<compile_context>
chip_gen: v6e
topology: v6e:2x2x1
jax: 0.10.0
libtpu: 0.0.40
codegen_flags: <defaults>
</compile_context>

<pallas_src>
import numpy as np
import jax
import jax.numpy as jnp
from jax.experimental import pallas as pl
from jax.experimental.pallas import tpu as pltpu

# ----- model hyper-parameters (the PyTorch module's globals), kept small ----
RESNET_BLOCKS = 2
RESNET_INPUT_DEPTH = 4
RESNET_CHANNEL_DEPTH = 8
PROGRAM_SIZE = 16
PROGRAM_WIDTH = PROGRAM_SIZE
PROGRAM_HEIGHT = PROGRAM_SIZE
VOCAB_LEN = 32
BN_EPS = 1e-5

CPAD = 8                               # channels padded to one full sublane group
N_TRUNK_CONVS = 1 + 2 * RESNET_BLOCKS  # conv1 + 2 convs per residual block
HEAD_N = 256 + VOCAB_LEN               # fused head-GEMM output width (288)
HI = jax.lax.Precision.HIGHEST

# "smalls" slab row layout ([CPAD + 4, HEAD_N] f32):
_SM_TBIAS = 0            # rows 0:8   trunk folded BN biases (column l = layer l)
_SM_HBIAS = CPAD         # row 8      [v1b (0:256) | plb (256:288)]
_SM_V2 = CPAD + 1        # row 9      v2w in cols 0:256, v2b at col 256
_SM_PVW = CPAD + 2       # rows 10:12 fused 1x1 conv weights (cols 0:8), bias col 8


# ------------------------------- the kernel ---------------------------------
def golai_zero_kernel(
    xm_ref,             # [CPAD + 9, B*S]  rows 0:8 input (channels padded),
                        #                  rows 8:17 per-tap validity mask
    tw_ref,             # [5, C, 9*CPAD]   trunk conv weights (BN scale folded in)
    hw_ref,             # [S, 288]         fused head weight [v1w | plw]
    sm_ref,             # [CPAD+4, 288]    smalls slab (see layout above)
    out_ref,            # [B, V+1]         cols 0:V = log-softmax policy, col V = value
    patch_ref,          # [9*CPAD, B*S]    VMEM scratch: im2col patch matrix
):
    _, N = patch_ref.shape
    B = out_ref.shape[0]
    S = N // B
    V = VOCAB_LEN
    row = PROGRAM_SIZE                 # innermost spatial extent of the flattening

    def conv3x3(feat, layer):
        # Build the im2col patch matrix tap-by-tap into VMEM scratch (keeps the
        # live set small; no 36-vreg concatenate), then one MXU matmul (K=72).
        # The rolls may wrap across image/batch boundaries, but every such tap
        # is zeroed by the mask row ('same' zero padding invariant).
        for k in range(9):
            dy, dx = divmod(k, 3)
            off = (dy - 1) * row + (dx - 1)
            shift = (-off) % N
            tap = pltpu.roll(feat, shift=shift, axis=1) if shift else feat
            if k != 4:     # center tap never touches the zero padding
                tap = tap * xm_ref[CPAD + k:CPAD + k + 1, :]   # mask row, bcast
            patch_ref[k * CPAD:(k + 1) * CPAD, :] = tap
        out = jnp.dot(tw_ref[layer], patch_ref[...],
                      preferred_element_type=jnp.float32, precision=HI)  # [C, N]
        return out + sm_ref[_SM_TBIAS:_SM_TBIAS + CPAD, layer:layer + 1]  # BN bias

    # ---------------- trunk: conv1 + bn1, then residual blocks ---------------
    feat = conv3x3(xm_ref[0:CPAD, :], 0)                     # no ReLU (matches module)
    for blk in range(RESNET_BLOCKS):
        out = jnp.maximum(conv3x3(feat, 1 + 2 * blk), 0.0)   # relu(bn(conv1))
        out = conv3x3(out, 2 + 2 * blk)                      # bn(conv2)
        feat = jnp.maximum(out + feat, 0.0)                  # relu(out + x)

    # --------------- fused policy/value 1x1 convs (one matmul) ---------------
    pvw = sm_ref[_SM_PVW:_SM_PVW + 2, 0:CPAD]                # [2, C]
    pvb = sm_ref[_SM_PVW:_SM_PVW + 2, CPAD:CPAD + 1]         # [2, 1]
    pv = jnp.dot(pvw, feat, preferred_element_type=jnp.float32, precision=HI)
    pv = jnp.maximum(pv + pvb, 0.0)                          # [2, N]; row0=p, row1=v

    # single lanes->rows relayout: [2, N] -> [2B, S] (p rows first, then v rows)
    lhs = jnp.concatenate(
        [pv[0:1, b * S:(b + 1) * S] for b in range(B)] +
        [pv[1:2, b * S:(b + 1) * S] for b in range(B)], axis=0)

    # ------------- fused head GEMM: [2B,S] @ [S, 256+V] + bias row ------------
    hb = sm_ref[_SM_HBIAS:_SM_HBIAS + 1, :]                  # [1, 288] = [v1b | plb]
    ho = jnp.dot(lhs, hw_ref[...], preferred_element_type=jnp.float32,
                 precision=HI) + hb                          # [2B, 288]

    # PolicyHead tail: log-softmax over the logits block
    logits = ho[0:B, 256:]                                   # [B, V]
    m = jnp.max(logits, axis=-1, keepdims=True)
    sh = logits - m
    lse = jnp.log(jnp.sum(jnp.exp(sh), axis=-1, keepdims=True))
    out_ref[:, 0:V] = (sh - lse).astype(out_ref.dtype)

    # ValueHead tail: relu -> (VPU mul + lane reduce) instead of a 3rd matmul
    h = jnp.maximum(ho[B:2 * B, 0:256], 0.0)                 # [B, 256]
    v2w = sm_ref[_SM_V2:_SM_V2 + 1, 0:256]                   # [1, 256]
    v2b = sm_ref[_SM_V2:_SM_V2 + 1, 256:257]                 # [1, 1]
    val = jnp.tanh(jnp.sum(h * v2w, axis=-1, keepdims=True) + v2b)
    out_ref[:, V:V + 1] = val.astype(out_ref.dtype)


# ------------------------------ parameters ----------------------------------
def _fold_bn(conv_bias, gamma, beta, running_mean, running_var, eps=BN_EPS):
    scale = gamma / jnp.sqrt(running_var + eps)
    bias = scale * (conv_bias - running_mean) + beta
    return scale, bias


def _conv_bn_params(key, cin, cout, taps=9):
    # conv weight convention: w[3*dy+dx, ci, co] == torch_weight[co, ci, dy, dx]
    ks = jax.random.split(key, 6)
    w = 0.1 * jax.random.normal(ks[0], (taps, cin, cout), jnp.float32)
    b = 0.1 * jax.random.normal(ks[1], (cout,), jnp.float32)
    gamma = 1.0 + 0.1 * jax.random.normal(ks[2], (cout,), jnp.float32)
    beta = 0.1 * jax.random.normal(ks[3], (cout,), jnp.float32)
    mean = 0.1 * jax.random.normal(ks[4], (cout,), jnp.float32)
    var = 1.0 + 0.1 * jax.random.uniform(ks[5], (cout,), jnp.float32)
    scale, bias = _fold_bn(b, gamma, beta, mean, var)
    return w, scale, bias


def _conv1x1_bn_params(key, cin):
    ks = jax.random.split(key, 6)
    w = 0.1 * jax.random.normal(ks[0], (cin, 1), jnp.float32)
    b = 0.1 * jax.random.normal(ks[1], (1,), jnp.float32)
    gamma = 1.0 + 0.1 * jax.random.normal(ks[2], (1,), jnp.float32)
    beta = 0.1 * jax.random.normal(ks[3], (1,), jnp.float32)
    mean = 0.1 * jax.random.normal(ks[4], (1,), jnp.float32)
    var = 1.0 + 0.1 * jax.random.uniform(ks[5], (1,), jnp.float32)
    scale, bias = _fold_bn(b, gamma, beta, mean, var)
    return w, scale, bias


def init_golai_params(key):
    """Natural (unpacked) parameters of the eval-mode GolaiZero model."""
    assert RESNET_BLOCKS == 2, "kernel operand packing assumes 2 residual blocks"
    ks = jax.random.split(key, 16)
    trunk = [_conv_bn_params(ks[0], RESNET_INPUT_DEPTH, RESNET_CHANNEL_DEPTH)]
    for i in range(RESNET_BLOCKS):
        trunk.append(_conv_bn_params(ks[1 + 2 * i],
                                     RESNET_CHANNEL_DEPTH, RESNET_CHANNEL_DEPTH))
        trunk.append(_conv_bn_params(ks[2 + 2 * i],
                                     RESNET_CHANNEL_DEPTH, RESNET_CHANNEL_DEPTH))
    pconv = _conv1x1_bn_params(ks[6], RESNET_CHANNEL_DEPTH)
    klw, klb = jax.random.split(ks[7])
    plw = 0.1 * jax.random.normal(klw, (PROGRAM_SIZE ** 2, VOCAB_LEN), jnp.float32)
    plb = 0.1 * jax.random.normal(klb, (VOCAB_LEN,), jnp.float32)
    vconv = _conv1x1_bn_params(ks[8], RESNET_CHANNEL_DEPTH)
    k1w, k1b, k2w, k2b = jax.random.split(ks[9], 4)
    v1w = 0.1 * jax.random.normal(k1w, (PROGRAM_SIZE ** 2, 256), jnp.float32)
    v1b = 0.1 * jax.random.normal(k1b, (256,), jnp.float32)
    v2w = 0.1 * jax.random.normal(k2w, (256, 1), jnp.float32)
    v2b = 0.1 * jax.random.normal(k2b, (1,), jnp.float32)
    return dict(trunk=trunk, pconv=pconv, plw=plw, plb=plb,
                vconv=vconv, v1w=v1w, v1b=v1b, v2w=v2w, v2b=v2b)


def _pack_conv3x3(w, scale, bias, cpad=CPAD):
    """[9,cin,cout] conv + folded BN -> ([cout, 9*cpad] weight, [cout] bias)."""
    taps, cin, cout = w.shape
    w = w * scale.reshape(1, 1, cout)                        # fold BN scale
    w = jnp.pad(w, ((0, 0), (0, cpad - cin), (0, 0)))
    wp = jnp.transpose(w, (2, 0, 1)).reshape(cout, taps * cpad)
    return wp, bias


def pack_golai_params(nat):
    """Pack natural params into the consolidated kernel operand tuple (3 arrays)."""
    tw, tb = [], []
    for (w, s, b) in nat["trunk"]:
        wp, bp = _pack_conv3x3(w, s, b)
        tw.append(wp)
        tb.append(np.asarray(bp))
    trunk_w = jnp.stack(tw)                                  # [5, C, 9*CPAD]

    # fused head weight: value linear1 first (cols 0:256), policy linear last.
    head_w = jnp.concatenate([nat["v1w"], nat["plw"]], axis=1)   # [S, 288]

    sm = np.zeros((CPAD + 4, HEAD_N), np.float32)
    for l, bp in enumerate(tb):
        sm[_SM_TBIAS:_SM_TBIAS + CPAD, l] = bp               # trunk folded biases
    sm[_SM_HBIAS, 0:256] = np.asarray(nat["v1b"])
    sm[_SM_HBIAS, 256:HEAD_N] = np.asarray(nat["plb"])
    sm[_SM_V2, 0:256] = np.asarray(nat["v2w"][:, 0])
    sm[_SM_V2, 256] = float(nat["v2b"][0])
    pw, ps, pb = nat["pconv"]
    vw, vs, vb = nat["vconv"]
    sm[_SM_PVW, 0:CPAD] = np.asarray(pw[:, 0] * ps[0])       # BN scale folded
    sm[_SM_PVW, CPAD] = float(pb[0])
    sm[_SM_PVW + 1, 0:CPAD] = np.asarray(vw[:, 0] * vs[0])
    sm[_SM_PVW + 1, CPAD] = float(vb[0])

    return (trunk_w, head_w, jnp.asarray(sm))


def _tap_mask(batch, h, w):
    """[9, batch*h*w] f32 validity mask of each rolled 3x3 tap ('same' pad)."""
    i = np.arange(batch * h * w)
    yy = (i // w) % h
    xx = i % w
    rows = []
    for k in range(9):
        dy, dx = divmod(k, 3)
        ok = ((yy + dy - 1 >= 0) & (yy + dy - 1 < h)
              & (xx + dx - 1 >= 0) & (xx + dx - 1 < w)).astype(np.float32)
        rows.append(ok)
    return jnp.asarray(np.stack(rows, axis=0))


# ------------------------------- wrapper -------------------------------------
@jax.jit
def golai_zero_forward(x, packed_params):
    trunk_w, head_w, smalls = packed_params
    # PyTorch: x.view(-1, RESNET_INPUT_DEPTH, PROGRAM_WIDTH, PROGRAM_HEIGHT)
    x = x.reshape(-1, RESNET_INPUT_DEPTH, PROGRAM_SIZE, PROGRAM_SIZE).astype(jnp.float32)
    B = x.shape[0]
    S = PROGRAM_SIZE * PROGRAM_SIZE
    assert S % 128 == 0, "lanes->rows slicing requires S to be a multiple of 128"
    N = B * S

    # NCHW -> channels-in-sublane / flat-space-in-lane [C, B*H*W], C padded to 8,
    # with the 9 tap-mask rows packed below it (single input operand).
    xT = jnp.transpose(x, (1, 0, 2, 3)).reshape(RESNET_INPUT_DEPTH, N)
    xT = jnp.pad(xT, ((0, CPAD - RESNET_INPUT_DEPTH), (0, 0)))
    xm = jnp.concatenate([xT, _tap_mask(B, PROGRAM_SIZE, PROGRAM_SIZE)], axis=0)

    vmem = pl.BlockSpec(memory_space=pltpu.MemorySpace.VMEM)
    out = pl.pallas_call(
        golai_zero_kernel,
        out_shape=jax.ShapeDtypeStruct((B, VOCAB_LEN + 1), jnp.float32),
        in_specs=[vmem] * 4,
        out_specs=vmem,
        scratch_shapes=[pltpu.VMEM((9 * CPAD, N), jnp.float32)],
    )(xm, trunk_w, head_w, smalls)
    return out[:, :VOCAB_LEN], out[:, VOCAB_LEN:VOCAB_LEN + 1]


# -------------------------- pure-JAX reference -------------------------------
def golai_zero_reference(x, nat):
    """Eval-mode reference (same folded-BN semantics), f32-precision matmuls."""
    x = x.reshape(-1, RESNET_INPUT_DEPTH, PROGRAM_SIZE, PROGRAM_SIZE).astype(jnp.float32)
    B = x.shape[0]

    def conv3x3_bn(x_nchw, w, scale, bias):
        _, _, H, W = x_nchw.shape
        cout = w.shape[2]
        xp = jnp.pad(x_nchw, ((0, 0), (0, 0), (1, 1), (1, 1)))
        out = jnp.zeros((x_nchw.shape[0], cout, H, W), jnp.float32)
        for dy in range(3):
            for dx in range(3):
                patch = xp[:, :, dy:dy + H, dx:dx + W]
                out = out + jnp.einsum('bchw,cd->bdhw', patch, w[3 * dy + dx],
                                       precision=HI)
        return out * scale.reshape(1, cout, 1, 1) + bias.reshape(1, cout, 1, 1)

    trunk = nat["trunk"]
    feat = conv3x3_bn(x, *trunk[0])
    for blk in range(RESNET_BLOCKS):
        out = jax.nn.relu(conv3x3_bn(feat, *trunk[1 + 2 * blk]))
        out = conv3x3_bn(out, *trunk[2 + 2 * blk])
        feat = jax.nn.relu(out + feat)

    pw, ps, pb = nat["pconv"]
    p = jax.nn.relu(jnp.einsum('bchw,co->bohw', feat, pw, precision=HI) * ps + pb)
    p = p.reshape(B, -1)
    policy = jax.nn.log_softmax(jnp.dot(p, nat["plw"], precision=HI) + nat["plb"],
                                axis=1)

    vw, vs, vb = nat["vconv"]
    v = jax.nn.relu(jnp.einsum('bchw,co->bohw', feat, vw, precision=HI) * vs + vb)
    v = v.reshape(B, -1)
    h = jax.nn.relu(jnp.dot(v, nat["v1w"], precision=HI) + nat["v1b"])
    value = jnp.tanh(jnp.dot(h, nat["v2w"], precision=HI) + nat["v2b"])
    return policy, value


if __name__ == "__main__":
    key = jax.random.PRNGKey(0)
    pkey, xkey = jax.random.split(key)
    nat_params = init_golai_params(pkey)
    packed = pack_golai_params(nat_params)

    x = jax.random.normal(
        xkey, (2, RESNET_INPUT_DEPTH, PROGRAM_WIDTH, PROGRAM_HEIGHT), jnp.float32)

    policy, value = golai_zero_forward(x, packed)
    jax.block_until_ready((policy, value))

    assert policy.shape == (2, VOCAB_LEN) and value.shape == (2, 1)
    assert bool(jnp.all(jnp.isfinite(policy))) and bool(jnp.all(jnp.isfinite(value)))

    # Correctness check against a pure-JAX reference.  In-kernel dots run at
    # precision=HIGHEST, so the tolerance only needs to absorb summation-order
    # differences; structural bugs would produce O(1) differences.
    ref_policy, ref_value = golai_zero_reference(x, nat_params)
    assert float(jnp.max(jnp.abs(policy - ref_policy))) < 5e-3
    assert float(jnp.max(jnp.abs(value - ref_value))) < 5e-3

    print("KERNEL_OK")
</pallas_src>

<mosaic_0001>
module attributes {stable_mosaic.version = 11 : i64} {
  func.func @golai_zero_kernel(%arg0: memref<17x512xf32, #tpu.memory_space<vmem>>, %arg1: memref<5x8x72xf32, #tpu.memory_space<vmem>>, %arg2: memref<256x288xf32, #tpu.memory_space<vmem>>, %arg3: memref<12x288xf32, #tpu.memory_space<vmem>>, %arg4: memref<2x33xf32, #tpu.memory_space<vmem>>, %arg5: memref<72x512xf32, #tpu.memory_space<vmem>>) attributes {dimension_semantics = [], scalar_prefetch = 0 : i64, scratch_operands = 1 : i64, tpu.core_type = #tpu.core_type<tc>} {
    %c0 = arith.constant 0 : index
    %c0_0 = arith.constant 0 : index
    %0 = vector.load %arg0[%c0, %c0_0] : memref<17x512xf32, #tpu.memory_space<vmem>>, vector<8x512xf32>
    %c17_i32 = arith.constant 17 : i32
    %1 = tpu.dynamic_rotate %0 by %c17_i32 dim 1 : vector<8x512xf32>, i32 -> vector<8x512xf32>
    %c8 = arith.constant 8 : index
    %c0_1 = arith.constant 0 : index
    %2 = vector.load %arg0[%c8, %c0_1] : memref<17x512xf32, #tpu.memory_space<vmem>>, vector<1x512xf32>
    %3 = vector.broadcast %2 : vector<1x512xf32> to vector<8x512xf32>
    %4 = arith.mulf %1, %3 : vector<8x512xf32>
    %c0_2 = arith.constant 0 : index
    %c0_3 = arith.constant 0 : index
    %5 = vector.load %arg5[%c0_2, %c0_3] : memref<72x512xf32, #tpu.memory_space<vmem>>, vector<8x512xf32>
    tpu.vector_store %arg5[%c0_2, %c0_3], %4 {strides = array<i32>} : memref<72x512xf32, #tpu.memory_space<vmem>>, vector<8x512xf32>,
    %c16_i32 = arith.constant 16 : i32
    %6 = tpu.dynamic_rotate %0 by %c16_i32 dim 1 : vector<8x512xf32>, i32 -> vector<8x512xf32>
    %c9 = arith.constant 9 : index
    %c0_4 = arith.constant 0 : index
    %7 = vector.load %arg0[%c9, %c0_4] : memref<17x512xf32, #tpu.memory_space<vmem>>, vector<1x512xf32>
    %8 = vector.broadcast %7 : vector<1x512xf32> to vector<8x512xf32>
    %9 = arith.mulf %6, %8 : vector<8x512xf32>
    %c8_5 = arith.constant 8 : index
    %c0_6 = arith.constant 0 : index
    %10 = vector.load %arg5[%c8_5, %c0_6] : memref<72x512xf32, #tpu.memory_space<vmem>>, vector<8x512xf32>
    tpu.vector_store %arg5[%c8_5, %c0_6], %9 {strides = array<i32>} : memref<72x512xf32, #tpu.memory_space<vmem>>, vector<8x512xf32>,
    %c15_i32 = arith.constant 15 : i32
    %11 = tpu.dynamic_rotate %0 by %c15_i32 dim 1 : vector<8x512xf32>, i32 -> vector<8x512xf32>
    %c10 = arith.constant 10 : index
    %c0_7 = arith.constant 0 : index
    %12 = vector.load %arg0[%c10, %c0_7] : memref<17x512xf32, #tpu.memory_space<vmem>>, vector<1x512xf32>
    %13 = vector.broadcast %12 : vector<1x512xf32> to vector<8x512xf32>
    %14 = arith.mulf %11, %13 : vector<8x512xf32>
    %c16 = arith.constant 16 : index
    %c0_8 = arith.constant 0 : index
    %15 = vector.load %arg5[%c16, %c0_8] : memref<72x512xf32, #tpu.memory_space<vmem>>, vector<8x512xf32>
    tpu.vector_store %arg5[%c16, %c0_8], %14 {strides = array<i32>} : memref<72x512xf32, #tpu.memory_space<vmem>>, vector<8x512xf32>,
    %c1_i32 = arith.constant 1 : i32
    %16 = tpu.dynamic_rotate %0 by %c1_i32 dim 1 : vector<8x512xf32>, i32 -> vector<8x512xf32>
    %c11 = arith.constant 11 : index
    %c0_9 = arith.constant 0 : index
    %17 = vector.load %arg0[%c11, %c0_9] : memref<17x512xf32, #tpu.memory_space<vmem>>, vector<1x512xf32>
    %18 = vector.broadcast %17 : vector<1x512xf32> to vector<8x512xf32>
    %19 = arith.mulf %16, %18 : vector<8x512xf32>
    %c24 = arith.constant 24 : index
    %c0_10 = arith.constant 0 : index
    %20 = vector.load %arg5[%c24, %c0_10] : memref<72x512xf32, #tpu.memory_space<vmem>>, vector<8x512xf32>
    tpu.vector_store %arg5[%c24, %c0_10], %19 {strides = array<i32>} : memref<72x512xf32, #tpu.memory_space<vmem>>, vector<8x512xf32>,
    %c32 = arith.constant 32 : index
    %c0_11 = arith.constant 0 : index
    %21 = vector.load %arg5[%c32, %c0_11] : memref<72x512xf32, #tpu.memory_space<vmem>>, vector<8x512xf32>
    tpu.vector_store %arg5[%c32, %c0_11], %0 {strides = array<i32>} : memref<72x512xf32, #tpu.memory_space<vmem>>, vector<8x512xf32>,
    %c511_i32 = arith.constant 511 : i32
    %22 = tpu.dynamic_rotate %0 by %c511_i32 dim 1 : vector<8x512xf32>, i32 -> vector<8x512xf32>
    %c13 = arith.constant 13 : index
    %c0_12 = arith.constant 0 : index
    %23 = vector.load %arg0[%c13, %c0_12] : memref<17x512xf32, #tpu.memory_space<vmem>>, vector<1x512xf32>
    %24 = vector.broadcast %23 : vector<1x512xf32> to vector<8x512xf32>
    %25 = arith.mulf %22, %24 : vector<8x512xf32>
    %c40 = arith.constant 40 : index
    %c0_13 = arith.constant 0 : index
    %26 = vector.load %arg5[%c40, %c0_13] : memref<72x512xf32, #tpu.memory_space<vmem>>, vector<8x512xf32>
    tpu.vector_store %arg5[%c40, %c0_13], %25 {strides = array<i32>} : memref<72x512xf32, #tpu.memory_space<vmem>>, vector<8x512xf32>,
    %c497_i32 = arith.constant 497 : i32
    %27 = tpu.dynamic_rotate %0 by %c497_i32 dim 1 : vector<8x512xf32>, i32 -> vector<8x512xf32>
    %c14 = arith.constant 14 : index
    %c0_14 = arith.constant 0 : index
    %28 = vector.load %arg0[%c14, %c0_14] : memref<17x512xf32, #tpu.memory_space<vmem>>, vector<1x512xf32>
    %29 = vector.broadcast %28 : vector<1x512xf32> to vector<8x512xf32>
    %30 = arith.mulf %27, %29 : vector<8x512xf32>
    %c48 = arith.constant 48 : index
    %c0_15 = arith.constant 0 : index
    %31 = vector.load %arg5[%c48, %c0_15] : memref<72x512xf32, #tpu.memory_space<vmem>>, vector<8x512xf32>
    tpu.vector_store %arg5[%c48, %c0_15], %30 {strides = array<i32>} : memref<72x512xf32, #tpu.memory_space<vmem>>, vector<8x512xf32>,
    %c496_i32 = arith.constant 496 : i32
    %32 = tpu.dynamic_rotate %0 by %c496_i32 dim 1 : vector<8x512xf32>, i32 -> vector<8x512xf32>
    %c15 = arith.constant 15 : index
    %c0_16 = arith.constant 0 : index
    %33 = vector.load %arg0[%c15, %c0_16] : memref<17x512xf32, #tpu.memory_space<vmem>>, vector<1x512xf32>
    %34 = vector.broadcast %33 : vector<1x512xf32> to vector<8x512xf32>
    %35 = arith.mulf %32, %34 : vector<8x512xf32>
    %c56 = arith.constant 56 : index
    %c0_17 = arith.constant 0 : index
    %36 = vector.load %arg5[%c56, %c0_17] : memref<72x512xf32, #tpu.memory_space<vmem>>, vector<8x512xf32>
    tpu.vector_store %arg5[%c56, %c0_17], %35 {strides = array<i32>} : memref<72x512xf32, #tpu.memory_space<vmem>>, vector<8x512xf32>,
    %c495_i32 = arith.constant 495 : i32
    %37 = tpu.dynamic_rotate %0 by %c495_i32 dim 1 : vector<8x512xf32>, i32 -> vector<8x512xf32>
    %c16_18 = arith.constant 16 : index
    %c0_19 = arith.constant 0 : index
    %38 = vector.load %arg0[%c16_18, %c0_19] : memref<17x512xf32, #tpu.memory_space<vmem>>, vector<1x512xf32>
    %39 = vector.broadcast %38 : vector<1x512xf32> to vector<8x512xf32>
    %40 = arith.mulf %37, %39 : vector<8x512xf32>
    %c64 = arith.constant 64 : index
    %c0_20 = arith.constant 0 : index
    %41 = vector.load %arg5[%c64, %c0_20] : memref<72x512xf32, #tpu.memory_space<vmem>>, vector<8x512xf32>
    tpu.vector_store %arg5[%c64, %c0_20], %40 {strides = array<i32>} : memref<72x512xf32, #tpu.memory_space<vmem>>, vector<8x512xf32>,
    %c0_21 = arith.constant 0 : index
    %c0_22 = arith.constant 0 : index
    %c0_23 = arith.constant 0 : index
    %42 = vector.load %arg1[%c0_21, %c0_22, %c0_23] : memref<5x8x72xf32, #tpu.memory_space<vmem>>, vector<1x8x72xf32>
    %43 = vector.shape_cast %42 : vector<1x8x72xf32> to vector<8x72xf32>
    %c0_24 = arith.constant 0 : index
    %c0_25 = arith.constant 0 : index
    %44 = vector.load %arg5[%c0_24, %c0_25] : memref<72x512xf32, #tpu.memory_space<vmem>>, vector<72x512xf32>
    %cst = arith.constant dense<0.000000e+00> : vector<8x512xf32>
    %45 = tpu.matmul %43, %44, %cst {dimension_numbers = #tpu.dot_dimension_numbers<[1], [0], [0], [1], [0, 0, 1, 1], [], []>, precision = #tpu.contract_precision<fp32>} : vector<8x72xf32>, vector<72x512xf32>, vector<8x512xf32> -> vector<8x512xf32>
    %c0_26 = arith.constant 0 : index
    %c0_27 = arith.constant 0 : index
    %46 = vector.load %arg3[%c0_26, %c0_27] : memref<12x288xf32, #tpu.memory_space<vmem>>, vector<8x1xf32>
    %47 = vector.broadcast %46 : vector<8x1xf32> to vector<8x512xf32>
    %48 = arith.addf %45, %47 : vector<8x512xf32>
    %c17_i32_28 = arith.constant 17 : i32
    %49 = tpu.dynamic_rotate %48 by %c17_i32_28 dim 1 : vector<8x512xf32>, i32 -> vector<8x512xf32>
    %c8_29 = arith.constant 8 : index
    %c0_30 = arith.constant 0 : index
    %50 = vector.load %arg0[%c8_29, %c0_30] : memref<17x512xf32, #tpu.memory_space<vmem>>, vector<1x512xf32>
    %51 = vector.broadcast %50 : vector<1x512xf32> to vector<8x512xf32>
    %52 = arith.mulf %49, %51 : vector<8x512xf32>
    %c0_31 = arith.constant 0 : index
    %c0_32 = arith.constant 0 : index
    %53 = vector.load %arg5[%c0_31, %c0_32] : memref<72x512xf32, #tpu.memory_space<vmem>>, vector<8x512xf32>
    tpu.vector_store %arg5[%c0_31, %c0_32], %52 {strides = array<i32>} : memref<72x512xf32, #tpu.memory_space<vmem>>, vector<8x512xf32>,
    %c16_i32_33 = arith.constant 16 : i32
    %54 = tpu.dynamic_rotate %48 by %c16_i32_33 dim 1 : vector<8x512xf32>, i32 -> vector<8x512xf32>
    %c9_34 = arith.constant 9 : index
    %c0_35 = arith.constant 0 : index
    %55 = vector.load %arg0[%c9_34, %c0_35] : memref<17x512xf32, #tpu.memory_space<vmem>>, vector<1x512xf32>
    %56 = vector.broadcast %55 : vector<1x512xf32> to vector<8x512xf32>
    %57 = arith.mulf %54, %56 : vector<8x512xf32>
    %c8_36 = arith.constant 8 : index
    %c0_37 = arith.constant 0 : index
    %58 = vector.load %arg5[%c8_36, %c0_37] : memref<72x512xf32, #tpu.memory_space<vmem>>, vector<8x512xf32>
    tpu.vector_store %arg5[%c8_36, %c0_37], %57 {strides = array<i32>} : memref<72x512xf32, #tpu.memory_space<vmem>>, vector<8x512xf32>,
    %c15_i32_38 = arith.constant 15 : i32
    %59 = tpu.dynamic_rotate %48 by %c15_i32_38 dim 1 : vector<8x512xf32>, i32 -> vector<8x512xf32>
    %c10_39 = arith.constant 10 : index
    %c0_40 = arith.constant 0 : index
    %60 = vector.load %arg0[%c10_39, %c0_40] : memref<17x512xf32, #tpu.memory_space<vmem>>, vector<1x512xf32>
    %61 = vector.broadcast %60 : vector<1x512xf32> to vector<8x512xf32>
    %62 = arith.mulf %59, %61 : vector<8x512xf32>
    %c16_41 = arith.constant 16 : index
    %c0_42 = arith.constant 0 : index
    %63 = vector.load %arg5[%c16_41, %c0_42] : memref<72x512xf32, #tpu.memory_space<vmem>>, vector<8x512xf32>
    tpu.vector_store %arg5[%c16_41, %c0_42], %62 {strides = array<i32>} : memref<72x512xf32, #tpu.memory_space<vmem>>, vector<8x512xf32>,
    %c1_i32_43 = arith.constant 1 : i32
    %64 = tpu.dynamic_rotate %48 by %c1_i32_43 dim 1 : vector<8x512xf32>, i32 -> vector<8x512xf32>
    %c11_44 = arith.constant 11 : index
    %c0_45 = arith.constant 0 : index
    %65 = vector.load %arg0[%c11_44, %c0_45] : memref<17x512xf32, #tpu.memory_space<vmem>>, vector<1x512xf32>
    %66 = vector.broadcast %65 : vector<1x512xf32> to vector<8x512xf32>
    %67 = arith.mulf %64, %66 : vector<8x512xf32>
    %c24_46 = arith.constant 24 : index
    %c0_47 = arith.constant 0 : index
    %68 = vector.load %arg5[%c24_46, %c0_47] : memref<72x512xf32, #tpu.memory_space<vmem>>, vector<8x512xf32>
    tpu.vector_store %arg5[%c24_46, %c0_47], %67 {strides = array<i32>} : memref<72x512xf32, #tpu.memory_space<vmem>>, vector<8x512xf32>,
    %c32_48 = arith.constant 32 : index
    %c0_49 = arith.constant 0 : index
    %69 = vector.load %arg5[%c32_48, %c0_49] : memref<72x512xf32, #tpu.memory_space<vmem>>, vector<8x512xf32>
    tpu.vector_store %arg5[%c32_48, %c0_49], %48 {strides = array<i32>} : memref<72x512xf32, #tpu.memory_space<vmem>>, vector<8x512xf32>,
    %c511_i32_50 = arith.constant 511 : i32
    %70 = tpu.dynamic_rotate %48 by %c511_i32_50 dim 1 : vector<8x512xf32>, i32 -> vector<8x512xf32>
    %c13_51 = arith.constant 13 : index
    %c0_52 = arith.constant 0 : index
    %71 = vector.load %arg0[%c13_51, %c0_52] : memref<17x512xf32, #tpu.memory_space<vmem>>, vector<1x512xf32>
    %72 = vector.broadcast %71 : vector<1x512xf32> to vector<8x512xf32>
    %73 = arith.mulf %70, %72 : vector<8x512xf32>
    %c40_53 = arith.constant 40 : index
    %c0_54 = arith.constant 0 : index
    %74 = vector.load %arg5[%c40_53, %c0_54] : memref<72x512xf32, #tpu.memory_space<vmem>>, vector<8x512xf32>
    tpu.vector_store %arg5[%c40_53, %c0_54], %73 {strides = array<i32>} : memref<72x512xf32, #tpu.memory_space<vmem>>, vector<8x512xf32>,
    %c497_i32_55 = arith.constant 497 : i32
    %75 = tpu.dynamic_rotate %48 by %c497_i32_55 dim 1 : vector<8x512xf32>, i32 -> vector<8x512xf32>
    %c14_56 = arith.constant 14 : index
    %c0_57 = arith.constant 0 : index
    %76 = vector.load %arg0[%c14_56, %c0_57] : memref<17x512xf32, #tpu.memory_space<vmem>>, vector<1x512xf32>
    %77 = vector.broadcast %76 : vector<1x512xf32> to vector<8x512xf32>
    %78 = arith.mulf %75, %77 : vector<8x512xf32>
    %c48_58 = arith.constant 48 : index
    %c0_59 = arith.constant 0 : index
    %79 = vector.load %arg5[%c48_58, %c0_59] : memref<72x512xf32, #tpu.memory_space<vmem>>, vector<8x512xf32>
    tpu.vector_store %arg5[%c48_58, %c0_59], %78 {strides = array<i32>} : memref<72x512xf32, #tpu.memory_space<vmem>>, vector<8x512xf32>,
    %c496_i32_60 = arith.constant 496 : i32
    %80 = tpu.dynamic_rotate %48 by %c496_i32_60 dim 1 : vector<8x512xf32>, i32 -> vector<8x512xf32>
    %c15_61 = arith.constant 15 : index
    %c0_62 = arith.constant 0 : index
    %81 = vector.load %arg0[%c15_61, %c0_62] : memref<17x512xf32, #tpu.memory_space<vmem>>, vector<1x512xf32>
    %82 = vector.broadcast %81 : vector<1x512xf32> to vector<8x512xf32>
    %83 = arith.mulf %80, %82 : vector<8x512xf32>
    %c56_63 = arith.constant 56 : index
    %c0_64 = arith.constant 0 : index
    %84 = vector.load %arg5[%c56_63, %c0_64] : memref<72x512xf32, #tpu.memory_space<vmem>>, vector<8x512xf32>
    tpu.vector_store %arg5[%c56_63, %c0_64], %83 {strides = array<i32>} : memref<72x512xf32, #tpu.memory_space<vmem>>, vector<8x512xf32>,
    %c495_i32_65 = arith.constant 495 : i32
    %85 = tpu.dynamic_rotate %48 by %c495_i32_65 dim 1 : vector<8x512xf32>, i32 -> vector<8x512xf32>
    %c16_66 = arith.constant 16 : index
    %c0_67 = arith.constant 0 : index
    %86 = vector.load %arg0[%c16_66, %c0_67] : memref<17x512xf32, #tpu.memory_space<vmem>>, vector<1x512xf32>
    %87 = vector.broadcast %86 : vector<1x512xf32> to vector<8x512xf32>
    %88 = arith.mulf %85, %87 : vector<8x512xf32>
    %c64_68 = arith.constant 64 : index
    %c0_69 = arith.constant 0 : index
    %89 = vector.load %arg5[%c64_68, %c0_69] : memref<72x512xf32, #tpu.memory_space<vmem>>, vector<8x512xf32>
    tpu.vector_store %arg5[%c64_68, %c0_69], %88 {strides = array<i32>} : memref<72x512xf32, #tpu.memory_space<vmem>>, vector<8x512xf32>,
    %c1 = arith.constant 1 : index
    %c0_70 = arith.constant 0 : index
    %c0_71 = arith.constant 0 : index
    %90 = vector.load %arg1[%c1, %c0_70, %c0_71] : memref<5x8x72xf32, #tpu.memory_space<vmem>>, vector<1x8x72xf32>
    %91 = vector.shape_cast %90 : vector<1x8x72xf32> to vector<8x72xf32>
    %c0_72 = arith.constant 0 : index
    %c0_73 = arith.constant 0 : index
    %92 = vector.load %arg5[%c0_72, %c0_73] : memref<72x512xf32, #tpu.memory_space<vmem>>, vector<72x512xf32>
    %cst_74 = arith.constant dense<0.000000e+00> : vector<8x512xf32>
    %93 = tpu.matmul %91, %92, %cst_74 {dimension_numbers = #tpu.dot_dimension_numbers<[1], [0], [0], [1], [0, 0, 1, 1], [], []>, precision = #tpu.contract_precision<fp32>} : vector<8x72xf32>, vector<72x512xf32>, vector<8x512xf32> -> vector<8x512xf32>
    %c0_75 = arith.constant 0 : index
    %c1_76 = arith.constant 1 : index
    %94 = vector.load %arg3[%c0_75, %c1_76] : memref<12x288xf32, #tpu.memory_space<vmem>>, vector<8x1xf32>
    %95 = vector.broadcast %94 : vector<8x1xf32> to vector<8x512xf32>
    %96 = arith.addf %93, %95 : vector<8x512xf32>
    %cst_77 = arith.constant 0.000000e+00 : f32
    %97 = vector.broadcast %cst_77 : f32 to vector<8x512xf32>
    %98 = arith.maximumf %96, %97 : vector<8x512xf32>
    %c17_i32_78 = arith.constant 17 : i32
    %99 = tpu.dynamic_rotate %98 by %c17_i32_78 dim 1 : vector<8x512xf32>, i32 -> vector<8x512xf32>
    %c8_79 = arith.constant 8 : index
    %c0_80 = arith.constant 0 : index
    %100 = vector.load %arg0[%c8_79, %c0_80] : memref<17x512xf32, #tpu.memory_space<vmem>>, vector<1x512xf32>
    %101 = vector.broadcast %100 : vector<1x512xf32> to vector<8x512xf32>
    %102 = arith.mulf %99, %101 : vector<8x512xf32>
    %c0_81 = arith.constant 0 : index
    %c0_82 = arith.constant 0 : index
    %103 = vector.load %arg5[%c0_81, %c0_82] : memref<72x512xf32, #tpu.memory_space<vmem>>, vector<8x512xf32>
    tpu.vector_store %arg5[%c0_81, %c0_82], %102 {strides = array<i32>} : memref<72x512xf32, #tpu.memory_space<vmem>>, vector<8x512xf32>,
    %c16_i32_83 = arith.constant 16 : i32
    %104 = tpu.dynamic_rotate %98 by %c16_i32_83 dim 1 : vector<8x512xf32>, i32 -> vector<8x512xf32>
    %c9_84 = arith.constant 9 : index
    %c0_85 = arith.constant 0 : index
    %105 = vector.load %arg0[%c9_84, %c0_85] : memref<17x512xf32, #tpu.memory_space<vmem>>, vector<1x512xf32>
    %106 = vector.broadcast %105 : vector<1x512xf32> to vector<8x512xf32>
    %107 = arith.mulf %104, %106 : vector<8x512xf32>
    %c8_86 = arith.constant 8 : index
    %c0_87 = arith.constant 0 : index
    %108 = vector.load %arg5[%c8_86, %c0_87] : memref<72x512xf32, #tpu.memory_space<vmem>>, vector<8x512xf32>
    tpu.vector_store %arg5[%c8_86, %c0_87], %107 {strides = array<i32>} : memref<72x512xf32, #tpu.memory_space<vmem>>, vector<8x512xf32>,
    %c15_i32_88 = arith.constant 15 : i32
    %109 = tpu.dynamic_rotate %98 by %c15_i32_88 dim 1 : vector<8x512xf32>, i32 -> vector<8x512xf32>
    %c10_89 = arith.constant 10 : index
    %c0_90 = arith.constant 0 : index
    %110 = vector.load %arg0[%c10_89, %c0_90] : memref<17x512xf32, #tpu.memory_space<vmem>>, vector<1x512xf32>
    %111 = vector.broadcast %110 : vector<1x512xf32> to vector<8x512xf32>
    %112 = arith.mulf %109, %111 : vector<8x512xf32>
    %c16_91 = arith.constant 16 : index
    %c0_92 = arith.constant 0 : index
    %113 = vector.load %arg5[%c16_91, %c0_92] : memref<72x512xf32, #tpu.memory_space<vmem>>, vector<8x512xf32>
    tpu.vector_store %arg5[%c16_91, %c0_92], %112 {strides = array<i32>} : memref<72x512xf32, #tpu.memory_space<vmem>>, vector<8x512xf32>,
    %c1_i32_93 = arith.constant 1 : i32
    %114 = tpu.dynamic_rotate %98 by %c1_i32_93 dim 1 : vector<8x512xf32>, i32 -> vector<8x512xf32>
    %c11_94 = arith.constant 11 : index
    %c0_95 = arith.constant 0 : index
    %115 = vector.load %arg0[%c11_94, %c0_95] : memref<17x512xf32, #tpu.memory_space<vmem>>, vector<1x512xf32>
    %116 = vector.broadcast %115 : vector<1x512xf32> to vector<8x512xf32>
    %117 = arith.mulf %114, %116 : vector<8x512xf32>
    %c24_96 = arith.constant 24 : index
    %c0_97 = arith.constant 0 : index
    %118 = vector.load %arg5[%c24_96, %c0_97] : memref<72x512xf32, #tpu.memory_space<vmem>>, vector<8x512xf32>
    tpu.vector_store %arg5[%c24_96, %c0_97], %117 {strides = array<i32>} : memref<72x512xf32, #tpu.memory_space<vmem>>, vector<8x512xf32>,
    %c32_98 = arith.constant 32 : index
    %c0_99 = arith.constant 0 : index
    %119 = vector.load %arg5[%c32_98, %c0_99] : memref<72x512xf32, #tpu.memory_space<vmem>>, vector<8x512xf32>
    tpu.vector_store %arg5[%c32_98, %c0_99], %98 {strides = array<i32>} : memref<72x512xf32, #tpu.memory_space<vmem>>, vector<8x512xf32>,
    %c511_i32_100 = arith.constant 511 : i32
    %120 = tpu.dynamic_rotate %98 by %c511_i32_100 dim 1 : vector<8x512xf32>, i32 -> vector<8x512xf32>
    %c13_101 = arith.constant 13 : index
    %c0_102 = arith.constant 0 : index
    %121 = vector.load %arg0[%c13_101, %c0_102] : memref<17x512xf32, #tpu.memory_space<vmem>>, vector<1x512xf32>
    %122 = vector.broadcast %121 : vector<1x512xf32> to vector<8x512xf32>
    %123 = arith.mulf %120, %122 : vector<8x512xf32>
    %c40_103 = arith.constant 40 : index
    %c0_104 = arith.constant 0 : index
    %124 = vector.load %arg5[%c40_103, %c0_104] : memref<72x512xf32, #tpu.memory_space<vmem>>, vector<8x512xf32>
    tpu.vector_store %arg5[%c40_103, %c0_104], %123 {strides = array<i32>} : memref<72x512xf32, #tpu.memory_space<vmem>>, vector<8x512xf32>,
    %c497_i32_105 = arith.constant 497 : i32
    %125 = tpu.dynamic_rotate %98 by %c497_i32_105 dim 1 : vector<8x512xf32>, i32 -> vector<8x512xf32>
    %c14_106 = arith.constant 14 : index
    %c0_107 = arith.constant 0 : index
    %126 = vector.load %arg0[%c14_106, %c0_107] : memref<17x512xf32, #tpu.memory_space<vmem>>, vector<1x512xf32>
    %127 = vector.broadcast %126 : vector<1x512xf32> to vector<8x512xf32>
    %128 = arith.mulf %125, %127 : vector<8x512xf32>
    %c48_108 = arith.constant 48 : index
    %c0_109 = arith.constant 0 : index
    %129 = vector.load %arg5[%c48_108, %c0_109] : memref<72x512xf32, #tpu.memory_space<vmem>>, vector<8x512xf32>
    tpu.vector_store %arg5[%c48_108, %c0_109], %128 {strides = array<i32>} : memref<72x512xf32, #tpu.memory_space<vmem>>, vector<8x512xf32>,
    %c496_i32_110 = arith.constant 496 : i32
    %130 = tpu.dynamic_rotate %98 by %c496_i32_110 dim 1 : vector<8x512xf32>, i32 -> vector<8x512xf32>
    %c15_111 = arith.constant 15 : index
    %c0_112 = arith.constant 0 : index
    %131 = vector.load %arg0[%c15_111, %c0_112] : memref<17x512xf32, #tpu.memory_space<vmem>>, vector<1x512xf32>
    %132 = vector.broadcast %131 : vector<1x512xf32> to vector<8x512xf32>
    %133 = arith.mulf %130, %132 : vector<8x512xf32>
    %c56_113 = arith.constant 56 : index
    %c0_114 = arith.constant 0 : index
    %134 = vector.load %arg5[%c56_113, %c0_114] : memref<72x512xf32, #tpu.memory_space<vmem>>, vector<8x512xf32>
    tpu.vector_store %arg5[%c56_113, %c0_114], %133 {strides = array<i32>} : memref<72x512xf32, #tpu.memory_space<vmem>>, vector<8x512xf32>,
    %c495_i32_115 = arith.constant 495 : i32
    %135 = tpu.dynamic_rotate %98 by %c495_i32_115 dim 1 : vector<8x512xf32>, i32 -> vector<8x512xf32>
    %c16_116 = arith.constant 16 : index
    %c0_117 = arith.constant 0 : index
    %136 = vector.load %arg0[%c16_116, %c0_117] : memref<17x512xf32, #tpu.memory_space<vmem>>, vector<1x512xf32>
    %137 = vector.broadcast %136 : vector<1x512xf32> to vector<8x512xf32>
    %138 = arith.mulf %135, %137 : vector<8x512xf32>
    %c64_118 = arith.constant 64 : index
    %c0_119 = arith.constant 0 : index
    %139 = vector.load %arg5[%c64_118, %c0_119] : memref<72x512xf32, #tpu.memory_space<vmem>>, vector<8x512xf32>
    tpu.vector_store %arg5[%c64_118, %c0_119], %138 {strides = array<i32>} : memref<72x512xf32, #tpu.memory_space<vmem>>, vector<8x512xf32>,
    %c2 = arith.constant 2 : index
    %c0_120 = arith.constant 0 : index
    %c0_121 = arith.constant 0 : index
    %140 = vector.load %arg1[%c2, %c0_120, %c0_121] : memref<5x8x72xf32, #tpu.memory_space<vmem>>, vector<1x8x72xf32>
    %141 = vector.shape_cast %140 : vector<1x8x72xf32> to vector<8x72xf32>
    %c0_122 = arith.constant 0 : index
    %c0_123 = arith.constant 0 : index
    %142 = vector.load %arg5[%c0_122, %c0_123] : memref<72x512xf32, #tpu.memory_space<vmem>>, vector<72x512xf32>
    %cst_124 = arith.constant dense<0.000000e+00> : vector<8x512xf32>
    %143 = tpu.matmul %141, %142, %cst_124 {dimension_numbers = #tpu.dot_dimension_numbers<[1], [0], [0], [1], [0, 0, 1, 1], [], []>, precision = #tpu.contract_precision<fp32>} : vector<8x72xf32>, vector<72x512xf32>, vector<8x512xf32> -> vector<8x512xf32>
    %c0_125 = arith.constant 0 : index
    %c2_126 = arith.constant 2 : index
    %144 = vector.load %arg3[%c0_125, %c2_126] : memref<12x288xf32, #tpu.memory_space<vmem>>, vector<8x1xf32>
    %145 = vector.broadcast %144 : vector<8x1xf32> to vector<8x512xf32>
    %146 = arith.addf %143, %145 : vector<8x512xf32>
    %147 = arith.addf %146, %48 : vector<8x512xf32>
    %cst_127 = arith.constant 0.000000e+00 : f32
    %148 = vector.broadcast %cst_127 : f32 to vector<8x512xf32>
    %149 = arith.maximumf %147, %148 : vector<8x512xf32>
    %c17_i32_128 = arith.constant 17 : i32
    %150 = tpu.dynamic_rotate %149 by %c17_i32_128 dim 1 : vector<8x512xf32>, i32 -> vector<8x512xf32>
    %c8_129 = arith.constant 8 : index
    %c0_130 = arith.constant 0 : index
    %151 = vector.load %arg0[%c8_129, %c0_130] : memref<17x512xf32, #tpu.memory_space<vmem>>, vector<1x512xf32>
    %152 = vector.broadcast %151 : vector<1x512xf32> to vector<8x512xf32>
    %153 = arith.mulf %150, %152 : vector<8x512xf32>
    %c0_131 = arith.constant 0 : index
    %c0_132 = arith.constant 0 : index
    %154 = vector.load %arg5[%c0_131, %c0_132] : memref<72x512xf32, #tpu.memory_space<vmem>>, vector<8x512xf32>
    tpu.vector_store %arg5[%c0_131, %c0_132], %153 {strides = array<i32>} : memref<72x512xf32, #tpu.memory_space<vmem>>, vector<8x512xf32>,
    %c16_i32_133 = arith.constant 16 : i32
    %155 = tpu.dynamic_rotate %149 by %c16_i32_133 dim 1 : vector<8x512xf32>, i32 -> vector<8x512xf32>
    %c9_134 = arith.constant 9 : index
    %c0_135 = arith.constant 0 : index
    %156 = vector.load %arg0[%c9_134, %c0_135] : memref<17x512xf32, #tpu.memory_space<vmem>>, vector<1x512xf32>
    %157 = vector.broadcast %156 : vector<1x512xf32> to vector<8x512xf32>
    %158 = arith.mulf %155, %157 : vector<8x512xf32>
    %c8_136 = arith.constant 8 : index
    %c0_137 = arith.constant 0 : index
    %159 = vector.load %arg5[%c8_136, %c0_137] : memref<72x512xf32, #tpu.memory_space<vmem>>, vector<8x512xf32>
    tpu.vector_store %arg5[%c8_136, %c0_137], %158 {strides = array<i32>} : memref<72x512xf32, #tpu.memory_space<vmem>>, vector<8x512xf32>,
    %c15_i32_138 = arith.constant 15 : i32
    %160 = tpu.dynamic_rotate %149 by %c15_i32_138 dim 1 : vector<8x512xf32>, i32 -> vector<8x512xf32>
    %c10_139 = arith.constant 10 : index
    %c0_140 = arith.constant 0 : index
    %161 = vector.load %arg0[%c10_139, %c0_140] : memref<17x512xf32, #tpu.memory_space<vmem>>, vector<1x512xf32>
    %162 = vector.broadcast %161 : vector<1x512xf32> to vector<8x512xf32>
    %163 = arith.mulf %160, %162 : vector<8x512xf32>
    %c16_141 = arith.constant 16 : index
    %c0_142 = arith.constant 0 : index
    %164 = vector.load %arg5[%c16_141, %c0_142] : memref<72x512xf32, #tpu.memory_space<vmem>>, vector<8x512xf32>
    tpu.vector_store %arg5[%c16_141, %c0_142], %163 {strides = array<i32>} : memref<72x512xf32, #tpu.memory_space<vmem>>, vector<8x512xf32>,
    %c1_i32_143 = arith.constant 1 : i32
    %165 = tpu.dynamic_rotate %149 by %c1_i32_143 dim 1 : vector<8x512xf32>, i32 -> vector<8x512xf32>
    %c11_144 = arith.constant 11 : index
    %c0_145 = arith.constant 0 : index
    %166 = vector.load %arg0[%c11_144, %c0_145] : memref<17x512xf32, #tpu.memory_space<vmem>>, vector<1x512xf32>
    %167 = vector.broadcast %166 : vector<1x512xf32> to vector<8x512xf32>
    %168 = arith.mulf %165, %167 : vector<8x512xf32>
    %c24_146 = arith.constant 24 : index
    %c0_147 = arith.constant 0 : index
    %169 = vector.load %arg5[%c24_146, %c0_147] : memref<72x512xf32, #tpu.memory_space<vmem>>, vector<8x512xf32>
    tpu.vector_store %arg5[%c24_146, %c0_147], %168 {strides = array<i32>} : memref<72x512xf32, #tpu.memory_space<vmem>>, vector<8x512xf32>,
    %c32_148 = arith.constant 32 : index
    %c0_149 = arith.constant 0 : index
    %170 = vector.load %arg5[%c32_148, %c0_149] : memref<72x512xf32, #tpu.memory_space<vmem>>, vector<8x512xf32>
    tpu.vector_store %arg5[%c32_148, %c0_149], %149 {strides = array<i32>} : memref<72x512xf32, #tpu.memory_space<vmem>>, vector<8x512xf32>,
    %c511_i32_150 = arith.constant 511 : i32
    %171 = tpu.dynamic_rotate %149 by %c511_i32_150 dim 1 : vector<8x512xf32>, i32 -> vector<8x512xf32>
    %c13_151 = arith.constant 13 : index
    %c0_152 = arith.constant 0 : index
    %172 = vector.load %arg0[%c13_151, %c0_152] : memref<17x512xf32, #tpu.memory_space<vmem>>, vector<1x512xf32>
    %173 = vector.broadcast %172 : vector<1x512xf32> to vector<8x512xf32>
    %174 = arith.mulf %171, %173 : vector<8x512xf32>
    %c40_153 = arith.constant 40 : index
    %c0_154 = arith.constant 0 : index
    %175 = vector.load %arg5[%c40_153, %c0_154] : memref<72x512xf32, #tpu.memory_space<vmem>>, vector<8x512xf32>
    tpu.vector_store %arg5[%c40_153, %c0_154], %174 {strides = array<i32>} : memref<72x512xf32, #tpu.memory_space<vmem>>, vector<8x512xf32>,
    %c497_i32_155 = arith.constant 497 : i32
    %176 = tpu.dynamic_rotate %149 by %c497_i32_155 dim 1 : vector<8x512xf32>, i32 -> vector<8x512xf32>
    %c14_156 = arith.constant 14 : index
    %c0_157 = arith.constant 0 : index
    %177 = vector.load %arg0[%c14_156, %c0_157] : memref<17x512xf32, #tpu.memory_space<vmem>>, vector<1x512xf32>
    %178 = vector.broadcast %177 : vector<1x512xf32> to vector<8x512xf32>
    %179 = arith.mulf %176, %178 : vector<8x512xf32>
    %c48_158 = arith.constant 48 : index
    %c0_159 = arith.constant 0 : index
    %180 = vector.load %arg5[%c48_158, %c0_159] : memref<72x512xf32, #tpu.memory_space<vmem>>, vector<8x512xf32>
    tpu.vector_store %arg5[%c48_158, %c0_159], %179 {strides = array<i32>} : memref<72x512xf32, #tpu.memory_space<vmem>>, vector<8x512xf32>,
    %c496_i32_160 = arith.constant 496 : i32
    %181 = tpu.dynamic_rotate %149 by %c496_i32_160 dim 1 : vector<8x512xf32>, i32 -> vector<8x512xf32>
    %c15_161 = arith.constant 15 : index
    %c0_162 = arith.constant 0 : index
    %182 = vector.load %arg0[%c15_161, %c0_162] : memref<17x512xf32, #tpu.memory_space<vmem>>, vector<1x512xf32>
    %183 = vector.broadcast %182 : vector<1x512xf32> to vector<8x512xf32>
    %184 = arith.mulf %181, %183 : vector<8x512xf32>
    %c56_163 = arith.constant 56 : index
    %c0_164 = arith.constant 0 : index
    %185 = vector.load %arg5[%c56_163, %c0_164] : memref<72x512xf32, #tpu.memory_space<vmem>>, vector<8x512xf32>
    tpu.vector_store %arg5[%c56_163, %c0_164], %184 {strides = array<i32>} : memref<72x512xf32, #tpu.memory_space<vmem>>, vector<8x512xf32>,
    %c495_i32_165 = arith.constant 495 : i32
    %186 = tpu.dynamic_rotate %149 by %c495_i32_165 dim 1 : vector<8x512xf32>, i32 -> vector<8x512xf32>
    %c16_166 = arith.constant 16 : index
    %c0_167 = arith.constant 0 : index
    %187 = vector.load %arg0[%c16_166, %c0_167] : memref<17x512xf32, #tpu.memory_space<vmem>>, vector<1x512xf32>
    %188 = vector.broadcast %187 : vector<1x512xf32> to vector<8x512xf32>
    %189 = arith.mulf %186, %188 : vector<8x512xf32>
    %c64_168 = arith.constant 64 : index
    %c0_169 = arith.constant 0 : index
    %190 = vector.load %arg5[%c64_168, %c0_169] : memref<72x512xf32, #tpu.memory_space<vmem>>, vector<8x512xf32>
    tpu.vector_store %arg5[%c64_168, %c0_169], %189 {strides = array<i32>} : memref<72x512xf32, #tpu.memory_space<vmem>>, vector<8x512xf32>,
    %c3 = arith.constant 3 : index
    %c0_170 = arith.constant 0 : index
    %c0_171 = arith.constant 0 : index
    %191 = vector.load %arg1[%c3, %c0_170, %c0_171] : memref<5x8x72xf32, #tpu.memory_space<vmem>>, vector<1x8x72xf32>
    %192 = vector.shape_cast %191 : vector<1x8x72xf32> to vector<8x72xf32>
    %c0_172 = arith.constant 0 : index
    %c0_173 = arith.constant 0 : index
    %193 = vector.load %arg5[%c0_172, %c0_173] : memref<72x512xf32, #tpu.memory_space<vmem>>, vector<72x512xf32>
    %cst_174 = arith.constant dense<0.000000e+00> : vector<8x512xf32>
    %194 = tpu.matmul %192, %193, %cst_174 {dimension_numbers = #tpu.dot_dimension_numbers<[1], [0], [0], [1], [0, 0, 1, 1], [], []>, precision = #tpu.contract_precision<fp32>} : vector<8x72xf32>, vector<72x512xf32>, vector<8x512xf32> -> vector<8x512xf32>
    %c0_175 = arith.constant 0 : index
    %c3_176 = arith.constant 3 : index
    %195 = vector.load %arg3[%c0_175, %c3_176] : memref<12x288xf32, #tpu.memory_space<vmem>>, vector<8x1xf32>
    %196 = vector.broadcast %195 : vector<8x1xf32> to vector<8x512xf32>
    %197 = arith.addf %194, %196 : vector<8x512xf32>
    %cst_177 = arith.constant 0.000000e+00 : f32
    %198 = vector.broadcast %cst_177 : f32 to vector<8x512xf32>
    %199 = arith.maximumf %197, %198 : vector<8x512xf32>
    %c17_i32_178 = arith.constant 17 : i32
    %200 = tpu.dynamic_rotate %199 by %c17_i32_178 dim 1 : vector<8x512xf32>, i32 -> vector<8x512xf32>
    %c8_179 = arith.constant 8 : index
    %c0_180 = arith.constant 0 : index
    %201 = vector.load %arg0[%c8_179, %c0_180] : memref<17x512xf32, #tpu.memory_space<vmem>>, vector<1x512xf32>
    %202 = vector.broadcast %201 : vector<1x512xf32> to vector<8x512xf32>
    %203 = arith.mulf %200, %202 : vector<8x512xf32>
    %c0_181 = arith.constant 0 : index
    %c0_182 = arith.constant 0 : index
    %204 = vector.load %arg5[%c0_181, %c0_182] : memref<72x512xf32, #tpu.memory_space<vmem>>, vector<8x512xf32>
    tpu.vector_store %arg5[%c0_181, %c0_182], %203 {strides = array<i32>} : memref<72x512xf32, #tpu.memory_space<vmem>>, vector<8x512xf32>,
    %c16_i32_183 = arith.constant 16 : i32
    %205 = tpu.dynamic_rotate %199 by %c16_i32_183 dim 1 : vector<8x512xf32>, i32 -> vector<8x512xf32>
    %c9_184 = arith.constant 9 : index
    %c0_185 = arith.constant 0 : index
    %206 = vector.load %arg0[%c9_184, %c0_185] : memref<17x512xf32, #tpu.memory_space<vmem>>, vector<1x512xf32>
    %207 = vector.broadcast %206 : vector<1x512xf32> to vector<8x512xf32>
    %208 = arith.mulf %205, %207 : vector<8x512xf32>
    %c8_186 = arith.constant 8 : index
    %c0_187 = arith.constant 0 : index
    %209 = vector.load %arg5[%c8_186, %c0_187] : memref<72x512xf32, #tpu.memory_space<vmem>>, vector<8x512xf32>
    tpu.vector_store %arg5[%c8_186, %c0_187], %208 {strides = array<i32>} : memref<72x512xf32, #tpu.memory_space<vmem>>, vector<8x512xf32>,
    %c15_i32_188 = arith.constant 15 : i32
    %210 = tpu.dynamic_rotate %199 by %c15_i32_188 dim 1 : vector<8x512xf32>, i32 -> vector<8x512xf32>
    %c10_189 = arith.constant 10 : index
    %c0_190 = arith.constant 0 : index
    %211 = vector.load %arg0[%c10_189, %c0_190] : memref<17x512xf32, #tpu.memory_space<vmem>>, vector<1x512xf32>
    %212 = vector.broadcast %211 : vector<1x512xf32> to vector<8x512xf32>
    %213 = arith.mulf %210, %212 : vector<8x512xf32>
    %c16_191 = arith.constant 16 : index
    %c0_192 = arith.constant 0 : index
    %214 = vector.load %arg5[%c16_191, %c0_192] : memref<72x512xf32, #tpu.memory_space<vmem>>, vector<8x512xf32>
    tpu.vector_store %arg5[%c16_191, %c0_192], %213 {strides = array<i32>} : memref<72x512xf32, #tpu.memory_space<vmem>>, vector<8x512xf32>,
    %c1_i32_193 = arith.constant 1 : i32
    %215 = tpu.dynamic_rotate %199 by %c1_i32_193 dim 1 : vector<8x512xf32>, i32 -> vector<8x512xf32>
    %c11_194 = arith.constant 11 : index
    %c0_195 = arith.constant 0 : index
    %216 = vector.load %arg0[%c11_194, %c0_195] : memref<17x512xf32, #tpu.memory_space<vmem>>, vector<1x512xf32>
    %217 = vector.broadcast %216 : vector<1x512xf32> to vector<8x512xf32>
    %218 = arith.mulf %215, %217 : vector<8x512xf32>
    %c24_196 = arith.constant 24 : index
    %c0_197 = arith.constant 0 : index
    %219 = vector.load %arg5[%c24_196, %c0_197] : memref<72x512xf32, #tpu.memory_space<vmem>>, vector<8x512xf32>
    tpu.vector_store %arg5[%c24_196, %c0_197], %218 {strides = array<i32>} : memref<72x512xf32, #tpu.memory_space<vmem>>, vector<8x512xf32>,
    %c32_198 = arith.constant 32 : index
    %c0_199 = arith.constant 0 : index
    %220 = vector.load %arg5[%c32_198, %c0_199] : memref<72x512xf32, #tpu.memory_space<vmem>>, vector<8x512xf32>
    tpu.vector_store %arg5[%c32_198, %c0_199], %199 {strides = array<i32>} : memref<72x512xf32, #tpu.memory_space<vmem>>, vector<8x512xf32>,
    %c511_i32_200 = arith.constant 511 : i32
    %221 = tpu.dynamic_rotate %199 by %c511_i32_200 dim 1 : vector<8x512xf32>, i32 -> vector<8x512xf32>
    %c13_201 = arith.constant 13 : index
    %c0_202 = arith.constant 0 : index
    %222 = vector.load %arg0[%c13_201, %c0_202] : memref<17x512xf32, #tpu.memory_space<vmem>>, vector<1x512xf32>
    %223 = vector.broadcast %222 : vector<1x512xf32> to vector<8x512xf32>
    %224 = arith.mulf %221, %223 : vector<8x512xf32>
    %c40_203 = arith.constant 40 : index
    %c0_204 = arith.constant 0 : index
    %225 = vector.load %arg5[%c40_203, %c0_204] : memref<72x512xf32, #tpu.memory_space<vmem>>, vector<8x512xf32>
    tpu.vector_store %arg5[%c40_203, %c0_204], %224 {strides = array<i32>} : memref<72x512xf32, #tpu.memory_space<vmem>>, vector<8x512xf32>,
    %c497_i32_205 = arith.constant 497 : i32
    %226 = tpu.dynamic_rotate %199 by %c497_i32_205 dim 1 : vector<8x512xf32>, i32 -> vector<8x512xf32>
    %c14_206 = arith.constant 14 : index
    %c0_207 = arith.constant 0 : index
    %227 = vector.load %arg0[%c14_206, %c0_207] : memref<17x512xf32, #tpu.memory_space<vmem>>, vector<1x512xf32>
    %228 = vector.broadcast %227 : vector<1x512xf32> to vector<8x512xf32>
    %229 = arith.mulf %226, %228 : vector<8x512xf32>
    %c48_208 = arith.constant 48 : index
    %c0_209 = arith.constant 0 : index
    %230 = vector.load %arg5[%c48_208, %c0_209] : memref<72x512xf32, #tpu.memory_space<vmem>>, vector<8x512xf32>
    tpu.vector_store %arg5[%c48_208, %c0_209], %229 {strides = array<i32>} : memref<72x512xf32, #tpu.memory_space<vmem>>, vector<8x512xf32>,
    %c496_i32_210 = arith.constant 496 : i32
    %231 = tpu.dynamic_rotate %199 by %c496_i32_210 dim 1 : vector<8x512xf32>, i32 -> vector<8x512xf32>
    %c15_211 = arith.constant 15 : index
    %c0_212 = arith.constant 0 : index
    %232 = vector.load %arg0[%c15_211, %c0_212] : memref<17x512xf32, #tpu.memory_space<vmem>>, vector<1x512xf32>
    %233 = vector.broadcast %232 : vector<1x512xf32> to vector<8x512xf32>
    %234 = arith.mulf %231, %233 : vector<8x512xf32>
    %c56_213 = arith.constant 56 : index
    %c0_214 = arith.constant 0 : index
    %235 = vector.load %arg5[%c56_213, %c0_214] : memref<72x512xf32, #tpu.memory_space<vmem>>, vector<8x512xf32>
    tpu.vector_store %arg5[%c56_213, %c0_214], %234 {strides = array<i32>} : memref<72x512xf32, #tpu.memory_space<vmem>>, vector<8x512xf32>,
    %c495_i32_215 = arith.constant 495 : i32
    %236 = tpu.dynamic_rotate %199 by %c495_i32_215 dim 1 : vector<8x512xf32>, i32 -> vector<8x512xf32>
    %c16_216 = arith.constant 16 : index
    %c0_217 = arith.constant 0 : index
    %237 = vector.load %arg0[%c16_216, %c0_217] : memref<17x512xf32, #tpu.memory_space<vmem>>, vector<1x512xf32>
    %238 = vector.broadcast %237 : vector<1x512xf32> to vector<8x512xf32>
    %239 = arith.mulf %236, %238 : vector<8x512xf32>
    %c64_218 = arith.constant 64 : index
    %c0_219 = arith.constant 0 : index
    %240 = vector.load %arg5[%c64_218, %c0_219] : memref<72x512xf32, #tpu.memory_space<vmem>>, vector<8x512xf32>
    tpu.vector_store %arg5[%c64_218, %c0_219], %239 {strides = array<i32>} : memref<72x512xf32, #tpu.memory_space<vmem>>, vector<8x512xf32>,
    %c4 = arith.constant 4 : index
    %c0_220 = arith.constant 0 : index
    %c0_221 = arith.constant 0 : index
    %241 = vector.load %arg1[%c4, %c0_220, %c0_221] : memref<5x8x72xf32, #tpu.memory_space<vmem>>, vector<1x8x72xf32>
    %242 = vector.shape_cast %241 : vector<1x8x72xf32> to vector<8x72xf32>
    %c0_222 = arith.constant 0 : index
    %c0_223 = arith.constant 0 : index
    %243 = vector.load %arg5[%c0_222, %c0_223] : memref<72x512xf32, #tpu.memory_space<vmem>>, vector<72x512xf32>
    %cst_224 = arith.constant dense<0.000000e+00> : vector<8x512xf32>
    %244 = tpu.matmul %242, %243, %cst_224 {dimension_numbers = #tpu.dot_dimension_numbers<[1], [0], [0], [1], [0, 0, 1, 1], [], []>, precision = #tpu.contract_precision<fp32>} : vector<8x72xf32>, vector<72x512xf32>, vector<8x512xf32> -> vector<8x512xf32>
    %c0_225 = arith.constant 0 : index
    %c4_226 = arith.constant 4 : index
    %245 = vector.load %arg3[%c0_225, %c4_226] : memref<12x288xf32, #tpu.memory_space<vmem>>, vector<8x1xf32>
    %246 = vector.broadcast %245 : vector<8x1xf32> to vector<8x512xf32>
    %247 = arith.addf %244, %246 : vector<8x512xf32>
    %248 = arith.addf %247, %149 : vector<8x512xf32>
    %cst_227 = arith.constant 0.000000e+00 : f32
    %249 = vector.broadcast %cst_227 : f32 to vector<8x512xf32>
    %250 = arith.maximumf %248, %249 : vector<8x512xf32>
    %c10_228 = arith.constant 10 : index
    %c0_229 = arith.constant 0 : index
    %251 = vector.load %arg3[%c10_228, %c0_229] : memref<12x288xf32, #tpu.memory_space<vmem>>, vector<2x8xf32>
    %c10_230 = arith.constant 10 : index
    %c8_231 = arith.constant 8 : index
    %252 = vector.load %arg3[%c10_230, %c8_231] : memref<12x288xf32, #tpu.memory_space<vmem>>, vector<2x1xf32>
    %cst_232 = arith.constant dense<0.000000e+00> : vector<2x512xf32>
    %253 = tpu.matmul %251, %250, %cst_232 {dimension_numbers = #tpu.dot_dimension_numbers<[1], [0], [0], [1], [0, 0, 1, 1], [], []>, precision = #tpu.contract_precision<fp32>} : vector<2x8xf32>, vector<8x512xf32>, vector<2x512xf32> -> vector<2x512xf32>
    %254 = vector.broadcast %252 : vector<2x1xf32> to vector<2x512xf32>
    %255 = arith.addf %253, %254 : vector<2x512xf32>
    %cst_233 = arith.constant 0.000000e+00 : f32
    %256 = vector.broadcast %cst_233 : f32 to vector<2x512xf32>
    %257 = arith.maximumf %255, %256 : vector<2x512xf32>
    %258 = vector.extract_strided_slice %257 {offsets = [0, 0], sizes = [1, 256], strides = [1, 1]} : vector<2x512xf32> to vector<1x256xf32>
    %259 = vector.extract_strided_slice %257 {offsets = [0, 256], sizes = [1, 256], strides = [1, 1]} : vector<2x512xf32> to vector<1x256xf32>
    %260 = vector.extract_strided_slice %257 {offsets = [1, 0], sizes = [1, 256], strides = [1, 1]} : vector<2x512xf32> to vector<1x256xf32>
    %261 = vector.extract_strided_slice %257 {offsets = [1, 256], sizes = [1, 256], strides = [1, 1]} : vector<2x512xf32> to vector<1x256xf32>
    %262 = tpu.concatenate %258, %259, %260, %261 in 0 : vector<1x256xf32>, vector<1x256xf32>, vector<1x256xf32>, vector<1x256xf32> -> vector<4x256xf32>
    %c8_234 = arith.constant 8 : index
    %c0_235 = arith.constant 0 : index
    %263 = vector.load %arg3[%c8_234, %c0_235] : memref<12x288xf32, #tpu.memory_space<vmem>>, vector<1x288xf32>
    %c0_236 = arith.constant 0 : index
    %c0_237 = arith.constant 0 : index
    %264 = vector.load %arg2[%c0_236, %c0_237] : memref<256x288xf32, #tpu.memory_space<vmem>>, vector<256x288xf32>
    %cst_238 = arith.constant dense<0.000000e+00> : vector<4x288xf32>
    %265 = tpu.matmul %262, %264, %cst_238 {dimension_numbers = #tpu.dot_dimension_numbers<[1], [0], [0], [1], [0, 0, 1, 1], [], []>, precision = #tpu.contract_precision<fp32>} : vector<4x256xf32>, vector<256x288xf32>, vector<4x288xf32> -> vector<4x288xf32>
    %266 = vector.broadcast %263 : vector<1x288xf32> to vector<4x288xf32>
    %267 = arith.addf %265, %266 : vector<4x288xf32>
    %268 = vector.extract_strided_slice %267 {offsets = [0, 256], sizes = [2, 32], strides = [1, 1]} : vector<4x288xf32> to vector<2x32xf32>
    %cst_239 = arith.constant dense<0xFF800000> : vector<2xf32>
    %269 = vector.multi_reduction <maximumf>, %268, %cst_239 [1] : vector<2x32xf32> to vector<2xf32>
    %270 = vector.shape_cast %269 : vector<2xf32> to vector<2x1xf32>
    %271 = vector.broadcast %270 : vector<2x1xf32> to vector<2x32xf32>
    %272 = arith.subf %268, %271 : vector<2x32xf32>
    %273 = math.exp %272 : vector<2x32xf32>
    %cst_240 = arith.constant dense<0.000000e+00> : vector<2xf32>
    %274 = vector.multi_reduction <add>, %273, %cst_240 [1] : vector<2x32xf32> to vector<2xf32>
    %275 = vector.shape_cast %274 : vector<2xf32> to vector<2x1xf32>
    %276 = math.log %275 : vector<2x1xf32>
    %277 = vector.broadcast %276 : vector<2x1xf32> to vector<2x32xf32>
    %278 = arith.subf %272, %277 : vector<2x32xf32>
    %c0_241 = arith.constant 0 : index
    %c0_242 = arith.constant 0 : index
    %279 = vector.load %arg4[%c0_241, %c0_242] : memref<2x33xf32, #tpu.memory_space<vmem>>, vector<2x32xf32>
    tpu.vector_store %arg4[%c0_241, %c0_242], %278 {strides = array<i32>} : memref<2x33xf32, #tpu.memory_space<vmem>>, vector<2x32xf32>,
    %280 = vector.extract_strided_slice %267 {offsets = [2, 0], sizes = [2, 256], strides = [1, 1]} : vector<4x288xf32> to vector<2x256xf32>
    %cst_243 = arith.constant 0.000000e+00 : f32
    %281 = vector.broadcast %cst_243 : f32 to vector<2x256xf32>
    %282 = arith.maximumf %280, %281 : vector<2x256xf32>
    %c9_244 = arith.constant 9 : index
    %c0_245 = arith.constant 0 : index
    %283 = vector.load %arg3[%c9_244, %c0_245] : memref<12x288xf32, #tpu.memory_space<vmem>>, vector<1x256xf32>
    %c9_246 = arith.constant 9 : index
    %c256 = arith.constant 256 : index
    %284 = vector.load %arg3[%c9_246, %c256] : memref<12x288xf32, #tpu.memory_space<vmem>>, vector<1x1xf32>
    %285 = vector.broadcast %283 : vector<1x256xf32> to vector<2x256xf32>
    %286 = arith.mulf %282, %285 : vector<2x256xf32>
    %cst_247 = arith.constant dense<0.000000e+00> : vector<2xf32>
    %287 = vector.multi_reduction <add>, %286, %cst_247 [1] : vector<2x256xf32> to vector<2xf32>
    %288 = vector.shape_cast %287 : vector<2xf32> to vector<2x1xf32>
    %289 = vector.broadcast %284 : vector<1x1xf32> to vector<2x1xf32>
    %290 = arith.addf %288, %289 : vector<2x1xf32>
    %291 = math.tanh %290 : vector<2x1xf32>
    %c0_248 = arith.constant 0 : index
    %c32_249 = arith.constant 32 : index
    %292 = vector.load %arg4[%c0_248, %c32_249] : memref<2x33xf32, #tpu.memory_space<vmem>>, vector<2x1xf32>
    tpu.vector_store %arg4[%c0_248, %c32_249], %291 {strides = array<i32>} : memref<2x33xf32, #tpu.memory_space<vmem>>, vector<2x1xf32>,
    return
  }
}

</mosaic_0001>

<bundles_post_ra>
// kernel: golai_zero_forward.1
= control target key start
LH: loop header
LB: loop body
LE: loop exit
PB: predicated region body
PF: predicated region fallthrough
CT: control target
= control target key end

     0   :  { %s12293_s19 = smov 111   ;;  %s12294_s22 = smov 112   ;;  %v19062_v4 = vmov 0.0   ;;  %v29_v5 = vlaneseq  ;;  %v12302_v38 = vmov 0   ;;  %vm422_vm5 = vcmask 588800   ;;  %s19048_s0 = inlined_call_operand.vmem [shape: f32[17,512], index: 0, kind: input, shape index: {}]   ;;  %s19049_s3 = inlined_call_operand.vmem [shape: f32[12,288], index: 3, kind: input, shape index: {}]   ;;  %s19050_s1 = inlined_call_operand.vmem [shape: f32[5,8,72], index: 1, kind: input, shape index: {}]   ;;  %s19051_s2 = inlined_call_operand.vmem [shape: f32[256,288], index: 2, kind: input, shape index: {}]   ;;  %s19052_s4 = inlined_call_operand.vmem [shape: f32[2,33], index: 4, kind: output, shape index: {}]  }
   0x1   :  { %v12337_v0 = vld [vmem:[%s19048_s0 + $0x8] sm:$0xff]  ;;  %v12342_v1 = vld [vmem:[%s19048_s0] sm:$0xff]  ;;  %v12351_v2 = vld [vmem:[%s19048_s0 + $0x10] sm:$0xff]  ;;  %s12295_s23 = smov 113   ;;  %s12296_s24 = smov 127   ;;  %508 = vmatprep.mubr.f32.mxu0 %v19062_v4  ;;  %674 = vmatprep.mubr.f32.mxu1 %v19062_v4  ;;  %vm8736_vm9 = vcmask 64512  }
   0x2   :  { %337 = vrot.lane.b32.xlu0 %v12337_v0, %s12293_s19  ;;  %335 = vrot.lane.b32.xlu1 %v12342_v1, %s12293_s19  ;;  %19575 = vst [vmem:[#allocation3_spill] sm:$0xff] %v12351_v2  ;;  %s12297_s25 = smov 1   ;;  %v12380_v3 = vld [vmem:[%s19048_s0 + $0x18] sm:$0xff]  ;;  %s12298_s28 = smov 15   ;;  %v12420_v6 = vshrl.u32 %v29_v5, 7  ;;  %v12422_v7 = vand.u32 127, %v29_v5 }
   0x3   :  { %s12299_s29 = smov 16   ;;  %s12300_s30 = smov 17   ;;  %v12430_v9 = vld [vmem:[%s19048_s0 + $0x40] ss:$8 sm:$0xf]  ;;  %12280 = vset.pattern.permute.xlu0 %v12302_v38  ;;  %v12526_v52 = vand.u32 4294901760, %v12337_v0 }
   0x4   :  { %v12425_v8 = vsub.s32 0, %v12420_v6  ;;  %vm343_vm0 = vcmp.lt.s32.totalorder %v12422_v7, 111  ;;  %v12436_v11 = vsub.s32 1, %v12420_v6  ;;  %v12448_v17 = vld [vmem:[%s19048_s0 + $0x27] ss:$8 sm:$0xf] }
   0x5   :  { %vm299_vm1 = vcmp.lt.s32.totalorder %v12422_v7, 112  ;;  %v12468_v26 = vld [vmem:[%s19048_s0 + $0x26] ss:$8 sm:$0xf]  ;;  %vm255_vm2 = vcmp.lt.s32.totalorder %v12422_v7, 113  ;;  %v12529_v53 = vand.u32 4294901760, %v12342_v1 }
   0x6   :  { %339 = vrot.lane.b32.xlu0 %v12351_v2, %s12293_s19  ;;  %293 = vrot.lane.b32.xlu1 %v12337_v0, %s12294_s22  ;;  %19576 = vst [vmem:[#allocation4_spill] sm:$0xff] %v12425_v8  ;;  %v354_v10 = vrot.slane %v12430_v9, %v12425_v8  ;;  %19577 = vst [vmem:[#allocation5_spill] sm:$0xff] %v12436_v11  ;;  %v358_v16 = vrot.slane %v12430_v9, %v12436_v11  ;;  %v416_v37 = vld [vmem:[%s19049_s3] sm:$0xff]  ;;  %vm211_vm3 = vcmp.lt.s32.totalorder %v12422_v7, 127  ;;  %vm9689_vm10 = vcmask 1040384   ;;  %s12308_s8 = smov 32  }
   0x7   :  { %v314_v23 = vrot.slane %v12448_v17, %v12436_v11  ;;  %v310_v24 = vrot.slane %v12448_v17, %v12425_v8  ;;  %v270_v35 = vrot.slane %v12468_v26, %v12436_v11  ;;  %v266_v45 = vrot.slane %v12468_v26, %v12425_v8  ;;  %v12522_v51 = vld [vmem:[%s19048_s0 + $0x25] ss:$8 sm:$0xf] }
   0x8   :  { %v226_v62 = vrot.slane %v12522_v51, %v12436_v11  ;;  %v222_v63 = vrot.slane %v12522_v51, %v12425_v8  ;;  %vm163_vm4 = vcmp.lt.s32.totalorder %v12422_v7, 1  ;;  %vm119_vm6 = vcmp.lt.s32.totalorder %v12422_v7, 15 }
   0x9   :  { %vm75_vm7 = vcmp.lt.s32.totalorder %v12422_v7, 16  ;;  %vm31_vm8 = vcmp.lt.s32.totalorder %v12422_v7, 17  ;;  %vm9692_vm11 = vcmask 1041408   ;;  %vm9695_vm12 = vcmask 1042432  }
   0xa   :  { %295 = vrot.lane.b32.xlu0 %v12351_v2, %s12294_s22  ;;  %291 = vrot.lane.b32.xlu1 %v12342_v1, %s12294_s22  ;;  %vm11990_vm13 = vcmask 1043458   ;;  %vm11958_vm14 = vcmask 254976   ;;  %vm12002_vm15 = vcmask 265474  }
   0xe   :  { %249 = vrot.lane.b32.xlu0 %v12337_v0, %s12295_s23  ;;  %251 = vrot.lane.b32.xlu1 %v12351_v2, %s12295_s23 }
  0x12   :  { %247 = vrot.lane.b32.xlu0 %v12342_v1, %s12295_s23  ;;  %205 = vrot.lane.b32.xlu1 %v12337_v0, %s12296_s24 }
  0x16   :  { %207 = vrot.lane.b32.xlu0 %v12351_v2, %s12296_s24  ;;  %203 = vrot.lane.b32.xlu1 %v12342_v1, %s12296_s24 }
  0x1a   :  { %155 = vrot.lane.b32.xlu0 %v12342_v1, %s12297_s25  ;;  %157 = vrot.lane.b32.xlu1 %v12337_v0, %s12297_s25 }
  0x1e   :  { %161 = vrot.lane.b32.xlu0 %v12380_v3, %s12297_s25  ;;  %111 = vrot.lane.b32.xlu1 %v12342_v1, %s12298_s28 }
  0x22   :  { %113 = vrot.lane.b32.xlu0 %v12337_v0, %s12298_s28  ;;  %117 = vrot.lane.b32.xlu1 %v12380_v3, %s12298_s28 }
  0x26   :  { %67 = vrot.lane.b32.xlu0 %v12342_v1, %s12299_s29  ;;  %69 = vrot.lane.b32.xlu1 %v12337_v0, %s12299_s29 }
  0x2a   :  { %73 = vrot.lane.b32.xlu0 %v12380_v3, %s12299_s29  ;;  %21 = vrot.lane.b32.xlu1 %v12342_v1, %s12300_s30 }
  0x2e   :  { %23 = vrot.lane.b32.xlu0 %v12337_v0, %s12300_s30  ;;  %27 = vrot.lane.b32.xlu1 %v12380_v3, %s12300_s30 }
  0x32   :  { %341 = vrot.lane.b32.xlu0 %v12380_v3, %s12293_s19  ;;  %297 = vrot.lane.b32.xlu1 %v12380_v3, %s12294_s22 }
  0x36   :  { %253 = vrot.lane.b32.xlu0 %v12380_v3, %s12295_s23  ;;  %209 = vrot.lane.b32.xlu1 %v12380_v3, %s12296_s24 }
  0x3a   :  { %159 = vrot.lane.b32.xlu0 %v12351_v2, %s12297_s25  ;;  %115 = vrot.lane.b32.xlu1 %v12351_v2, %s12298_s28 }
  0x3e   :  { %71 = vrot.lane.b32.xlu0 %v12351_v2, %s12299_s29  ;;  %25 = vrot.lane.b32.xlu1 %v12351_v2, %s12300_s30 }
  0x42   :  { %419 = vperm.xlu0 %12280, %v416_v37  }
  0x74   :  { %v338_v12 = vpop.permute.xlu0 %337  ;;  %v12438_v13 = vpop.permute.xlu1 %335 }
  0x75   :  { %v346_v14 = vsel %vm343_vm0, %v12438_v13, %v338_v12 }
  0x76   :  { %v371_v15 = vmul.f32 %v354_v10, %v346_v14  ;;  %v12555_v14 = vld [vmem:[%s19048_s0 + $0x23] ss:$8 sm:$0xf] }
  0x78   :  { %v12450_v18 = vand.u32 4294901760, %v371_v15  ;;  %v12452_v19 = vpop.permute.xlu0 %339  ;;  %v294_v20 = vpop.permute.xlu1 %293 }
  0x79   :  { %v345_v21 = vsel %vm343_vm0, %v338_v12, %v12452_v19 }
  0x7a   :  { %v372_v22 = vmul.f32 %v358_v16, %v345_v21  ;;  %v12463_v25 = vsub.f32 %v371_v15, %v12450_v18  ;;  %v12562_v16 = vsub.f32 %v12337_v0, %v12526_v52 }
  0x7c   :  { %v12470_v27 = vand.u32 4294901760, %v372_v22  ;;  %v12472_v28 = vpop.permute.xlu0 %295  ;;  %v12474_v29 = vpop.permute.xlu1 %291  ;;  %v19059_v32 = vand.u32 4294901760, %v12463_v25 }
  0x7d   :  { %v301_v30 = vsel %vm299_vm1, %v294_v20, %v12472_v28  ;;  %v302_v31 = vsel %vm299_vm1, %v12474_v29, %v294_v20  ;;  %v12566_v20 = vsub.f32 %v12342_v1, %v12529_v53  ;;  %v178_v1 = vrot.slane %v12555_v14, %v12436_v11 }
  0x7e   :  { %v328_v33 = vmul.f32 %v314_v23, %v301_v30  ;;  %v327_v34 = vmul.f32 %v310_v24, %v302_v31  ;;  %441 = vmatprep.subr.mxu0 %v12470_v27  ;;  %v12488_v36 = vsub.f32 %v372_v22, %v12470_v27  ;;  %v543_v46 = vsub.f32 %v12463_v25, %v19059_v32 }
  0x7f   :  { %443 = vmatpush1.msra.mxu0 %v12450_v18 }
  0x80   :  { %v12494_v39 = vand.u32 4294901760, %v328_v33  ;;  %v12496_v40 = vand.u32 4294901760, %v327_v34  ;;  %v250_v41 = vpop.permute.xlu0 %249  ;;  %v12498_v42 = vpop.permute.xlu1 %251  ;;  %v19061_v43 = vand.u32 4294901760, %v12488_v36  ;;  %v544_v61 = vand.u32 4294901760, %v543_v46 }
  0x81   :  { %19578 = vst [vmem:[#allocation6_spill] sm:$0xff] %v12498_v42  ;;  %v257_v44 = vsel %vm255_vm2, %v250_v41, %v12498_v42 }
  0x82   :  { %v12510_v47 = vsub.f32 %v328_v33, %v12494_v39  ;;  %v12513_v48 = vsub.f32 %v327_v34, %v12496_v40  ;;  %v284_v49 = vmul.f32 %v270_v35, %v257_v44  ;;  %445 = vmatprep.subr.mxu0 %v12494_v39  ;;  %v537_v50 = vsub.f32 %v12488_v36, %v19061_v43 }
  0x83   :  { %447 = vmatpush1.msra.mxu0 %v12496_v40  ;;  %v19054_v44 = vand.u32 4294901760, %v12566_v20 }
  0x84   :  { %v12531_v54 = vand.u32 4294901760, %v284_v49  ;;  %v12533_v55 = vpop.permute.xlu0 %247  ;;  %v206_v56 = vpop.permute.xlu1 %205  ;;  %v538_v57 = vand.u32 4294901760, %v537_v50  ;;  %v19058_v58 = vand.u32 4294901760, %v12510_v47  ;;  %v19057_v59 = vand.u32 4294901760, %v12513_v48 }
  0x85   :  { %19579 = vst [vmem:[#allocation7_spill] sm:$0xff] %v12533_v55  ;;  %v258_v60 = vsel %vm255_vm2, %v12533_v55, %v250_v41  ;;  %v19053_v41 = vand.u32 4294901760, %v12562_v16 }
  0x86   :  { %v12545_v5 = vsub.f32 %v284_v49, %v12531_v54  ;;  %v283_v10 = vmul.f32 %v266_v45, %v258_v60  ;;  %449 = vmatprep.subr.mxu0 %v12531_v54  ;;  %539 = vmatprep.subr.mxu1 %v538_v57  ;;  %v549_v12 = vsub.f32 %v12510_v47, %v19058_v58  ;;  %v379_v57 = vld [vmem:[%s19050_s1] sm:$0xff] }
  0x87   :  { %545 = vmatpush1.msra.mxu1 %v544_v61  ;;  %v555_v15 = vsub.f32 %v12513_v48, %v19057_v59 }
  0x88   :  { %v12568_v21 = vand.u32 4294901760, %v283_v10  ;;  %v12570_v22 = vpop.permute.xlu0 %207  ;;  %v12572_v23 = vpop.permute.xlu1 %203  ;;  %v550_v24 = vand.u32 4294901760, %v549_v12  ;;  %v19056_v30 = vand.u32 4294901760, %v12545_v5 }
  0x89   :  { %19580 = vst [vmem:[#allocation8_spill] sm:$0xff] %v12570_v22  ;;  %19581 = vst [vmem:[#allocation9_spill] sm:$0xff] %v12572_v23  ;;  %v213_v31 = vsel %vm211_vm3, %v206_v56, %v12570_v22  ;;  %v214_v0 = vsel %vm211_vm3, %v12572_v23, %v206_v56  ;;  %v556_v33 = vand.u32 4294901760, %v555_v15 }
  0x8a   :  { %v12584_v34 = vsub.f32 %v283_v10, %v12568_v21  ;;  %v240_v35 = vmul.f32 %v226_v62, %v213_v31  ;;  %v239_v37 = vmul.f32 %v222_v63, %v214_v0  ;;  %451 = vmatpush1.msra.mxu0 %v12568_v21  ;;  %551 = vmatprep.subr.mxu1 %v550_v24  ;;  %v12621_v24 = vld [vmem:[%s19048_s0 + $0x22] ss:$8 sm:$0xf] }
  0x8b   :  { %557 = vmatpush1.msra.mxu1 %v556_v33  ;;  %v561_v38 = vsub.f32 %v12545_v5, %v19056_v30  ;;  %v174_v62 = vrot.slane %v12555_v14, %v12425_v8  ;;  %19583 = vst [vmem:[#allocation11_spill] sm:$0xff] %v12621_v24  ;;  %v585_v31 = vsub.f32 %v12562_v16, %v19053_v41  ;;  %v424_v33 = vsel %vm422_vm5, %v379_v57, 0  ;;  %v12657_v30 = vld [vmem:[%s19048_s0 + $0x21] ss:$8 sm:$0xf] }
  0x8c   :  { %v12593_v45 = vand.u32 4294901760, %v240_v35  ;;  %v12595_v46 = vand.u32 4294901760, %v239_v37  ;;  %v156_v49 = vpop.permute.xlu0 %155  ;;  %v12597_v50 = vpop.permute.xlu1 %157  ;;  %v19055_v56 = vand.u32 4294901760, %v12584_v34  ;;  %v591_v0 = vsub.f32 %v12566_v20, %v19054_v44  ;;  %19585 = vst [vmem:[#allocation13_spill] sm:$0xff] %v12657_v30 }
  0x8d   :  { %19582 = vst [vmem:[#allocation10_spill] sm:$0xff] %v12597_v50  ;;  %v166_v60 = vsel %vm163_vm4, %v156_v49, %v12597_v50  ;;  %v562_v61 = vand.u32 4294901760, %v561_v38  ;;  %v134_v57 = vrot.slane %v12621_v24, %v12436_v11  ;;  %v130_v44 = vrot.slane %v12621_v24, %v12425_v8 }
  0x8e   :  { %v12609_v63 = vsub.f32 %v240_v35, %v12593_v45  ;;  %v12612_v10 = vsub.f32 %v239_v37, %v12595_v46  ;;  %v192_v12 = vmul.f32 %v178_v1, %v166_v60  ;;  %453 = vmatprep.subr.mxu0 %v12593_v45  ;;  %v567_v15 = vsub.f32 %v12584_v34, %v19055_v56 }
  0x8f   :  { %563 = vmatprep.subr.mxu1 %v562_v61  ;;  %455 = vmatpush1.msra.mxu0 %v12595_v46  ;;  %v586_v59 = vand.u32 4294901760, %v585_v31  ;;  %v90_v50 = vrot.slane %v12657_v30, %v12436_v11 }
  0x90   :  { %v12631_v1 = vand.u32 4294901760, %v192_v12  ;;  %v12633_v35 = vpop.permute.xlu0 %161  ;;  %457 = vmatprep.subr.mxu0 %v12526_v52  ;;  %v112_v37 = vpop.permute.xlu1 %111  ;;  %v568_v38 = vand.u32 4294901760, %v567_v15  ;;  %v19060_v60 = vand.u32 4294901760, %v12609_v63  ;;  %v19064_v61 = vand.u32 4294901760, %v12612_v10 }
  0x91   :  { %19584 = vst [vmem:[#allocation12_spill] sm:$0xff] %v12633_v35  ;;  %v167_v41 = vsel %vm163_vm4, %v12633_v35, %v156_v49  ;;  %459 = vmatpush1.msra.mxu0 %v12529_v53 }
  0x92   :  { %v12647_v56 = vsub.f32 %v192_v12, %v12631_v1  ;;  %v191_v15 = vmul.f32 %v174_v62, %v167_v41  ;;  %461 = vmatprep.subr.mxu0 %v12631_v1  ;;  %569 = vmatpush1.msra.mxu1 %v568_v38  ;;  %v573_v49 = vsub.f32 %v12609_v63, %v19060_v60  ;;  %v12662_v41 = vand.u32 4294901760, %v424_v33 }
  0x93   :  { %v579_v12 = vsub.f32 %v12612_v10, %v19064_v61  ;;  %v592_v60 = vand.u32 4294901760, %v591_v0 }
  0x94   :  { %v12664_v62 = vand.u32 4294901760, %v191_v15  ;;  %v12666_v38 = vpop.permute.xlu0 %113  ;;  %v12668_v58 = vpop.permute.xlu1 %117  ;;  %v574_v32 = vand.u32 4294901760, %v573_v49  ;;  %v19070_v43 = vand.u32 4294901760, %v12647_v56 }
  0x95   :  { %19586 = vst [vmem:[#allocation14_spill] sm:$0xff] %v12666_v38  ;;  %19587 = vst [vmem:[#allocation15_spill] sm:$0xff] %v12668_v58  ;;  %v122_v4 = vsel %vm119_vm6, %v112_v37, %v12666_v38  ;;  %v123_v31 = vsel %vm119_vm6, %v12668_v58, %v112_v37  ;;  %v580_v61 = vand.u32 4294901760, %v579_v12  ;;  %v12688_v37 = vsub.f32 %v424_v33, %v12662_v41 }
  0x96   :  { %v12680_v35 = vsub.f32 %v191_v15, %v12664_v62  ;;  %v148_v24 = vmul.f32 %v134_v57, %v122_v4  ;;  %v147_v49 = vmul.f32 %v130_v44, %v123_v31  ;;  %463 = vmatpush1.msra.mxu0 %v12664_v62  ;;  %575 = vmatprep.subr.mxu1 %v574_v32 }
  0x97   :  { %581 = vmatpush1.msra.mxu1 %v580_v61  ;;  %v597_v0 = vsub.f32 %v12647_v56, %v19070_v43  ;;  %v86_v33 = vrot.slane %v12657_v30, %v12425_v8 }
  0x98   :  { %v12690_v12 = vand.u32 4294901760, %v148_v24  ;;  %v12692_v38 = vand.u32 4294901760, %v147_v49  ;;  %v68_v15 = vpop.permute.xlu0 %67  ;;  %587 = vmatprep.subr.mxu1 %v586_v59  ;;  %v12694_v4 = vpop.permute.xlu1 %69  ;;  %v19072_v32 = vand.u32 4294901760, %v12680_v35 }
  0x99   :  { %19588 = vst [vmem:[#allocation16_spill] sm:$0xff] %v12694_v4  ;;  %v78_v44 = vsel %vm75_vm7, %v68_v15, %v12694_v4  ;;  %593 = vmatpush1.msra.mxu1 %v592_v60  ;;  %v598_v61 = vand.u32 4294901760, %v597_v0  ;;  %v12715_v60 = vld [vmem:[%s19048_s0 + $0x20] ss:$8 sm:$0xf] }
  0x9a   :  { %v12703_v57 = vsub.f32 %v148_v24, %v12690_v12  ;;  %v12706_v31 = vsub.f32 %v147_v49, %v12692_v38  ;;  %v104_v59 = vmul.f32 %v90_v50, %v78_v44  ;;  %465 = vmatprep.subr.mxu0 %v12690_v12  ;;  %v603_v43 = vsub.f32 %v12680_v35, %v19072_v32 }
  0x9b   :  { %19589 = vst [vmem:[#allocation17_spill] sm:$0xff] %v12715_v60  ;;  %599 = vmatprep.subr.mxu1 %v598_v61  ;;  %467 = vmatpush1.msra.mxu0 %v12692_v38  ;;  %v12719_v24 = vand.u32 4294901760, %v12688_v37  ;;  %v46_v61 = vrot.slane %v12715_v60, %v12436_v11  ;;  %v42_v30 = vrot.slane %v12715_v60, %v12425_v8 }
  0x9c   :  { %v12721_v49 = vand.u32 4294901760, %v104_v59  ;;  %v12723_v50 = vpop.permute.xlu0 %73  ;;  %v22_v0 = vpop.permute.xlu1 %21  ;;  %v604_v44 = vand.u32 4294901760, %v603_v43  ;;  %v19083_v4 = vand.u32 4294901760, %v12703_v57  ;;  %v19084_v32 = vand.u32 4294901760, %v12706_v31 }
  0x9d   :  { %19590 = vst [vmem:[#allocation18_spill] sm:$0xff] %v12719_v24  ;;  %19591 = vst [vmem:[#allocation19_spill] sm:$0xff] %v12723_v50  ;;  %v79_v58 = vsel %vm75_vm7, %v12723_v50, %v68_v15 }
  0x9e   :  { %v12735_v2 = vsub.f32 %v104_v59, %v12721_v49  ;;  %v103_v22 = vmul.f32 %v86_v33, %v79_v58  ;;  %469 = vmatprep.subr.mxu0 %v12721_v49  ;;  %605 = vmatpush1.msra.mxu1 %v604_v44  ;;  %v609_v43 = vsub.f32 %v12703_v57, %v19083_v4 }
  0x9f   :  { %v615_v15 = vsub.f32 %v12706_v31, %v19084_v32  ;;  %v512_v44 = vsub.f32 %v12688_v37, %v12719_v24 }
  0xa0   :  { %v12745_v11 = vand.u32 4294901760, %v103_v22  ;;  %v12747_v8 = vpop.permute.xlu0 %23  ;;  %v12749_v59 = vpop.permute.xlu1 %27  ;;  %v610_v58 = vand.u32 4294901760, %v609_v43  ;;  %v620_v33 = vand.u32 4294901760, %v12735_v2 }
  0xa1   :  { %19592 = vst [vmem:[#allocation20_spill] sm:$0xff] %v12747_v8  ;;  %v34_v4 = vsel %vm31_vm8, %v22_v0, %v12747_v8  ;;  %v35_v32 = vsel %vm31_vm8, %v12749_v59, %v22_v0  ;;  %v616_v50 = vand.u32 4294901760, %v615_v15  ;;  %v12771_v55 = vand.u32 4294901760, %v512_v44 }
  0xa2   :  { %v12761_v60 = vsub.f32 %v103_v22, %v12745_v11  ;;  %v60_v23 = vmul.f32 %v46_v61, %v34_v4  ;;  %v59_v42 = vmul.f32 %v42_v30, %v35_v32  ;;  %471 = vmatpush1.msra.mxu0 %v12745_v11  ;;  %611 = vmatprep.subr.mxu1 %v610_v58 }
  0xa3   :  { %617 = vmatpush1.msra.mxu1 %v616_v50  ;;  %v621_v43 = vsub.f32 %v12735_v2, %v620_v33  ;;  %v19593_v50 = vmov 0.0  }
  0xa4   :  { %v12767_v24 = vand.u32 4294901760, %v60_v23  ;;  %v12769_v8 = vand.u32 4294901760, %v59_v42  ;;  %v19096_v0 = vand.u32 4294901760, %v12761_v60 }
  0xa5   :  { %v622_v22 = vand.u32 4294901760, %v621_v43 }
  0xa6   :  { %473 = vmatprep.subr.mxu0 %v12767_v24  ;;  %v12777_v30 = vsub.f32 %v60_v23, %v12767_v24  ;;  %v12782_v4 = vsub.f32 %v59_v42, %v12769_v8  ;;  %v627_v32 = vsub.f32 %v12761_v60, %v19096_v0 }
  0xa7   :  { %475 = vmatpush1.msra.mxu0 %v12769_v8  ;;  %623 = vmatprep.subr.mxu1 %v622_v22  ;;  %v342_v22 = vpop.permute.xlu0 %341 }
  0xa8   :  { %698 = vmatprep.subr.mxu0 %v12488_v36  ;;  %514 = vmatmul.mubr.f32.vlgmr.msra.gmra.mxu0 %v12771_v55  ;;  %v19095_v23 = vand.u32 4294901760, %v12777_v30  ;;  %v628_v61 = vand.u32 4294901760, %v627_v32  ;;  %v19094_v42 = vand.u32 4294901760, %v12782_v4  ;;  %v12824_v32 = vsub.s32 2, %v12420_v6 }
  0xa9   :  { %701 = vmatpush1.msra.mxu0 %v12463_v25  ;;  %782 = vmatprep.mubr.f32.mxu0 %v19593_v50 }
  0xaa   :  { %704 = vmatprep.subr.mxu0 %v12510_v47  ;;  %629 = vmatpush1.msra.mxu1 %v628_v61  ;;  %v633_v15 = vsub.f32 %v12777_v30, %v19095_v23  ;;  %v639_v58 = vsub.f32 %v12782_v4, %v19094_v42  ;;  %19594 = vst [vmem:[#allocation21_spill] sm:$0xff] %v12824_v32  ;;  %v12827_v61 = vsub.s32 3, %v12420_v6  ;;  %v19598_v6 = vand.u32 4294901760, %v12513_v48 }
  0xab   :  { %707 = vmatpush1.msra.mxu0 %v12513_v48  ;;  %v12861_v42 = vand.u32 4294901760, %v12380_v3 }
  0xac   :  { %710 = vmatprep.subr.mxu0 %v12545_v5  ;;  %v634_v44 = vand.u32 4294901760, %v633_v15  ;;  %v640_v43 = vand.u32 4294901760, %v639_v58  ;;  %v19595_v15 = vand.u32 4294901760, %v12488_v36  ;;  %v298_v58 = vpop.permute.xlu1 %297  ;;  %v362_v36 = vrot.slane %v12430_v9, %v12824_v32 }
  0xad   :  { %713 = vmatpush1.msra.mxu0 %v12584_v34  ;;  %v322_v48 = vrot.slane %v12448_v17, %v12827_v61 }
  0xae   :  { %716 = vmatprep.subr.mxu0 %v12609_v63  ;;  %635 = vmatprep.subr.mxu1 %v634_v44  ;;  %v19596_v44 = vand.u32 4294901760, %v12463_v25  ;;  %v318_v25 = vrot.slane %v12448_v17, %v12824_v32  ;;  %v230_v17 = vrot.slane %v12522_v51, %v12824_v32 }
  0xaf   :  { %719 = vmatpush1.msra.mxu0 %v12612_v10  ;;  %641 = vmatpush1.msra.mxu1 %v640_v43  ;;  %v19597_v43 = vand.u32 4294901760, %v12510_v47  ;;  %v347_v47 = vsel %vm343_vm0, %v342_v22, %v12438_v13  ;;  %v278_v13 = vrot.slane %v12468_v26, %v12827_v61 }
  0xb0   :  { %722 = vmatprep.subr.mxu0 %v12562_v16  ;;  %676 = vmatmul.mubr.f32.vlgmr.msra.gmra.mxu1 %v12662_v41  ;;  %v210_v23 = vpop.permute.xlu1 %209 }
  0xb1   :  { %725 = vmatpush1.msra.mxu0 %v12566_v20  ;;  %806 = vmatprep.subr.mxu1 %v12470_v27 }
  0xb2   :  { %728 = vmatprep.subr.mxu0 %v12647_v56  ;;  %808 = vmatpush1.msra.mxu1 %v12450_v18 }
  0xb3   :  { %731 = vmatpush1.msra.mxu0 %v12680_v35  ;;  %810 = vmatprep.subr.mxu1 %v12494_v39 }
  0xb4   :  { %734 = vmatprep.subr.mxu0 %v12703_v57  ;;  %812 = vmatpush1.msra.mxu1 %v12496_v40 }
  0xb5   :  { %737 = vmatpush1.msra.mxu0 %v12706_v31  ;;  %814 = vmatprep.subr.mxu1 %v12531_v54 }
  0xb6   :  { %740 = vmatprep.subr.mxu0 %v12735_v2  ;;  %816 = vmatpush1.msra.mxu1 %v12568_v21 }
  0xb7   :  { %743 = vmatpush1.msra.mxu0 %v12761_v60  ;;  %818 = vmatprep.subr.mxu1 %v12593_v45 }
  0xb8   :  { %746 = vmatprep.subr.mxu0 %v12777_v30  ;;  %820 = vmatpush1.msra.mxu1 %v12595_v46 }
  0xb9   :  { %749 = vmatpush1.msra.mxu0 %v12782_v4  ;;  %822 = vmatprep.subr.mxu1 %v12526_v52 }
  0xba   :  { %785 = vmatmul.mubr.f32.vlgmr.msra.gmra.mxu0 %v12688_v37  ;;  %900 = vmatprep.subr.mxu0 %v19595_v15  ;;  %v366_v15 = vrot.slane %v12430_v9, %v12827_v61  ;;  %v19600_v9 = vand.u32 4294901760, %v12584_v34  ;;  %v303_v34 = vsel %vm299_vm1, %v298_v58, %v12474_v29 }
  0xbb   :  { %824 = vmatpush1.msra.mxu1 %v12529_v53  ;;  %904 = vmatpush1.msra.mxu0 %v19596_v44  ;;  %v19599_v44 = vand.u32 4294901760, %v12545_v5  ;;  %v344_v5 = vsel %vm343_vm0, %v12452_v19, %v342_v22  ;;  %v19602_v22 = vld [vmem:[#allocation7_spill] sm:$0xff]  ;;  %v19604_v19 = vld [vmem:[#allocation6_spill] sm:$0xff] }
  0xbc   :  { %826 = vmatprep.subr.mxu1 %v12631_v1  ;;  %908 = vmatprep.subr.mxu0 %v19597_v43  ;;  %v274_v43 = vrot.slane %v12468_v26, %v12824_v32  ;;  %v374_v26 = vmul.f32 %v366_v15, %v347_v47  ;;  %v19605_v15 = vand.u32 4294901760, %v12562_v16  ;;  %v19606_v47 = vld [vmem:[#allocation9_spill] sm:$0xff]  ;;  %v19608_v16 = vld [vmem:[#allocation8_spill] sm:$0xff] }
  0xbd   :  { %828 = vmatpush1.msra.mxu1 %v12664_v62  ;;  %912 = vmatpush1.msra.mxu0 %v19598_v6  ;;  %v254_v6 = vpop.permute.xlu0 %253 }
  0xbe   :  { %830 = vmatprep.subr.mxu1 %v12690_v12  ;;  %916 = vmatprep.subr.mxu0 %v19599_v44  ;;  %v19601_v44 = vand.u32 4294901760, %v12609_v63  ;;  %v300_v63 = vsel %vm299_vm1, %v12472_v28, %v298_v58  ;;  %v259_v29 = vsel %vm255_vm2, %v254_v6, %v19602_v22  ;;  %v256_v0 = vsel %vm255_vm2, %v19604_v19, %v254_v6 }
  0xbf   :  { %832 = vmatpush1.msra.mxu1 %v12692_v38  ;;  %920 = vmatpush1.msra.mxu0 %v19600_v9  ;;  %v234_v9 = vrot.slane %v12522_v51, %v12827_v61  ;;  %v19603_v51 = vand.u32 4294901760, %v12612_v10  ;;  %v12899_v28 = vsub.f32 %v12380_v3, %v12861_v42  ;;  %v330_v58 = vmul.f32 %v322_v48, %v303_v34  ;;  %v19610_v34 = vld [vmem:[#allocation3_spill] sm:$0xff] }
  0xc0   :  { %834 = vmatprep.subr.mxu1 %v12721_v49  ;;  %924 = vmatprep.subr.mxu0 %v19601_v44  ;;  %v373_v44 = vmul.f32 %v362_v36, %v344_v5  ;;  %v215_v10 = vsel %vm211_vm3, %v210_v23, %v19606_v47  ;;  %v186_v36 = vrot.slane %v12555_v14, %v12827_v61  ;;  %v19607_v5 = vld [vmem:[#allocation18_spill] sm:$0xff]  ;;  %v19609_v48 = vand.u32 4294901760, %v12566_v20 }
  0xc1   :  { %836 = vmatpush1.msra.mxu1 %v12745_v11  ;;  %873 = vmatprep.mubr.f32.mxu1 %v19593_v50  ;;  %v329_v6 = vmul.f32 %v318_v25, %v300_v63  ;;  %v286_v19 = vmul.f32 %v278_v13, %v259_v29  ;;  %v212_v22 = vsel %vm211_vm3, %v19608_v16, %v210_v23  ;;  %v160_v3 = vpop.permute.xlu0 %159  ;;  %v19612_v23 = vand.u32 4294901760, %v12647_v56  ;;  %v116_v63 = vpop.permute.xlu1 %115  ;;  %v19613_v29 = vld [vmem:[#allocation13_spill] sm:$0xff] }
  0xc2   :  { %838 = vmatprep.subr.mxu1 %v12767_v24  ;;  %928 = vmatpush1.msra.mxu0 %v19603_v51  ;;  %v12915_v51 = vand.u32 4294901760, %v19610_v34  ;;  %v285_v47 = vmul.f32 %v274_v43, %v256_v0  ;;  %v12926_v20 = vand.u32 4294901760, %v373_v44  ;;  %v94_v16 = vrot.slane %v19613_v29, %v12824_v32 }
  0xc3   :  { %840 = vmatpush1.msra.mxu1 %v12769_v8  ;;  %932 = vmatprep.subr.mxu0 %v19605_v15  ;;  %v12917_v15 = vand.u32 4294901760, %v374_v26  ;;  %v19614_v0 = vand.u32 4294901760, %v12680_v35  ;;  %v19097_v43 = vand.u32 4294901760, %v12899_v28  ;;  %v241_v56 = vmul.f32 %v230_v17, %v212_v22 }
  0xc4   :  { %877 = vmatmul.mubr.f32.vlgmr.msra.gmra.mxu1 %v19607_v5  ;;  %1024 = vmatprep.subr.mxu1 %v12470_v27  ;;  %v19611_v27 = vld [vmem:[#allocation11_spill] sm:$0xff]  ;;  %v12943_v35 = vand.u32 4294901760, %v329_v6  ;;  %v19618_v17 = vand.u32 4294901760, %v12706_v31  ;;  %v12955_v22 = vsub.f32 %v19610_v34, %v12915_v51 }
  0xc5   :  { %936 = vmatpush1.msra.mxu0 %v19609_v48  ;;  %1026 = vmatpush1.msra.mxu1 %v12450_v18  ;;  %v138_v25 = vrot.slane %v19611_v27, %v12824_v32  ;;  %v142_v13 = vrot.slane %v19611_v27, %v12827_v61  ;;  %v242_v18 = vmul.f32 %v234_v9, %v215_v10  ;;  %v12934_v48 = vand.u32 4294901760, %v330_v58  ;;  %v19615_v27 = vld [vmem:[#allocation17_spill] sm:$0xff] }
  0xc6   :  { %940 = vmatprep.subr.mxu0 %v19612_v23  ;;  %1028 = vmatprep.subr.mxu1 %v12494_v39  ;;  %v98_v39 = vrot.slane %v19613_v29, %v12827_v61  ;;  %v19616_v10 = vand.u32 4294901760, %v12703_v57  ;;  %v12945_v23 = vand.u32 4294901760, %v286_v19  ;;  %v12958_v57 = vsub.f32 %v374_v26, %v12917_v15  ;;  %v19620_v26 = vld [vmem:[#allocation15_spill] sm:$0xff] }
  0xc7   :  { %944 = vmatpush1.msra.mxu0 %v19614_v0  ;;  %1030 = vmatpush1.msra.mxu1 %v12496_v40  ;;  %v19617_v40 = vld [vmem:[#allocation12_spill] sm:$0xff]  ;;  %v12973_v31 = vand.u32 4294901760, %v242_v18  ;;  %v120_v34 = vsel %vm119_vm6, %v116_v63, %v19620_v26  ;;  %v12984_v2 = vsub.f32 %v12899_v28, %v19097_v43 }
  0xc8   :  { %948 = vmatprep.subr.mxu0 %v19616_v10  ;;  %1032 = vmatprep.subr.mxu1 %v12531_v54  ;;  %v164_v0 = vsel %vm163_vm4, %v160_v3, %v19617_v40  ;;  %v12960_v54 = vand.u32 4294901760, %v285_v47  ;;  %v19619_v10 = vld [vmem:[#allocation10_spill] sm:$0xff]  ;;  %v54_v40 = vrot.slane %v19615_v27, %v12827_v61 }
  0xc9   :  { %952 = vmatpush1.msra.mxu0 %v19618_v17  ;;  %1034 = vmatpush1.msra.mxu1 %v12568_v21  ;;  %v165_v9 = vsel %vm163_vm4, %v19619_v10, %v160_v3  ;;  %v12971_v21 = vsub.f32 %v373_v44, %v12926_v20  ;;  %v72_v17 = vpop.permute.xlu0 %71  ;;  %v19621_v3 = vand.u32 4294901760, %v12761_v60  ;;  %v194_v44 = vmul.f32 %v186_v36, %v164_v0  ;;  %v19622_v10 = vld [vmem:[#allocation14_spill] sm:$0xff]  ;;  %v26_v36 = vpop.permute.xlu1 %25 }
  0xca   :  { %956 = vmatprep.subr.mxu0 %v620_v33  ;;  %1036 = vmatprep.subr.mxu1 %v12593_v45  ;;  %v12987_v45 = vsub.f32 %v330_v58, %v12934_v48  ;;  %v12989_v33 = vand.u32 4294901760, %v241_v56  ;;  %v121_v26 = vsel %vm119_vm6, %v19622_v10, %v116_v63  ;;  %v19623_v60 = vand.u32 4294901760, %v12777_v30  ;;  %v19626_v63 = vld [vmem:[#allocation19_spill] sm:$0xff]  ;;  %v19627_v10 = vld [vmem:[#allocation16_spill] sm:$0xff] }
  0xcb   :  { %960 = vmatpush1.msra.mxu0 %v19621_v3  ;;  %1038 = vmatpush1.msra.mxu1 %v12595_v46  ;;  %v12998_v46 = vsub.f32 %v329_v6, %v12943_v35  ;;  %v13001_v3 = vsub.f32 %v286_v19, %v12945_v23  ;;  %v19624_v58 = vrot.slane %v12555_v14, %v12824_v32  ;;  %v19625_v0 = vand.u32 4294901760, %v12782_v4 }
  0xcc   :  { %964 = vmatprep.subr.mxu0 %v19623_v60  ;;  %1040 = vmatprep.subr.mxu1 %v12526_v52  ;;  %v19102_v30 = vand.u32 4294901760, %v12955_v22  ;;  %v13011_v52 = vsub.f32 %v285_v47, %v12960_v54  ;;  %v150_v6 = vmul.f32 %v142_v13, %v120_v34  ;;  %v76_v19 = vsel %vm75_vm7, %v72_v17, %v19626_v63 }
  0xcd   :  { %v193_v43 = vmul.f32 %v19624_v58, %v165_v9  ;;  %968 = vmatpush1.msra.mxu0 %v19625_v0  ;;  %1001 = vmatprep.mubr.f32.mxu0 %v19593_v50  ;;  %v1209_v14 = vand.u32 4294901760, %v12958_v57  ;;  %v13020_v4 = vsub.f32 %v242_v18, %v12973_v31  ;;  %v149_v9 = vmul.f32 %v138_v25, %v121_v26  ;;  %v19628_v26 = vld [vmem:[#allocation20_spill] sm:$0xff] }
  0xce   :  { %1042 = vmatpush1.msra.mxu1 %v12529_v53  ;;  %1003 = vmatmul.mubr.f32.vlgmr.msra.gmra.mxu0 %v12662_v41  ;;  %v77_v47 = vsel %vm75_vm7, %v19627_v10, %v72_v17  ;;  %v1215_v13 = vand.u32 4294901760, %v12971_v21  ;;  %v13029_v53 = vsub.f32 %v241_v56, %v12989_v33  ;;  %v13031_v34 = vand.u32 4294901760, %v194_v44 }
  0xcf   :  { %1044 = vmatprep.subr.mxu1 %v12631_v1  ;;  %1114 = vmatprep.subr.mxu0 %v12917_v15  ;;  %v32_v18 = vsel %vm31_vm8, %v26_v36, %v12749_v59  ;;  %v1221_v25 = vand.u32 4294901760, %v12987_v45  ;;  %v13039_v1 = vand.u32 4294901760, %v193_v43  ;;  %v106_v17 = vmul.f32 %v98_v39, %v76_v19 }
  0xd0   :  { %1046 = vmatpush1.msra.mxu1 %v12664_v62  ;;  %1116 = vmatpush1.msra.mxu0 %v12926_v20  ;;  %v33_v56 = vsel %vm31_vm8, %v19628_v26, %v26_v36  ;;  %v1227_v60 = vand.u32 4294901760, %v12998_v46  ;;  %v13047_v59 = vand.u32 4294901760, %v150_v6  ;;  %v105_v62 = vmul.f32 %v94_v16, %v77_v47 }
  0xd1   :  { %1048 = vmatprep.subr.mxu1 %v12690_v12  ;;  %1118 = vmatprep.subr.mxu0 %v12934_v48  ;;  %v1210_v39 = vsub.f32 %v12958_v57, %v1209_v14  ;;  %v19098_v12 = vand.u32 4294901760, %v13001_v3  ;;  %v13058_v58 = vand.u32 4294901760, %v149_v9  ;;  %v62_v36 = vmul.f32 %v54_v40, %v32_v18 }
  0xd2   :  { %1050 = vmatpush1.msra.mxu1 %v12692_v38  ;;  %1120 = vmatpush1.msra.mxu0 %v12943_v35  ;;  %v1216_v29 = vsub.f32 %v12971_v21, %v1215_v13  ;;  %v19099_v38 = vand.u32 4294901760, %v13011_v52  ;;  %v13067_v16 = vsub.f32 %v194_v44, %v13031_v34  ;;  %v19629_v0 = vrot.slane %v19615_v27, %v12824_v32 }
  0xd3   :  { %1052 = vmatprep.subr.mxu1 %v12721_v49  ;;  %1122 = vmatprep.subr.mxu0 %v12945_v23  ;;  %v1222_v49 = vsub.f32 %v12987_v45, %v1221_v25  ;;  %v19100_v40 = vand.u32 4294901760, %v13020_v4  ;;  %v13079_v19 = vsub.f32 %v193_v43, %v13039_v1  ;;  %v13081_v10 = vand.u32 4294901760, %v106_v17 }
  0xd4   :  { %v61_v63 = vmul.f32 %v19629_v0, %v33_v56  ;;  %1054 = vmatpush1.msra.mxu1 %v12745_v11  ;;  %1124 = vmatpush1.msra.mxu0 %v12960_v54  ;;  %v1228_v11 = vsub.f32 %v12998_v46, %v1227_v60  ;;  %v19101_v27 = vand.u32 4294901760, %v13029_v53  ;;  %v13090_v44 = vsub.f32 %v150_v6, %v13047_v59 }
  0xd5   :  { %1056 = vmatprep.subr.mxu1 %v12767_v24  ;;  %1126 = vmatprep.subr.mxu0 %v12973_v31  ;;  %v13092_v47 = vand.u32 4294901760, %v105_v62  ;;  %v1211_v43 = vand.u32 4294901760, %v1210_v39  ;;  %v1234_v24 = vsub.f32 %v13001_v3, %v19098_v12  ;;  %v13100_v18 = vsub.f32 %v149_v9, %v13058_v58 }
  0xd6   :  { %1058 = vmatpush1.msra.mxu1 %v12769_v8  ;;  %1091 = vmatprep.mubr.f32.mxu1 %v19593_v50  ;;  %v13102_v26 = vand.u32 4294901760, %v62_v36  ;;  %v1217_v6 = vand.u32 4294901760, %v1216_v29  ;;  %v1240_v8 = vsub.f32 %v13011_v52, %v19099_v38  ;;  %v13109_v56 = vand.u32 4294901760, %v61_v63 }
  0xd7   :  { %1128 = vmatpush1.msra.mxu0 %v12989_v33  ;;  %1093 = vmatmul.mubr.f32.vlgmr.msra.gmra.mxu1 %v12662_v41  ;;  %v1223_v39 = vand.u32 4294901760, %v1222_v49  ;;  %v1246_v9 = vsub.f32 %v13020_v4, %v19100_v40  ;;  %v1269_v0 = vand.u32 4294901760, %v13067_v16  ;;  %v13117_v12 = vsub.f32 %v106_v17, %v13081_v10 }
  0xd8   :  { %1130 = vmatprep.subr.mxu0 %v12861_v42  ;;  %1212 = vmatprep.subr.mxu1 %v1211_v43  ;;  %v1229_v29 = vand.u32 4294901760, %v1228_v11  ;;  %v1252_v38 = vsub.f32 %v13029_v53, %v19101_v27  ;;  %v1264_v49 = vsub.f32 %v12955_v22, %v19102_v30  ;;  %v13127_v43 = vsub.f32 %v105_v62, %v13092_v47 }
  0xd9   :  { %1132 = vmatpush1.msra.mxu0 %v12915_v51  ;;  %1218 = vmatpush1.msra.mxu1 %v1217_v6  ;;  %v1235_v17 = vand.u32 4294901760, %v1234_v24  ;;  %v1275_v40 = vand.u32 4294901760, %v13079_v19  ;;  %v13132_v6 = vsub.f32 %v62_v36, %v13102_v26  ;;  %v1241_v11 = vand.u32 4294901760, %v1240_v8 }
  0xda   :  { %1134 = vmatprep.subr.mxu0 %v13031_v34  ;;  %1224 = vmatprep.subr.mxu1 %v1223_v39  ;;  %v1259_v27 = vand.u32 4294901760, %v12984_v2  ;;  %v19103_v30 = vand.u32 4294901760, %v13090_v44  ;;  %v13138_v62 = vsub.f32 %v61_v63, %v13109_v56  ;;  %v1247_v24 = vand.u32 4294901760, %v1246_v9 }
  0xdb   :  { %1136 = vmatpush1.msra.mxu0 %v13039_v1  ;;  %1230 = vmatpush1.msra.mxu1 %v1229_v29  ;;  %v1270_v36 = vsub.f32 %v13067_v16, %v1269_v0  ;;  %v1287_v39 = vand.u32 4294901760, %v13100_v18  ;;  %v1253_v8 = vand.u32 4294901760, %v1252_v38  ;;  %v1265_v2 = vand.u32 4294901760, %v1264_v49 }
  0xdc   :  { %1138 = vmatprep.subr.mxu0 %v13047_v59  ;;  %1236 = vmatprep.subr.mxu1 %v1235_v17  ;;  %v19104_v29 = vand.u32 4294901760, %v13117_v12  ;;  %v1276_v63 = vsub.f32 %v13079_v19, %v1275_v40  ;;  %v1299_v9 = vand.u32 4294901760, %v13127_v43  ;;  %v1282_v17 = vsub.f32 %v13090_v44, %v19103_v30 }
  0xdd   :  { %1140 = vmatpush1.msra.mxu0 %v13058_v58  ;;  %1242 = vmatpush1.msra.mxu1 %v1241_v11  ;;  %v1305_v38 = vand.u32 4294901760, %v13132_v6  ;;  %v1271_v49 = vand.u32 4294901760, %v1270_v36  ;;  %v1288_v11 = vsub.f32 %v13100_v18, %v1287_v39 }
  0xde   :  { %1142 = vmatprep.subr.mxu0 %v13081_v10  ;;  %1248 = vmatprep.subr.mxu1 %v1247_v24  ;;  %v1311_v24 = vand.u32 4294901760, %v13138_v62  ;;  %v1277_v30 = vand.u32 4294901760, %v1276_v63  ;;  %v1283_v36 = vand.u32 4294901760, %v1282_v17 }
  0xdf   :  { %1144 = vmatpush1.msra.mxu0 %v13092_v47  ;;  %1254 = vmatpush1.msra.mxu1 %v1253_v8  ;;  %v1294_v8 = vsub.f32 %v13117_v12, %v19104_v29  ;;  %v1289_v29 = vand.u32 4294901760, %v1288_v11 }
  0xe0   :  { %1146 = vmatprep.subr.mxu0 %v13102_v26  ;;  %1260 = vmatprep.subr.mxu1 %v1259_v27  ;;  %v1300_v27 = vsub.f32 %v13127_v43, %v1299_v9  ;;  %v1312_v63 = vsub.f32 %v13138_v62, %v1311_v24 }
  0xe1   :  { %1148 = vmatpush1.msra.mxu0 %v13109_v56  ;;  %1266 = vmatpush1.msra.mxu1 %v1265_v2  ;;  %v1306_v2 = vsub.f32 %v13132_v6, %v1305_v38 }
  0xe2   :  { %1181 = vmatprep.mubr.f32.mxu0 %v19593_v50  ;;  %1272 = vmatprep.subr.mxu1 %v1271_v49  ;;  %v1295_v49 = vand.u32 4294901760, %v1294_v8 }
  0xe3   :  { %1371 = vmatprep.subr.mxu0 %v12958_v57  ;;  %1187 = vmatmul.mubr.f32.vlgmr.msra.gmra.mxu0 %v12771_v55  ;;  %v1301_v55 = vand.u32 4294901760, %v1300_v27  ;;  %v1307_v17 = vand.u32 4294901760, %v1306_v2  ;;  %v19631_v57 = vand.u32 4294901760, %v13011_v52 }
  0xe4   :  { %1278 = vmatpush1.msra.mxu1 %v1277_v30  ;;  %1374 = vmatpush1.msra.mxu0 %v12971_v21  ;;  %v1313_v30 = vand.u32 4294901760, %v1312_v63  ;;  %v19632_v21 = vand.u32 4294901760, %v13020_v4 }
  0xe5   :  { %1284 = vmatprep.subr.mxu1 %v1283_v36  ;;  %1377 = vmatprep.subr.mxu0 %v12987_v45  ;;  %v19633_v45 = vand.u32 4294901760, %v13029_v53 }
  0xe6   :  { %1290 = vmatpush1.msra.mxu1 %v1289_v29  ;;  %1380 = vmatpush1.msra.mxu0 %v12998_v46  ;;  %v19634_v46 = vand.u32 4294901760, %v12899_v28 }
  0xe7   :  { %1296 = vmatprep.subr.mxu1 %v1295_v49  ;;  %1383 = vmatprep.subr.mxu0 %v13001_v3 }
  0xe8   :  { %1302 = vmatpush1.msra.mxu1 %v1301_v55  ;;  %1386 = vmatpush1.msra.mxu0 %v13011_v52 }
  0xe9   :  { %1308 = vmatprep.subr.mxu1 %v1307_v17  ;;  %1389 = vmatprep.subr.mxu0 %v13020_v4 }
  0xea   :  { %1314 = vmatpush1.msra.mxu1 %v1313_v30  ;;  %1347 = vmatprep.mubr.f32.mxu1 %v19593_v50 }
  0xeb   :  { %1392 = vmatpush1.msra.mxu0 %v13029_v53  ;;  %1349 = vmatmul.mubr.f32.vlgmr.msra.gmra.mxu1 %v12662_v41 }
  0xec   :  { %1395 = vmatprep.subr.mxu0 %v12899_v28  ;;  %1479 = vmatprep.subr.mxu1 %v12917_v15  ;;  %v19636_v28 = vand.u32 4294901760, %v13090_v44 }
  0xed   :  { %1398 = vmatpush1.msra.mxu0 %v12955_v22  ;;  %1481 = vmatpush1.msra.mxu1 %v12926_v20 }
  0xee   :  { %1401 = vmatprep.subr.mxu0 %v13067_v16  ;;  %1483 = vmatprep.subr.mxu1 %v12934_v48 }
  0xef   :  { %1404 = vmatpush1.msra.mxu0 %v13079_v19  ;;  %1485 = vmatpush1.msra.mxu1 %v12943_v35 }
  0xf0   :  { %1407 = vmatprep.subr.mxu0 %v13090_v44  ;;  %1487 = vmatprep.subr.mxu1 %v12945_v23 }
  0xf1   :  { %1410 = vmatpush1.msra.mxu0 %v13100_v18  ;;  %1489 = vmatpush1.msra.mxu1 %v12960_v54 }
  0xf2   :  { %1413 = vmatprep.subr.mxu0 %v13117_v12  ;;  %1491 = vmatprep.subr.mxu1 %v12973_v31 }
  0xf3   :  { %1416 = vmatpush1.msra.mxu0 %v13127_v43  ;;  %1493 = vmatpush1.msra.mxu1 %v12989_v33 }
  0xf4   :  { %1419 = vmatprep.subr.mxu0 %v13132_v6  ;;  %1495 = vmatprep.subr.mxu1 %v12861_v42 }
  0xf5   :  { %1422 = vmatpush1.msra.mxu0 %v13138_v62  ;;  %1455 = vmatprep.mubr.f32.mxu0 %v19593_v50 }
  0xf6   :  { %1497 = vmatpush1.msra.mxu1 %v12915_v51  ;;  %1458 = vmatmul.mubr.f32.vlgmr.msra.gmra.mxu0 %v12688_v37  ;;  %v19630_v37 = vand.u32 4294901760, %v13001_v3  ;;  %v19635_v3 = vand.u32 4294901760, %v12955_v22 }
  0xf7   :  { %1499 = vmatprep.subr.mxu1 %v13031_v34  ;;  %1573 = vmatprep.subr.mxu0 %v1209_v14 }
  0xf8   :  { %1501 = vmatpush1.msra.mxu1 %v13039_v1  ;;  %1577 = vmatpush1.msra.mxu0 %v1215_v13 }
  0xf9   :  { %1503 = vmatprep.subr.mxu1 %v13047_v59  ;;  %1581 = vmatprep.subr.mxu0 %v1221_v25 }
  0xfa   :  { %1505 = vmatpush1.msra.mxu1 %v13058_v58  ;;  %1585 = vmatpush1.msra.mxu0 %v1227_v60 }
  0xfb   :  { %1507 = vmatprep.subr.mxu1 %v13081_v10  ;;  %1589 = vmatprep.subr.mxu0 %v19630_v37 }
  0xfc   :  { %1509 = vmatpush1.msra.mxu1 %v13092_v47  ;;  %1593 = vmatpush1.msra.mxu0 %v19631_v57 }
  0xfd   :  { %1511 = vmatprep.subr.mxu1 %v13102_v26  ;;  %1597 = vmatprep.subr.mxu0 %v19632_v21 }
  0xfe   :  { %1513 = vmatpush1.msra.mxu1 %v13109_v56  ;;  %1546 = vmatprep.mubr.f32.mxu1 %v19593_v50 }
  0xff   :  { %1601 = vmatpush1.msra.mxu0 %v19633_v45  ;;  %1550 = vmatmul.mubr.f32.vlgmr.msra.gmra.mxu1 %v19607_v5  ;;  %v19637_v5 = vand.u32 4294901760, %v13117_v12 }
 0x100   :  { %1605 = vmatprep.subr.mxu0 %v19634_v46  ;;  %1697 = vmatprep.subr.mxu1 %v12917_v15  ;;  %v13366_v46 = vld [vmem:[%s19048_s0 + $0x40] ss:$8 sm:$0xf] }
 0x101   :  { %1609 = vmatpush1.msra.mxu0 %v19635_v3  ;;  %1699 = vmatpush1.msra.mxu1 %v12926_v20 }
 0x102   :  { %1613 = vmatprep.subr.mxu0 %v1269_v0  ;;  %1701 = vmatprep.subr.mxu1 %v12934_v48 }
 0x103   :  { %1617 = vmatpush1.msra.mxu0 %v1275_v40  ;;  %1703 = vmatpush1.msra.mxu1 %v12943_v35 }
 0x104   :  { %1621 = vmatprep.subr.mxu0 %v19636_v28  ;;  %1705 = vmatprep.subr.mxu1 %v12945_v23 }
 0x105   :  { %1625 = vmatpush1.msra.mxu0 %v1287_v39  ;;  %1707 = vmatpush1.msra.mxu1 %v12960_v54 }
 0x106   :  { %1629 = vmatprep.subr.mxu0 %v19637_v5  ;;  %1709 = vmatprep.subr.mxu1 %v12973_v31  ;;  %v19646_v5 = vld [vmem:[#allocation4_spill] sm:$0xff] }
 0x107   :  { %1633 = vmatpush1.msra.mxu0 %v1299_v9  ;;  %1711 = vmatpush1.msra.mxu1 %v12989_v33 }
 0x108   :  { %1637 = vmatprep.subr.mxu0 %v1305_v38  ;;  %1713 = vmatprep.subr.mxu1 %v12861_v42 }
 0x109   :  { %1641 = vmatpush1.msra.mxu0 %v1311_v24  ;;  %1674 = vmatprep.mubr.f32.mxu0 %v19593_v50 }
 0x10a   :  { %1715 = vmatpush1.msra.mxu1 %v12915_v51  ;;  %1676 = vmatmul.mubr.f32.vlgmr.msra.gmra.mxu0 %v12662_v41  ;;  %v420_v51 = vpop.permute.xlu0 %419 }
 0x10b   :  { %1717 = vmatprep.subr.mxu1 %v13031_v34  ;;  %1764 = vmatprep.mubr.f32.mxu1 %v19593_v50 }
 0x10c   :  { %1719 = vmatpush1.msra.mxu1 %v13039_v1  ;;  %2241 = vmatprep.mubr.f32.mxu0 %v19593_v50 }
 0x10d   :  { %1721 = vmatprep.subr.mxu1 %v13047_v59 }
 0x10e   :  { %1723 = vmatpush1.msra.mxu1 %v13058_v58 }
 0x10f   :  { %1725 = vmatprep.subr.mxu1 %v13081_v10 }
 0x110   :  { %1727 = vmatpush1.msra.mxu1 %v13092_v47 }
 0x111   :  { %1729 = vmatprep.subr.mxu1 %v13102_v26 }
 0x112   :  { %1731 = vmatpush1.msra.mxu1 %v13109_v56 }
 0x113   :  { %1766 = vmatmul.mubr.f32.vlgmr.msra.gmra.mxu1 %v12662_v41 }
 0x114   :  { %2407 = vmatprep.mubr.f32.mxu1 %v19593_v50 }
 0x168   :  { %v515_v42 = vpop.f32.mrf.mxu0 }
 0x169   :  { %v516_v48 = vadd.f32 %v515_v42, %v420_v51  ;;  %v2087_v42 = vrot.slane %v13366_v46, %v19646_v5 }
 0x16a   :  { %v517_v15 = vpop.f32.mrf.mxu0 }
 0x16b   :  { %v518_v34 = vadd.f32 %v517_v15, %v420_v51 }
 0x170   :  { %v677_v20 = vpop.f32.mrf.mxu1 }
 0x171   :  { %v678_v22 = vadd.f32 %v677_v20, %v516_v48  ;;  %v12303_v48 = vmov 1  }
 0x172   :  { %v679_v23 = vpop.f32.mrf.mxu1  ;;  %12281 = vset.pattern.permute.xlu0 %v12303_v48 }
 0x173   :  { %v680_v25 = vadd.f32 %v679_v23, %v518_v34  ;;  %v13387_v23 = vld [vmem:[%s19048_s0 + $0x27] ss:$8 sm:$0xf]  ;;  %v13412_v34 = vld [vmem:[%s19048_s0 + $0x25] ss:$8 sm:$0xf] }
 0x174   :  { %19647 = vst [vmem:[#allocation17_spill] sm:$0xff] %v13387_v23  ;;  %19649 = vst [vmem:[#allocation10_spill] sm:$0xff] %v13412_v34 }
 0x17a   :  { %v786_v35 = vpop.f32.mrf.mxu0 }
 0x17b   :  { %v787_v33 = vadd.f32 %v786_v35, %v678_v22  ;;  %v2150_v35 = vld [vmem:[%s19049_s3] sm:$0xff] }
 0x17c   :  { %v788_v54 = vpop.f32.mrf.mxu0 }
 0x17d   :  { %v789_v1 = vadd.f32 %v788_v54, %v680_v25  ;;  %v13392_v54 = vld [vmem:[%s19048_s0 + $0x26] ss:$8 sm:$0xf] }
 0x17e   :  { %19648 = vst [vmem:[#allocation12_spill] sm:$0xff] %v13392_v54 }
 0x184   :  { %v878_v31 = vpop.f32.mrf.mxu1 }
 0x185   :  { %v879_v14 = vadd.f32 %v878_v31, %v787_v33 }
 0x186   :  { %v880_v4 = vpop.f32.mrf.mxu1 }
 0x187   :  { %v881_v59 = vadd.f32 %v880_v4, %v789_v1  ;;  %v2045_v4 = vrot.slane %v13387_v23, %v19646_v5 }
 0x18e   :  { %v1004_v52 = vpop.f32.mrf.mxu0 }
 0x18f   :  { %v1005_v13 = vadd.f32 %v1004_v52, %v879_v14 }
 0x190   :  { %v1006_v60 = vpop.f32.mrf.mxu0 }
 0x191   :  { %v1007_v58 = vadd.f32 %v1006_v60, %v881_v59 }
 0x197   :  { %v1094_v53 = vpop.f32.mrf.mxu1 }
 0x198   :  { %v13279_v41 = vadd.f32 %v1094_v53, %v1005_v13  ;;  %v2003_v53 = vrot.slane %v13392_v54, %v19646_v5 }
 0x199   :  { %v1096_v12 = vpop.f32.mrf.mxu1 }
 0x19a   :  { %19638 = vst [vmem:[#allocation7_spill] sm:$0xff] %v13279_v41  ;;  %2028 = vrot.lane.b32.xlu1 %v13279_v41, %s12294_s22  ;;  %2070 = vrot.lane.b32.xlu0 %v13279_v41, %s12293_s19  ;;  %v13293_v16 = vadd.f32 %v1096_v12, %v1007_v58  ;;  %v13376_v15 = vand.u32 4294901760, %v13279_v41  ;;  %v13424_v12 = vld [vmem:[%s19048_s0 + $0x22] ss:$8 sm:$0xf] }
 0x19c   :  { %19639 = vst [vmem:[#allocation6_spill] sm:$0xff] %v13293_v16  ;;  %v13400_v33 = vsub.f32 %v13279_v41, %v13376_v15 }
 0x19e   :  { %1944 = vrot.lane.b32.xlu1 %v13279_v41, %s12296_s24  ;;  %1986 = vrot.lane.b32.xlu0 %v13279_v41, %s12295_s23  ;;  %v19105_v59 = vand.u32 4294901760, %v13400_v33 }
 0x1a2   :  { %1856 = vrot.lane.b32.xlu1 %v13279_v41, %s12298_s28  ;;  %1898 = vrot.lane.b32.xlu0 %v13279_v41, %s12297_s25 }
 0x1a3   :  { %v1188_v40 = vpop.f32.mrf.mxu0 }
 0x1a4   :  { %v1189_v44 = vadd.f32 %v1188_v40, %v420_v51  ;;  %v1961_v40 = vrot.slane %v13412_v34, %v19646_v5 }
 0x1a5   :  { %v1190_v19 = vpop.f32.mrf.mxu0 }
 0x1a6   :  { %2072 = vrot.lane.b32.xlu1 %v13293_v16, %s12293_s19  ;;  %1814 = vrot.lane.b32.xlu0 %v13279_v41, %s12299_s29  ;;  %v1191_v29 = vadd.f32 %v1190_v19, %v420_v51  ;;  %v13373_v51 = vand.u32 4294901760, %v13293_v16  ;;  %v13431_v19 = vld [vmem:[%s19048_s0 + $0x23] ss:$8 sm:$0xf] }
 0x1a7   :  { %19650 = vst [vmem:[#allocation15_spill] sm:$0xff] %v13431_v19 }
 0x1a8   :  { %v13396_v31 = vsub.f32 %v13293_v16, %v13373_v51 }
 0x1aa   :  { %2030 = vrot.lane.b32.xlu1 %v13293_v16, %s12294_s22  ;;  %1988 = vrot.lane.b32.xlu0 %v13293_v16, %s12295_s23  ;;  %v19106_v60 = vand.u32 4294901760, %v13396_v31 }
 0x1ab   :  { %v1350_v10 = vpop.f32.mrf.mxu1 }
 0x1ac   :  { %v1351_v26 = vadd.f32 %v1350_v10, %v1189_v44 }
 0x1ad   :  { %v1352_v18 = vpop.f32.mrf.mxu1 }
 0x1ae   :  { %1946 = vrot.lane.b32.xlu1 %v13293_v16, %s12296_s24  ;;  %1858 = vrot.lane.b32.xlu0 %v13293_v16, %s12298_s28  ;;  %v1353_v11 = vadd.f32 %v1352_v18, %v1191_v29 }
 0x1b2   :  { %1900 = vrot.lane.b32.xlu1 %v13293_v16, %s12297_s25 }
 0x1b6   :  { %v1459_v47 = vpop.f32.mrf.mxu0 }
 0x1b7   :  { %v1460_v43 = vadd.f32 %v1459_v47, %v1351_v26  ;;  %v13443_v26 = vld [vmem:[%s19048_s0 + $0x21] ss:$8 sm:$0xf] }
 0x1b8   :  { %v1461_v56 = vpop.f32.mrf.mxu0  ;;  %19653 = vst [vmem:[#allocation16_spill] sm:$0xff] %v13443_v26 }
 0x1b9   :  { %v1462_v8 = vadd.f32 %v1461_v56, %v1353_v11 }
 0x1bf   :  { %v1551_v0 = vpop.f32.mrf.mxu1 }
 0x1c0   :  { %v1552_v62 = vadd.f32 %v1551_v0, %v1460_v43  ;;  %v19654_v0 = vld [vmem:[#allocation5_spill] sm:$0xff] }
 0x1c1   :  { %v1553_v39 = vpop.f32.mrf.mxu1  ;;  %v1877_v43 = vrot.slane %v13424_v12, %v19654_v0  ;;  %v1919_v29 = vrot.slane %v13431_v19, %v19654_v0  ;;  %v2007_v11 = vrot.slane %v13392_v54, %v19654_v0 }
 0x1c2   :  { %v1554_v36 = vadd.f32 %v1553_v39, %v1462_v8  ;;  %v12024_v39 = vld [vmem:[%s19050_s1 + $0x8] sm:$0xff] }
 0x1ca   :  { %v1677_v6 = vpop.f32.mrf.mxu0 }
 0x1cb   :  { %v1678_v9 = vadd.f32 %v1677_v6, %v1552_v62  ;;  %v13453_v6 = vsub.f32 %v13396_v31, %v19106_v60  ;;  %v13458_v62 = vsub.f32 %v13400_v33, %v19105_v59 }
 0x1cc   :  { %v1679_v27 = vpop.f32.mrf.mxu0 }
 0x1cd   :  { %v1680_v63 = vadd.f32 %v1679_v27, %v1554_v36  ;;  %v1965_v36 = vrot.slane %v13412_v34, %v19654_v0 }
 0x1d3   :  { %v1767_v38 = vpop.f32.mrf.mxu1 }
 0x1d4   :  { %v13309_v24 = vadd.f32 %v1767_v38, %v1678_v9  ;;  %v2091_v9 = vrot.slane %v13366_v46, %v19654_v0  ;;  %v2049_v38 = vrot.slane %v13387_v23, %v19654_v0 }
 0x1d5   :  { %v1769_v2 = vpop.f32.mrf.mxu1 }
 0x1d6   :  { %19640 = vst [vmem:[#allocation9_spill] sm:$0xff] %v13309_v24  ;;  %2074 = vrot.lane.b32.xlu1 %v13309_v24, %s12293_s19  ;;  %2032 = vrot.lane.b32.xlu0 %v13309_v24, %s12294_s22  ;;  %v13319_v49 = vadd.f32 %v1769_v2, %v1680_v63 }
 0x1d8   :  { %19641 = vst [vmem:[#allocation18_spill] sm:$0xff] %v13319_v49 }
 0x1da   :  { %1990 = vrot.lane.b32.xlu1 %v13309_v24, %s12295_s23  ;;  %1948 = vrot.lane.b32.xlu0 %v13309_v24, %s12296_s24 }
 0x1de   :  { %1816 = vrot.lane.b32.xlu1 %v13293_v16, %s12299_s29  ;;  %1904 = vrot.lane.b32.xlu0 %v13319_v49, %s12297_s25 }
 0x1e2   :  { %1772 = vrot.lane.b32.xlu1 %v13279_v41, %s12300_s30  ;;  %1820 = vrot.lane.b32.xlu0 %v13319_v49, %s12299_s29 }
 0x1e6   :  { %1862 = vrot.lane.b32.xlu1 %v13319_v49, %s12298_s28  ;;  %1774 = vrot.lane.b32.xlu0 %v13293_v16, %s12300_s30 }
 0x1ea   :  { %1778 = vrot.lane.b32.xlu1 %v13319_v49, %s12300_s30  ;;  %2076 = vrot.lane.b32.xlu0 %v13319_v49, %s12293_s19 }
 0x1ee   :  { %2034 = vrot.lane.b32.xlu1 %v13319_v49, %s12294_s22  ;;  %1992 = vrot.lane.b32.xlu0 %v13319_v49, %s12295_s23 }
 0x1f2   :  { %1950 = vrot.lane.b32.xlu1 %v13319_v49, %s12296_s24  ;;  %1902 = vrot.lane.b32.xlu0 %v13309_v24, %s12297_s25 }
 0x1f6   :  { %1860 = vrot.lane.b32.xlu1 %v13309_v24, %s12298_s28  ;;  %1818 = vrot.lane.b32.xlu0 %v13309_v24, %s12299_s29 }
 0x1fa   :  { %1776 = vrot.lane.b32.xlu1 %v13309_v24, %s12300_s30  ;;  %2153 = vperm.xlu0 %12281, %v2150_v35   ;;  %v1915_v35 = vrot.slane %v13431_v19, %v19646_v5 }
 0x20c   :  { %v13351_v55 = vpop.permute.xlu1 %2028  ;;  %v13353_v17 = vpop.permute.xlu0 %2070 }
 0x20d   :  { %19642 = vst [vmem:[#allocation8_spill] sm:$0xff] %v13351_v55  ;;  %19643 = vst [vmem:[#allocation3_spill] sm:$0xff] %v13353_v17 }
 0x210   :  { %v13355_v30 = vpop.permute.xlu1 %1944  ;;  %v13357_v37 = vpop.permute.xlu0 %1986 }
 0x211   :  { %19644 = vst [vmem:[#allocation11_spill] sm:$0xff] %v13355_v30  ;;  %19645 = vst [vmem:[#allocation13_spill] sm:$0xff] %v13357_v37 }
 0x214   :  { %v13359_v57 = vpop.permute.xlu1 %1856  ;;  %v13361_v21 = vpop.permute.xlu0 %1898 }
 0x218   :  { %v2073_v45 = vpop.permute.xlu1 %2072  ;;  %v13368_v3 = vpop.permute.xlu0 %1814 }
 0x219   :  { %v2080_v20 = vsel %vm343_vm0, %v13353_v17, %v2073_v45 }
 0x21a   :  { %v2104_v22 = vmul.f32 %v2087_v42, %v2080_v20 }
 0x21c   :  { %v2031_v28 = vpop.permute.xlu1 %2030  ;;  %v1989_v52 = vpop.permute.xlu0 %1988  ;;  %v13414_v25 = vand.u32 4294901760, %v2104_v22 }
 0x21d   :  { %v2038_v13 = vsel %vm299_vm1, %v13351_v55, %v2031_v28  ;;  %v1996_v1 = vsel %vm255_vm2, %v13357_v37, %v1989_v52 }
 0x21e   :  { %v2062_v58 = vmul.f32 %v2045_v4, %v2038_v13  ;;  %v2020_v10 = vmul.f32 %v2003_v53, %v1996_v1  ;;  %v13446_v56 = vsub.f32 %v2104_v22, %v13414_v25  ;;  %v2157_v22 = vsel %vm422_vm5, %v12024_v39, 0 }
 0x21f   :  { %v13515_v2 = vand.u32 4294901760, %v2157_v22 }
 0x220   :  { %v1947_v14 = vpop.permute.xlu1 %1946  ;;  %v13436_v47 = vpop.permute.xlu0 %1858  ;;  %v13471_v8 = vand.u32 4294901760, %v2062_v58  ;;  %v13477_v63 = vand.u32 4294901760, %v2020_v10 }
 0x221   :  { %v1954_v44 = vsel %vm211_vm3, %v13355_v30, %v1947_v14  ;;  %19651 = vst [vmem:[#allocation14_spill] sm:$0xff] %v13436_v47 }
 0x222   :  { %v1978_v27 = vmul.f32 %v1961_v40, %v1954_v44  ;;  %v13502_v40 = vld [vmem:[%s19048_s0 + $0x20] ss:$8 sm:$0xf]  ;;  %v1866_v44 = vsel %vm119_vm6, %v13359_v57, %v13436_v47  ;;  %v13511_v59 = vsub.f32 %v2062_v58, %v13471_v8  ;;  %v13518_v1 = vsub.f32 %v2020_v10, %v13477_v63 }
 0x224   :  { %v13438_v18 = vpop.permute.xlu1 %1900  ;;  %v13513_v60 = vand.u32 4294901760, %v1978_v27 }
 0x225   :  { %19652 = vst [vmem:[#allocation19_spill] sm:$0xff] %v13438_v18  ;;  %v1908_v42 = vsel %vm163_vm4, %v13361_v21, %v13438_v18 }
 0x226   :  { %v1933_v53 = vmul.f32 %v1919_v29, %v1908_v42  ;;  %v19659_v42 = vand.u32 4294901760, %v13446_v56 }
 0x248   :  { %v13483_v20 = vpop.permute.xlu1 %2074  ;;  %v13485_v48 = vpop.permute.xlu0 %2032 }
 0x249   :  { %19655 = vst [vmem:[#allocation20_spill] sm:$0xff] %v13483_v20  ;;  %19656 = vst [vmem:[#allocation22_spill] sm:$0xff] %v13485_v48  ;;  %v2079_v4 = vsel %vm343_vm0, %v2073_v45, %v13483_v20  ;;  %v2037_v13 = vsel %vm299_vm1, %v2031_v28, %v13485_v48 }
 0x24a   :  { %v2105_v45 = vmul.f32 %v2091_v9, %v2079_v4  ;;  %v2063_v39 = vmul.f32 %v2049_v38, %v2037_v13  ;;  %v1891_v4 = vmul.f32 %v1877_v43, %v1866_v44  ;;  %v2276_v13 = vsub.f32 %v13446_v56, %v19659_v42 }
 0x24b   :  { %v13549_v44 = vand.u32 4294901760, %v1933_v53  ;;  %v13554_v42 = vsub.f32 %v2157_v22, %v13515_v2 }
 0x24c   :  { %v13520_v16 = vand.u32 4294901760, %v2105_v45  ;;  %v13522_v41 = vand.u32 4294901760, %v2063_v39  ;;  %v13524_v9 = vpop.permute.xlu1 %1990  ;;  %v13526_v38 = vpop.permute.xlu0 %1948 }
 0x24d   :  { %19657 = vst [vmem:[#allocation23_spill] sm:$0xff] %v13524_v9  ;;  %19658 = vst [vmem:[#allocation24_spill] sm:$0xff] %v13526_v38  ;;  %v1995_v29 = vsel %vm255_vm2, %v1989_v52, %v13524_v9  ;;  %v1953_v10 = vsel %vm211_vm3, %v1947_v14, %v13526_v38  ;;  %v13547_v52 = vsub.f32 %v1978_v27, %v13513_v60  ;;  %v2277_v14 = vand.u32 4294901760, %v2276_v13 }
 0x24e   :  { %v13540_v28 = vsub.f32 %v2105_v45, %v13520_v16  ;;  %v13543_v47 = vsub.f32 %v2063_v39, %v13522_v41  ;;  %v2021_v58 = vmul.f32 %v2007_v11, %v1995_v29  ;;  %v1979_v43 = vmul.f32 %v1965_v36, %v1953_v10  ;;  %2174 = vmatprep.subr.mxu0 %v13520_v16 }
 0x24f   :  { %2176 = vmatpush1.msra.mxu0 %v13414_v25  ;;  %19660 = vst [vmem:[#allocation25_spill] sm:$0xff] %v13554_v42  ;;  %v13567_v10 = vand.u32 4294901760, %v1891_v4  ;;  %v13647_v48 = vand.u32 4294901760, %v13554_v42 }
 0x250   :  { %v13556_v45 = vand.u32 4294901760, %v2021_v58  ;;  %v13558_v39 = vand.u32 4294901760, %v1979_v43  ;;  %v13560_v11 = vpop.permute.xlu1 %1816  ;;  %2178 = vmatprep.subr.mxu0 %v13522_v41  ;;  %v13563_v36 = vpop.permute.xlu0 %1904  ;;  %v19663_v13 = vand.u32 4294901760, %v13540_v28 }
 0x251   :  { %19661 = vst [vmem:[#allocation26_spill] sm:$0xff] %v13560_v11  ;;  %19662 = vst [vmem:[#allocation27_spill] sm:$0xff] %v13563_v36  ;;  %v1909_v22 = vsel %vm163_vm4, %v13563_v36, %v13361_v21  ;;  %2180 = vmatpush1.msra.mxu0 %v13471_v8  ;;  %v1824_v29 = vsel %vm75_vm7, %v13368_v3, %v13560_v11  ;;  %v13587_v21 = vsub.f32 %v1933_v53, %v13549_v44 }
 0x252   :  { %v13576_v19 = vsub.f32 %v2021_v58, %v13556_v45  ;;  %v13579_v30 = vsub.f32 %v1979_v43, %v13558_v39  ;;  %v1932_v27 = vmul.f32 %v1915_v35, %v1909_v22  ;;  %2182 = vmatprep.subr.mxu0 %v13556_v45  ;;  %v2270_v58 = vsub.f32 %v13540_v28, %v19663_v13 }
 0x253   :  { %2184 = vmatpush1.msra.mxu0 %v13477_v63  ;;  %v19664_v43 = vand.u32 4294901760, %v13543_v47  ;;  %v19665_v36 = vand.u32 4294901760, %v13511_v59  ;;  %v13608_v37 = vsub.f32 %v1891_v4, %v13567_v10  ;;  %v19668_v13 = vrot.slane %v13443_v26, %v19646_v5 }
 0x254   :  { %v13599_v35 = vand.u32 4294901760, %v1932_v27  ;;  %v1773_v22 = vpop.permute.xlu1 %1772  ;;  %2186 = vmatprep.subr.mxu0 %v13558_v39  ;;  %v13602_v53 = vpop.permute.xlu0 %1820  ;;  %v2271_v54 = vand.u32 4294901760, %v2270_v58  ;;  %v19669_v34 = vand.u32 4294901760, %v13576_v19 }
 0x255   :  { %v2282_v18 = vsub.f32 %v13543_v47, %v19664_v43  ;;  %v2288_v11 = vsub.f32 %v13511_v59, %v19665_v36  ;;  %19666 = vst [vmem:[#allocation28_spill] sm:$0xff] %v13602_v53  ;;  %v19667_v43 = vrot.slane %v13443_v26, %v19654_v0  ;;  %v1825_v9 = vsel %vm75_vm7, %v13602_v53, %v13368_v3 }
 0x256   :  { %2188 = vmatpush1.msra.mxu0 %v13513_v60  ;;  %v13619_v38 = vsub.f32 %v1932_v27, %v13599_v35  ;;  %v1848_v4 = vmul.f32 %v19668_v13, %v1825_v9  ;;  %2272 = vmatprep.subr.mxu1 %v2271_v54  ;;  %v1789_v27 = vrot.slane %v13502_v40, %v19646_v5  ;;  %v19671_v53 = vand.u32 4294901760, %v13579_v30 }
 0x257   :  { %v1849_v36 = vmul.f32 %v19667_v43, %v1824_v29  ;;  %2190 = vmatprep.subr.mxu0 %v13373_v51  ;;  %v2294_v29 = vsub.f32 %v13576_v19, %v19669_v34  ;;  %v19670_v43 = vand.u32 4294901760, %v13518_v1  ;;  %v2283_v58 = vand.u32 4294901760, %v2282_v18  ;;  %2278 = vmatpush1.msra.mxu1 %v2277_v14 }
 0x258   :  { %2192 = vmatpush1.msra.mxu0 %v13376_v15  ;;  %v2306_v9 = vsub.f32 %v13579_v30, %v19671_v53  ;;  %v13638_v26 = vpop.permute.xlu1 %1862  ;;  %v13640_v34 = vpop.permute.xlu0 %1774  ;;  %v2289_v54 = vand.u32 4294901760, %v2288_v11  ;;  %v19674_v18 = vand.u32 4294901760, %v13547_v52 }
 0x259   :  { %v2300_v3 = vsub.f32 %v13518_v1, %v19670_v43  ;;  %19672 = vst [vmem:[#allocation29_spill] sm:$0xff] %v13638_v26  ;;  %19673 = vst [vmem:[#allocation30_spill] sm:$0xff] %v13640_v34  ;;  %2194 = vmatprep.subr.mxu0 %v13549_v44  ;;  %v2295_v43 = vand.u32 4294901760, %v2294_v29  ;;  %v13649_v23 = vand.u32 4294901760, %v1849_v36  ;;  %v1867_v14 = vsel %vm119_vm6, %v13638_v26, %v13359_v57 }
 0x25a   :  { %v2312_v55 = vsub.f32 %v13547_v52, %v19674_v18  ;;  %2284 = vmatprep.subr.mxu1 %v2283_v58  ;;  %v1782_v11 = vsel %vm31_vm8, %v1773_v22, %v13640_v34  ;;  %2196 = vmatpush1.msra.mxu0 %v13599_v35  ;;  %v13660_v29 = vand.u32 4294901760, %v1848_v4  ;;  %v19675_v18 = vrot.slane %v13424_v12, %v19646_v5 }
 0x25b   :  { %2290 = vmatpush1.msra.mxu1 %v2289_v54  ;;  %2198 = vmatprep.subr.mxu0 %v13567_v10  ;;  %v2301_v20 = vand.u32 4294901760, %v2300_v3  ;;  %v19140_v57 = vand.u32 4294901760, %v13608_v37  ;;  %v2307_v58 = vand.u32 4294901760, %v2306_v9  ;;  %v2325_v34 = vand.u32 4294901760, %v13458_v62 }
 0x25c   :  { %v1890_v13 = vmul.f32 %v19675_v18, %v1867_v14  ;;  %2296 = vmatprep.subr.mxu1 %v2295_v43  ;;  %v19676_v26 = vand.u32 4294901760, %v13587_v21  ;;  %v19677_v5 = vrot.slane %v13502_v40, %v19654_v0  ;;  %v13676_v54 = vpop.permute.xlu1 %1778  ;;  %v2313_v3 = vand.u32 4294901760, %v2312_v55  ;;  %v19695_v0 = vld [vmem:[#allocation13_spill] sm:$0xff] }
 0x25d   :  { %2302 = vmatpush1.msra.mxu1 %v2301_v20  ;;  %v2319_v18 = vand.u32 4294901760, %v13453_v6  ;;  %v13680_v9 = vsub.f32 %v1849_v36, %v13649_v23  ;;  %v1783_v62 = vsel %vm31_vm8, %v13676_v54, %v1773_v22  ;;  %v13691_v20 = vsub.f32 %v1848_v4, %v13660_v29 }
 0x25e   :  { %v2330_v53 = vsub.f32 %v13587_v21, %v19676_v26  ;;  %v13671_v17 = vand.u32 4294901760, %v1890_v13  ;;  %v1807_v14 = vmul.f32 %v19677_v5, %v1782_v11  ;;  %2308 = vmatprep.subr.mxu1 %v2307_v58  ;;  %v19678_v26 = vand.u32 4294901760, %v13619_v38 }
 0x25f   :  { %v2245_v5 = vsub.f32 %v13554_v42, %v13647_v48  ;;  %v1806_v6 = vmul.f32 %v1789_v27, %v1783_v62  ;;  %2314 = vmatpush1.msra.mxu1 %v2313_v3  ;;  %v2342_v22 = vsub.f32 %v13608_v37, %v19140_v57  ;;  %v19138_v3 = vand.u32 4294901760, %v13680_v9 }
 0x260   :  { %v2336_v43 = vsub.f32 %v13619_v38, %v19678_v26  ;;  %v13694_v55 = vsub.f32 %v1890_v13, %v13671_v17  ;;  %2200 = vmatpush1.msra.mxu0 %v13671_v17  ;;  %2320 = vmatprep.subr.mxu1 %v2319_v18  ;;  %v2331_v36 = vand.u32 4294901760, %v2330_v53  ;;  %v13700_v11 = vand.u32 4294901760, %v1807_v14 }
 0x261   :  { %v13702_v58 = vand.u32 4294901760, %v1806_v6  ;;  %2202 = vmatprep.subr.mxu0 %v13649_v23  ;;  %2326 = vmatpush1.msra.mxu1 %v2325_v34  ;;  %v13707_v13 = vand.u32 4294901760, %v2245_v5  ;;  %v2343_v53 = vand.u32 4294901760, %v2342_v22  ;;  %v19137_v18 = vand.u32 4294901760, %v13691_v20 }
 0x262   :  { %v19139_v4 = vand.u32 4294901760, %v13694_v55  ;;  %2204 = vmatpush1.msra.mxu0 %v13660_v29  ;;  %2332 = vmatprep.subr.mxu1 %v2331_v36  ;;  %v2337_v27 = vand.u32 4294901760, %v2336_v43  ;;  %v13718_v62 = vsub.f32 %v1807_v14, %v13700_v11  ;;  %v2354_v26 = vsub.f32 %v13680_v9, %v19138_v3 }
 0x263   :  { %2206 = vmatprep.subr.mxu0 %v13700_v11  ;;  %v2360_v43 = vsub.f32 %v13691_v20, %v19137_v18  ;;  %v13732_v14 = vsub.f32 %v1806_v6, %v13702_v58  ;;  %v19690_v18 = vld [vmem:[#allocation8_spill] sm:$0xff] }
 0x264   :  { %2338 = vmatpush1.msra.mxu1 %v2337_v27  ;;  %2208 = vmatpush1.msra.mxu0 %v13702_v58  ;;  %v2348_v34 = vsub.f32 %v13694_v55, %v19139_v4  ;;  %v2355_v22 = vand.u32 4294901760, %v2354_v26  ;;  %v19136_v36 = vand.u32 4294901760, %v13718_v62 }
 0x265   :  { %2344 = vmatprep.subr.mxu1 %v2343_v53  ;;  %2431 = vmatprep.subr.mxu0 %v13540_v28  ;;  %v2361_v27 = vand.u32 4294901760, %v2360_v43  ;;  %v19135_v6 = vand.u32 4294901760, %v13732_v14 }
 0x266   :  { %2247 = vmatmul.mubr.f32.vlgmr.msra.gmra.mxu0 %v13707_v13  ;;  %v2349_v5 = vand.u32 4294901760, %v2348_v34  ;;  %v2366_v53 = vsub.f32 %v13718_v62, %v19136_v36 }
 0x267   :  { %2434 = vmatpush1.msra.mxu0 %v13446_v56  ;;  %2515 = vmatprep.mubr.f32.mxu0 %v19593_v50  ;;  %v2372_v26 = vsub.f32 %v13732_v14, %v19135_v6 }
 0x268   :  { %2437 = vmatprep.subr.mxu0 %v13543_v47  ;;  %2350 = vmatpush1.msra.mxu1 %v2349_v5  ;;  %v2367_v34 = vand.u32 4294901760, %v2366_v53  ;;  %v2077_v5 = vpop.permute.xlu0 %2076  ;;  %v13771_v53 = vand.u32 4294901760, %v13309_v24 }
 0x269   :  { %2440 = vmatpush1.msra.mxu0 %v13511_v59  ;;  %2356 = vmatprep.subr.mxu1 %v2355_v22  ;;  %v2373_v43 = vand.u32 4294901760, %v2372_v26  ;;  %v19679_v22 = vand.u32 4294901760, %v13540_v28  ;;  %v19681_v26 = vand.u32 4294901760, %v13543_v47  ;;  %v19682_v28 = vand.u32 4294901760, %v13511_v59 }
 0x26a   :  { %2443 = vmatprep.subr.mxu0 %v13576_v19  ;;  %2362 = vmatpush1.msra.mxu1 %v2361_v27  ;;  %v19680_v27 = vand.u32 4294901760, %v13446_v56  ;;  %v19683_v56 = vand.u32 4294901760, %v13576_v19  ;;  %v19684_v47 = vand.u32 4294901760, %v13518_v1  ;;  %v2095_v59 = vrot.slane %v13366_v46, %v12824_v32 }
 0x26b   :  { %2446 = vmatpush1.msra.mxu0 %v13518_v1  ;;  %2368 = vmatprep.subr.mxu1 %v2367_v34  ;;  %v2035_v34 = vpop.permute.xlu1 %2034 }
 0x26c   :  { %2449 = vmatprep.subr.mxu0 %v13579_v30  ;;  %2374 = vmatpush1.msra.mxu1 %v2373_v43  ;;  %v13777_v43 = vand.u32 4294901760, %v13319_v49  ;;  %v2039_v3 = vsel %vm299_vm1, %v2035_v34, %v19690_v18  ;;  %v19694_v18 = vand.u32 4294901760, %v13396_v31 }
 0x26d   :  { %2452 = vmatpush1.msra.mxu0 %v13547_v52  ;;  %2409 = vmatmul.mubr.f32.vlgmr.msra.gmra.mxu1 %v13515_v2 }
 0x26e   :  { %2455 = vmatprep.subr.mxu0 %v13396_v31  ;;  %2539 = vmatprep.subr.mxu1 %v13520_v16  ;;  %v13804_v1 = vsub.f32 %v13319_v49, %v13777_v43  ;;  %v19698_v31 = vand.u32 4294901760, %v13587_v21 }
 0x26f   :  { %2458 = vmatpush1.msra.mxu0 %v13400_v33  ;;  %2541 = vmatpush1.msra.mxu1 %v13414_v25  ;;  %v1951_v4 = vpop.permute.xlu1 %1950 }
 0x270   :  { %2461 = vmatprep.subr.mxu0 %v13587_v21  ;;  %2543 = vmatprep.subr.mxu1 %v13522_v41  ;;  %v19701_v21 = vld [vmem:[#allocation15_spill] sm:$0xff] }
 0x271   :  { %2464 = vmatpush1.msra.mxu0 %v13619_v38  ;;  %2545 = vmatpush1.msra.mxu1 %v13471_v8 }
 0x272   :  { %2467 = vmatprep.subr.mxu0 %v13608_v37  ;;  %2547 = vmatprep.subr.mxu1 %v13556_v45 }
 0x273   :  { %2470 = vmatpush1.msra.mxu0 %v13694_v55  ;;  %2549 = vmatpush1.msra.mxu1 %v13477_v63 }
 0x274   :  { %2473 = vmatprep.subr.mxu0 %v13680_v9  ;;  %2551 = vmatprep.subr.mxu1 %v13558_v39 }
 0x275   :  { %2476 = vmatpush1.msra.mxu0 %v13691_v20  ;;  %2553 = vmatpush1.msra.mxu1 %v13513_v60 }
 0x276   :  { %2479 = vmatprep.subr.mxu0 %v13718_v62  ;;  %2555 = vmatprep.subr.mxu1 %v13373_v51 }
 0x277   :  { %2482 = vmatpush1.msra.mxu0 %v13732_v14  ;;  %2557 = vmatpush1.msra.mxu1 %v13376_v15 }
 0x278   :  { %2518 = vmatmul.mubr.f32.vlgmr.msra.gmra.mxu0 %v13554_v42  ;;  %2633 = vmatprep.subr.mxu0 %v19679_v22  ;;  %v2099_v22 = vrot.slane %v13366_v46, %v12827_v61  ;;  %v19688_v46 = vld [vmem:[#allocation17_spill] sm:$0xff] }
 0x279   :  { %2637 = vmatpush1.msra.mxu0 %v19680_v27  ;;  %2559 = vmatprep.subr.mxu1 %v13549_v44  ;;  %v13792_v27 = vsub.f32 %v13309_v24, %v13771_v53  ;;  %v2053_v36 = vrot.slane %v19688_v46, %v12824_v32  ;;  %v19693_v24 = vld [vmem:[#allocation23_spill] sm:$0xff] }
 0x27a   :  { %2641 = vmatprep.subr.mxu0 %v19681_v26  ;;  %2561 = vmatpush1.msra.mxu1 %v13599_v35  ;;  %v19685_v26 = vld [vmem:[#allocation3_spill] sm:$0xff] }
 0x27b   :  { %2645 = vmatpush1.msra.mxu0 %v19682_v28  ;;  %v2081_v19 = vsel %vm343_vm0, %v2077_v5, %v19685_v26  ;;  %v1993_v28 = vpop.permute.xlu0 %1992  ;;  %2563 = vmatprep.subr.mxu1 %v13567_v10  ;;  %v2057_v26 = vrot.slane %v19688_v46, %v12827_v61  ;;  %v19692_v46 = vand.u32 4294901760, %v13547_v52  ;;  %v19696_v52 = vld [vmem:[#allocation10_spill] sm:$0xff] }
 0x27c   :  { %2649 = vmatprep.subr.mxu0 %v19683_v56  ;;  %v19686_v56 = vand.u32 4294901760, %v13579_v30  ;;  %2565 = vmatpush1.msra.mxu1 %v13671_v17  ;;  %v19689_v30 = vld [vmem:[#allocation22_spill] sm:$0xff]  ;;  %v2107_v57 = vmul.f32 %v2099_v22, %v2081_v19  ;;  %v1997_v42 = vsel %vm255_vm2, %v1993_v28, %v19695_v0  ;;  %v1969_v22 = vrot.slane %v19696_v52, %v12824_v32  ;;  %v19699_v0 = vld [vmem:[#allocation24_spill] sm:$0xff] }
 0x27d   :  { %2653 = vmatpush1.msra.mxu0 %v19684_v47  ;;  %v19687_v47 = vld [vmem:[#allocation20_spill] sm:$0xff]  ;;  %2606 = vmatprep.mubr.f32.mxu1 %v19593_v50  ;;  %v19697_v19 = vand.u32 4294901760, %v13400_v33 }
 0x27e   :  { %2657 = vmatprep.subr.mxu0 %v19686_v56  ;;  %v2078_v6 = vsel %vm343_vm0, %v19687_v47, %v2077_v5  ;;  %v2036_v56 = vsel %vm299_vm1, %v19689_v30, %v2035_v34  ;;  %v19691_v5 = vld [vmem:[#allocation12_spill] sm:$0xff]  ;;  %2567 = vmatprep.subr.mxu1 %v13649_v23  ;;  %v1994_v30 = vsel %vm255_vm2, %v19693_v24, %v1993_v28  ;;  %v19700_v28 = vld [vmem:[#allocation11_spill] sm:$0xff] }
 0x27f   :  { %v2011_v47 = vrot.slane %v19691_v5, %v12824_v32  ;;  %2661 = vmatpush1.msra.mxu0 %v19692_v46  ;;  %v2015_v49 = vrot.slane %v19691_v5, %v12827_v61  ;;  %2569 = vmatpush1.msra.mxu1 %v13660_v29  ;;  %v2106_v34 = vmul.f32 %v2095_v59, %v2078_v6 }
 0x280   :  { %2665 = vmatprep.subr.mxu0 %v19694_v18  ;;  %2571 = vmatprep.subr.mxu1 %v13700_v11  ;;  %v2064_v5 = vmul.f32 %v2053_v36, %v2036_v56  ;;  %v2065_v24 = vmul.f32 %v2057_v26, %v2039_v3  ;;  %v1973_v46 = vrot.slane %v19696_v52, %v12827_v61  ;;  %v1903_v18 = vpop.permute.xlu0 %1902  ;;  %v13855_v3 = vand.u32 4294901760, %v2107_v57 }
 0x281   :  { %2669 = vmatpush1.msra.mxu0 %v19697_v19  ;;  %2573 = vmatpush1.msra.mxu1 %v13702_v58  ;;  %v2022_v6 = vmul.f32 %v2011_v47, %v1994_v30  ;;  %v1952_v59 = vsel %vm211_vm3, %v19699_v0, %v1951_v4  ;;  %v1955_v33 = vsel %vm211_vm3, %v1951_v4, %v19700_v28  ;;  %v19702_v47 = vand.u32 4294901760, %v13619_v38  ;;  %v19705_v0 = vld [vmem:[#allocation27_spill] sm:$0xff] }
 0x282   :  { %2673 = vmatprep.subr.mxu0 %v19698_v31  ;;  %2610 = vmatmul.mubr.f32.vlgmr.msra.gmra.mxu1 %v13647_v48  ;;  %v2023_v36 = vmul.f32 %v2015_v49, %v1997_v42  ;;  %v1923_v26 = vrot.slane %v19701_v21, %v12824_v32  ;;  %v1927_v56 = vrot.slane %v19701_v21, %v12827_v61  ;;  %v13864_v4 = vand.u32 4294901760, %v2106_v34  ;;  %v1861_v49 = vpop.permute.xlu1 %1860  ;;  %v19703_v42 = vld [vmem:[#allocation16_spill] sm:$0xff] }
 0x283   :  { %2757 = vmatprep.subr.mxu1 %v13520_v16  ;;  %2677 = vmatpush1.msra.mxu0 %v19702_v47  ;;  %v1881_v30 = vrot.slane %v13424_v12, %v12824_v32  ;;  %v1885_v16 = vrot.slane %v13424_v12, %v12827_v61  ;;  %v1839_v52 = vrot.slane %v19703_v42, %v12824_v32  ;;  %v19704_v19 = vand.u32 4294901760, %v13608_v37 }
 0x284   :  { %2759 = vmatpush1.msra.mxu1 %v13414_v25  ;;  %v13875_v25 = vand.u32 4294901760, %v2065_v24  ;;  %v1980_v38 = vmul.f32 %v1969_v22, %v1952_v59  ;;  %v1981_v31 = vmul.f32 %v1973_v46, %v1955_v33  ;;  %v1906_v28 = vsel %vm163_vm4, %v1903_v18, %v19705_v0  ;;  %v19708_v46 = vld [vmem:[#allocation19_spill] sm:$0xff]  ;;  %2734 = vmatprep.mubr.f32.mxu0 %v19593_v50 }
 0x285   :  { %2761 = vmatprep.subr.mxu1 %v13522_v41  ;;  %2681 = vmatprep.subr.mxu0 %v19704_v19  ;;  %v19706_v12 = vand.u32 4294901760, %v13694_v55  ;;  %v13883_v21 = vand.u32 4294901760, %v2064_v5  ;;  %v13885_v47 = vand.u32 4294901760, %v2022_v6  ;;  %v1843_v41 = vrot.slane %v19703_v42, %v12827_v61 }
 0x286   :  { %2763 = vmatpush1.msra.mxu1 %v13471_v8  ;;  %v1797_v37 = vrot.slane %v13502_v40, %v12824_v32  ;;  %v19707_v22 = vand.u32 4294901760, %v13680_v9  ;;  %v13895_v8 = vsub.f32 %v2107_v57, %v13855_v3  ;;  %v13897_v55 = vand.u32 4294901760, %v2023_v36  ;;  %v19710_v57 = vld [vmem:[#allocation29_spill] sm:$0xff]  ;;  %2824 = vmatprep.mubr.f32.mxu1 %v19593_v50 }
 0x287   :  { %2685 = vmatpush1.msra.mxu0 %v19706_v12  ;;  %2765 = vmatprep.subr.mxu1 %v13556_v45  ;;  %v1907_v59 = vsel %vm163_vm4, %v19708_v46, %v1903_v18  ;;  %v1801_v33 = vrot.slane %v13502_v40, %v12827_v61  ;;  %v19709_v19 = vand.u32 4294901760, %v13691_v20  ;;  %v13908_v45 = vsub.f32 %v2106_v34, %v13864_v4  ;;  %v1819_v12 = vpop.permute.xlu0 %1818 }
 0x288   :  { %2689 = vmatprep.subr.mxu0 %v19707_v22  ;;  %2767 = vmatpush1.msra.mxu1 %v13477_v63  ;;  %v1935_v9 = vmul.f32 %v1927_v56, %v1906_v28  ;;  %v1864_v0 = vsel %vm119_vm6, %v1861_v49, %v19710_v57  ;;  %v19711_v18 = vand.u32 4294901760, %v13718_v62  ;;  %v19148_v22 = vand.u32 4294901760, %v13792_v27  ;;  %v19712_v56 = vld [vmem:[#allocation14_spill] sm:$0xff] }
 0x289   :  { %2693 = vmatpush1.msra.mxu0 %v19709_v19  ;;  %2769 = vmatprep.subr.mxu1 %v13558_v39  ;;  %v13918_v63 = vsub.f32 %v2065_v24, %v13875_v25  ;;  %v13920_v20 = vand.u32 4294901760, %v1981_v31  ;;  %v13922_v34 = vand.u32 4294901760, %v1980_v38  ;;  %v1865_v28 = vsel %vm119_vm6, %v19712_v56, %v1861_v49  ;;  %v1777_v19 = vpop.permute.xlu1 %1776  ;;  %v19716_v56 = vld [vmem:[#allocation30_spill] sm:$0xff] }
 0x28a   :  { %2697 = vmatprep.subr.mxu0 %v19711_v18  ;;  %2771 = vmatpush1.msra.mxu1 %v13513_v60  ;;  %v19713_v39 = vand.u32 4294901760, %v13732_v14  ;;  %v13931_v62 = vsub.f32 %v2064_v5, %v13883_v21  ;;  %v13934_v46 = vsub.f32 %v2022_v6, %v13885_v47  ;;  %v1934_v24 = vmul.f32 %v1923_v26, %v1907_v59  ;;  %v19714_v14 = vld [vmem:[#allocation28_spill] sm:$0xff]  ;;  %v19715_v59 = vld [vmem:[#allocation26_spill] sm:$0xff] }
 0x28b   :  { %2773 = vmatprep.subr.mxu1 %v13373_v51  ;;  %v19147_v57 = vand.u32 4294901760, %v13804_v1  ;;  %v13940_v49 = vsub.f32 %v2023_v36, %v13897_v55  ;;  %v1893_v60 = vmul.f32 %v1885_v16, %v1864_v0  ;;  %v1822_v5 = vsel %vm75_vm7, %v1819_v12, %v19714_v14 }
 0x28c   :  { %2701 = vmatpush1.msra.mxu0 %v19713_v39  ;;  %2775 = vmatpush1.msra.mxu1 %v13376_v15  ;;  %v2942_v6 = vand.u32 4294901760, %v13895_v8  ;;  %v13948_v26 = vand.u32 4294901760, %v1935_v9  ;;  %v1892_v51 = vmul.f32 %v1881_v30, %v1865_v28  ;;  %v1823_v18 = vsel %vm75_vm7, %v19715_v59, %v1819_v12 }
 0x28d   :  { %2736 = vmatmul.mubr.f32.vlgmr.msra.gmra.mxu0 %v13515_v2  ;;  %2777 = vmatprep.subr.mxu1 %v13549_v44  ;;  %v2948_v36 = vand.u32 4294901760, %v13908_v45  ;;  %v13957_v16 = vsub.f32 %v1981_v31, %v13920_v20  ;;  %v13960_v15 = vsub.f32 %v1980_v38, %v13922_v34  ;;  %v1780_v30 = vsel %vm31_vm8, %v1777_v19, %v13676_v54 }
 0x28e   :  { %2847 = vmatprep.subr.mxu0 %v13855_v3  ;;  %2779 = vmatpush1.msra.mxu1 %v13599_v35  ;;  %v2954_v44 = vand.u32 4294901760, %v13918_v63  ;;  %v13968_v0 = vand.u32 4294901760, %v1934_v24  ;;  %v1851_v12 = vmul.f32 %v1843_v41, %v1822_v5  ;;  %v1781_v31 = vsel %vm31_vm8, %v19716_v56, %v1777_v19 }
 0x28f   :  { %2849 = vmatpush1.msra.mxu0 %v13864_v4  ;;  %2781 = vmatprep.subr.mxu1 %v13567_v10  ;;  %v2960_v38 = vand.u32 4294901760, %v13931_v62  ;;  %v13976_v54 = vand.u32 4294901760, %v1893_v60  ;;  %v1850_v35 = vmul.f32 %v1839_v52, %v1823_v18  ;;  %v2943_v41 = vsub.f32 %v13895_v8, %v2942_v6 }
 0x290   :  { %2851 = vmatprep.subr.mxu0 %v13875_v25  ;;  %2783 = vmatpush1.msra.mxu1 %v13671_v17  ;;  %v2966_v10 = vand.u32 4294901760, %v13940_v49  ;;  %v13987_v28 = vand.u32 4294901760, %v1892_v51  ;;  %v1809_v39 = vmul.f32 %v1801_v33, %v1780_v30  ;;  %v2949_v42 = vsub.f32 %v13908_v45, %v2948_v36 }
 0x291   :  { %2853 = vmatpush1.msra.mxu0 %v13883_v21  ;;  %2785 = vmatprep.subr.mxu1 %v13649_v23  ;;  %v19145_v17 = vand.u32 4294901760, %v13934_v46  ;;  %v13996_v52 = vsub.f32 %v1935_v9, %v13948_v26  ;;  %v1808_v19 = vmul.f32 %v1797_v37, %v1781_v31  ;;  %v2955_v23 = vsub.f32 %v13918_v63, %v2954_v44 }
 0x292   :  { %2855 = vmatprep.subr.mxu0 %v13897_v55  ;;  %2787 = vmatpush1.msra.mxu1 %v13660_v29  ;;  %v19146_v33 = vand.u32 4294901760, %v13957_v16  ;;  %v14008_v14 = vsub.f32 %v1934_v24, %v13968_v0  ;;  %v14010_v5 = vand.u32 4294901760, %v1851_v12  ;;  %v2961_v40 = vsub.f32 %v13931_v62, %v2960_v38 }
 0x293   :  { %2857 = vmatpush1.msra.mxu0 %v13885_v47  ;;  %2789 = vmatprep.subr.mxu1 %v13700_v11  ;;  %v2984_v29 = vand.u32 4294901760, %v13960_v15  ;;  %v14019_v37 = vsub.f32 %v1893_v60, %v13976_v54  ;;  %v14021_v9 = vand.u32 4294901760, %v1850_v35  ;;  %v2944_v24 = vand.u32 4294901760, %v2943_v41 }
 0x294   :  { %2859 = vmatprep.subr.mxu0 %v13920_v20  ;;  %2791 = vmatpush1.msra.mxu1 %v13702_v58  ;;  %v2967_v11 = vsub.f32 %v13940_v49, %v2966_v10  ;;  %v14029_v59 = vsub.f32 %v1892_v51, %v13987_v28  ;;  %v14031_v18 = vand.u32 4294901760, %v1809_v39  ;;  %v2950_v60 = vand.u32 4294901760, %v2949_v42 }
 0x295   :  { %2861 = vmatpush1.msra.mxu0 %v13922_v34  ;;  %2826 = vmatmul.mubr.f32.vlgmr.msra.gmra.mxu1 %v13515_v2  ;;  %v2973_v58 = vsub.f32 %v13934_v46, %v19145_v17  ;;  %v14038_v30 = vand.u32 4294901760, %v1808_v19  ;;  %v2956_v56 = vand.u32 4294901760, %v2955_v23  ;;  %v2979_v51 = vsub.f32 %v13957_v16, %v19146_v33 }
 0x296   :  { %2863 = vmatprep.subr.mxu0 %v13777_v43  ;;  %2945 = vmatprep.subr.mxu1 %v2944_v24  ;;  %v19149_v31 = vand.u32 4294901760, %v13996_v52  ;;  %v14046_v41 = vsub.f32 %v1851_v12, %v14010_v5  ;;  %v2962_v42 = vand.u32 4294901760, %v2961_v40  ;;  %v2985_v17 = vsub.f32 %v13960_v15, %v2984_v29 }
 0x297   :  { %2865 = vmatpush1.msra.mxu0 %v13771_v53  ;;  %2951 = vmatpush1.msra.mxu1 %v2950_v60  ;;  %v14053_v24 = vsub.f32 %v1850_v35, %v14021_v9  ;;  %v2968_v23 = vand.u32 4294901760, %v2967_v11  ;;  %v2991_v12 = vsub.f32 %v13804_v1, %v19147_v57  ;;  %v19150_v33 = vand.u32 4294901760, %v14008_v14 }
 0x298   :  { %2867 = vmatprep.subr.mxu0 %v13948_v26  ;;  %2957 = vmatprep.subr.mxu1 %v2956_v56  ;;  %v14061_v60 = vsub.f32 %v1809_v39, %v14031_v18  ;;  %v2974_v40 = vand.u32 4294901760, %v2973_v58  ;;  %v2997_v35 = vsub.f32 %v13792_v27, %v19148_v22  ;;  %v3014_v56 = vand.u32 4294901760, %v14019_v37 }
 0x299   :  { %2869 = vmatpush1.msra.mxu0 %v13968_v0  ;;  %2963 = vmatpush1.msra.mxu1 %v2962_v42  ;;  %v14069_v11 = vsub.f32 %v1808_v19, %v14038_v30  ;;  %v2980_v57 = vand.u32 4294901760, %v2979_v51  ;;  %v3003_v39 = vsub.f32 %v13996_v52, %v19149_v31  ;;  %v3020_v42 = vand.u32 4294901760, %v14029_v59 }
 0x29a   :  { %2871 = vmatprep.subr.mxu0 %v13976_v54  ;;  %2969 = vmatprep.subr.mxu1 %v2968_v23  ;;  %v2986_v58 = vand.u32 4294901760, %v2985_v17  ;;  %v19151_v22 = vand.u32 4294901760, %v14046_v41  ;;  %v2992_v19 = vand.u32 4294901760, %v2991_v12  ;;  %v3009_v51 = vsub.f32 %v14008_v14, %v19150_v33 }
 0x29b   :  { %2873 = vmatpush1.msra.mxu0 %v13987_v28  ;;  %2975 = vmatpush1.msra.mxu1 %v2974_v40  ;;  %v3032_v23 = vand.u32 4294901760, %v14053_v24  ;;  %v2998_v31 = vand.u32 4294901760, %v2997_v35  ;;  %v3015_v17 = vsub.f32 %v14019_v37, %v3014_v56  ;;  %v3038_v40 = vand.u32 4294901760, %v14061_v60 }
 0x29c   :  { %2875 = vmatprep.subr.mxu0 %v14010_v5  ;;  %2981 = vmatprep.subr.mxu1 %v2980_v57  ;;  %v3004_v57 = vand.u32 4294901760, %v3003_v39  ;;  %v3021_v12 = vsub.f32 %v14029_v59, %v3020_v42  ;;  %v3044_v33 = vand.u32 4294901760, %v14069_v11  ;;  %v3027_v35 = vsub.f32 %v14046_v41, %v19151_v22 }
 0x29d   :  { %2877 = vmatpush1.msra.mxu0 %v14021_v9  ;;  %2987 = vmatpush1.msra.mxu1 %v2986_v58  ;;  %v3010_v58 = vand.u32 4294901760, %v3009_v51  ;;  %v3033_v39 = vsub.f32 %v14053_v24, %v3032_v23 }
 0x29e   :  { %2879 = vmatprep.subr.mxu0 %v14031_v18  ;;  %2993 = vmatprep.subr.mxu1 %v2992_v19  ;;  %v3016_v19 = vand.u32 4294901760, %v3015_v17  ;;  %v3022_v22 = vand.u32 4294901760, %v3021_v12  ;;  %v3045_v51 = vsub.f32 %v14069_v11, %v3044_v33 }
 0x29f   :  { %2881 = vmatpush1.msra.mxu0 %v14038_v30  ;;  %2999 = vmatpush1.msra.mxu1 %v2998_v31  ;;  %v3039_v31 = vsub.f32 %v14061_v60, %v3038_v40 }
 0x2a0   :  { %2914 = vmatprep.mubr.f32.mxu0 %v19593_v50  ;;  %3005 = vmatprep.subr.mxu1 %v3004_v57  ;;  %v3028_v57 = vand.u32 4294901760, %v3027_v35  ;;  %v3046_v12 = vand.u32 4294901760, %v3045_v51 }
 0x2a1   :  { %3104 = vmatprep.subr.mxu0 %v13895_v8  ;;  %2920 = vmatmul.mubr.f32.vlgmr.msra.gmra.mxu0 %v13707_v13  ;;  %v3034_v13 = vand.u32 4294901760, %v3033_v39  ;;  %v3040_v17 = vand.u32 4294901760, %v3039_v31  ;;  %v19718_v8 = vand.u32 4294901760, %v13934_v46 }
 0x2a2   :  { %3011 = vmatpush1.msra.mxu1 %v3010_v58  ;;  %3107 = vmatpush1.msra.mxu0 %v13908_v45  ;;  %v19719_v45 = vand.u32 4294901760, %v13957_v16 }
 0x2a3   :  { %3017 = vmatprep.subr.mxu1 %v3016_v19  ;;  %3110 = vmatprep.subr.mxu0 %v13918_v63  ;;  %v19720_v63 = vand.u32 4294901760, %v13804_v1 }
 0x2a4   :  { %3023 = vmatpush1.msra.mxu1 %v3022_v22  ;;  %3113 = vmatpush1.msra.mxu0 %v13931_v62  ;;  %v19717_v22 = vld [vmem:[#allocation25_spill] sm:$0xff]  ;;  %v19721_v62 = vand.u32 4294901760, %v13792_v27 }
 0x2a5   :  { %3029 = vmatprep.subr.mxu1 %v3028_v57  ;;  %3116 = vmatprep.subr.mxu0 %v13940_v49  ;;  %v19723_v49 = vand.u32 4294901760, %v14008_v14 }
 0x2a6   :  { %3035 = vmatpush1.msra.mxu1 %v3034_v13  ;;  %3119 = vmatpush1.msra.mxu0 %v13934_v46  ;;  %v19722_v46 = vand.u32 4294901760, %v13996_v52 }
 0x2a7   :  { %3041 = vmatprep.subr.mxu1 %v3040_v17  ;;  %3122 = vmatprep.subr.mxu0 %v13957_v16 }
 0x2a8   :  { %3047 = vmatpush1.msra.mxu1 %v3046_v12  ;;  %3080 = vmatprep.mubr.f32.mxu1 %v19593_v50 }
 0x2a9   :  { %3125 = vmatpush1.msra.mxu0 %v13960_v15  ;;  %3082 = vmatmul.mubr.f32.vlgmr.msra.gmra.mxu1 %v13515_v2 }
 0x2aa   :  { %3128 = vmatprep.subr.mxu0 %v13804_v1  ;;  %3212 = vmatprep.subr.mxu1 %v13855_v3 }
 0x2ab   :  { %3131 = vmatpush1.msra.mxu0 %v13792_v27  ;;  %3214 = vmatpush1.msra.mxu1 %v13864_v4 }
 0x2ac   :  { %3134 = vmatprep.subr.mxu0 %v13996_v52  ;;  %3216 = vmatprep.subr.mxu1 %v13875_v25 }
 0x2ad   :  { %3137 = vmatpush1.msra.mxu0 %v14008_v14  ;;  %3218 = vmatpush1.msra.mxu1 %v13883_v21 }
 0x2ae   :  { %3140 = vmatprep.subr.mxu0 %v14019_v37  ;;  %3220 = vmatprep.subr.mxu1 %v13897_v55 }
 0x2af   :  { %3143 = vmatpush1.msra.mxu0 %v14029_v59  ;;  %3222 = vmatpush1.msra.mxu1 %v13885_v47 }
 0x2b0   :  { %3146 = vmatprep.subr.mxu0 %v14046_v41  ;;  %3224 = vmatprep.subr.mxu1 %v13920_v20 }
 0x2b1   :  { %3149 = vmatpush1.msra.mxu0 %v14053_v24  ;;  %3226 = vmatpush1.msra.mxu1 %v13922_v34 }
 0x2b2   :  { %3152 = vmatprep.subr.mxu0 %v14061_v60  ;;  %3228 = vmatprep.subr.mxu1 %v13777_v43 }
 0x2b3   :  { %3155 = vmatpush1.msra.mxu0 %v14069_v11  ;;  %3188 = vmatprep.mubr.f32.mxu0 %v19593_v50 }
 0x2b4   :  { %3230 = vmatpush1.msra.mxu1 %v13771_v53  ;;  %3191 = vmatmul.mubr.f32.vlgmr.msra.gmra.mxu0 %v19717_v22 }
 0x2b5   :  { %3232 = vmatprep.subr.mxu1 %v13948_v26  ;;  %3306 = vmatprep.subr.mxu0 %v2942_v6 }
 0x2b6   :  { %3234 = vmatpush1.msra.mxu1 %v13968_v0  ;;  %3310 = vmatpush1.msra.mxu0 %v2948_v36 }
 0x2b7   :  { %3236 = vmatprep.subr.mxu1 %v13976_v54  ;;  %3314 = vmatprep.subr.mxu0 %v2954_v44 }
 0x2b8   :  { %3238 = vmatpush1.msra.mxu1 %v13987_v28  ;;  %3318 = vmatpush1.msra.mxu0 %v2960_v38 }
 0x2b9   :  { %3240 = vmatprep.subr.mxu1 %v14010_v5  ;;  %3322 = vmatprep.subr.mxu0 %v2966_v10 }
 0x2ba   :  { %3242 = vmatpush1.msra.mxu1 %v14021_v9  ;;  %3326 = vmatpush1.msra.mxu0 %v19718_v8 }
 0x2bb   :  { %3244 = vmatprep.subr.mxu1 %v14031_v18  ;;  %3330 = vmatprep.subr.mxu0 %v19719_v45 }
 0x2bc   :  { %3246 = vmatpush1.msra.mxu1 %v14038_v30  ;;  %3279 = vmatprep.mubr.f32.mxu1 %v19593_v50 }
 0x2bd   :  { %3334 = vmatpush1.msra.mxu0 %v2984_v29  ;;  %3283 = vmatmul.mubr.f32.vlgmr.msra.gmra.mxu1 %v13647_v48  ;;  %v19724_v48 = vand.u32 4294901760, %v14046_v41 }
 0x2be   :  { %3338 = vmatprep.subr.mxu0 %v19720_v63  ;;  %3430 = vmatprep.subr.mxu1 %v13855_v3 }
 0x2bf   :  { %3342 = vmatpush1.msra.mxu0 %v19721_v62  ;;  %3432 = vmatpush1.msra.mxu1 %v13864_v4 }
 0x2c0   :  { %3346 = vmatprep.subr.mxu0 %v19722_v46  ;;  %3434 = vmatprep.subr.mxu1 %v13875_v25 }
 0x2c1   :  { %3350 = vmatpush1.msra.mxu0 %v19723_v49  ;;  %3436 = vmatpush1.msra.mxu1 %v13883_v21 }
 0x2c2   :  { %3354 = vmatprep.subr.mxu0 %v3014_v56  ;;  %3438 = vmatprep.subr.mxu1 %v13897_v55 }
 0x2c3   :  { %3358 = vmatpush1.msra.mxu0 %v3020_v42  ;;  %3440 = vmatpush1.msra.mxu1 %v13885_v47 }
 0x2c4   :  { %3362 = vmatprep.subr.mxu0 %v19724_v48  ;;  %3442 = vmatprep.subr.mxu1 %v13920_v20 }
 0x2c5   :  { %3366 = vmatpush1.msra.mxu0 %v3032_v23  ;;  %3444 = vmatpush1.msra.mxu1 %v13922_v34 }
 0x2c6   :  { %3370 = vmatprep.subr.mxu0 %v3038_v40  ;;  %3446 = vmatprep.subr.mxu1 %v13777_v43  ;;  %v2154_v43 = vpop.permute.xlu0 %2153 }
 0x2c7   :  { %3374 = vmatpush1.msra.mxu0 %v3044_v33  ;;  %3407 = vmatprep.mubr.f32.mxu0 %v19593_v50 }
 0x2c8   :  { %3448 = vmatpush1.msra.mxu1 %v13771_v53  ;;  %3409 = vmatmul.mubr.f32.vlgmr.msra.gmra.mxu0 %v13515_v2 }
 0x2c9   :  { %3450 = vmatprep.subr.mxu1 %v13948_v26  ;;  %3497 = vmatprep.mubr.f32.mxu1 %v19593_v50 }
 0x2ca   :  { %3452 = vmatpush1.msra.mxu1 %v13968_v0  ;;  %3978 = vmatprep.mubr.f32.mxu0 %v19593_v50 }
 0x2cb   :  { %3454 = vmatprep.subr.mxu1 %v13976_v54 }
 0x2cc   :  { %3456 = vmatpush1.msra.mxu1 %v13987_v28 }
 0x2cd   :  { %3458 = vmatprep.subr.mxu1 %v14010_v5 }
 0x2ce   :  { %3460 = vmatpush1.msra.mxu1 %v14021_v9 }
 0x2cf   :  { %3462 = vmatprep.subr.mxu1 %v14031_v18 }
 0x2d0   :  { %3464 = vmatpush1.msra.mxu1 %v14038_v30 }
 0x2d1   :  { %3499 = vmatmul.mubr.f32.vlgmr.msra.gmra.mxu1 %v13515_v2 }
 0x2d2   :  { %4144 = vmatprep.mubr.f32.mxu1 %v19593_v50 }
 0x326   :  { %v2248_v53 = vpop.f32.mrf.mxu0 }
 0x327   :  { %v2249_v3 = vadd.f32 %v2248_v53, %v2154_v43 }
 0x328   :  { %v2250_v27 = vpop.f32.mrf.mxu0 }
 0x329   :  { %v2251_v36 = vadd.f32 %v2250_v27, %v2154_v43  ;;  %v14299_v27 = vld [vmem:[%s19048_s0 + $0x40] ss:$8 sm:$0xf] }
 0x32a   :  { %19731 = vst [vmem:[#allocation23_spill] sm:$0xff] %v14299_v27 }
 0x32d   :  { %v2410_v1 = vpop.f32.mrf.mxu1 }
 0x32e   :  { %v2411_v21 = vadd.f32 %v2410_v1, %v2249_v3 }
 0x32f   :  { %v2412_v25 = vpop.f32.mrf.mxu1 }
 0x330   :  { %v2413_v44 = vadd.f32 %v2412_v25, %v2251_v36  ;;  %v3887_v25 = vld [vmem:[%s19049_s3] sm:$0xff] }
 0x338   :  { %v2519_v4 = vpop.f32.mrf.mxu0 }
 0x339   :  { %v2520_v20 = vadd.f32 %v2519_v4, %v2411_v21  ;;  %v12304_v4 = vmov 2   ;;  %v19733_v21 = vld [vmem:[#allocation4_spill] sm:$0xff] }
 0x33a   :  { %v2521_v47 = vpop.f32.mrf.mxu0  ;;  %12282 = vset.pattern.permute.xlu0 %v12304_v4 }
 0x33b   :  { %v2522_v38 = vadd.f32 %v2521_v47, %v2413_v44  ;;  %v3824_v47 = vrot.slane %v14299_v27, %v19733_v21 }
 0x342   :  { %v2611_v55 = vpop.f32.mrf.mxu1 }
 0x343   :  { %v2612_v6 = vadd.f32 %v2611_v55, %v2520_v20  ;;  %v14315_v55 = vld [vmem:[%s19048_s0 + $0x27] ss:$8 sm:$0xf] }
 0x344   :  { %v2613_v26 = vpop.f32.mrf.mxu1  ;;  %19734 = vst [vmem:[#allocation10_spill] sm:$0xff] %v14315_v55 }
 0x345   :  { %v2614_v10 = vadd.f32 %v2613_v26, %v2522_v38  ;;  %v14331_v26 = vld [vmem:[%s19048_s0 + $0x26] ss:$8 sm:$0xf] }
 0x346   :  { %v3740_v38 = vrot.slane %v14331_v26, %v19733_v21 }
 0x34d   :  { %v2737_v34 = vpop.f32.mrf.mxu0 }
 0x34e   :  { %v2738_v16 = vadd.f32 %v2737_v34, %v2612_v6 }
 0x34f   :  { %v2739_v54 = vpop.f32.mrf.mxu0 }
 0x350   :  { %v2740_v52 = vadd.f32 %v2739_v54, %v2614_v10 }
 0x355   :  { %v2827_v15 = vpop.f32.mrf.mxu1 }
 0x356   :  { %v2828_v2 = vadd.f32 %v2827_v15, %v2738_v16  ;;  %v3782_v15 = vrot.slane %v14315_v55, %v19733_v21 }
 0x357   :  { %v2829_v28 = vpop.f32.mrf.mxu1 }
 0x358   :  { %v14210_v0 = vmax.f32 %v2828_v2, 0.0  ;;  %v2830_v33 = vadd.f32 %v2829_v28, %v2740_v52 }
 0x35a   :  { %3765 = vrot.lane.b32.xlu1 %v14210_v0, %s12294_s22  ;;  %3807 = vrot.lane.b32.xlu0 %v14210_v0, %s12293_s19  ;;  %v14224_v14 = vmax.f32 %v2830_v33, 0.0  ;;  %v14305_v3 = vand.u32 4294901760, %v14210_v0 }
 0x35c   :  { %v14302_v1 = vand.u32 4294901760, %v14224_v14  ;;  %19732 = vst [vmem:[#allocation13_spill] sm:$0xff] %v14305_v3  ;;  %v14326_v6 = vsub.f32 %v14210_v0, %v14305_v3 }
 0x35e   :  { %3681 = vrot.lane.b32.xlu1 %v14210_v0, %s12296_s24  ;;  %3723 = vrot.lane.b32.xlu0 %v14210_v0, %s12295_s23  ;;  %v14322_v34 = vsub.f32 %v14224_v14, %v14302_v1  ;;  %v19152_v10 = vand.u32 4294901760, %v14326_v6 }
 0x360   :  { %v19153_v54 = vand.u32 4294901760, %v14322_v34 }
 0x361   :  { %v2921_v5 = vpop.f32.mrf.mxu0 }
 0x362   :  { %3593 = vrot.lane.b32.xlu1 %v14210_v0, %s12298_s28  ;;  %3635 = vrot.lane.b32.xlu0 %v14210_v0, %s12297_s25  ;;  %v2922_v9 = vadd.f32 %v2921_v5, %v2154_v43  ;;  %v14360_v5 = vld [vmem:[%s19048_s0 + $0x23] ss:$8 sm:$0xf] }
 0x363   :  { %v2923_v29 = vpop.f32.mrf.mxu0  ;;  %v3652_v4 = vrot.slane %v14360_v5, %v19733_v21 }
 0x364   :  { %v2924_v11 = vadd.f32 %v2923_v29, %v2154_v43 }
 0x366   :  { %3809 = vrot.lane.b32.xlu1 %v14224_v14, %s12293_s19  ;;  %3551 = vrot.lane.b32.xlu0 %v14210_v0, %s12299_s29 }
 0x369   :  { %v3083_v37 = vpop.f32.mrf.mxu1 }
 0x36a   :  { %3767 = vrot.lane.b32.xlu1 %v14224_v14, %s12294_s22  ;;  %3725 = vrot.lane.b32.xlu0 %v14224_v14, %s12295_s23  ;;  %v3084_v30 = vadd.f32 %v3083_v37, %v2922_v9 }
 0x36b   :  { %v3085_v18 = vpop.f32.mrf.mxu1 }
 0x36c   :  { %v3086_v40 = vadd.f32 %v3085_v18, %v2924_v11 }
 0x36e   :  { %3683 = vrot.lane.b32.xlu1 %v14224_v14, %s12296_s24  ;;  %3595 = vrot.lane.b32.xlu0 %v14224_v14, %s12298_s28 }
 0x372   :  { %3637 = vrot.lane.b32.xlu1 %v14224_v14, %s12297_s25 }
 0x374   :  { %v3192_v59 = vpop.f32.mrf.mxu0 }
 0x375   :  { %v3193_v60 = vadd.f32 %v3192_v59, %v3084_v30  ;;  %v14374_v30 = vld [vmem:[%s19048_s0 + $0x21] ss:$8 sm:$0xf] }
 0x376   :  { %v3194_v41 = vpop.f32.mrf.mxu0 }
 0x377   :  { %v3195_v39 = vadd.f32 %v3194_v41, %v3086_v40  ;;  %v14379_v41 = vsub.f32 %v14322_v34, %v19153_v54  ;;  %v12033_v40 = vld [vmem:[%s19050_s1 + $0x10] sm:$0xff] }
 0x37d   :  { %v3284_v24 = vpop.f32.mrf.mxu1 }
 0x37e   :  { %v3285_v42 = vadd.f32 %v3284_v24, %v3193_v60  ;;  %v14384_v24 = vsub.f32 %v14326_v6, %v19152_v10  ;;  %v19738_v60 = vld [vmem:[#allocation5_spill] sm:$0xff] }
 0x37f   :  { %v3286_v23 = vpop.f32.mrf.mxu1  ;;  %v3656_v11 = vrot.slane %v14360_v5, %v19738_v60 }
 0x380   :  { %v3287_v51 = vadd.f32 %v3286_v23, %v3195_v39  ;;  %v3786_v23 = vrot.slane %v14315_v55, %v19738_v60  ;;  %v3744_v39 = vrot.slane %v14331_v26, %v19738_v60 }
 0x388   :  { %v3410_v56 = vpop.f32.mrf.mxu0 }
 0x389   :  { %v3411_v35 = vadd.f32 %v3410_v56, %v3285_v42  ;;  %v3828_v42 = vrot.slane %v14299_v27, %v19738_v60  ;;  %v19755_v27 = vrot.slane %v14374_v30, %v19733_v21 }
 0x38a   :  { %v3412_v31 = vpop.f32.mrf.mxu0 }
 0x38b   :  { %v3413_v17 = vadd.f32 %v3412_v31, %v3287_v51 }
 0x391   :  { %v3500_v58 = vpop.f32.mrf.mxu1 }
 0x392   :  { %v3501_v19 = vadd.f32 %v3500_v58, %v3411_v35 }
 0x393   :  { %v3502_v13 = vpop.f32.mrf.mxu1 }
 0x394   :  { %v14240_v57 = vmax.f32 %v3501_v19, 0.0  ;;  %v3503_v12 = vadd.f32 %v3502_v13, %v3413_v17 }
 0x396   :  { %19725 = vst [vmem:[#allocation3_spill] sm:$0xff] %v14240_v57  ;;  %3811 = vrot.lane.b32.xlu1 %v14240_v57, %s12293_s19  ;;  %3769 = vrot.lane.b32.xlu0 %v14240_v57, %s12294_s22  ;;  %v14250_v22 = vmax.f32 %v3503_v12, 0.0 }
 0x398   :  { %19726 = vst [vmem:[#allocation20_spill] sm:$0xff] %v14250_v22 }
 0x39a   :  { %3727 = vrot.lane.b32.xlu1 %v14240_v57, %s12295_s23  ;;  %3685 = vrot.lane.b32.xlu0 %v14240_v57, %s12296_s24 }
 0x39e   :  { %3553 = vrot.lane.b32.xlu1 %v14224_v14, %s12299_s29  ;;  %3641 = vrot.lane.b32.xlu0 %v14250_v22, %s12297_s25 }
 0x3a2   :  { %3509 = vrot.lane.b32.xlu1 %v14210_v0, %s12300_s30  ;;  %3557 = vrot.lane.b32.xlu0 %v14250_v22, %s12299_s29  ;;  %v14341_v0 = vld [vmem:[%s19048_s0 + $0x25] ss:$8 sm:$0xf] }
 0x3a3   :  { %19735 = vst [vmem:[#allocation24_spill] sm:$0xff] %v14341_v0  ;;  %v3698_v33 = vrot.slane %v14341_v0, %v19733_v21  ;;  %v3702_v19 = vrot.slane %v14341_v0, %v19738_v60 }
 0x3a6   :  { %3599 = vrot.lane.b32.xlu1 %v14250_v22, %s12298_s28  ;;  %3511 = vrot.lane.b32.xlu0 %v14224_v14, %s12300_s30  ;;  %v14355_v14 = vld [vmem:[%s19048_s0 + $0x22] ss:$8 sm:$0xf] }
 0x3a7   :  { %v3614_v56 = vrot.slane %v14355_v14, %v19738_v60 }
 0x3aa   :  { %3515 = vrot.lane.b32.xlu1 %v14250_v22, %s12300_s30  ;;  %3813 = vrot.lane.b32.xlu0 %v14250_v22, %s12293_s19 }
 0x3ae   :  { %3771 = vrot.lane.b32.xlu1 %v14250_v22, %s12294_s22  ;;  %3729 = vrot.lane.b32.xlu0 %v14250_v22, %s12295_s23 }
 0x3b2   :  { %3687 = vrot.lane.b32.xlu1 %v14250_v22, %s12296_s24  ;;  %3639 = vrot.lane.b32.xlu0 %v14240_v57, %s12297_s25 }
 0x3b6   :  { %3597 = vrot.lane.b32.xlu1 %v14240_v57, %s12298_s28  ;;  %3555 = vrot.lane.b32.xlu0 %v14240_v57, %s12299_s29 }
 0x3ba   :  { %3513 = vrot.lane.b32.xlu1 %v14240_v57, %s12300_s30  ;;  %3890 = vperm.xlu0 %12282, %v3887_v25  }
 0x3cc   :  { %v14282_v8 = vpop.permute.xlu1 %3765  ;;  %v14284_v45 = vpop.permute.xlu0 %3807 }
 0x3cd   :  { %19727 = vst [vmem:[#allocation17_spill] sm:$0xff] %v14282_v8  ;;  %19728 = vst [vmem:[#allocation22_spill] sm:$0xff] %v14284_v45 }
 0x3d0   :  { %v14286_v63 = vpop.permute.xlu1 %3681  ;;  %v14288_v62 = vpop.permute.xlu0 %3723 }
 0x3d1   :  { %19729 = vst [vmem:[#allocation8_spill] sm:$0xff] %v14286_v63  ;;  %19730 = vst [vmem:[#allocation12_spill] sm:$0xff] %v14288_v62 }
 0x3d4   :  { %v14290_v46 = vpop.permute.xlu1 %3593  ;;  %v14292_v49 = vpop.permute.xlu0 %3635 }
 0x3d8   :  { %v3810_v48 = vpop.permute.xlu1 %3809  ;;  %v14294_v53 = vpop.permute.xlu0 %3551 }
 0x3d9   :  { %v3817_v20 = vsel %vm343_vm0, %v14284_v45, %v3810_v48 }
 0x3da   :  { %v3841_v2 = vmul.f32 %v3824_v47, %v3817_v20 }
 0x3dc   :  { %v3768_v43 = vpop.permute.xlu1 %3767  ;;  %v3726_v36 = vpop.permute.xlu0 %3725  ;;  %v14362_v29 = vand.u32 4294901760, %v3841_v2 }
 0x3dd   :  { %v3775_v44 = vsel %vm299_vm1, %v14282_v8, %v3768_v43  ;;  %v3733_v28 = vsel %vm255_vm2, %v14288_v62, %v3726_v36 }
 0x3de   :  { %v3799_v52 = vmul.f32 %v3782_v15, %v3775_v44  ;;  %v3757_v18 = vmul.f32 %v3740_v38, %v3733_v28  ;;  %v14404_v31 = vsub.f32 %v3841_v2, %v14362_v29  ;;  %v3894_v15 = vsel %vm422_vm5, %v12033_v40, 0  ;;  %v14443_v40 = vld [vmem:[%s19048_s0 + $0x20] ss:$8 sm:$0xf] }
 0x3e0   :  { %v3684_v16 = vpop.permute.xlu1 %3683  ;;  %v14367_v9 = vpop.permute.xlu0 %3595  ;;  %v14397_v35 = vand.u32 4294901760, %v3799_v52  ;;  %v14418_v25 = vand.u32 4294901760, %v3757_v18 }
 0x3e1   :  { %v3691_v37 = vsel %vm211_vm3, %v14286_v63, %v3684_v16  ;;  %19736 = vst [vmem:[#allocation11_spill] sm:$0xff] %v14367_v9  ;;  %v3603_v2 = vsel %vm119_vm6, %v14290_v46, %v14367_v9 }
 0x3e2   :  { %v3715_v58 = vmul.f32 %v3698_v33, %v3691_v37  ;;  %v14434_v33 = vsub.f32 %v3799_v52, %v14397_v35 }
 0x3e4   :  { %v14369_v59 = vpop.permute.xlu1 %3637  ;;  %v19747_v0 = vand.u32 4294901760, %v14434_v33 }
 0x3e5   :  { %19737 = vst [vmem:[#allocation15_spill] sm:$0xff] %v14369_v59  ;;  %v3645_v51 = vsel %vm163_vm4, %v14292_v49, %v14369_v59 }
 0x3e6   :  { %v3670_v37 = vmul.f32 %v3656_v11, %v3645_v51  ;;  %v14457_v11 = vsub.f32 %v3757_v18, %v14418_v25  ;;  %v3628_v51 = vmul.f32 %v3614_v56, %v3603_v2 }
 0x3e8   :  { %v14475_v56 = vand.u32 4294901760, %v3670_v37 }
 0x408   :  { %v14410_v13 = vpop.permute.xlu1 %3811  ;;  %v14412_v17 = vpop.permute.xlu0 %3769 }
 0x409   :  { %19739 = vst [vmem:[#allocation16_spill] sm:$0xff] %v14410_v13  ;;  %19740 = vst [vmem:[#allocation27_spill] sm:$0xff] %v14412_v17  ;;  %v3816_v47 = vsel %vm343_vm0, %v3810_v48, %v14410_v13  ;;  %v3774_v20 = vsel %vm299_vm1, %v3768_v43, %v14412_v17  ;;  %v14436_v48 = vand.u32 4294901760, %v3715_v58 }
 0x40a   :  { %v3842_v44 = vmul.f32 %v3828_v42, %v3816_v47  ;;  %v3800_v38 = vmul.f32 %v3786_v23, %v3774_v20  ;;  %v14454_v20 = vand.u32 4294901760, %v3894_v15 }
 0x40b   :  { %v14473_v18 = vsub.f32 %v3715_v58, %v14436_v48 }
 0x40c   :  { %v14445_v10 = vand.u32 4294901760, %v3842_v44  ;;  %v14447_v42 = vand.u32 4294901760, %v3800_v38  ;;  %v14449_v23 = vpop.permute.xlu1 %3727  ;;  %v14451_v47 = vpop.permute.xlu0 %3685  ;;  %v14503_v59 = vsub.f32 %v3894_v15, %v14454_v20 }
 0x40d   :  { %19741 = vst [vmem:[#allocation19_spill] sm:$0xff] %v14451_v47  ;;  %v3732_v54 = vsel %vm255_vm2, %v3726_v36, %v14449_v23  ;;  %v3690_v43 = vsel %vm211_vm3, %v3684_v16, %v14451_v47  ;;  %v19743_v36 = vand.u32 4294901760, %v14404_v31 }
 0x40e   :  { %v14466_v28 = vsub.f32 %v3842_v44, %v14445_v10  ;;  %v14469_v12 = vsub.f32 %v3800_v38, %v14447_v42  ;;  %v3758_v52 = vmul.f32 %v3744_v39, %v3732_v54  ;;  %v3716_v9 = vmul.f32 %v3702_v19, %v3690_v43  ;;  %3911 = vmatprep.subr.mxu0 %v14445_v10 }
 0x40f   :  { %3913 = vmatpush1.msra.mxu0 %v14362_v29  ;;  %v14492_v38 = vand.u32 4294901760, %v3628_v51  ;;  %v4013_v16 = vsub.f32 %v14404_v31, %v19743_v36  ;;  %19744 = vst [vmem:[#allocation14_spill] sm:$0xff] %v14503_v59 }
 0x410   :  { %v14481_v2 = vand.u32 4294901760, %v3758_v52  ;;  %v14483_v44 = vand.u32 4294901760, %v3716_v9  ;;  %v14485_v54 = vpop.permute.xlu1 %3553  ;;  %3915 = vmatprep.subr.mxu0 %v14447_v42  ;;  %v14488_v39 = vpop.permute.xlu0 %3641  ;;  %v19745_v36 = vand.u32 4294901760, %v14466_v28  ;;  %v19746_v58 = vand.u32 4294901760, %v14469_v12 }
 0x411   :  { %19742 = vst [vmem:[#allocation29_spill] sm:$0xff] %v14485_v54  ;;  %v3646_v43 = vsel %vm163_vm4, %v14488_v39, %v14292_v49  ;;  %3917 = vmatpush1.msra.mxu0 %v14397_v35  ;;  %v14514_v49 = vsub.f32 %v3670_v37, %v14475_v56  ;;  %v14535_v8 = vsub.f32 %v3628_v51, %v14492_v38 }
 0x412   :  { %v14507_v19 = vsub.f32 %v3758_v52, %v14481_v2  ;;  %v14510_v47 = vsub.f32 %v3716_v9, %v14483_v44  ;;  %v3669_v63 = vmul.f32 %v3652_v4, %v3646_v43  ;;  %3919 = vmatprep.subr.mxu0 %v14481_v2  ;;  %v4007_v15 = vsub.f32 %v14466_v28, %v19745_v36 }
 0x413   :  { %3921 = vmatpush1.msra.mxu0 %v14418_v25  ;;  %v4019_v52 = vsub.f32 %v14469_v12, %v19746_v58  ;;  %v4025_v9 = vsub.f32 %v14434_v33, %v19747_v0  ;;  %v3561_v0 = vsel %vm75_vm7, %v14294_v53, %v14485_v54  ;;  %v4014_v4 = vand.u32 4294901760, %v4013_v16 }
 0x414   :  { %v14527_v43 = vand.u32 4294901760, %v3669_v63  ;;  %v3510_v37 = vpop.permute.xlu1 %3509  ;;  %3923 = vmatprep.subr.mxu0 %v14483_v44  ;;  %v14530_v62 = vpop.permute.xlu0 %3557  ;;  %v19169_v22 = vand.u32 4294901760, %v14507_v19  ;;  %v4008_v58 = vand.u32 4294901760, %v4007_v15  ;;  %v19749_v54 = vand.u32 4294901760, %v14457_v11 }
 0x415   :  { %19748 = vst [vmem:[#allocation28_spill] sm:$0xff] %v14530_v62  ;;  %3925 = vmatpush1.msra.mxu0 %v14436_v48  ;;  %v3562_v36 = vsel %vm75_vm7, %v14530_v62, %v14294_v53  ;;  %v19750_v16 = vand.u32 4294901760, %v14510_v47  ;;  %v14562_v62 = vand.u32 4294901760, %v14503_v59 }
 0x416   :  { %v14543_v17 = vsub.f32 %v3669_v63, %v14527_v43  ;;  %3927 = vmatprep.subr.mxu0 %v14302_v1  ;;  %v4031_v51 = vsub.f32 %v14507_v19, %v19169_v22  ;;  %v4037_v55 = vsub.f32 %v14457_v11, %v19749_v54  ;;  %4009 = vmatprep.subr.mxu1 %v4008_v58  ;;  %v4020_v63 = vand.u32 4294901760, %v4019_v52 }
 0x417   :  { %3929 = vmatpush1.msra.mxu0 %v14305_v3  ;;  %v4043_v15 = vsub.f32 %v14510_v47, %v19750_v16  ;;  %v19751_v22 = vrot.slane %v14374_v30, %v19738_v60  ;;  %4015 = vmatpush1.msra.mxu1 %v4014_v4  ;;  %v4026_v52 = vand.u32 4294901760, %v4025_v9  ;;  %v19754_v16 = vand.u32 4294901760, %v14473_v18 }
 0x418   :  { %v14567_v45 = vpop.permute.xlu1 %3599  ;;  %v14569_v54 = vpop.permute.xlu0 %3511  ;;  %3931 = vmatprep.subr.mxu0 %v14475_v56  ;;  %v4032_v58 = vand.u32 4294901760, %v4031_v51  ;;  %v3585_v3 = vmul.f32 %v19755_v27, %v3562_v36  ;;  %4021 = vmatprep.subr.mxu1 %v4020_v63  ;;  %v19756_v4 = vrot.slane %v14355_v14, %v19733_v21  ;;  %v4038_v27 = vand.u32 4294901760, %v4037_v55 }
 0x419   :  { %v3586_v13 = vmul.f32 %v19751_v22, %v3561_v0  ;;  %19752 = vst [vmem:[#allocation26_spill] sm:$0xff] %v14567_v45  ;;  %19753 = vst [vmem:[#allocation30_spill] sm:$0xff] %v14569_v54  ;;  %v4049_v53 = vsub.f32 %v14473_v18, %v19754_v16  ;;  %v3604_v22 = vsel %vm119_vm6, %v14567_v45, %v14290_v46  ;;  %3933 = vmatpush1.msra.mxu0 %v14527_v43 }
 0x41a   :  { %v3519_v9 = vsel %vm31_vm8, %v3510_v37, %v14569_v54  ;;  %v3627_v0 = vmul.f32 %v19756_v4, %v3604_v22  ;;  %4027 = vmatpush1.msra.mxu1 %v4026_v52  ;;  %3935 = vmatprep.subr.mxu0 %v14492_v38  ;;  %v3526_v36 = vrot.slane %v14443_v40, %v19733_v21  ;;  %v4044_v51 = vand.u32 4294901760, %v4043_v15 }
 0x41b   :  { %4033 = vmatprep.subr.mxu1 %v4032_v58  ;;  %v19757_v63 = vand.u32 4294901760, %v14514_v49  ;;  %v3982_v57 = vsub.f32 %v14503_v59, %v14562_v62  ;;  %v14599_v54 = vand.u32 4294901760, %v3586_v13  ;;  %v19758_v55 = vrot.slane %v14443_v40, %v19738_v60 }
 0x41c   :  { %v14601_v52 = vand.u32 4294901760, %v3627_v0  ;;  %4039 = vmatpush1.msra.mxu1 %v4038_v27  ;;  %v14606_v4 = vpop.permute.xlu1 %3515  ;;  %v14608_v58 = vpop.permute.xlu0 %3813  ;;  %v4050_v15 = vand.u32 4294901760, %v4049_v53  ;;  %v14610_v46 = vand.u32 4294901760, %v3585_v3  ;;  %v4056_v21 = vand.u32 4294901760, %v14379_v41 }
 0x41d   :  { %v4067_v16 = vsub.f32 %v14514_v49, %v19757_v63  ;;  %v3544_v22 = vmul.f32 %v19758_v55, %v3519_v9  ;;  %19759 = vst [vmem:[#allocation25_spill] sm:$0xff] %v14606_v4  ;;  %v3520_v63 = vsel %vm31_vm8, %v14606_v4, %v3510_v37  ;;  %4045 = vmatprep.subr.mxu1 %v4044_v51  ;;  %v19760_v45 = vand.u32 4294901760, %v14543_v17 }
 0x41e   :  { %v3543_v9 = vmul.f32 %v3526_v36, %v3520_v63  ;;  %4051 = vmatpush1.msra.mxu1 %v4050_v15  ;;  %v4062_v27 = vand.u32 4294901760, %v14384_v24  ;;  %v19761_v55 = vand.u32 4294901760, %v14535_v8  ;;  %3937 = vmatpush1.msra.mxu0 %v14601_v52  ;;  %v3748_v37 = vrot.slane %v14331_v26, %v12824_v32 }
 0x41f   :  { %v4073_v60 = vsub.f32 %v14543_v17, %v19760_v45  ;;  %4057 = vmatprep.subr.mxu1 %v4056_v21  ;;  %v4068_v51 = vand.u32 4294901760, %v4067_v16  ;;  %v14627_v41 = vsub.f32 %v3586_v13, %v14599_v54  ;;  %v14629_v4 = vand.u32 4294901760, %v3544_v22  ;;  %3939 = vmatprep.subr.mxu0 %v14599_v54 }
 0x420   :  { %v4079_v53 = vsub.f32 %v14535_v8, %v19761_v55  ;;  %v14631_v45 = vand.u32 4294901760, %v3543_v9  ;;  %4063 = vmatpush1.msra.mxu1 %v4062_v27  ;;  %v14634_v24 = vpop.permute.xlu0 %3729  ;;  %v14636_v36 = vand.u32 4294901760, %v3982_v57  ;;  %v14639_v21 = vsub.f32 %v3585_v3, %v14610_v46  ;;  %3941 = vmatpush1.msra.mxu0 %v14610_v46 }
 0x421   :  { %v14642_v15 = vsub.f32 %v3627_v0, %v14601_v52  ;;  %v3731_v13 = vsel %vm255_vm2, %v14449_v23, %v14634_v24  ;;  %4069 = vmatprep.subr.mxu1 %v4068_v51  ;;  %v4074_v16 = vand.u32 4294901760, %v4073_v60  ;;  %3943 = vmatprep.subr.mxu0 %v14629_v4  ;;  %v19186_v0 = vand.u32 4294901760, %v14627_v41 }
 0x422   :  { %v4080_v63 = vand.u32 4294901760, %v4079_v53  ;;  %v14650_v57 = vmul.f32 %v3748_v37, %v3731_v13  ;;  %3945 = vmatpush1.msra.mxu0 %v14631_v45  ;;  %v19183_v23 = vand.u32 4294901760, %v14639_v21  ;;  %v3664_v60 = vrot.slane %v14360_v5, %v12827_v61 }
 0x423   :  { %4075 = vmatpush1.msra.mxu1 %v4074_v16  ;;  %4168 = vmatprep.subr.mxu0 %v14466_v28  ;;  %v19187_v27 = vand.u32 4294901760, %v14642_v15  ;;  %v14663_v55 = vsub.f32 %v3544_v22, %v14629_v4  ;;  %v14667_v53 = vsub.f32 %v3543_v9, %v14631_v45  ;;  %v4091_v22 = vsub.f32 %v14627_v41, %v19186_v0  ;;  %v19777_v0 = vld [vmem:[#allocation17_spill] sm:$0xff] }
 0x424   :  { %4081 = vmatprep.subr.mxu1 %v4080_v63  ;;  %v14654_v3 = vpop.permute.xlu0 %3639  ;;  %3984 = vmatmul.mubr.f32.vlgmr.msra.gmra.mxu0 %v14636_v36 }
 0x425   :  { %4171 = vmatpush1.msra.mxu0 %v14404_v31  ;;  %v3643_v37 = vsel %vm163_vm4, %v14654_v3, %v14488_v39  ;;  %4252 = vmatprep.mubr.f32.mxu0 %v19593_v50  ;;  %v4085_v9 = vsub.f32 %v14642_v15, %v19187_v27  ;;  %v4097_v39 = vsub.f32 %v14639_v21, %v19183_v23  ;;  %v19185_v13 = vand.u32 4294901760, %v14663_v55 }
 0x426   :  { %4174 = vmatprep.subr.mxu0 %v14469_v12  ;;  %v14679_v51 = vmul.f32 %v3664_v60, %v3643_v37  ;;  %v19184_v16 = vand.u32 4294901760, %v14667_v53  ;;  %v4092_v60 = vand.u32 4294901760, %v4091_v22  ;;  %v3752_v27 = vrot.slane %v14331_v26, %v12827_v61  ;;  %v19782_v26 = vld [vmem:[#allocation24_spill] sm:$0xff] }
 0x427   :  { %4177 = vmatpush1.msra.mxu0 %v14434_v33  ;;  %v4086_v63 = vand.u32 4294901760, %v4085_v9  ;;  %v4098_v37 = vand.u32 4294901760, %v4097_v39  ;;  %v4103_v23 = vsub.f32 %v14663_v55, %v19185_v13 }
 0x428   :  { %4180 = vmatprep.subr.mxu0 %v14507_v19  ;;  %v4109_v9 = vsub.f32 %v14667_v53, %v19184_v16  ;;  %v19776_v16 = vld [vmem:[#allocation27_spill] sm:$0xff] }
 0x429   :  { %4183 = vmatpush1.msra.mxu0 %v14457_v11  ;;  %4087 = vmatpush1.msra.mxu1 %v4086_v63  ;;  %v4104_v22 = vand.u32 4294901760, %v4103_v23  ;;  %v19762_v23 = vand.u32 4294901760, %v14466_v28  ;;  %v19763_v63 = vand.u32 4294901760, %v14404_v31  ;;  %v19767_v28 = vand.u32 4294901760, %v14507_v19 }
 0x42a   :  { %4186 = vmatprep.subr.mxu0 %v14510_v47  ;;  %4093 = vmatprep.subr.mxu1 %v4092_v60  ;;  %v4110_v39 = vand.u32 4294901760, %v4109_v9  ;;  %v3772_v60 = vpop.permute.xlu1 %3771  ;;  %v19765_v9 = vand.u32 4294901760, %v14434_v33  ;;  %v19768_v31 = vand.u32 4294901760, %v14457_v11  ;;  %v19771_v33 = vld [vmem:[#allocation3_spill] sm:$0xff] }
 0x42b   :  { %4189 = vmatpush1.msra.mxu0 %v14473_v18  ;;  %4099 = vmatpush1.msra.mxu1 %v4098_v37  ;;  %v19764_v37 = vand.u32 4294901760, %v14469_v12  ;;  %v19770_v12 = vand.u32 4294901760, %v14510_v47  ;;  %v3773_v13 = vsel %vm299_vm1, %v19776_v16, %v3772_v60 }
 0x42c   :  { %4192 = vmatprep.subr.mxu0 %v14322_v34  ;;  %4105 = vmatprep.subr.mxu1 %v4104_v22  ;;  %v19766_v22 = vld [vmem:[#allocation13_spill] sm:$0xff] }
 0x42d   :  { %4195 = vmatpush1.msra.mxu0 %v14326_v6  ;;  %4111 = vmatpush1.msra.mxu1 %v4110_v39  ;;  %v19769_v39 = vld [vmem:[#allocation23_spill] sm:$0xff] }
 0x42e   :  { %4198 = vmatprep.subr.mxu0 %v14514_v49  ;;  %4146 = vmatmul.mubr.f32.vlgmr.msra.gmra.mxu1 %v14454_v20  ;;  %v3832_v19 = vrot.slane %v19769_v39, %v12824_v32 }
 0x42f   :  { %4201 = vmatpush1.msra.mxu0 %v14543_v17  ;;  %4276 = vmatprep.subr.mxu1 %v14445_v10 }
 0x430   :  { %4204 = vmatprep.subr.mxu0 %v14535_v8  ;;  %4278 = vmatpush1.msra.mxu1 %v14362_v29 }
 0x431   :  { %4207 = vmatpush1.msra.mxu0 %v14642_v15  ;;  %4280 = vmatprep.subr.mxu1 %v14447_v42 }
 0x432   :  { %4210 = vmatprep.subr.mxu0 %v14627_v41  ;;  %4282 = vmatpush1.msra.mxu1 %v14397_v35 }
 0x433   :  { %4213 = vmatpush1.msra.mxu0 %v14639_v21  ;;  %4284 = vmatprep.subr.mxu1 %v14481_v2 }
 0x434   :  { %4216 = vmatprep.subr.mxu0 %v14663_v55  ;;  %4286 = vmatpush1.msra.mxu1 %v14418_v25 }
 0x435   :  { %4219 = vmatpush1.msra.mxu0 %v14667_v53  ;;  %4288 = vmatprep.subr.mxu1 %v14483_v44 }
 0x436   :  { %4255 = vmatmul.mubr.f32.vlgmr.msra.gmra.mxu0 %v14503_v59  ;;  %4370 = vmatprep.subr.mxu0 %v19762_v23  ;;  %v3836_v23 = vrot.slane %v19769_v39, %v12827_v61  ;;  %v19781_v59 = vld [vmem:[#allocation12_spill] sm:$0xff] }
 0x437   :  { %4374 = vmatpush1.msra.mxu0 %v19763_v63  ;;  %4290 = vmatpush1.msra.mxu1 %v14436_v48  ;;  %v14740_v63 = vand.u32 4294901760, %v19771_v33 }
 0x438   :  { %4378 = vmatprep.subr.mxu0 %v19764_v37  ;;  %4292 = vmatprep.subr.mxu1 %v14302_v1  ;;  %v19772_v37 = vld [vmem:[#allocation22_spill] sm:$0xff] }
 0x439   :  { %4382 = vmatpush1.msra.mxu0 %v19765_v9  ;;  %4294 = vmatpush1.msra.mxu1 %v19766_v22  ;;  %v3818_v11 = vsel %vm343_vm0, %v14608_v58, %v19772_v37  ;;  %v19773_v9 = vld [vmem:[#allocation16_spill] sm:$0xff]  ;;  %v19775_v37 = vand.u32 4294901760, %v14473_v18  ;;  %v19779_v18 = vand.u32 4294901760, %v14326_v6  ;;  %v19783_v6 = vand.u32 4294901760, %v14514_v49 }
 0x43a   :  { %4386 = vmatprep.subr.mxu0 %v19767_v28  ;;  %4296 = vmatprep.subr.mxu1 %v14475_v56  ;;  %v3815_v47 = vsel %vm343_vm0, %v19773_v9, %v14608_v58  ;;  %v19774_v28 = vld [vmem:[#allocation10_spill] sm:$0xff]  ;;  %v3776_v58 = vsel %vm299_vm1, %v3772_v60, %v19777_v0  ;;  %v19778_v9 = vand.u32 4294901760, %v14322_v34  ;;  %v14780_v0 = vsub.f32 %v19771_v33, %v14740_v63 }
 0x43b   :  { %4390 = vmatpush1.msra.mxu0 %v19768_v31  ;;  %4298 = vmatpush1.msra.mxu1 %v14527_v43  ;;  %v3790_v31 = vrot.slane %v19774_v28, %v12824_v32  ;;  %v3794_v39 = vrot.slane %v19774_v28, %v12827_v61  ;;  %v3844_v28 = vmul.f32 %v3836_v23, %v3818_v11 }
 0x43c   :  { %4394 = vmatprep.subr.mxu0 %v19770_v12  ;;  %4300 = vmatprep.subr.mxu1 %v14492_v38  ;;  %v3688_v12 = vpop.permute.xlu1 %3687  ;;  %v3843_v60 = vmul.f32 %v3832_v19, %v3815_v47  ;;  %v3734_v34 = vsel %vm255_vm2, %v14634_v24, %v19781_v59  ;;  %v3710_v23 = vrot.slane %v19782_v26, %v12827_v61  ;;  %v19785_v19 = vand.u32 4294901760, %v14543_v17 }
 0x43d   :  { %4343 = vmatprep.mubr.f32.mxu1 %v19593_v50  ;;  %4302 = vmatpush1.msra.mxu1 %v14601_v52  ;;  %v3801_v11 = vmul.f32 %v3790_v31, %v3773_v13  ;;  %v3706_v59 = vrot.slane %v19782_v26, %v12824_v32  ;;  %v14801_v49 = vand.u32 4294901760, %v3844_v28  ;;  %v3760_v24 = vmul.f32 %v3752_v27, %v3734_v34  ;;  %v19786_v13 = vld [vmem:[#allocation19_spill] sm:$0xff] }
 0x43e   :  { %4398 = vmatpush1.msra.mxu0 %v19775_v37  ;;  %4304 = vmatprep.subr.mxu1 %v14599_v54  ;;  %v19780_v37 = vld [vmem:[#allocation20_spill] sm:$0xff]  ;;  %v3689_v47 = vsel %vm211_vm3, %v19786_v13, %v3688_v12  ;;  %v19787_v17 = vand.u32 4294901760, %v14535_v8  ;;  %v3660_v27 = vrot.slane %v14360_v5, %v12824_v32  ;;  %v3622_v26 = vrot.slane %v14355_v14, %v12827_v61 }
 0x43f   :  { %4402 = vmatprep.subr.mxu0 %v19778_v9  ;;  %4306 = vmatpush1.msra.mxu1 %v14610_v46  ;;  %v14776_v16 = vand.u32 4294901760, %v19780_v37  ;;  %v3802_v9 = vmul.f32 %v3794_v39, %v3776_v58  ;;  %v14813_v58 = vand.u32 4294901760, %v3843_v60  ;;  %v14823_v8 = vand.u32 4294901760, %v3801_v11 }
 0x440   :  { %4406 = vmatpush1.msra.mxu0 %v19779_v18  ;;  %4308 = vmatprep.subr.mxu1 %v14629_v4  ;;  %v19784_v18 = vld [vmem:[#allocation8_spill] sm:$0xff]  ;;  %v3598_v31 = vpop.permute.xlu1 %3597  ;;  %v19789_v5 = vand.u32 4294901760, %v14627_v41  ;;  %v19791_v41 = vld [vmem:[#allocation15_spill] sm:$0xff] }
 0x441   :  { %4410 = vmatprep.subr.mxu0 %v19783_v6  ;;  %v3692_v33 = vsel %vm211_vm3, %v3688_v12, %v19784_v18  ;;  %4310 = vmatpush1.msra.mxu1 %v14631_v45  ;;  %v14811_v39 = vsub.f32 %v19780_v37, %v14776_v16  ;;  %v19788_v12 = vand.u32 4294901760, %v14642_v15  ;;  %v14821_v34 = vand.u32 4294901760, %v3802_v9 }
 0x442   :  { %4414 = vmatpush1.msra.mxu0 %v19785_v19  ;;  %4347 = vmatmul.mubr.f32.vlgmr.msra.gmra.mxu1 %v14562_v62  ;;  %v3618_v37 = vrot.slane %v14355_v14, %v12824_v32  ;;  %v3717_v15 = vmul.f32 %v3706_v59, %v3689_v47  ;;  %v3580_v6 = vrot.slane %v14374_v30, %v12827_v61  ;;  %v19790_v18 = vand.u32 4294901760, %v14639_v21  ;;  %v3556_v19 = vpop.permute.xlu0 %3555 }
 0x443   :  { %4494 = vmatprep.subr.mxu1 %v14445_v10  ;;  %4418 = vmatprep.subr.mxu0 %v19787_v17  ;;  %v3718_v10 = vmul.f32 %v3710_v23, %v3692_v33  ;;  %v3576_v23 = vrot.slane %v14374_v30, %v12824_v32  ;;  %v14843_v14 = vsub.f32 %v3844_v28, %v14801_v49  ;;  %v19792_v30 = vand.u32 4294901760, %v14663_v55  ;;  %v19793_v28 = vld [vmem:[#allocation26_spill] sm:$0xff] }
 0x444   :  { %4496 = vmatpush1.msra.mxu1 %v14362_v29  ;;  %4422 = vmatpush1.msra.mxu0 %v19788_v12  ;;  %v19195_v29 = vand.u32 4294901760, %v14780_v0  ;;  %v3644_v33 = vsel %vm163_vm4, %v19791_v41, %v14654_v3  ;;  %v3534_v59 = vrot.slane %v14443_v40, %v12824_v32  ;;  %v3601_v13 = vsel %vm119_vm6, %v3598_v31, %v19793_v28  ;;  %v3514_v12 = vpop.permute.xlu1 %3513 }
 0x445   :  { %4498 = vmatprep.subr.mxu1 %v14447_v42  ;;  %4426 = vmatprep.subr.mxu0 %v19789_v5  ;;  %v14833_v42 = vand.u32 4294901760, %v14650_v57  ;;  %v14859_v21 = vand.u32 4294901760, %v3718_v10  ;;  %v3538_v3 = vrot.slane %v14443_v40, %v12827_v61  ;;  %v19794_v47 = vand.u32 4294901760, %v14667_v53 }
 0x446   :  { %4500 = vmatpush1.msra.mxu1 %v14397_v35  ;;  %4430 = vmatpush1.msra.mxu0 %v19790_v18  ;;  %v14845_v35 = vand.u32 4294901760, %v3760_v24  ;;  %v14873_v55 = vsub.f32 %v3801_v11, %v14823_v8  ;;  %v19192_v40 = vand.u32 4294901760, %v14811_v39  ;;  %v14885_v53 = vand.u32 4294901760, %v3717_v15  ;;  %v19796_v11 = vld [vmem:[#allocation28_spill] sm:$0xff]  ;;  %v19797_v18 = vld [vmem:[#allocation29_spill] sm:$0xff] }
 0x447   :  { %4502 = vmatprep.subr.mxu1 %v14481_v2  ;;  %4434 = vmatprep.subr.mxu0 %v19792_v30  ;;  %v14857_v2 = vsub.f32 %v3843_v60, %v14813_v58  ;;  %v19795_v60 = vld [vmem:[#allocation11_spill] sm:$0xff]  ;;  %v3559_v5 = vsel %vm75_vm7, %v3556_v19, %v19796_v11  ;;  %v19798_v30 = vld [vmem:[#allocation25_spill] sm:$0xff] }
 0x448   :  { %4504 = vmatpush1.msra.mxu1 %v14418_v25  ;;  %4438 = vmatpush1.msra.mxu0 %v19794_v47  ;;  %v14870_v25 = vsub.f32 %v3802_v9, %v14821_v34  ;;  %v3602_v17 = vsel %vm119_vm6, %v19795_v60, %v3598_v31  ;;  %v3671_v9 = vmul.f32 %v3660_v27, %v3644_v33  ;;  %v4679_v27 = vand.u32 4294901760, %v14843_v14 }
 0x449   :  { %4506 = vmatprep.subr.mxu1 %v14483_v44  ;;  %4471 = vmatprep.mubr.f32.mxu0 %v19593_v50  ;;  %v14883_v44 = vsub.f32 %v14650_v57, %v14833_v42  ;;  %v3630_v31 = vmul.f32 %v3622_v26, %v3601_v13  ;;  %v3560_v57 = vsel %vm75_vm7, %v19797_v18, %v3556_v19  ;;  %v4685_v41 = vand.u32 4294901760, %v14857_v2  ;;  %v19799_v19 = vld [vmem:[#allocation30_spill] sm:$0xff] }
 0x44a   :  { %4508 = vmatpush1.msra.mxu1 %v14436_v48  ;;  %4473 = vmatmul.mubr.f32.vlgmr.msra.gmra.mxu0 %v14454_v20  ;;  %v14893_v48 = vsub.f32 %v3760_v24, %v14845_v35  ;;  %v3629_v33 = vmul.f32 %v3618_v37, %v3602_v17  ;;  %v3517_v24 = vsel %vm31_vm8, %v3514_v12, %v19798_v30  ;;  %v4697_v37 = vand.u32 4294901760, %v14873_v55 }
 0x44b   :  { %4510 = vmatprep.subr.mxu1 %v14302_v1  ;;  %4584 = vmatprep.subr.mxu0 %v14801_v49  ;;  %v14903_v1 = vsub.f32 %v3718_v10, %v14859_v21  ;;  %v3588_v26 = vmul.f32 %v3580_v6, %v3559_v5  ;;  %v3518_v28 = vsel %vm31_vm8, %v19799_v19, %v3514_v12  ;;  %v4691_v10 = vand.u32 4294901760, %v14870_v25 }
 0x44c   :  { %4512 = vmatpush1.msra.mxu1 %v19766_v22  ;;  %4586 = vmatpush1.msra.mxu0 %v14813_v58  ;;  %v14911_v22 = vand.u32 4294901760, %v14679_v51  ;;  %v14923_v13 = vand.u32 4294901760, %v3671_v9  ;;  %v3587_v47 = vmul.f32 %v3576_v23, %v3560_v57  ;;  %v14927_v6 = vand.u32 4294901760, %v3630_v31 }
 0x44d   :  { %4514 = vmatprep.subr.mxu1 %v14475_v56  ;;  %4588 = vmatprep.subr.mxu0 %v14821_v34  ;;  %v14921_v56 = vsub.f32 %v3717_v15, %v14885_v53  ;;  %v3546_v60 = vmul.f32 %v3538_v3, %v3517_v24  ;;  %v19189_v15 = vand.u32 4294901760, %v14893_v48  ;;  %v19191_v17 = vand.u32 4294901760, %v14883_v44 }
 0x44e   :  { %4516 = vmatpush1.msra.mxu1 %v14527_v43  ;;  %4590 = vmatpush1.msra.mxu0 %v14823_v8  ;;  %v4680_v43 = vsub.f32 %v14843_v14, %v4679_v27  ;;  %v14936_v23 = vand.u32 4294901760, %v3629_v33  ;;  %v14945_v3 = vsub.f32 %v14679_v51, %v14911_v22  ;;  %v14947_v12 = vand.u32 4294901760, %v3588_v26 }
 0x44f   :  { %4518 = vmatprep.subr.mxu1 %v14492_v38  ;;  %4592 = vmatprep.subr.mxu0 %v14845_v35  ;;  %v3545_v38 = vmul.f32 %v3534_v59, %v3518_v28  ;;  %v19190_v59 = vand.u32 4294901760, %v14903_v1  ;;  %v19193_v11 = vand.u32 4294901760, %v14921_v56  ;;  %v14957_v5 = vsub.f32 %v3671_v9, %v14923_v13 }
 0x450   :  { %4520 = vmatpush1.msra.mxu1 %v14601_v52  ;;  %4594 = vmatpush1.msra.mxu0 %v14833_v42  ;;  %v4686_v52 = vsub.f32 %v14857_v2, %v4685_v41  ;;  %v14959_v18 = vand.u32 4294901760, %v3587_v47  ;;  %v14967_v51 = vsub.f32 %v3630_v31, %v14927_v6  ;;  %v14969_v57 = vand.u32 4294901760, %v3546_v60 }
 0x451   :  { %4522 = vmatprep.subr.mxu1 %v14599_v54  ;;  %4596 = vmatprep.subr.mxu0 %v14859_v21  ;;  %v4692_v54 = vsub.f32 %v14870_v25, %v4691_v10  ;;  %v4681_v9 = vand.u32 4294901760, %v4680_v43  ;;  %v14977_v30 = vsub.f32 %v3629_v33, %v14936_v23  ;;  %v14979_v24 = vand.u32 4294901760, %v3545_v38 }
 0x452   :  { %4524 = vmatpush1.msra.mxu1 %v14610_v46  ;;  %4561 = vmatprep.mubr.f32.mxu1 %v19593_v50  ;;  %v4698_v46 = vsub.f32 %v14873_v55, %v4697_v37  ;;  %v4687_v31 = vand.u32 4294901760, %v4686_v52  ;;  %v14987_v19 = vsub.f32 %v3588_v26, %v14947_v12  ;;  %v4716_v33 = vsub.f32 %v14903_v1, %v19190_v59 }
 0x453   :  { %4526 = vmatprep.subr.mxu1 %v14629_v4  ;;  %4598 = vmatpush1.msra.mxu0 %v14885_v53  ;;  %v4704_v4 = vsub.f32 %v14893_v48, %v19189_v15  ;;  %v4693_v28 = vand.u32 4294901760, %v4692_v54  ;;  %v19194_v43 = vand.u32 4294901760, %v14945_v3  ;;  %v4745_v15 = vand.u32 4294901760, %v14957_v5 }
 0x454   :  { %4528 = vmatpush1.msra.mxu1 %v14631_v45  ;;  %4600 = vmatprep.subr.mxu0 %v14776_v16  ;;  %v4710_v45 = vsub.f32 %v14883_v44, %v19191_v17  ;;  %v14996_v52 = vsub.f32 %v3587_v47, %v14959_v18  ;;  %v4699_v26 = vand.u32 4294901760, %v4698_v46  ;;  %v15003_v54 = vsub.f32 %v3546_v60, %v14969_v57 }
 0x455   :  { %4563 = vmatmul.mubr.f32.vlgmr.msra.gmra.mxu1 %v14454_v20  ;;  %4682 = vmatprep.subr.mxu1 %v4681_v9  ;;  %v4722_v9 = vsub.f32 %v14921_v56, %v19193_v11  ;;  %v4705_v59 = vand.u32 4294901760, %v4704_v4  ;;  %v4728_v47 = vsub.f32 %v14811_v39, %v19192_v40  ;;  %v4757_v17 = vand.u32 4294901760, %v14977_v30 }
 0x456   :  { %4602 = vmatpush1.msra.mxu0 %v14740_v63  ;;  %4688 = vmatpush1.msra.mxu1 %v4687_v31  ;;  %v19196_v31 = vand.u32 4294901760, %v14967_v51  ;;  %v15012_v46 = vsub.f32 %v3545_v38, %v14979_v24  ;;  %v4711_v60 = vand.u32 4294901760, %v4710_v45  ;;  %v4717_v4 = vand.u32 4294901760, %v4716_v33 }
 0x457   :  { %4604 = vmatprep.subr.mxu0 %v14911_v22  ;;  %4694 = vmatprep.subr.mxu1 %v4693_v28  ;;  %v4734_v28 = vsub.f32 %v14780_v0, %v19195_v29  ;;  %v4740_v40 = vsub.f32 %v14945_v3, %v19194_v43  ;;  %v4763_v11 = vand.u32 4294901760, %v14987_v19  ;;  %v4769_v38 = vand.u32 4294901760, %v14996_v52 }
 0x458   :  { %4606 = vmatpush1.msra.mxu0 %v14923_v13  ;;  %4700 = vmatpush1.msra.mxu1 %v4699_v26  ;;  %v4723_v45 = vand.u32 4294901760, %v4722_v9  ;;  %v4746_v26 = vsub.f32 %v14957_v5, %v4745_v15  ;;  %v4752_v33 = vsub.f32 %v14967_v51, %v19196_v31  ;;  %v4775_v43 = vand.u32 4294901760, %v15003_v54 }
 0x459   :  { %4608 = vmatprep.subr.mxu0 %v14927_v6  ;;  %4706 = vmatprep.subr.mxu1 %v4705_v59  ;;  %v4729_v59 = vand.u32 4294901760, %v4728_v47  ;;  %v4781_v29 = vand.u32 4294901760, %v15012_v46  ;;  %v4735_v9 = vand.u32 4294901760, %v4734_v28  ;;  %v4741_v47 = vand.u32 4294901760, %v4740_v40 }
 0x45a   :  { %4610 = vmatpush1.msra.mxu0 %v14936_v23  ;;  %4712 = vmatpush1.msra.mxu1 %v4711_v60  ;;  %v4758_v60 = vsub.f32 %v14977_v30, %v4757_v17  ;;  %v4747_v31 = vand.u32 4294901760, %v4746_v26  ;;  %v4770_v28 = vsub.f32 %v14996_v52, %v4769_v38  ;;  %v4776_v40 = vsub.f32 %v15003_v54, %v4775_v43 }
 0x45b   :  { %4612 = vmatprep.subr.mxu0 %v14947_v12  ;;  %4718 = vmatprep.subr.mxu1 %v4717_v4  ;;  %v4764_v4 = vsub.f32 %v14987_v19, %v4763_v11  ;;  %v4782_v26 = vsub.f32 %v15012_v46, %v4781_v29 }
 0x45c   :  { %4614 = vmatpush1.msra.mxu0 %v14959_v18  ;;  %4724 = vmatpush1.msra.mxu1 %v4723_v45  ;;  %v4753_v45 = vand.u32 4294901760, %v4752_v33  ;;  %v4771_v33 = vand.u32 4294901760, %v4770_v28 }
 0x45d   :  { %4616 = vmatprep.subr.mxu0 %v14969_v57  ;;  %4730 = vmatprep.subr.mxu1 %v4729_v59  ;;  %v4759_v59 = vand.u32 4294901760, %v4758_v60 }
 0x45e   :  { %4618 = vmatpush1.msra.mxu0 %v14979_v24  ;;  %4736 = vmatpush1.msra.mxu1 %v4735_v9  ;;  %v4765_v9 = vand.u32 4294901760, %v4764_v4 }
 0x45f   :  { %4651 = vmatprep.mubr.f32.mxu0 %v19593_v50  ;;  %4742 = vmatprep.subr.mxu1 %v4741_v47  ;;  %v4777_v47 = vand.u32 4294901760, %v4776_v40 }
 0x460   :  { %4841 = vmatprep.subr.mxu0 %v14843_v14  ;;  %4657 = vmatmul.mubr.f32.vlgmr.msra.gmra.mxu0 %v14636_v36  ;;  %v4783_v36 = vand.u32 4294901760, %v4782_v26  ;;  %v19801_v14 = vand.u32 4294901760, %v14893_v48 }
 0x461   :  { %4748 = vmatpush1.msra.mxu1 %v4747_v31  ;;  %4844 = vmatpush1.msra.mxu0 %v14857_v2  ;;  %v19800_v31 = vld [vmem:[#allocation14_spill] sm:$0xff]  ;;  %v19802_v2 = vand.u32 4294901760, %v14883_v44 }
 0x462   :  { %4754 = vmatprep.subr.mxu1 %v4753_v45  ;;  %4847 = vmatprep.subr.mxu0 %v14870_v25  ;;  %v19803_v25 = vand.u32 4294901760, %v14903_v1 }
 0x463   :  { %4760 = vmatpush1.msra.mxu1 %v4759_v59  ;;  %4850 = vmatpush1.msra.mxu0 %v14873_v55  ;;  %v19804_v55 = vand.u32 4294901760, %v14921_v56 }
 0x464   :  { %4766 = vmatprep.subr.mxu1 %v4765_v9  ;;  %4853 = vmatprep.subr.mxu0 %v14893_v48  ;;  %v19805_v48 = vand.u32 4294901760, %v14811_v39 }
 0x465   :  { %4772 = vmatpush1.msra.mxu1 %v4771_v33  ;;  %4856 = vmatpush1.msra.mxu0 %v14883_v44  ;;  %v19806_v44 = vand.u32 4294901760, %v14780_v0 }
 0x466   :  { %4778 = vmatprep.subr.mxu1 %v4777_v47  ;;  %4859 = vmatprep.subr.mxu0 %v14903_v1 }
 0x467   :  { %4784 = vmatpush1.msra.mxu1 %v4783_v36  ;;  %4817 = vmatprep.mubr.f32.mxu1 %v19593_v50 }
 0x468   :  { %4862 = vmatpush1.msra.mxu0 %v14921_v56  ;;  %4819 = vmatmul.mubr.f32.vlgmr.msra.gmra.mxu1 %v14454_v20 }
 0x469   :  { %4865 = vmatprep.subr.mxu0 %v14811_v39  ;;  %4949 = vmatprep.subr.mxu1 %v14801_v49 }
 0x46a   :  { %4868 = vmatpush1.msra.mxu0 %v14780_v0  ;;  %4951 = vmatpush1.msra.mxu1 %v14813_v58 }
 0x46b   :  { %4871 = vmatprep.subr.mxu0 %v14945_v3  ;;  %4953 = vmatprep.subr.mxu1 %v14821_v34 }
 0x46c   :  { %4874 = vmatpush1.msra.mxu0 %v14957_v5  ;;  %4955 = vmatpush1.msra.mxu1 %v14823_v8  ;;  %v19811_v5 = vld [vmem:[#allocation6_spill] sm:$0xff] }
 0x46d   :  { %4877 = vmatprep.subr.mxu0 %v14967_v51  ;;  %4957 = vmatprep.subr.mxu1 %v14845_v35 }
 0x46e   :  { %4880 = vmatpush1.msra.mxu0 %v14977_v30  ;;  %4959 = vmatpush1.msra.mxu1 %v14833_v42 }
 0x46f   :  { %4883 = vmatprep.subr.mxu0 %v14987_v19  ;;  %4961 = vmatprep.subr.mxu1 %v14859_v21 }
 0x470   :  { %4886 = vmatpush1.msra.mxu0 %v14996_v52  ;;  %4963 = vmatpush1.msra.mxu1 %v14885_v53 }
 0x471   :  { %4889 = vmatprep.subr.mxu0 %v15003_v54  ;;  %4965 = vmatprep.subr.mxu1 %v14776_v16 }
 0x472   :  { %4892 = vmatpush1.msra.mxu0 %v15012_v46  ;;  %4925 = vmatprep.mubr.f32.mxu0 %v19593_v50 }
 0x473   :  { %4967 = vmatpush1.msra.mxu1 %v14740_v63  ;;  %4928 = vmatmul.mubr.f32.vlgmr.msra.gmra.mxu0 %v19800_v31 }
 0x474   :  { %4969 = vmatprep.subr.mxu1 %v14911_v22  ;;  %5043 = vmatprep.subr.mxu0 %v4679_v27  ;;  %v19807_v27 = vand.u32 4294901760, %v14945_v3 }
 0x475   :  { %4971 = vmatpush1.msra.mxu1 %v14923_v13  ;;  %5047 = vmatpush1.msra.mxu0 %v4685_v41 }
 0x476   :  { %4973 = vmatprep.subr.mxu1 %v14927_v6  ;;  %5051 = vmatprep.subr.mxu0 %v4691_v10 }
 0x477   :  { %4975 = vmatpush1.msra.mxu1 %v14936_v23  ;;  %5055 = vmatpush1.msra.mxu0 %v4697_v37 }
 0x478   :  { %4977 = vmatprep.subr.mxu1 %v14947_v12  ;;  %5059 = vmatprep.subr.mxu0 %v19801_v14 }
 0x479   :  { %4979 = vmatpush1.msra.mxu1 %v14959_v18  ;;  %5063 = vmatpush1.msra.mxu0 %v19802_v2 }
 0x47a   :  { %4981 = vmatprep.subr.mxu1 %v14969_v57  ;;  %5067 = vmatprep.subr.mxu0 %v19803_v25  ;;  %v19813_v25 = vld [vmem:[#allocation9_spill] sm:$0xff] }
 0x47b   :  { %4983 = vmatpush1.msra.mxu1 %v14979_v24  ;;  %5016 = vmatprep.mubr.f32.mxu1 %v19593_v50 }
 0x47c   :  { %5071 = vmatpush1.msra.mxu0 %v19804_v55  ;;  %5020 = vmatmul.mubr.f32.vlgmr.msra.gmra.mxu1 %v14562_v62  ;;  %v19808_v62 = vand.u32 4294901760, %v14967_v51 }
 0x47d   :  { %5075 = vmatprep.subr.mxu0 %v19805_v48  ;;  %5167 = vmatprep.subr.mxu1 %v14801_v49 }
 0x47e   :  { %5079 = vmatpush1.msra.mxu0 %v19806_v44  ;;  %5169 = vmatpush1.msra.mxu1 %v14813_v58 }
 0x47f   :  { %5083 = vmatprep.subr.mxu0 %v19807_v27  ;;  %5171 = vmatprep.subr.mxu1 %v14821_v34  ;;  %v19815_v27 = vld [vmem:[#allocation18_spill] sm:$0xff] }
 0x480   :  { %5087 = vmatpush1.msra.mxu0 %v4745_v15  ;;  %5173 = vmatpush1.msra.mxu1 %v14823_v8 }
 0x481   :  { %5091 = vmatprep.subr.mxu0 %v19808_v62  ;;  %5175 = vmatprep.subr.mxu1 %v14845_v35 }
 0x482   :  { %5095 = vmatpush1.msra.mxu0 %v4757_v17  ;;  %5177 = vmatpush1.msra.mxu1 %v14833_v42 }
 0x483   :  { %5099 = vmatprep.subr.mxu0 %v4763_v11  ;;  %5179 = vmatprep.subr.mxu1 %v14859_v21 }
 0x484   :  { %5103 = vmatpush1.msra.mxu0 %v4769_v38  ;;  %5181 = vmatpush1.msra.mxu1 %v14885_v53 }
 0x485   :  { %5107 = vmatprep.subr.mxu0 %v4775_v43  ;;  %5183 = vmatprep.subr.mxu1 %v14776_v16  ;;  %v3891_v16 = vpop.permute.xlu0 %3890 }
 0x486   :  { %5111 = vmatpush1.msra.mxu0 %v4781_v29  ;;  %5144 = vmatprep.mubr.f32.mxu0 %v19593_v50 }
 0x487   :  { %5185 = vmatpush1.msra.mxu1 %v14740_v63  ;;  %5146 = vmatmul.mubr.f32.vlgmr.msra.gmra.mxu0 %v14454_v20 }
 0x488   :  { %5187 = vmatprep.subr.mxu1 %v14911_v22  ;;  %5234 = vmatprep.mubr.f32.mxu1 %v19593_v50 }
 0x489   :  { %5189 = vmatpush1.msra.mxu1 %v14923_v13  ;;  %5719 = vmatprep.mubr.f32.mxu0 %v19593_v50  ;;  %v19809_v13 = vld [vmem:[#allocation7_spill] sm:$0xff] }
 0x48a   :  { %5191 = vmatprep.subr.mxu1 %v14927_v6 }
 0x48b   :  { %5193 = vmatpush1.msra.mxu1 %v14936_v23 }
 0x48c   :  { %5195 = vmatprep.subr.mxu1 %v14947_v12 }
 0x48d   :  { %5197 = vmatpush1.msra.mxu1 %v14959_v18 }
 0x48e   :  { %5199 = vmatprep.subr.mxu1 %v14969_v57 }
 0x48f   :  { %5201 = vmatpush1.msra.mxu1 %v14979_v24 }
 0x490   :  { %5236 = vmatmul.mubr.f32.vlgmr.msra.gmra.mxu1 %v14454_v20 }
 0x491   :  { %5885 = vmatprep.mubr.f32.mxu1 %v19593_v50 }
 0x4e4   :  { %v3985_v63 = vpop.f32.mrf.mxu0 }
 0x4e5   :  { %v3986_v39 = vadd.f32 %v3985_v63, %v3891_v16 }
 0x4e6   :  { %v3987_v0 = vpop.f32.mrf.mxu0 }
 0x4e7   :  { %v3988_v53 = vadd.f32 %v3987_v0, %v3891_v16 }
 0x4ee   :  { %v4147_v49 = vpop.f32.mrf.mxu1 }
 0x4ef   :  { %v4148_v34 = vadd.f32 %v4147_v49, %v3986_v39 }
 0x4f0   :  { %v4149_v29 = vpop.f32.mrf.mxu1 }
 0x4f1   :  { %v4150_v20 = vadd.f32 %v4149_v29, %v3988_v53  ;;  %v12305_v53 = vmov 3  }
 0x4f2   :  { %12283 = vset.pattern.permute.xlu0 %v12305_v53 }
 0x4f6   :  { %v4256_v58 = vpop.f32.mrf.mxu0 }
 0x4f7   :  { %v4257_v35 = vadd.f32 %v4256_v58, %v4148_v34 }
 0x4f8   :  { %v4258_v8 = vpop.f32.mrf.mxu0 }
 0x4f9   :  { %v4259_v56 = vadd.f32 %v4258_v8, %v4150_v20 }
 0x502   :  { %v4348_v42 = vpop.f32.mrf.mxu1 }
 0x503   :  { %v4349_v41 = vadd.f32 %v4348_v42, %v4257_v35  ;;  %v15248_v35 = vld [vmem:[%s19048_s0 + $0x40] ss:$8 sm:$0xf] }
 0x504   :  { %v4350_v1 = vpop.f32.mrf.mxu1  ;;  %19821 = vst [vmem:[#allocation20_spill] sm:$0xff] %v15248_v35 }
 0x505   :  { %v4351_v17 = vadd.f32 %v4350_v1, %v4259_v56  ;;  %v19823_v1 = vld [vmem:[#allocation4_spill] sm:$0xff] }
 0x50a   :  { %v4474_v21 = vpop.f32.mrf.mxu0 }
 0x50b   :  { %v4475_v22 = vadd.f32 %v4474_v21, %v4349_v41  ;;  %v5628_v41 = vld [vmem:[%s19049_s3] sm:$0xff] }
 0x50c   :  { %v4476_v15 = vpop.f32.mrf.mxu0 }
 0x50d   :  { %v4477_v12 = vadd.f32 %v4476_v15, %v4351_v17 }
 0x515   :  { %v4564_v10 = vpop.f32.mrf.mxu1 }
 0x516   :  { %v4565_v37 = vadd.f32 %v4564_v10, %v4475_v22  ;;  %v5565_v22 = vrot.slane %v15248_v35, %v19823_v1  ;;  %v15261_v10 = vld [vmem:[%s19048_s0 + $0x27] ss:$8 sm:$0xf] }
 0x517   :  { %v4566_v3 = vpop.f32.mrf.mxu1  ;;  %v5523_v17 = vrot.slane %v15261_v10, %v19823_v1 }
 0x518   :  { %v5242_v6 = vadd.f32 %v4565_v37, %v19809_v13  ;;  %v4567_v11 = vadd.f32 %v4566_v3, %v4477_v12  ;;  %v15276_v13 = vld [vmem:[%s19048_s0 + $0x26] ss:$8 sm:$0xf] }
 0x51a   :  { %v15156_v23 = vmax.f32 %v5242_v6, 0.0  ;;  %v5243_v18 = vadd.f32 %v4567_v11, %v19811_v5  ;;  %v15286_v11 = vld [vmem:[%s19048_s0 + $0x25] ss:$8 sm:$0xf]  ;;  %v5481_v5 = vrot.slane %v15276_v13, %v19823_v1 }
 0x51b   :  { %19825 = vst [vmem:[#allocation8_spill] sm:$0xff] %v15286_v11 }
 0x51c   :  { %19810 = vst [vmem:[#allocation13_spill] sm:$0xff] %v15156_v23  ;;  %5506 = vrot.lane.b32.xlu1 %v15156_v23, %s12294_s22  ;;  %5548 = vrot.lane.b32.xlu0 %v15156_v23, %s12293_s19  ;;  %v15171_v51 = vmax.f32 %v5243_v18, 0.0  ;;  %v15251_v21 = vand.u32 4294901760, %v15156_v23 }
 0x51e   :  { %19812 = vst [vmem:[#allocation23_spill] sm:$0xff] %v15171_v51  ;;  %19822 = vst [vmem:[#allocation12_spill] sm:$0xff] %v15251_v21  ;;  %v15267_v37 = vand.u32 4294901760, %v15171_v51  ;;  %v15271_v56 = vsub.f32 %v15156_v23, %v15251_v21 }
 0x520   :  { %5422 = vrot.lane.b32.xlu1 %v15156_v23, %s12296_s24  ;;  %5464 = vrot.lane.b32.xlu0 %v15156_v23, %s12295_s23  ;;  %v4658_v57 = vpop.f32.mrf.mxu0  ;;  %19824 = vst [vmem:[#allocation24_spill] sm:$0xff] %v15267_v37  ;;  %v15292_v18 = vsub.f32 %v15171_v51, %v15267_v37 }
 0x521   :  { %v4659_v19 = vadd.f32 %v4658_v57, %v3891_v16  ;;  %v19197_v57 = vand.u32 4294901760, %v15271_v56 }
 0x522   :  { %v4660_v30 = vpop.f32.mrf.mxu0 }
 0x523   :  { %v4661_v60 = vadd.f32 %v4660_v30, %v3891_v16 }
 0x524   :  { %5334 = vrot.lane.b32.xlu1 %v15156_v23, %s12298_s28  ;;  %5376 = vrot.lane.b32.xlu0 %v15156_v23, %s12297_s25 }
 0x528   :  { %5550 = vrot.lane.b32.xlu1 %v15171_v51, %s12293_s19  ;;  %5292 = vrot.lane.b32.xlu0 %v15156_v23, %s12299_s29  ;;  %v4820_v24 = vpop.f32.mrf.mxu1 }
 0x529   :  { %v4821_v54 = vadd.f32 %v4820_v24, %v4659_v19  ;;  %v12042_v24 = vld [vmem:[%s19050_s1 + $0x18] sm:$0xff] }
 0x52a   :  { %v4822_v52 = vpop.f32.mrf.mxu1 }
 0x52b   :  { %v4823_v45 = vadd.f32 %v4822_v52, %v4661_v60  ;;  %v15306_v52 = vld [vmem:[%s19048_s0 + $0x22] ss:$8 sm:$0xf] }
 0x52c   :  { %5508 = vrot.lane.b32.xlu1 %v15171_v51, %s12294_s22  ;;  %5466 = vrot.lane.b32.xlu0 %v15171_v51, %s12295_s23  ;;  %19826 = vst [vmem:[#allocation19_spill] sm:$0xff] %v15306_v52 }
 0x530   :  { %5424 = vrot.lane.b32.xlu1 %v15171_v51, %s12296_s24  ;;  %5336 = vrot.lane.b32.xlu0 %v15171_v51, %s12298_s28 }
 0x533   :  { %v4929_v43 = vpop.f32.mrf.mxu0 }
 0x534   :  { %5378 = vrot.lane.b32.xlu1 %v15171_v51, %s12297_s25  ;;  %v4930_v4 = vadd.f32 %v4929_v43, %v4821_v54  ;;  %v5439_v43 = vrot.slane %v15286_v11, %v19823_v1  ;;  %v15311_v54 = vld [vmem:[%s19048_s0 + $0x23] ss:$8 sm:$0xf] }
 0x535   :  { %v4931_v46 = vpop.f32.mrf.mxu0 }
 0x536   :  { %v4932_v26 = vadd.f32 %v4931_v46, %v4823_v45  ;;  %v15325_v45 = vld [vmem:[%s19048_s0 + $0x21] ss:$8 sm:$0xf] }
 0x537   :  { %19829 = vst [vmem:[#allocation11_spill] sm:$0xff] %v15325_v45 }
 0x53c   :  { %v5021_v38 = vpop.f32.mrf.mxu1 }
 0x53d   :  { %v5022_v40 = vadd.f32 %v5021_v38, %v4930_v4 }
 0x53e   :  { %v5023_v59 = vpop.f32.mrf.mxu1 }
 0x53f   :  { %v5024_v36 = vadd.f32 %v5023_v59, %v4932_v26  ;;  %v15331_v59 = vsub.f32 %v15271_v56, %v19197_v57  ;;  %v5635_v26 = vsel %vm422_vm5, %v12042_v24, 0 }
 0x547   :  { %v5147_v28 = vpop.f32.mrf.mxu0 }
 0x548   :  { %v5148_v9 = vadd.f32 %v5147_v28, %v5022_v40 }
 0x549   :  { %v5149_v33 = vpop.f32.mrf.mxu0 }
 0x54a   :  { %v5150_v2 = vadd.f32 %v5149_v33, %v5024_v36 }
 0x550   :  { %v5237_v47 = vpop.f32.mrf.mxu1 }
 0x551   :  { %v5238_v31 = vadd.f32 %v5237_v47, %v5148_v9  ;;  %v19830_v9 = vld [vmem:[#allocation5_spill] sm:$0xff] }
 0x552   :  { %v5239_v14 = vpop.f32.mrf.mxu1  ;;  %v5355_v33 = vrot.slane %v15306_v52, %v19830_v9  ;;  %v5397_v47 = vrot.slane %v15311_v54, %v19830_v9  ;;  %v5569_v36 = vrot.slane %v15248_v35, %v19830_v9 }
 0x553   :  { %v5244_v55 = vadd.f32 %v5238_v31, %v19813_v25  ;;  %v5240_v44 = vadd.f32 %v5239_v14, %v5150_v2  ;;  %v5527_v31 = vrot.slane %v15261_v10, %v19830_v9  ;;  %v5485_v25 = vrot.slane %v15276_v13, %v19830_v9 }
 0x555   :  { %v15188_v48 = vmax.f32 %v5244_v55, 0.0  ;;  %v5245_v62 = vadd.f32 %v5240_v44, %v19815_v27  ;;  %v5443_v55 = vrot.slane %v15286_v11, %v19830_v9 }
 0x557   :  { %19814 = vst [vmem:[#allocation3_spill] sm:$0xff] %v15188_v48  ;;  %5552 = vrot.lane.b32.xlu1 %v15188_v48, %s12293_s19  ;;  %5510 = vrot.lane.b32.xlu0 %v15188_v48, %s12294_s22  ;;  %v15199_v63 = vmax.f32 %v5245_v62, 0.0 }
 0x559   :  { %19816 = vst [vmem:[#allocation22_spill] sm:$0xff] %v15199_v63 }
 0x55b   :  { %5468 = vrot.lane.b32.xlu1 %v15188_v48, %s12295_s23  ;;  %5426 = vrot.lane.b32.xlu0 %v15188_v48, %s12296_s24 }
 0x55f   :  { %5294 = vrot.lane.b32.xlu1 %v15171_v51, %s12299_s29  ;;  %5382 = vrot.lane.b32.xlu0 %v15199_v63, %s12297_s25 }
 0x563   :  { %5250 = vrot.lane.b32.xlu1 %v15156_v23, %s12300_s30  ;;  %5298 = vrot.lane.b32.xlu0 %v15199_v63, %s12299_s29 }
 0x567   :  { %5340 = vrot.lane.b32.xlu1 %v15199_v63, %s12298_s28  ;;  %5252 = vrot.lane.b32.xlu0 %v15171_v51, %s12300_s30 }
 0x56b   :  { %5256 = vrot.lane.b32.xlu1 %v15199_v63, %s12300_s30  ;;  %5554 = vrot.lane.b32.xlu0 %v15199_v63, %s12293_s19 }
 0x56f   :  { %5512 = vrot.lane.b32.xlu1 %v15199_v63, %s12294_s22  ;;  %5470 = vrot.lane.b32.xlu0 %v15199_v63, %s12295_s23 }
 0x573   :  { %5428 = vrot.lane.b32.xlu1 %v15199_v63, %s12296_s24  ;;  %5380 = vrot.lane.b32.xlu0 %v15188_v48, %s12297_s25 }
 0x577   :  { %5338 = vrot.lane.b32.xlu1 %v15188_v48, %s12298_s28  ;;  %5296 = vrot.lane.b32.xlu0 %v15188_v48, %s12299_s29 }
 0x57b   :  { %5254 = vrot.lane.b32.xlu1 %v15188_v48, %s12300_s30  ;;  %5631 = vperm.xlu0 %12283, %v5628_v41  }
 0x58e   :  { %v15231_v16 = vpop.permute.xlu1 %5506  ;;  %v15233_v0 = vpop.permute.xlu0 %5548 }
 0x58f   :  { %19817 = vst [vmem:[#allocation16_spill] sm:$0xff] %v15231_v16  ;;  %19818 = vst [vmem:[#allocation10_spill] sm:$0xff] %v15233_v0 }
 0x592   :  { %v15235_v49 = vpop.permute.xlu1 %5422  ;;  %v15237_v39 = vpop.permute.xlu0 %5464 }
 0x593   :  { %19819 = vst [vmem:[#allocation27_spill] sm:$0xff] %v15235_v49  ;;  %19820 = vst [vmem:[#allocation17_spill] sm:$0xff] %v15237_v39 }
 0x596   :  { %v15239_v58 = vpop.permute.xlu1 %5334  ;;  %v15241_v29 = vpop.permute.xlu0 %5376 }
 0x59a   :  { %v5551_v34 = vpop.permute.xlu1 %5550  ;;  %v15243_v8 = vpop.permute.xlu0 %5292 }
 0x59b   :  { %v5558_v20 = vsel %vm343_vm0, %v15233_v0, %v5551_v34 }
 0x59c   :  { %v5582_v3 = vmul.f32 %v5565_v22, %v5558_v20  ;;  %v15361_v22 = vand.u32 4294901760, %v5635_v26 }
 0x59e   :  { %v5509_v42 = vpop.permute.xlu1 %5508  ;;  %v5467_v6 = vpop.permute.xlu0 %5466  ;;  %v15313_v46 = vand.u32 4294901760, %v5582_v3 }
 0x59f   :  { %v5516_v12 = vsel %vm299_vm1, %v15231_v16, %v5509_v42  ;;  %v5474_v30 = vsel %vm255_vm2, %v15237_v39, %v5467_v6 }
 0x5a0   :  { %v5540_v19 = vmul.f32 %v5523_v17, %v5516_v12  ;;  %v5498_v28 = vmul.f32 %v5481_v5, %v5474_v30  ;;  %v15349_v44 = vsub.f32 %v5582_v3, %v15313_v46  ;;  %v5393_v12 = vrot.slane %v15311_v54, %v19823_v1 }
 0x5a2   :  { %v5425_v15 = vpop.permute.xlu1 %5424  ;;  %v15318_v60 = vpop.permute.xlu0 %5336  ;;  %v15342_v14 = vand.u32 4294901760, %v5540_v19  ;;  %v15363_v20 = vand.u32 4294901760, %v5498_v28 }
 0x5a3   :  { %v5432_v38 = vsel %vm211_vm3, %v15235_v49, %v5425_v15  ;;  %19827 = vst [vmem:[#allocation15_spill] sm:$0xff] %v15318_v60  ;;  %v5344_v5 = vsel %vm119_vm6, %v15239_v58, %v15318_v60 }
 0x5a4   :  { %v5456_v2 = vmul.f32 %v5439_v43, %v5432_v38  ;;  %v15380_v38 = vsub.f32 %v5540_v19, %v15342_v14  ;;  %v15398_v19 = vld [vmem:[%s19048_s0 + $0x20] ss:$8 sm:$0xf] }
 0x5a6   :  { %v15320_v4 = vpop.permute.xlu1 %5378 }
 0x5a7   :  { %19828 = vst [vmem:[#allocation26_spill] sm:$0xff] %v15320_v4  ;;  %v5386_v27 = vsel %vm163_vm4, %v15241_v29, %v15320_v4 }
 0x5a8   :  { %v5411_v57 = vmul.f32 %v5397_v47, %v5386_v27  ;;  %v15401_v47 = vsub.f32 %v5635_v26, %v15361_v22  ;;  %v15404_v27 = vsub.f32 %v5498_v28, %v15363_v20 }
 0x5aa   :  { %v15449_v60 = vand.u32 4294901760, %v15401_v47  ;;  %v19840_v0 = vand.u32 4294901760, %v15404_v27 }
 0x5c9   :  { %v15355_v62 = vpop.permute.xlu1 %5552  ;;  %v15357_v53 = vpop.permute.xlu0 %5510 }
 0x5ca   :  { %19831 = vst [vmem:[#allocation28_spill] sm:$0xff] %v15355_v62  ;;  %v5557_v17 = vsel %vm343_vm0, %v5551_v34, %v15355_v62  ;;  %v5515_v3 = vsel %vm299_vm1, %v5509_v42, %v15357_v53  ;;  %v15382_v34 = vand.u32 4294901760, %v5456_v2 }
 0x5cb   :  { %v5583_v30 = vmul.f32 %v5569_v36, %v5557_v17  ;;  %v5541_v24 = vmul.f32 %v5527_v31, %v5515_v3  ;;  %v5369_v17 = vmul.f32 %v5355_v33, %v5344_v5 }
 0x5cc   :  { %v15421_v33 = vsub.f32 %v5456_v2, %v15382_v34 }
 0x5cd   :  { %v15387_v41 = vand.u32 4294901760, %v5583_v30  ;;  %v15389_v51 = vand.u32 4294901760, %v5541_v24  ;;  %v15391_v36 = vpop.permute.xlu1 %5468  ;;  %v15393_v31 = vpop.permute.xlu0 %5426  ;;  %v15451_v4 = vand.u32 4294901760, %v5369_v17 }
 0x5ce   :  { %19832 = vst [vmem:[#allocation29_spill] sm:$0xff] %v15393_v31  ;;  %v5473_v3 = vsel %vm255_vm2, %v5467_v6, %v15391_v36  ;;  %v5431_v42 = vsel %vm211_vm3, %v5425_v15, %v15393_v31  ;;  %v15423_v6 = vand.u32 4294901760, %v5411_v57  ;;  %v19834_v15 = vand.u32 4294901760, %v15349_v44 }
 0x5cf   :  { %v15413_v43 = vsub.f32 %v5583_v30, %v15387_v41  ;;  %v15416_v40 = vsub.f32 %v5541_v24, %v15389_v51  ;;  %v5499_v26 = vmul.f32 %v5485_v25, %v5473_v3  ;;  %v5457_v23 = vmul.f32 %v5443_v55, %v5431_v42  ;;  %5652 = vmatprep.subr.mxu0 %v15387_v41 }
 0x5d0   :  { %5654 = vmatpush1.msra.mxu0 %v15313_v46  ;;  %v5754_v28 = vsub.f32 %v15349_v44, %v19834_v15  ;;  %v15462_v31 = vsub.f32 %v5411_v57, %v15423_v6  ;;  %v19838_v57 = vand.u32 4294901760, %v15380_v38 }
 0x5d1   :  { %v15428_v5 = vand.u32 4294901760, %v5499_v26  ;;  %v15430_v30 = vand.u32 4294901760, %v5457_v23  ;;  %v15432_v25 = vpop.permute.xlu1 %5294  ;;  %5656 = vmatprep.subr.mxu0 %v15389_v51  ;;  %v15435_v55 = vpop.permute.xlu0 %5382  ;;  %v19835_v15 = vand.u32 4294901760, %v15413_v43 }
 0x5d2   :  { %19833 = vst [vmem:[#allocation25_spill] sm:$0xff] %v15432_v25  ;;  %v5387_v3 = vsel %vm163_vm4, %v15435_v55, %v15241_v29  ;;  %5658 = vmatpush1.msra.mxu0 %v15342_v14  ;;  %v5766_v29 = vsub.f32 %v15380_v38, %v19838_v57  ;;  %v5755_v62 = vand.u32 4294901760, %v5754_v28  ;;  %v15491_v57 = vsub.f32 %v5369_v17, %v15451_v4 }
 0x5d3   :  { %v15454_v24 = vsub.f32 %v5499_v26, %v15428_v5  ;;  %v15457_v42 = vsub.f32 %v5457_v23, %v15430_v30  ;;  %v5410_v2 = vmul.f32 %v5393_v12, %v5387_v3  ;;  %5660 = vmatprep.subr.mxu0 %v15428_v5  ;;  %v5748_v49 = vsub.f32 %v15413_v43, %v19835_v15 }
 0x5d4   :  { %5662 = vmatpush1.msra.mxu0 %v15363_v20  ;;  %v19836_v26 = vand.u32 4294901760, %v15416_v40  ;;  %v5302_v15 = vsel %vm75_vm7, %v15243_v8, %v15432_v25 }
 0x5d5   :  { %v15471_v23 = vand.u32 4294901760, %v5410_v2  ;;  %v5251_v12 = vpop.permute.xlu1 %5250  ;;  %5664 = vmatprep.subr.mxu0 %v15430_v30  ;;  %v15474_v3 = vpop.permute.xlu0 %5298  ;;  %v5749_v16 = vand.u32 4294901760, %v5748_v49  ;;  %v19839_v63 = vand.u32 4294901760, %v15454_v24  ;;  %v19841_v17 = vand.u32 4294901760, %v15457_v42 }
 0x5d6   :  { %v5760_v11 = vsub.f32 %v15416_v40, %v19836_v26  ;;  %19837 = vst [vmem:[#allocation30_spill] sm:$0xff] %v15474_v3  ;;  %v5303_v26 = vsel %vm75_vm7, %v15474_v3, %v15243_v8  ;;  %5666 = vmatpush1.msra.mxu0 %v15382_v34  ;;  %v5778_v8 = vsub.f32 %v15404_v27, %v19840_v0 }
 0x5d7   :  { %v15494_v39 = vsub.f32 %v5410_v2, %v15471_v23  ;;  %5668 = vmatprep.subr.mxu0 %v15267_v37  ;;  %v5772_v25 = vsub.f32 %v15454_v24, %v19839_v63  ;;  %5750 = vmatprep.subr.mxu1 %v5749_v16  ;;  %v5784_v28 = vsub.f32 %v15457_v42, %v19841_v17  ;;  %v19842_v2 = vand.u32 4294901760, %v15421_v33 }
 0x5d8   :  { %5670 = vmatpush1.msra.mxu0 %v15251_v21  ;;  %v5761_v49 = vand.u32 4294901760, %v5760_v11  ;;  %v19843_v63 = vrot.slane %v15325_v45, %v19830_v9  ;;  %v19844_v16 = vrot.slane %v15325_v45, %v19823_v1  ;;  %5756 = vmatpush1.msra.mxu1 %v5755_v62  ;;  %v5767_v17 = vand.u32 4294901760, %v5766_v29 }
 0x5d9   :  { %v5790_v3 = vsub.f32 %v15421_v33, %v19842_v2  ;;  %v15517_v11 = vpop.permute.xlu1 %5340  ;;  %v15519_v21 = vpop.permute.xlu0 %5252  ;;  %5672 = vmatprep.subr.mxu0 %v15423_v6  ;;  %v5773_v37 = vand.u32 4294901760, %v5772_v25  ;;  %v19848_v25 = vrot.slane %v15306_v52, %v19823_v1  ;;  %v5785_v2 = vand.u32 4294901760, %v5784_v28 }
 0x5da   :  { %v5327_v35 = vmul.f32 %v19843_v63, %v5302_v15  ;;  %v5326_v0 = vmul.f32 %v19844_v16, %v5303_v26  ;;  %19845 = vst [vmem:[#allocation14_spill] sm:$0xff] %v15517_v11  ;;  %19846 = vst [vmem:[#allocation7_spill] sm:$0xff] %v15519_v21  ;;  %v5345_v15 = vsel %vm119_vm6, %v15517_v11, %v15239_v58  ;;  %5762 = vmatprep.subr.mxu1 %v5761_v49 }
 0x5db   :  { %v5260_v62 = vsel %vm31_vm8, %v5251_v12, %v15519_v21  ;;  %5674 = vmatpush1.msra.mxu0 %v15471_v23  ;;  %v19847_v26 = vand.u32 4294901760, %v15292_v18  ;;  %v5368_v29 = vmul.f32 %v19848_v25, %v5345_v15  ;;  %5768 = vmatpush1.msra.mxu1 %v5767_v17  ;;  %v5779_v16 = vand.u32 4294901760, %v5778_v8 }
 0x5dc   :  { %5676 = vmatprep.subr.mxu0 %v15451_v4  ;;  %v5267_v58 = vrot.slane %v15398_v19, %v19823_v1  ;;  %5774 = vmatprep.subr.mxu1 %v5773_v37  ;;  %v5791_v48 = vand.u32 4294901760, %v5790_v3  ;;  %v19849_v21 = vand.u32 4294901760, %v15462_v31  ;;  %v5723_v11 = vsub.f32 %v15401_v47, %v15449_v60 }
 0x5dd   :  { %v5796_v63 = vsub.f32 %v15292_v18, %v19847_v26  ;;  %v15546_v15 = vand.u32 4294901760, %v5327_v35  ;;  %v15548_v17 = vand.u32 4294901760, %v5326_v0  ;;  %v15550_v8 = vand.u32 4294901760, %v5368_v29  ;;  %5780 = vmatpush1.msra.mxu1 %v5779_v16  ;;  %v15555_v37 = vpop.permute.xlu1 %5256  ;;  %v15557_v3 = vpop.permute.xlu0 %5554 }
 0x5de   :  { %v5808_v26 = vsub.f32 %v15462_v31, %v19849_v21  ;;  %v19850_v25 = vrot.slane %v15398_v19, %v19830_v9  ;;  %v5261_v21 = vsel %vm31_vm8, %v15555_v37, %v5251_v12  ;;  %5786 = vmatprep.subr.mxu1 %v5785_v2  ;;  %v19851_v1 = vand.u32 4294901760, %v15494_v39 }
 0x5df   :  { %v5797_v28 = vand.u32 4294901760, %v5796_v63  ;;  %v5284_v52 = vmul.f32 %v5267_v58, %v5261_v21  ;;  %5792 = vmatpush1.msra.mxu1 %v5791_v48  ;;  %v5803_v9 = vand.u32 4294901760, %v15331_v59  ;;  %v19852_v16 = vand.u32 4294901760, %v15491_v57  ;;  %5678 = vmatpush1.msra.mxu0 %v15550_v8 }
 0x5e0   :  { %v5285_v49 = vmul.f32 %v19850_v25, %v5260_v62  ;;  %v5814_v45 = vsub.f32 %v15494_v39, %v19851_v1  ;;  %v5531_v62 = vrot.slane %v15261_v10, %v12824_v32  ;;  %v5489_v12 = vrot.slane %v15276_v13, %v12824_v32  ;;  %5680 = vmatprep.subr.mxu0 %v15546_v15 }
 0x5e1   :  { %v5820_v25 = vsub.f32 %v15491_v57, %v19852_v16  ;;  %5798 = vmatprep.subr.mxu1 %v5797_v28  ;;  %v5809_v2 = vand.u32 4294901760, %v5808_v26  ;;  %v15574_v63 = vand.u32 4294901760, %v5723_v11  ;;  %v15577_v48 = vsub.f32 %v5327_v35, %v15546_v15  ;;  %v15587_v21 = vpop.permute.xlu1 %5512  ;;  %v15589_v28 = vpop.permute.xlu0 %5470  ;;  %5682 = vmatpush1.msra.mxu0 %v15548_v17 }
 0x5e2   :  { %v15580_v1 = vsub.f32 %v5326_v0, %v15548_v17  ;;  %v15582_v59 = vand.u32 4294901760, %v5285_v49  ;;  %v15584_v58 = vand.u32 4294901760, %v5284_v52  ;;  %5804 = vmatpush1.msra.mxu1 %v5803_v9  ;;  %v15592_v11 = vsub.f32 %v5368_v29, %v15550_v8 }
 0x5e3   :  { %19853 = vst [vmem:[#allocation6_spill] sm:$0xff] %v15574_v63  ;;  %v5514_v35 = vsel %vm299_vm1, %v15357_v53, %v15587_v21  ;;  %v5472_v0 = vsel %vm255_vm2, %v15391_v36, %v15589_v28  ;;  %5810 = vmatprep.subr.mxu1 %v5809_v2  ;;  %v5815_v9 = vand.u32 4294901760, %v5814_v45  ;;  %v5821_v29 = vand.u32 4294901760, %v5820_v25 }
 0x5e4   :  { %v15603_v26 = vmul.f32 %v5531_v62, %v5514_v35  ;;  %5684 = vmatprep.subr.mxu0 %v15582_v59  ;;  %v15606_v16 = vmul.f32 %v5489_v12, %v5472_v0  ;;  %v5831_v36 = vand.u32 4294901760, %v15577_v48  ;;  %v19231_v2 = vand.u32 4294901760, %v15580_v1 }
 0x5e5   :  { %5816 = vmatpush1.msra.mxu1 %v5815_v9  ;;  %5686 = vmatpush1.msra.mxu0 %v15584_v58  ;;  %v15610_v53 = vpop.permute.xlu0 %5380  ;;  %v5825_v45 = vand.u32 4294901760, %v15592_v11  ;;  %v5405_v62 = vrot.slane %v15311_v54, %v12827_v61  ;;  %v15619_v25 = vsub.f32 %v5285_v49, %v15582_v59  ;;  %v15623_v12 = vsub.f32 %v5284_v52, %v15584_v58 }
 0x5e6   :  { %5822 = vmatprep.subr.mxu1 %v5821_v29  ;;  %5909 = vmatprep.subr.mxu0 %v15413_v43  ;;  %v5384_v35 = vsel %vm163_vm4, %v15610_v53, %v15435_v55  ;;  %v5832_v49 = vsub.f32 %v15577_v48, %v5831_v36  ;;  %v5838_v55 = vsub.f32 %v15580_v1, %v19231_v2 }
 0x5e7   :  { %5725 = vmatmul.mubr.f32.vlgmr.msra.gmra.mxu0 %v15574_v63  ;;  %v15635_v0 = vmul.f32 %v5405_v62, %v5384_v35  ;;  %v5826_v52 = vsub.f32 %v15592_v11, %v5825_v45  ;;  %v19233_v9 = vand.u32 4294901760, %v15619_v25  ;;  %v19232_v29 = vand.u32 4294901760, %v15623_v12 }
 0x5e8   :  { %5912 = vmatpush1.msra.mxu0 %v15349_v44  ;;  %5993 = vmatprep.mubr.f32.mxu0 %v19593_v50  ;;  %v5833_v62 = vand.u32 4294901760, %v5832_v49  ;;  %v5839_v35 = vand.u32 4294901760, %v5838_v55  ;;  %v19855_v55 = vand.u32 4294901760, %v15349_v44  ;;  %v19861_v44 = vand.u32 4294901760, %v15404_v27 }
 0x5e9   :  { %5915 = vmatprep.subr.mxu0 %v15416_v40  ;;  %v5827_v63 = vand.u32 4294901760, %v5826_v52  ;;  %v5844_v2 = vsub.f32 %v15619_v25, %v19233_v9  ;;  %v5850_v52 = vsub.f32 %v15623_v12, %v19232_v29  ;;  %v19869_v29 = vand.u32 4294901760, %v15292_v18  ;;  %v19872_v9 = vld [vmem:[#allocation17_spill] sm:$0xff] }
 0x5ea   :  { %5918 = vmatpush1.msra.mxu0 %v15380_v38 }
 0x5eb   :  { %5921 = vmatprep.subr.mxu0 %v15454_v24  ;;  %5828 = vmatpush1.msra.mxu1 %v5827_v63  ;;  %v5845_v49 = vand.u32 4294901760, %v5844_v2  ;;  %v5851_v63 = vand.u32 4294901760, %v5850_v52  ;;  %v19854_v2 = vand.u32 4294901760, %v15413_v43  ;;  %v19858_v52 = vand.u32 4294901760, %v15380_v38  ;;  %v19864_v38 = vld [vmem:[#allocation3_spill] sm:$0xff] }
 0x5ec   :  { %5924 = vmatpush1.msra.mxu0 %v15404_v27  ;;  %5834 = vmatprep.subr.mxu1 %v5833_v62  ;;  %v19856_v62 = vand.u32 4294901760, %v15416_v40  ;;  %v19860_v43 = vand.u32 4294901760, %v15454_v24  ;;  %v19863_v40 = vand.u32 4294901760, %v15457_v42 }
 0x5ed   :  { %5927 = vmatprep.subr.mxu0 %v15457_v42  ;;  %5840 = vmatpush1.msra.mxu1 %v5839_v35  ;;  %v19857_v35 = vld [vmem:[#allocation24_spill] sm:$0xff] }
 0x5ee   :  { %5930 = vmatpush1.msra.mxu0 %v15421_v33  ;;  %5846 = vmatprep.subr.mxu1 %v5845_v49  ;;  %v19859_v49 = vld [vmem:[#allocation12_spill] sm:$0xff] }
 0x5ef   :  { %5933 = vmatprep.subr.mxu0 %v15292_v18  ;;  %5852 = vmatpush1.msra.mxu1 %v5851_v63  ;;  %v19862_v63 = vld [vmem:[#allocation20_spill] sm:$0xff]  ;;  %v5475_v18 = vsel %vm255_vm2, %v15589_v28, %v19872_v9 }
 0x5f0   :  { %5936 = vmatpush1.msra.mxu0 %v15271_v56  ;;  %5887 = vmatmul.mubr.f32.vlgmr.msra.gmra.mxu1 %v15361_v22  ;;  %v5573_v24 = vrot.slane %v19862_v63, %v12824_v32 }
 0x5f1   :  { %5939 = vmatprep.subr.mxu0 %v15462_v31  ;;  %6017 = vmatprep.subr.mxu1 %v15387_v41 }
 0x5f2   :  { %5942 = vmatpush1.msra.mxu0 %v15494_v39  ;;  %6019 = vmatpush1.msra.mxu1 %v15313_v46 }
 0x5f3   :  { %5945 = vmatprep.subr.mxu0 %v15491_v57  ;;  %6021 = vmatprep.subr.mxu1 %v15389_v51 }
 0x5f4   :  { %5948 = vmatpush1.msra.mxu0 %v15592_v11  ;;  %6023 = vmatpush1.msra.mxu1 %v15342_v14  ;;  %v19880_v11 = vld [vmem:[#allocation11_spill] sm:$0xff] }
 0x5f5   :  { %5951 = vmatprep.subr.mxu0 %v15577_v48  ;;  %6025 = vmatprep.subr.mxu1 %v15428_v5 }
 0x5f6   :  { %5954 = vmatpush1.msra.mxu0 %v15580_v1  ;;  %6027 = vmatpush1.msra.mxu1 %v15363_v20 }
 0x5f7   :  { %5957 = vmatprep.subr.mxu0 %v15619_v25  ;;  %6029 = vmatprep.subr.mxu1 %v15430_v30 }
 0x5f8   :  { %5960 = vmatpush1.msra.mxu0 %v15623_v12  ;;  %6031 = vmatpush1.msra.mxu1 %v15382_v34 }
 0x5f9   :  { %5996 = vmatmul.mubr.f32.vlgmr.msra.gmra.mxu0 %v15401_v47  ;;  %6111 = vmatprep.subr.mxu0 %v19854_v2  ;;  %v5577_v2 = vrot.slane %v19862_v63, %v12827_v61  ;;  %v19867_v63 = vand.u32 4294901760, %v15421_v33  ;;  %v19871_v33 = vld [vmem:[#allocation22_spill] sm:$0xff] }
 0x5fa   :  { %6115 = vmatpush1.msra.mxu0 %v19855_v55  ;;  %6033 = vmatprep.subr.mxu1 %v19857_v35  ;;  %v15696_v55 = vand.u32 4294901760, %v19864_v38 }
 0x5fb   :  { %6119 = vmatprep.subr.mxu0 %v19856_v62  ;;  %6035 = vmatpush1.msra.mxu1 %v19859_v49  ;;  %v19865_v62 = vld [vmem:[#allocation10_spill] sm:$0xff] }
 0x5fc   :  { %6123 = vmatpush1.msra.mxu0 %v19858_v52  ;;  %6037 = vmatprep.subr.mxu1 %v15423_v6  ;;  %v5559_v27 = vsel %vm343_vm0, %v15557_v3, %v19865_v62  ;;  %v19866_v52 = vld [vmem:[#allocation28_spill] sm:$0xff] }
 0x5fd   :  { %6127 = vmatprep.subr.mxu0 %v19860_v43  ;;  %6039 = vmatpush1.msra.mxu1 %v15471_v23  ;;  %v5556_v42 = vsel %vm343_vm0, %v19866_v52, %v15557_v3  ;;  %v5535_v43 = vrot.slane %v15261_v10, %v12827_v61  ;;  %v5585_v3 = vmul.f32 %v5577_v2, %v5559_v27  ;;  %v19870_v52 = vand.u32 4294901760, %v15271_v56  ;;  %v19875_v27 = vld [vmem:[#allocation27_spill] sm:$0xff] }
 0x5fe   :  { %6131 = vmatpush1.msra.mxu0 %v19861_v44  ;;  %6041 = vmatprep.subr.mxu1 %v15451_v4  ;;  %v5429_v44 = vpop.permute.xlu1 %5428  ;;  %v5493_v10 = vrot.slane %v15276_v13, %v12827_v61  ;;  %v19873_v13 = vld [vmem:[#allocation8_spill] sm:$0xff]  ;;  %v19874_v56 = vand.u32 4294901760, %v15462_v31 }
 0x5ff   :  { %6135 = vmatprep.subr.mxu0 %v19863_v40  ;;  %6084 = vmatprep.mubr.f32.mxu1 %v19593_v50  ;;  %v19868_v40 = vld [vmem:[#allocation16_spill] sm:$0xff]  ;;  %v5447_v28 = vrot.slane %v19873_v13, %v12824_v32  ;;  %v15753_v9 = vand.u32 4294901760, %v5585_v3 }
 0x600   :  { %6043 = vmatpush1.msra.mxu1 %v15550_v8  ;;  %6139 = vmatpush1.msra.mxu0 %v19867_v63  ;;  %v5517_v62 = vsel %vm299_vm1, %v15587_v21, %v19868_v40  ;;  %v15728_v63 = vand.u32 4294901760, %v19871_v33  ;;  %v15732_v21 = vsub.f32 %v19864_v38, %v15696_v55  ;;  %v5584_v40 = vmul.f32 %v5573_v24, %v5556_v42  ;;  %v19877_v42 = vld [vmem:[#allocation29_spill] sm:$0xff] }
 0x601   :  { %6045 = vmatprep.subr.mxu1 %v15546_v15  ;;  %6143 = vmatprep.subr.mxu0 %v19869_v29  ;;  %v5451_v29 = vrot.slane %v19873_v13, %v12827_v61  ;;  %v5543_v2 = vmul.f32 %v5535_v43, %v5517_v62  ;;  %v19876_v24 = vand.u32 4294901760, %v15494_v39  ;;  %v5501_v31 = vmul.f32 %v5493_v10, %v5475_v18  ;;  %v19879_v18 = vld [vmem:[#allocation19_spill] sm:$0xff] }
 0x602   :  { %6047 = vmatpush1.msra.mxu1 %v15548_v17  ;;  %6147 = vmatpush1.msra.mxu0 %v19870_v52  ;;  %v5433_v52 = vsel %vm211_vm3, %v5429_v44, %v19875_v27  ;;  %v5430_v43 = vsel %vm211_vm3, %v19877_v42, %v5429_v44  ;;  %v5339_v62 = vpop.permute.xlu1 %5338  ;;  %v19878_v39 = vand.u32 4294901760, %v15491_v57  ;;  %v15763_v13 = vsub.f32 %v19871_v33, %v15728_v63  ;;  %v5297_v42 = vpop.permute.xlu0 %5296 }
 0x603   :  { %6049 = vmatprep.subr.mxu1 %v15582_v59  ;;  %6151 = vmatprep.subr.mxu0 %v19874_v56  ;;  %v15765_v56 = vand.u32 4294901760, %v5584_v40  ;;  %v5401_v10 = vrot.slane %v15311_v54, %v12824_v32  ;;  %v15773_v44 = vand.u32 4294901760, %v5543_v2  ;;  %v15776_v57 = vand.u32 4294901760, %v15603_v26 }
 0x604   :  { %6051 = vmatpush1.msra.mxu1 %v15584_v58  ;;  %6155 = vmatpush1.msra.mxu0 %v19876_v24  ;;  %v5359_v27 = vrot.slane %v19879_v18, %v12824_v32  ;;  %v5458_v54 = vmul.f32 %v5447_v28, %v5430_v43  ;;  %v19881_v24 = vand.u32 4294901760, %v15580_v1  ;;  %v15798_v48 = vand.u32 4294901760, %v5501_v31 }
 0x605   :  { %6088 = vmatmul.mubr.f32.vlgmr.msra.gmra.mxu1 %v15449_v60  ;;  %6235 = vmatprep.subr.mxu1 %v15387_v41  ;;  %v5459_v41 = vmul.f32 %v5451_v29, %v5433_v52  ;;  %v5363_v29 = vrot.slane %v19879_v18, %v12827_v61  ;;  %v5321_v52 = vrot.slane %v19880_v11, %v12827_v61 }
 0x606   :  { %6237 = vmatpush1.msra.mxu1 %v15313_v46  ;;  %6159 = vmatprep.subr.mxu0 %v19878_v39  ;;  %v19242_v46 = vand.u32 4294901760, %v15732_v21  ;;  %v5275_v43 = vrot.slane %v15398_v19, %v12824_v32  ;;  %v15810_v1 = vsub.f32 %v5584_v40, %v15765_v56  ;;  %v19884_v39 = vld [vmem:[#allocation14_spill] sm:$0xff]  ;;  %v19886_v40 = vld [vmem:[#allocation15_spill] sm:$0xff] }
 0x607   :  { %6239 = vmatprep.subr.mxu1 %v15389_v51  ;;  %6163 = vmatpush1.msra.mxu0 %v5825_v45  ;;  %v15786_v51 = vand.u32 4294901760, %v15606_v16  ;;  %v5317_v45 = vrot.slane %v19880_v11, %v12824_v32  ;;  %v5342_v18 = vsel %vm119_vm6, %v5339_v62, %v19884_v39  ;;  %v19885_v11 = vand.u32 4294901760, %v15623_v12  ;;  %v19888_v39 = vld [vmem:[#allocation25_spill] sm:$0xff] }
 0x608   :  { %6241 = vmatpush1.msra.mxu1 %v15342_v14  ;;  %6167 = vmatprep.subr.mxu0 %v5831_v36  ;;  %v15796_v14 = vsub.f32 %v5585_v3, %v15753_v9  ;;  %v19882_v36 = vld [vmem:[#allocation26_spill] sm:$0xff]  ;;  %v15812_v3 = vand.u32 4294901760, %v5459_v41  ;;  %v15839_v12 = vand.u32 4294901760, %v5458_v54 }
 0x609   :  { %6243 = vmatprep.subr.mxu1 %v15428_v5  ;;  %6171 = vmatpush1.msra.mxu0 %v19881_v24  ;;  %v5385_v28 = vsel %vm163_vm4, %v19882_v36, %v15610_v53  ;;  %v19883_v5 = vand.u32 4294901760, %v15619_v25  ;;  %v5279_v53 = vrot.slane %v15398_v19, %v12827_v61  ;;  %v15827_v25 = vsub.f32 %v15603_v26, %v15776_v57  ;;  %v5255_v36 = vpop.permute.xlu1 %5254  ;;  %v19887_v26 = vld [vmem:[#allocation30_spill] sm:$0xff] }
 0x60a   :  { %6245 = vmatpush1.msra.mxu1 %v15363_v20  ;;  %v15823_v20 = vsub.f32 %v5543_v2, %v15773_v44  ;;  %v5343_v24 = vsel %vm119_vm6, %v19886_v40, %v5339_v62  ;;  %6212 = vmatprep.mubr.f32.mxu0 %v19593_v50  ;;  %v19239_v19 = vand.u32 4294901760, %v15763_v13  ;;  %v5412_v2 = vmul.f32 %v5401_v10, %v5385_v28 }
 0x60b   :  { %6175 = vmatprep.subr.mxu0 %v19883_v5  ;;  %6247 = vmatprep.subr.mxu1 %v15430_v30  ;;  %v15837_v30 = vsub.f32 %v15606_v16, %v15786_v51  ;;  %v5300_v5 = vsel %vm75_vm7, %v5297_v42, %v19887_v26  ;;  %v5371_v62 = vmul.f32 %v5363_v29, %v5342_v18  ;;  %v6420_v10 = vand.u32 4294901760, %v15796_v14 }
 0x60c   :  { %6179 = vmatpush1.msra.mxu0 %v19885_v11  ;;  %6249 = vmatpush1.msra.mxu1 %v15382_v34  ;;  %v15847_v34 = vsub.f32 %v5501_v31, %v15798_v48  ;;  %v5301_v16 = vsel %vm75_vm7, %v19888_v39, %v5297_v42  ;;  %v6426_v28 = vand.u32 4294901760, %v15810_v1  ;;  %v5370_v11 = vmul.f32 %v5359_v27, %v5343_v24  ;;  %v19889_v42 = vld [vmem:[#allocation7_spill] sm:$0xff] }
 0x60d   :  { %6251 = vmatprep.subr.mxu1 %v19857_v35  ;;  %6214 = vmatmul.mubr.f32.vlgmr.msra.gmra.mxu0 %v15361_v22  ;;  %v15857_v35 = vsub.f32 %v5459_v41, %v15812_v3  ;;  %v5258_v31 = vsel %vm31_vm8, %v5255_v36, %v15555_v37  ;;  %v5329_v29 = vmul.f32 %v5321_v52, %v5300_v5  ;;  %v19236_v41 = vand.u32 4294901760, %v15823_v20 }
 0x60e   :  { %6253 = vmatpush1.msra.mxu1 %v19859_v49  ;;  %6325 = vmatprep.subr.mxu0 %v15753_v9  ;;  %v15865_v49 = vand.u32 4294901760, %v15635_v0  ;;  %v5259_v18 = vsel %vm31_vm8, %v19889_v42, %v5255_v36  ;;  %v19235_v37 = vand.u32 4294901760, %v15827_v25  ;;  %v15877_v27 = vand.u32 4294901760, %v5412_v2 }
 0x60f   :  { %6255 = vmatprep.subr.mxu1 %v15423_v6  ;;  %6327 = vmatpush1.msra.mxu0 %v15765_v56  ;;  %v15875_v6 = vsub.f32 %v5458_v54, %v15839_v12  ;;  %v5328_v40 = vmul.f32 %v5317_v45, %v5301_v16  ;;  %v15881_v52 = vand.u32 4294901760, %v5371_v62  ;;  %v5287_v24 = vmul.f32 %v5279_v53, %v5258_v31 }
 0x610   :  { %6257 = vmatpush1.msra.mxu1 %v15471_v23  ;;  %6329 = vmatprep.subr.mxu0 %v15773_v44  ;;  %v6421_v23 = vsub.f32 %v15796_v14, %v6420_v10  ;;  %v19234_v54 = vand.u32 4294901760, %v15847_v34  ;;  %v19238_v36 = vand.u32 4294901760, %v15837_v30  ;;  %v15890_v45 = vand.u32 4294901760, %v5370_v11 }
 0x611   :  { %6259 = vmatprep.subr.mxu1 %v15451_v4  ;;  %6331 = vmatpush1.msra.mxu0 %v15776_v57  ;;  %v5286_v4 = vmul.f32 %v5275_v43, %v5259_v18  ;;  %v15899_v53 = vsub.f32 %v15635_v0, %v15865_v49  ;;  %v15901_v26 = vand.u32 4294901760, %v5329_v29  ;;  %v19237_v43 = vand.u32 4294901760, %v15857_v35 }
 0x612   :  { %6261 = vmatpush1.msra.mxu1 %v15550_v8  ;;  %6333 = vmatprep.subr.mxu0 %v15798_v48  ;;  %v6427_v8 = vsub.f32 %v15810_v1, %v6426_v28  ;;  %v19240_v5 = vand.u32 4294901760, %v15875_v6  ;;  %v15911_v39 = vsub.f32 %v5412_v2, %v15877_v27  ;;  %v15913_v16 = vand.u32 4294901760, %v5328_v40 }
 0x613   :  { %6263 = vmatprep.subr.mxu1 %v15546_v15  ;;  %6335 = vmatpush1.msra.mxu0 %v15786_v51  ;;  %v6433_v15 = vsub.f32 %v15823_v20, %v19236_v41  ;;  %v15921_v0 = vsub.f32 %v5371_v62, %v15881_v52  ;;  %v15923_v31 = vand.u32 4294901760, %v5287_v24  ;;  %v6422_v2 = vand.u32 4294901760, %v6421_v23 }
 0x614   :  { %6265 = vmatpush1.msra.mxu1 %v15548_v17  ;;  %6337 = vmatprep.subr.mxu0 %v15812_v3  ;;  %v6439_v17 = vsub.f32 %v15827_v25, %v19235_v37  ;;  %v15931_v42 = vsub.f32 %v5370_v11, %v15890_v45  ;;  %v15933_v18 = vand.u32 4294901760, %v5286_v4  ;;  %v6428_v62 = vand.u32 4294901760, %v6427_v8 }
 0x615   :  { %6267 = vmatprep.subr.mxu1 %v15582_v59  ;;  %6302 = vmatprep.mubr.f32.mxu1 %v19593_v50  ;;  %v6445_v59 = vsub.f32 %v15847_v34, %v19234_v54  ;;  %v15941_v23 = vsub.f32 %v5329_v29, %v15901_v26  ;;  %v6434_v54 = vand.u32 4294901760, %v6433_v15  ;;  %v6457_v11 = vsub.f32 %v15857_v35, %v19237_v43 }
 0x616   :  { %6269 = vmatpush1.msra.mxu1 %v15584_v58  ;;  %6339 = vmatpush1.msra.mxu0 %v15839_v12  ;;  %v6451_v58 = vsub.f32 %v15837_v30, %v19238_v36  ;;  %v19241_v37 = vand.u32 4294901760, %v15899_v53  ;;  %v6486_v41 = vand.u32 4294901760, %v15911_v39  ;;  %v15950_v8 = vsub.f32 %v5328_v40, %v15913_v16 }
 0x617   :  { %6304 = vmatmul.mubr.f32.vlgmr.msra.gmra.mxu1 %v15361_v22  ;;  %6341 = vmatprep.subr.mxu0 %v15728_v63  ;;  %v6440_v29 = vand.u32 4294901760, %v6439_v17  ;;  %v15957_v15 = vsub.f32 %v5287_v24, %v15923_v31  ;;  %v6446_v43 = vand.u32 4294901760, %v6445_v59  ;;  %v6469_v40 = vsub.f32 %v15763_v13, %v19239_v19 }
 0x618   :  { %6423 = vmatprep.subr.mxu1 %v6422_v2  ;;  %6343 = vmatpush1.msra.mxu0 %v15696_v55  ;;  %v6463_v2 = vsub.f32 %v15875_v6, %v19240_v5  ;;  %v6498_v36 = vand.u32 4294901760, %v15931_v42  ;;  %v15966_v17 = vsub.f32 %v5286_v4, %v15933_v18  ;;  %v6452_v24 = vand.u32 4294901760, %v6451_v58 }
 0x619   :  { %6429 = vmatpush1.msra.mxu1 %v6428_v62  ;;  %6345 = vmatprep.subr.mxu0 %v15865_v49  ;;  %v19243_v62 = vand.u32 4294901760, %v15921_v0  ;;  %v6458_v59 = vand.u32 4294901760, %v6457_v11  ;;  %v6481_v19 = vsub.f32 %v15899_v53, %v19241_v37  ;;  %v19244_v5 = vand.u32 4294901760, %v15941_v23 }
 0x61a   :  { %6435 = vmatprep.subr.mxu1 %v6434_v54  ;;  %6347 = vmatpush1.msra.mxu0 %v15877_v27  ;;  %v6475_v54 = vsub.f32 %v15732_v21, %v19242_v46  ;;  %v6510_v4 = vand.u32 4294901760, %v15950_v8  ;;  %v6464_v58 = vand.u32 4294901760, %v6463_v2  ;;  %v6516_v37 = vand.u32 4294901760, %v15957_v15 }
 0x61b   :  { %6441 = vmatpush1.msra.mxu1 %v6440_v29  ;;  %6349 = vmatprep.subr.mxu0 %v15881_v52  ;;  %v6487_v29 = vsub.f32 %v15911_v39, %v6486_v41  ;;  %v6493_v11 = vsub.f32 %v15921_v0, %v19243_v62  ;;  %v6522_v46 = vand.u32 4294901760, %v15966_v17 }
 0x61c   :  { %6447 = vmatprep.subr.mxu1 %v6446_v43  ;;  %6351 = vmatpush1.msra.mxu0 %v15890_v45  ;;  %v6470_v43 = vand.u32 4294901760, %v6469_v40  ;;  %v6476_v2 = vand.u32 4294901760, %v6475_v54  ;;  %v6482_v40 = vand.u32 4294901760, %v6481_v19  ;;  %v6511_v54 = vsub.f32 %v15950_v8, %v6510_v4 }
 0x61d   :  { %6453 = vmatpush1.msra.mxu1 %v6452_v24  ;;  %6353 = vmatprep.subr.mxu0 %v15901_v26  ;;  %v6499_v24 = vsub.f32 %v15931_v42, %v6498_v36  ;;  %v6488_v62 = vand.u32 4294901760, %v6487_v29  ;;  %v6517_v19 = vsub.f32 %v15957_v15, %v6516_v37  ;;  %v6523_v29 = vsub.f32 %v15966_v17, %v6522_v46 }
 0x61e   :  { %6459 = vmatprep.subr.mxu1 %v6458_v59  ;;  %6355 = vmatpush1.msra.mxu0 %v15913_v16  ;;  %v6505_v59 = vsub.f32 %v15941_v23, %v19244_v5 }
 0x61f   :  { %6465 = vmatpush1.msra.mxu1 %v6464_v58  ;;  %6357 = vmatprep.subr.mxu0 %v15923_v31  ;;  %v6494_v58 = vand.u32 4294901760, %v6493_v11  ;;  %v6500_v5 = vand.u32 4294901760, %v6499_v24  ;;  %v6512_v11 = vand.u32 4294901760, %v6511_v54  ;;  %v19892_v24 = vand.u32 4294901760, %v15827_v25 }
 0x620   :  { %6471 = vmatprep.subr.mxu1 %v6470_v43  ;;  %6359 = vmatpush1.msra.mxu0 %v15933_v18  ;;  %v19890_v43 = vld [vmem:[#allocation6_spill] sm:$0xff] }
 0x621   :  { %6477 = vmatpush1.msra.mxu1 %v6476_v2  ;;  %6392 = vmatprep.mubr.f32.mxu0 %v19593_v50  ;;  %v6506_v2 = vand.u32 4294901760, %v6505_v59 }
 0x622   :  { %6483 = vmatprep.subr.mxu1 %v6482_v40  ;;  %6582 = vmatprep.subr.mxu0 %v15796_v14  ;;  %v6518_v40 = vand.u32 4294901760, %v6517_v19  ;;  %v19894_v14 = vand.u32 4294901760, %v15837_v30 }
 0x623   :  { %6398 = vmatmul.mubr.f32.vlgmr.msra.gmra.mxu0 %v19890_v43  ;;  %6489 = vmatpush1.msra.mxu1 %v6488_v62  ;;  %v6524_v62 = vand.u32 4294901760, %v6523_v29 }
 0x624   :  { %6585 = vmatpush1.msra.mxu0 %v15810_v1  ;;  %6495 = vmatprep.subr.mxu1 %v6494_v58  ;;  %v19895_v1 = vand.u32 4294901760, %v15857_v35 }
 0x625   :  { %6588 = vmatprep.subr.mxu0 %v15823_v20  ;;  %6501 = vmatpush1.msra.mxu1 %v6500_v5  ;;  %v19891_v5 = vand.u32 4294901760, %v15823_v20  ;;  %v19896_v20 = vand.u32 4294901760, %v15875_v6 }
 0x626   :  { %6591 = vmatpush1.msra.mxu0 %v15827_v25  ;;  %6507 = vmatprep.subr.mxu1 %v6506_v2  ;;  %v19897_v25 = vand.u32 4294901760, %v15763_v13 }
 0x627   :  { %6594 = vmatprep.subr.mxu0 %v15847_v34  ;;  %6513 = vmatpush1.msra.mxu1 %v6512_v11 }
 0x628   :  { %6597 = vmatpush1.msra.mxu0 %v15837_v30  ;;  %6519 = vmatprep.subr.mxu1 %v6518_v40  ;;  %v19898_v30 = vand.u32 4294901760, %v15732_v21 }
 0x629   :  { %6600 = vmatprep.subr.mxu0 %v15857_v35  ;;  %6525 = vmatpush1.msra.mxu1 %v6524_v62 }
 0x62a   :  { %6558 = vmatprep.mubr.f32.mxu1 %v19593_v50  ;;  %6603 = vmatpush1.msra.mxu0 %v15875_v6 }
 0x62b   :  { %6560 = vmatmul.mubr.f32.vlgmr.msra.gmra.mxu1 %v15361_v22  ;;  %6606 = vmatprep.subr.mxu0 %v15763_v13 }
 0x62c   :  { %6690 = vmatprep.subr.mxu1 %v15753_v9  ;;  %6609 = vmatpush1.msra.mxu0 %v15732_v21  ;;  %v19901_v21 = vand.u32 4294901760, %v15941_v23 }
 0x62d   :  { %6692 = vmatpush1.msra.mxu1 %v15765_v56  ;;  %6612 = vmatprep.subr.mxu0 %v15899_v53 }
 0x62e   :  { %6694 = vmatprep.subr.mxu1 %v15773_v44  ;;  %6615 = vmatpush1.msra.mxu0 %v15911_v39 }
 0x62f   :  { %6696 = vmatpush1.msra.mxu1 %v15776_v57  ;;  %6618 = vmatprep.subr.mxu0 %v15921_v0 }
 0x630   :  { %6698 = vmatprep.subr.mxu1 %v15798_v48  ;;  %6621 = vmatpush1.msra.mxu0 %v15931_v42 }
 0x631   :  { %6700 = vmatpush1.msra.mxu1 %v15786_v51  ;;  %6624 = vmatprep.subr.mxu0 %v15941_v23 }
 0x632   :  { %6702 = vmatprep.subr.mxu1 %v15812_v3  ;;  %6627 = vmatpush1.msra.mxu0 %v15950_v8 }
 0x633   :  { %6704 = vmatpush1.msra.mxu1 %v15839_v12  ;;  %6630 = vmatprep.subr.mxu0 %v15957_v15 }
 0x634   :  { %6706 = vmatprep.subr.mxu1 %v15728_v63  ;;  %6633 = vmatpush1.msra.mxu0 %v15966_v17 }
 0x635   :  { %6666 = vmatprep.mubr.f32.mxu0 %v19593_v50  ;;  %6708 = vmatpush1.msra.mxu1 %v15696_v55 }
 0x636   :  { %6669 = vmatmul.mubr.f32.vlgmr.msra.gmra.mxu0 %v15401_v47  ;;  %6710 = vmatprep.subr.mxu1 %v15865_v49  ;;  %v19893_v47 = vand.u32 4294901760, %v15847_v34  ;;  %v19899_v34 = vand.u32 4294901760, %v15899_v53 }
 0x637   :  { %6784 = vmatprep.subr.mxu0 %v6420_v10  ;;  %6712 = vmatpush1.msra.mxu1 %v15877_v27 }
 0x638   :  { %6788 = vmatpush1.msra.mxu0 %v6426_v28  ;;  %6714 = vmatprep.subr.mxu1 %v15881_v52 }
 0x639   :  { %6792 = vmatprep.subr.mxu0 %v19891_v5  ;;  %6716 = vmatpush1.msra.mxu1 %v15890_v45 }
 0x63a   :  { %6796 = vmatpush1.msra.mxu0 %v19892_v24  ;;  %6718 = vmatprep.subr.mxu1 %v15901_v26 }
 0x63b   :  { %6800 = vmatprep.subr.mxu0 %v19893_v47  ;;  %6720 = vmatpush1.msra.mxu1 %v15913_v16 }
 0x63c   :  { %6804 = vmatpush1.msra.mxu0 %v19894_v14  ;;  %6722 = vmatprep.subr.mxu1 %v15923_v31 }
 0x63d   :  { %6808 = vmatprep.subr.mxu0 %v19895_v1  ;;  %6724 = vmatpush1.msra.mxu1 %v15933_v18 }
 0x63e   :  { %6757 = vmatprep.mubr.f32.mxu1 %v19593_v50  ;;  %6812 = vmatpush1.msra.mxu0 %v19896_v20 }
 0x63f   :  { %6761 = vmatmul.mubr.f32.vlgmr.msra.gmra.mxu1 %v15449_v60  ;;  %6816 = vmatprep.subr.mxu0 %v19897_v25  ;;  %v19900_v60 = vand.u32 4294901760, %v15921_v0 }
 0x640   :  { %6908 = vmatprep.subr.mxu1 %v15753_v9  ;;  %6820 = vmatpush1.msra.mxu0 %v19898_v30 }
 0x641   :  { %6910 = vmatpush1.msra.mxu1 %v15765_v56  ;;  %6824 = vmatprep.subr.mxu0 %v19899_v34 }
 0x642   :  { %6912 = vmatprep.subr.mxu1 %v15773_v44  ;;  %6828 = vmatpush1.msra.mxu0 %v6486_v41 }
 0x643   :  { %6914 = vmatpush1.msra.mxu1 %v15776_v57  ;;  %6832 = vmatprep.subr.mxu0 %v19900_v60 }
 0x644   :  { %6916 = vmatprep.subr.mxu1 %v15798_v48  ;;  %6836 = vmatpush1.msra.mxu0 %v6498_v36 }
 0x645   :  { %6918 = vmatpush1.msra.mxu1 %v15786_v51  ;;  %6840 = vmatprep.subr.mxu0 %v19901_v21 }
 0x646   :  { %6920 = vmatprep.subr.mxu1 %v15812_v3  ;;  %6844 = vmatpush1.msra.mxu0 %v6510_v4 }
 0x647   :  { %6922 = vmatpush1.msra.mxu1 %v15839_v12  ;;  %6848 = vmatprep.subr.mxu0 %v6516_v37 }
 0x648   :  { %6924 = vmatprep.subr.mxu1 %v15728_v63  ;;  %6852 = vmatpush1.msra.mxu0 %v6522_v46  ;;  %v5632_v63 = vpop.permute.xlu0 %5631 }
 0x649   :  { %6885 = vmatprep.mubr.f32.mxu0 %v19593_v50  ;;  %6926 = vmatpush1.msra.mxu1 %v15696_v55 }
 0x64a   :  { %6887 = vmatmul.mubr.f32.vlgmr.msra.gmra.mxu0 %v15361_v22  ;;  %6928 = vmatprep.subr.mxu1 %v15865_v49 }
 0x64b   :  { %6930 = vmatpush1.msra.mxu1 %v15877_v27  ;;  %6975 = vmatprep.mubr.f32.mxu1 %v19593_v50 }
 0x64c   :  { %6932 = vmatprep.subr.mxu1 %v15881_v52  ;;  %7456 = vmatprep.mubr.f32.mxu0 %v19593_v50 }
 0x64d   :  { %6934 = vmatpush1.msra.mxu1 %v15890_v45 }
 0x64e   :  { %6936 = vmatprep.subr.mxu1 %v15901_v26 }
 0x64f   :  { %6938 = vmatpush1.msra.mxu1 %v15913_v16 }
 0x650   :  { %6940 = vmatprep.subr.mxu1 %v15923_v31 }
 0x651   :  { %6942 = vmatpush1.msra.mxu1 %v15933_v18 }
 0x652   :  { %6977 = vmatmul.mubr.f32.vlgmr.msra.gmra.mxu1 %v15361_v22 }
 0x653   :  { %7622 = vmatprep.mubr.f32.mxu1 %v19593_v50 }
 0x6a7   :  { %v5726_v55 = vpop.f32.mrf.mxu0 }
 0x6a8   :  { %v5727_v56 = vadd.f32 %v5726_v55, %v5632_v63 }
 0x6a9   :  { %v5728_v9 = vpop.f32.mrf.mxu0 }
 0x6aa   :  { %v5729_v35 = vadd.f32 %v5728_v9, %v5632_v63 }
 0x6b0   :  { %v5888_v13 = vpop.f32.mrf.mxu1 }
 0x6b1   :  { %v5889_v57 = vadd.f32 %v5888_v13, %v5727_v56  ;;  %v16198_v56 = vld [vmem:[%s19048_s0 + $0x40] ss:$8 sm:$0xf] }
 0x6b2   :  { %v5890_v44 = vpop.f32.mrf.mxu1  ;;  %19908 = vst [vmem:[#allocation28_spill] sm:$0xff] %v16198_v56 }
 0x6b3   :  { %v5891_v37 = vadd.f32 %v5890_v44, %v5729_v35  ;;  %v12306_v44 = vmov 4   ;;  %v16226_v35 = vld [vmem:[%s19048_s0 + $0x26] ss:$8 sm:$0xf] }
 0x6b4   :  { %12284 = vset.pattern.permute.xlu0 %v12306_v44 }
 0x6b9   :  { %v5997_v46 = vpop.f32.mrf.mxu0 }
 0x6ba   :  { %v5998_v3 = vadd.f32 %v5997_v46, %v5889_v57  ;;  %v7365_v57 = vld [vmem:[%s19049_s3] sm:$0xff] }
 0x6bb   :  { %v5999_v51 = vpop.f32.mrf.mxu0 }
 0x6bc   :  { %v6000_v27 = vadd.f32 %v5999_v51, %v5891_v37  ;;  %v19910_v51 = vld [vmem:[#allocation4_spill] sm:$0xff] }
 0x6c5   :  { %v6089_v48 = vpop.f32.mrf.mxu1 }
 0x6c6   :  { %v6090_v10 = vadd.f32 %v6089_v48, %v5998_v3  ;;  %v7302_v48 = vrot.slane %v16198_v56, %v19910_v51  ;;  %v16211_v3 = vld [vmem:[%s19048_s0 + $0x27] ss:$8 sm:$0xf] }
 0x6c7   :  { %v6091_v28 = vpop.f32.mrf.mxu1 }
 0x6c8   :  { %v6092_v36 = vadd.f32 %v6091_v28, %v6000_v27 }
 0x6cd   :  { %v6215_v12 = vpop.f32.mrf.mxu0 }
 0x6ce   :  { %v6216_v49 = vadd.f32 %v6215_v12, %v6090_v10 }
 0x6cf   :  { %v6217_v52 = vpop.f32.mrf.mxu0 }
 0x6d0   :  { %v6218_v53 = vadd.f32 %v6217_v52, %v6092_v36  ;;  %v7218_v52 = vrot.slane %v16226_v35, %v19910_v51 }
 0x6d7   :  { %v6305_v41 = vpop.f32.mrf.mxu1 }
 0x6d8   :  { %v6306_v22 = vadd.f32 %v6305_v41, %v6216_v49 }
 0x6d9   :  { %v6307_v45 = vpop.f32.mrf.mxu1 }
 0x6da   :  { %v16109_v6 = vmax.f32 %v6306_v22, 0.0  ;;  %v6308_v26 = vadd.f32 %v6307_v45, %v6218_v53  ;;  %v7260_v22 = vrot.slane %v16211_v3, %v19910_v51 }
 0x6dc   :  { %7243 = vrot.lane.b32.xlu1 %v16109_v6, %s12294_s22  ;;  %7285 = vrot.lane.b32.xlu0 %v16109_v6, %s12293_s19  ;;  %v16123_v39 = vmax.f32 %v6308_v26, 0.0  ;;  %v16201_v46 = vand.u32 4294901760, %v16109_v6  ;;  %v12051_v26 = vld [vmem:[%s19050_s1 + $0x20] sm:$0xff] }
 0x6de   :  { %19909 = vst [vmem:[#allocation16_spill] sm:$0xff] %v16201_v46  ;;  %v16217_v10 = vand.u32 4294901760, %v16123_v39  ;;  %v16221_v28 = vsub.f32 %v16109_v6, %v16201_v46 }
 0x6e0   :  { %7159 = vrot.lane.b32.xlu1 %v16109_v6, %s12296_s24  ;;  %7201 = vrot.lane.b32.xlu0 %v16109_v6, %s12295_s23  ;;  %19911 = vst [vmem:[#allocation17_spill] sm:$0xff] %v16217_v10  ;;  %v16242_v36 = vsub.f32 %v16123_v39, %v16217_v10  ;;  %v19245_v45 = vand.u32 4294901760, %v16221_v28 }
 0x6e3   :  { %v6399_v16 = vpop.f32.mrf.mxu0 }
 0x6e4   :  { %7071 = vrot.lane.b32.xlu1 %v16109_v6, %s12298_s28  ;;  %7113 = vrot.lane.b32.xlu0 %v16109_v6, %s12297_s25  ;;  %v6400_v42 = vadd.f32 %v6399_v16, %v5632_v63 }
 0x6e5   :  { %v6401_v0 = vpop.f32.mrf.mxu0 }
 0x6e6   :  { %v6402_v54 = vadd.f32 %v6401_v0, %v5632_v63 }
 0x6e8   :  { %7287 = vrot.lane.b32.xlu1 %v16123_v39, %s12293_s19  ;;  %7029 = vrot.lane.b32.xlu0 %v16109_v6, %s12299_s29 }
 0x6eb   :  { %v6561_v31 = vpop.f32.mrf.mxu1 }
 0x6ec   :  { %7245 = vrot.lane.b32.xlu1 %v16123_v39, %s12294_s22  ;;  %7203 = vrot.lane.b32.xlu0 %v16123_v39, %s12295_s23  ;;  %v6562_v8 = vadd.f32 %v6561_v31, %v6400_v42  ;;  %v16256_v31 = vld [vmem:[%s19048_s0 + $0x22] ss:$8 sm:$0xf] }
 0x6ed   :  { %v6563_v23 = vpop.f32.mrf.mxu1  ;;  %19913 = vst [vmem:[#allocation27_spill] sm:$0xff] %v16256_v31 }
 0x6ee   :  { %v6564_v43 = vadd.f32 %v6563_v23, %v6402_v54  ;;  %v7372_v54 = vsel %vm422_vm5, %v12051_v26, 0 }
 0x6f0   :  { %7161 = vrot.lane.b32.xlu1 %v16123_v39, %s12296_s24  ;;  %7073 = vrot.lane.b32.xlu0 %v16123_v39, %s12298_s28 }
 0x6f4   :  { %7115 = vrot.lane.b32.xlu1 %v16123_v39, %s12297_s25 }
 0x6f6   :  { %v6670_v18 = vpop.f32.mrf.mxu0 }
 0x6f7   :  { %v6671_v4 = vadd.f32 %v6670_v18, %v6562_v8 }
 0x6f8   :  { %v6672_v15 = vpop.f32.mrf.mxu0 }
 0x6f9   :  { %v6673_v11 = vadd.f32 %v6672_v15, %v6564_v43 }
 0x6ff   :  { %v6762_v17 = vpop.f32.mrf.mxu1 }
 0x700   :  { %v6763_v58 = vadd.f32 %v6762_v17, %v6671_v4  ;;  %v16275_v17 = vld [vmem:[%s19048_s0 + $0x21] ss:$8 sm:$0xf] }
 0x701   :  { %v6764_v19 = vpop.f32.mrf.mxu1  ;;  %19916 = vst [vmem:[#allocation11_spill] sm:$0xff] %v16275_v17 }
 0x702   :  { %v6765_v5 = vadd.f32 %v6764_v19, %v6673_v11 }
 0x70a   :  { %v6888_v59 = vpop.f32.mrf.mxu0 }
 0x70b   :  { %v6889_v29 = vadd.f32 %v6888_v59, %v6763_v58  ;;  %v16281_v59 = vsub.f32 %v16221_v28, %v19245_v45  ;;  %v19917_v58 = vld [vmem:[#allocation5_spill] sm:$0xff] }
 0x70c   :  { %v6890_v62 = vpop.f32.mrf.mxu0  ;;  %v7092_v19 = vrot.slane %v16256_v31, %v19917_v58 }
 0x70d   :  { %v6891_v14 = vadd.f32 %v6890_v62, %v6765_v5  ;;  %v7222_v62 = vrot.slane %v16226_v35, %v19917_v58 }
 0x712   :  { %v6978_v2 = vpop.f32.mrf.mxu1 }
 0x713   :  { %v6979_v40 = vadd.f32 %v6978_v2, %v6889_v29  ;;  %v7306_v29 = vrot.slane %v16198_v56, %v19917_v58  ;;  %v7264_v2 = vrot.slane %v16211_v3, %v19917_v58 }
 0x714   :  { %v6980_v47 = vpop.f32.mrf.mxu1 }
 0x715   :  { %v16139_v24 = vmax.f32 %v6979_v40, 0.0  ;;  %v6981_v1 = vadd.f32 %v6980_v47, %v6891_v14 }
 0x717   :  { %19902 = vst [vmem:[#allocation9_spill] sm:$0xff] %v16139_v24  ;;  %7289 = vrot.lane.b32.xlu1 %v16139_v24, %s12293_s19  ;;  %7247 = vrot.lane.b32.xlu0 %v16139_v24, %s12294_s22  ;;  %v16149_v20 = vmax.f32 %v6981_v1, 0.0 }
 0x719   :  { %19903 = vst [vmem:[#allocation18_spill] sm:$0xff] %v16149_v20 }
 0x71b   :  { %7205 = vrot.lane.b32.xlu1 %v16139_v24, %s12295_s23  ;;  %7163 = vrot.lane.b32.xlu0 %v16139_v24, %s12296_s24 }
 0x71f   :  { %7031 = vrot.lane.b32.xlu1 %v16123_v39, %s12299_s29  ;;  %7119 = vrot.lane.b32.xlu0 %v16149_v20, %s12297_s25 }
 0x723   :  { %6987 = vrot.lane.b32.xlu1 %v16109_v6, %s12300_s30  ;;  %7035 = vrot.lane.b32.xlu0 %v16149_v20, %s12299_s29  ;;  %v16236_v6 = vld [vmem:[%s19048_s0 + $0x25] ss:$8 sm:$0xf] }
 0x724   :  { %19912 = vst [vmem:[#allocation8_spill] sm:$0xff] %v16236_v6  ;;  %v7176_v0 = vrot.slane %v16236_v6, %v19910_v51  ;;  %v7180_v5 = vrot.slane %v16236_v6, %v19917_v58 }
 0x727   :  { %7077 = vrot.lane.b32.xlu1 %v16149_v20, %s12298_s28  ;;  %6989 = vrot.lane.b32.xlu0 %v16123_v39, %s12300_s30  ;;  %v16261_v39 = vld [vmem:[%s19048_s0 + $0x23] ss:$8 sm:$0xf] }
 0x728   :  { %v7134_v43 = vrot.slane %v16261_v39, %v19917_v58 }
 0x72b   :  { %6993 = vrot.lane.b32.xlu1 %v16149_v20, %s12300_s30  ;;  %7291 = vrot.lane.b32.xlu0 %v16149_v20, %s12293_s19 }
 0x72f   :  { %7249 = vrot.lane.b32.xlu1 %v16149_v20, %s12294_s22  ;;  %7207 = vrot.lane.b32.xlu0 %v16149_v20, %s12295_s23 }
 0x733   :  { %7165 = vrot.lane.b32.xlu1 %v16149_v20, %s12296_s24  ;;  %7117 = vrot.lane.b32.xlu0 %v16139_v24, %s12297_s25 }
 0x737   :  { %7075 = vrot.lane.b32.xlu1 %v16139_v24, %s12298_s28  ;;  %7033 = vrot.lane.b32.xlu0 %v16139_v24, %s12299_s29 }
 0x73b   :  { %6991 = vrot.lane.b32.xlu1 %v16139_v24, %s12300_s30  ;;  %7368 = vperm.xlu0 %12284, %v7365_v57  }
 0x74e   :  { %v16181_v25 = vpop.permute.xlu1 %7243  ;;  %v16183_v30 = vpop.permute.xlu0 %7285 }
 0x74f   :  { %19904 = vst [vmem:[#allocation24_spill] sm:$0xff] %v16181_v25  ;;  %19905 = vst [vmem:[#allocation12_spill] sm:$0xff] %v16183_v30 }
 0x752   :  { %v16185_v34 = vpop.permute.xlu1 %7159  ;;  %v16187_v60 = vpop.permute.xlu0 %7201 }
 0x753   :  { %19906 = vst [vmem:[#allocation20_spill] sm:$0xff] %v16185_v34  ;;  %19907 = vst [vmem:[#allocation10_spill] sm:$0xff] %v16187_v60 }
 0x756   :  { %v16189_v21 = vpop.permute.xlu1 %7071  ;;  %v16191_v55 = vpop.permute.xlu0 %7113 }
 0x75a   :  { %v7288_v63 = vpop.permute.xlu1 %7287  ;;  %v16193_v9 = vpop.permute.xlu0 %7029 }
 0x75b   :  { %v7295_v12 = vsel %vm343_vm0, %v16183_v30, %v7288_v63 }
 0x75c   :  { %v7319_v37 = vmul.f32 %v7302_v48, %v7295_v12  ;;  %v16311_v48 = vand.u32 4294901760, %v7372_v54 }
 0x75e   :  { %v7246_v13 = vpop.permute.xlu1 %7245  ;;  %v7204_v49 = vpop.permute.xlu0 %7203  ;;  %v16263_v42 = vand.u32 4294901760, %v7319_v37 }
 0x75f   :  { %v7253_v27 = vsel %vm299_vm1, %v16181_v25, %v7246_v13  ;;  %v7211_v53 = vsel %vm255_vm2, %v16187_v60, %v7204_v49 }
 0x760   :  { %v7277_v16 = vmul.f32 %v7260_v22, %v7253_v27  ;;  %v7235_v15 = vmul.f32 %v7218_v52, %v7211_v53  ;;  %v16299_v47 = vsub.f32 %v7319_v37, %v16263_v42  ;;  %v7130_v27 = vrot.slane %v16261_v39, %v19910_v51 }
 0x762   :  { %v7162_v41 = vpop.permute.xlu1 %7161  ;;  %v16268_v23 = vpop.permute.xlu0 %7073  ;;  %v16292_v11 = vand.u32 4294901760, %v7277_v16  ;;  %v16313_v12 = vand.u32 4294901760, %v7235_v15 }
 0x763   :  { %v7169_v18 = vsel %vm211_vm3, %v16185_v34, %v7162_v41  ;;  %19914 = vst [vmem:[#allocation29_spill] sm:$0xff] %v16268_v23  ;;  %v7081_v52 = vsel %vm119_vm6, %v16189_v21, %v16268_v23 }
 0x764   :  { %v7193_v40 = vmul.f32 %v7176_v0, %v7169_v18  ;;  %v16330_v18 = vsub.f32 %v7277_v16, %v16292_v11  ;;  %v16348_v16 = vld [vmem:[%s19048_s0 + $0x20] ss:$8 sm:$0xf] }
 0x766   :  { %v16270_v8 = vpop.permute.xlu1 %7115 }
 0x767   :  { %19915 = vst [vmem:[#allocation19_spill] sm:$0xff] %v16270_v8  ;;  %v7123_v14 = vsel %vm163_vm4, %v16191_v55, %v16270_v8 }
 0x768   :  { %v7148_v45 = vmul.f32 %v7134_v43, %v7123_v14  ;;  %v16351_v43 = vsub.f32 %v7372_v54, %v16311_v48  ;;  %v16354_v14 = vsub.f32 %v7235_v15, %v16313_v12 }
 0x76a   :  { %v16399_v23 = vand.u32 4294901760, %v16351_v43  ;;  %v19927_v30 = vand.u32 4294901760, %v16354_v14 }
 0x789   :  { %v16305_v1 = vpop.permute.xlu1 %7289  ;;  %v16307_v44 = vpop.permute.xlu0 %7247 }
 0x78a   :  { %19918 = vst [vmem:[#allocation26_spill] sm:$0xff] %v16305_v1  ;;  %v7294_v22 = vsel %vm343_vm0, %v7288_v63, %v16305_v1  ;;  %v7252_v37 = vsel %vm299_vm1, %v7246_v13, %v16307_v44  ;;  %v16332_v63 = vand.u32 4294901760, %v7193_v40 }
 0x78b   :  { %v7320_v53 = vmul.f32 %v7306_v29, %v7294_v22  ;;  %v7278_v26 = vmul.f32 %v7264_v2, %v7252_v37  ;;  %v7106_v22 = vmul.f32 %v7092_v19, %v7081_v52 }
 0x78c   :  { %v16371_v19 = vsub.f32 %v7193_v40, %v16332_v63 }
 0x78d   :  { %v16337_v57 = vand.u32 4294901760, %v7320_v53  ;;  %v16339_v33 = vand.u32 4294901760, %v7278_v26  ;;  %v16341_v29 = vpop.permute.xlu1 %7205  ;;  %v16343_v2 = vpop.permute.xlu0 %7163  ;;  %v16401_v8 = vand.u32 4294901760, %v7106_v22 }
 0x78e   :  { %19919 = vst [vmem:[#allocation14_spill] sm:$0xff] %v16343_v2  ;;  %v7210_v37 = vsel %vm255_vm2, %v7204_v49, %v16341_v29  ;;  %v7168_v13 = vsel %vm211_vm3, %v7162_v41, %v16343_v2  ;;  %v16373_v49 = vand.u32 4294901760, %v7148_v45  ;;  %v19921_v41 = vand.u32 4294901760, %v16299_v47 }
 0x78f   :  { %v16363_v0 = vsub.f32 %v7320_v53, %v16337_v57  ;;  %v16366_v4 = vsub.f32 %v7278_v26, %v16339_v33  ;;  %v7236_v54 = vmul.f32 %v7222_v62, %v7210_v37  ;;  %v7194_v38 = vmul.f32 %v7180_v5, %v7168_v13  ;;  %7389 = vmatprep.subr.mxu0 %v16337_v57 }
 0x790   :  { %7391 = vmatpush1.msra.mxu0 %v16263_v42  ;;  %v7491_v15 = vsub.f32 %v16299_v47, %v19921_v41  ;;  %v16412_v2 = vsub.f32 %v7148_v45, %v16373_v49  ;;  %v19925_v45 = vand.u32 4294901760, %v16330_v18 }
 0x791   :  { %v16378_v52 = vand.u32 4294901760, %v7236_v54  ;;  %v16380_v53 = vand.u32 4294901760, %v7194_v38  ;;  %v16382_v62 = vpop.permute.xlu1 %7031  ;;  %7393 = vmatprep.subr.mxu0 %v16339_v33  ;;  %v16385_v5 = vpop.permute.xlu0 %7119  ;;  %v19922_v41 = vand.u32 4294901760, %v16363_v0 }
 0x792   :  { %19920 = vst [vmem:[#allocation15_spill] sm:$0xff] %v16382_v62  ;;  %v7124_v37 = vsel %vm163_vm4, %v16385_v5, %v16191_v55  ;;  %7395 = vmatpush1.msra.mxu0 %v16292_v11  ;;  %v7503_v55 = vsub.f32 %v16330_v18, %v19925_v45  ;;  %v7492_v1 = vand.u32 4294901760, %v7491_v15  ;;  %v16441_v45 = vsub.f32 %v7106_v22, %v16401_v8 }
 0x793   :  { %v16404_v26 = vsub.f32 %v7236_v54, %v16378_v52  ;;  %v16407_v13 = vsub.f32 %v7194_v38, %v16380_v53  ;;  %v7147_v40 = vmul.f32 %v7130_v27, %v7124_v37  ;;  %7397 = vmatprep.subr.mxu0 %v16378_v52  ;;  %v7485_v34 = vsub.f32 %v16363_v0, %v19922_v41 }
 0x794   :  { %7399 = vmatpush1.msra.mxu0 %v16313_v12  ;;  %v19923_v54 = vand.u32 4294901760, %v16366_v4  ;;  %v7039_v41 = vsel %vm75_vm7, %v16193_v9, %v16382_v62 }
 0x795   :  { %v16421_v38 = vand.u32 4294901760, %v7147_v40  ;;  %v6988_v27 = vpop.permute.xlu1 %6987  ;;  %7401 = vmatprep.subr.mxu0 %v16380_v53  ;;  %v16424_v37 = vpop.permute.xlu0 %7035  ;;  %v7486_v25 = vand.u32 4294901760, %v7485_v34  ;;  %v19926_v20 = vand.u32 4294901760, %v16404_v26  ;;  %v19928_v22 = vand.u32 4294901760, %v16407_v13 }
 0x796   :  { %v7497_v6 = vsub.f32 %v16366_v4, %v19923_v54  ;;  %19924 = vst [vmem:[#allocation30_spill] sm:$0xff] %v16424_v37  ;;  %v7040_v54 = vsel %vm75_vm7, %v16424_v37, %v16193_v9  ;;  %7403 = vmatpush1.msra.mxu0 %v16332_v63  ;;  %v7515_v9 = vsub.f32 %v16354_v14, %v19927_v30 }
 0x797   :  { %v16444_v60 = vsub.f32 %v7147_v40, %v16421_v38  ;;  %7405 = vmatprep.subr.mxu0 %v16217_v10  ;;  %v7509_v62 = vsub.f32 %v16404_v26, %v19926_v20  ;;  %7487 = vmatprep.subr.mxu1 %v7486_v25  ;;  %v7521_v15 = vsub.f32 %v16407_v13, %v19928_v22  ;;  %v19929_v40 = vand.u32 4294901760, %v16371_v19 }
 0x798   :  { %7407 = vmatpush1.msra.mxu0 %v16201_v46  ;;  %v7498_v34 = vand.u32 4294901760, %v7497_v6  ;;  %v19930_v20 = vrot.slane %v16275_v17, %v19917_v58  ;;  %v19931_v25 = vrot.slane %v16275_v17, %v19910_v51  ;;  %7493 = vmatpush1.msra.mxu1 %v7492_v1  ;;  %v7504_v22 = vand.u32 4294901760, %v7503_v55 }
 0x799   :  { %v7527_v37 = vsub.f32 %v16371_v19, %v19929_v40  ;;  %v16467_v6 = vpop.permute.xlu1 %7077  ;;  %v16469_v46 = vpop.permute.xlu0 %6989  ;;  %7409 = vmatprep.subr.mxu0 %v16373_v49  ;;  %v7510_v10 = vand.u32 4294901760, %v7509_v62  ;;  %v19935_v62 = vrot.slane %v16256_v31, %v19910_v51  ;;  %v7522_v40 = vand.u32 4294901760, %v7521_v15 }
 0x79a   :  { %v7064_v56 = vmul.f32 %v19930_v20, %v7039_v41  ;;  %v7063_v30 = vmul.f32 %v19931_v25, %v7040_v54  ;;  %19932 = vst [vmem:[#allocation25_spill] sm:$0xff] %v16467_v6  ;;  %19933 = vst [vmem:[#allocation7_spill] sm:$0xff] %v16469_v46  ;;  %v7082_v41 = vsel %vm119_vm6, %v16467_v6, %v16189_v21  ;;  %7499 = vmatprep.subr.mxu1 %v7498_v34 }
 0x79b   :  { %v6997_v1 = vsel %vm31_vm8, %v6988_v27, %v16469_v46  ;;  %7411 = vmatpush1.msra.mxu0 %v16421_v38  ;;  %v19934_v54 = vand.u32 4294901760, %v16242_v36  ;;  %v7105_v55 = vmul.f32 %v19935_v62, %v7082_v41  ;;  %7505 = vmatpush1.msra.mxu1 %v7504_v22  ;;  %v7516_v25 = vand.u32 4294901760, %v7515_v9 }
 0x79c   :  { %7413 = vmatprep.subr.mxu0 %v16401_v8  ;;  %v7004_v21 = vrot.slane %v16348_v16, %v19910_v51  ;;  %7511 = vmatprep.subr.mxu1 %v7510_v10  ;;  %v7528_v24 = vand.u32 4294901760, %v7527_v37  ;;  %v19936_v46 = vand.u32 4294901760, %v16412_v2  ;;  %v7460_v6 = vsub.f32 %v16351_v43, %v16399_v23 }
 0x79d   :  { %v7533_v20 = vsub.f32 %v16242_v36, %v19934_v54  ;;  %v16496_v41 = vand.u32 4294901760, %v7064_v56  ;;  %v16498_v22 = vand.u32 4294901760, %v7063_v30  ;;  %v16500_v9 = vand.u32 4294901760, %v7105_v55  ;;  %7517 = vmatpush1.msra.mxu1 %v7516_v25  ;;  %v16505_v10 = vpop.permute.xlu1 %6993  ;;  %v16507_v37 = vpop.permute.xlu0 %7291 }
 0x79e   :  { %v7545_v54 = vsub.f32 %v16412_v2, %v19936_v46  ;;  %v19937_v62 = vrot.slane %v16348_v16, %v19917_v58  ;;  %v6998_v46 = vsel %vm31_vm8, %v16505_v10, %v6988_v27  ;;  %7523 = vmatprep.subr.mxu1 %v7522_v40  ;;  %v19938_v51 = vand.u32 4294901760, %v16444_v60 }
 0x79f   :  { %v7534_v15 = vand.u32 4294901760, %v7533_v20  ;;  %v7021_v31 = vmul.f32 %v7004_v21, %v6998_v46  ;;  %7529 = vmatpush1.msra.mxu1 %v7528_v24  ;;  %v7540_v58 = vand.u32 4294901760, %v16281_v59  ;;  %v19939_v25 = vand.u32 4294901760, %v16441_v45  ;;  %7415 = vmatpush1.msra.mxu0 %v16500_v9 }
 0x7a0   :  { %v7022_v34 = vmul.f32 %v19937_v62, %v6997_v1  ;;  %v7551_v17 = vsub.f32 %v16444_v60, %v19938_v51  ;;  %v7268_v1 = vrot.slane %v16211_v3, %v12824_v32  ;;  %v7226_v27 = vrot.slane %v16226_v35, %v12824_v32  ;;  %7417 = vmatprep.subr.mxu0 %v16496_v41 }
 0x7a1   :  { %v7557_v62 = vsub.f32 %v16441_v45, %v19939_v25  ;;  %7535 = vmatprep.subr.mxu1 %v7534_v15  ;;  %v7546_v40 = vand.u32 4294901760, %v7545_v54  ;;  %v16524_v20 = vand.u32 4294901760, %v7460_v6  ;;  %v16527_v24 = vsub.f32 %v7064_v56, %v16496_v41  ;;  %v16537_v46 = vpop.permute.xlu1 %7249  ;;  %v16539_v15 = vpop.permute.xlu0 %7207  ;;  %7419 = vmatpush1.msra.mxu0 %v16498_v22 }
 0x7a2   :  { %v16530_v51 = vsub.f32 %v7063_v30, %v16498_v22  ;;  %v16532_v59 = vand.u32 4294901760, %v7022_v34  ;;  %v16534_v21 = vand.u32 4294901760, %v7021_v31  ;;  %7541 = vmatpush1.msra.mxu1 %v7540_v58  ;;  %v16542_v6 = vsub.f32 %v7105_v55, %v16500_v9 }
 0x7a3   :  { %19940 = vst [vmem:[#allocation6_spill] sm:$0xff] %v16524_v20  ;;  %v7251_v56 = vsel %vm299_vm1, %v16307_v44, %v16537_v46  ;;  %v7209_v30 = vsel %vm255_vm2, %v16341_v29, %v16539_v15  ;;  %7547 = vmatprep.subr.mxu1 %v7546_v40  ;;  %v7552_v58 = vand.u32 4294901760, %v7551_v17  ;;  %v7558_v55 = vand.u32 4294901760, %v7557_v62 }
 0x7a4   :  { %v16553_v54 = vmul.f32 %v7268_v1, %v7251_v56  ;;  %7421 = vmatprep.subr.mxu0 %v16532_v59  ;;  %v16556_v25 = vmul.f32 %v7226_v27, %v7209_v30  ;;  %v7568_v29 = vand.u32 4294901760, %v16527_v24  ;;  %v19279_v40 = vand.u32 4294901760, %v16530_v51 }
 0x7a5   :  { %7553 = vmatpush1.msra.mxu1 %v7552_v58  ;;  %7423 = vmatpush1.msra.mxu0 %v16534_v21  ;;  %v16560_v44 = vpop.permute.xlu0 %7117  ;;  %v7562_v17 = vand.u32 4294901760, %v16542_v6  ;;  %v7142_v1 = vrot.slane %v16261_v39, %v12827_v61  ;;  %v16569_v62 = vsub.f32 %v7022_v34, %v16532_v59  ;;  %v16573_v27 = vsub.f32 %v7021_v31, %v16534_v21 }
 0x7a6   :  { %7559 = vmatprep.subr.mxu1 %v7558_v55  ;;  %7646 = vmatprep.subr.mxu0 %v16363_v0  ;;  %v7121_v56 = vsel %vm163_vm4, %v16560_v44, %v16385_v5  ;;  %v7569_v34 = vsub.f32 %v16527_v24, %v7568_v29  ;;  %v7575_v5 = vsub.f32 %v16530_v51, %v19279_v40 }
 0x7a7   :  { %7462 = vmatmul.mubr.f32.vlgmr.msra.gmra.mxu0 %v16524_v20  ;;  %v16585_v30 = vmul.f32 %v7142_v1, %v7121_v56  ;;  %v7563_v31 = vsub.f32 %v16542_v6, %v7562_v17  ;;  %v19281_v58 = vand.u32 4294901760, %v16569_v62  ;;  %v19280_v55 = vand.u32 4294901760, %v16573_v27 }
 0x7a8   :  { %7649 = vmatpush1.msra.mxu0 %v16299_v47  ;;  %7730 = vmatprep.mubr.f32.mxu0 %v19593_v50  ;;  %v7570_v1 = vand.u32 4294901760, %v7569_v34  ;;  %v7576_v56 = vand.u32 4294901760, %v7575_v5  ;;  %v19942_v5 = vand.u32 4294901760, %v16299_v47  ;;  %v19948_v47 = vand.u32 4294901760, %v16354_v14 }
 0x7a9   :  { %7652 = vmatprep.subr.mxu0 %v16366_v4  ;;  %v7564_v20 = vand.u32 4294901760, %v7563_v31  ;;  %v7581_v40 = vsub.f32 %v16569_v62, %v19281_v58  ;;  %v7587_v31 = vsub.f32 %v16573_v27, %v19280_v55  ;;  %v19956_v55 = vand.u32 4294901760, %v16242_v36  ;;  %v19959_v58 = vld [vmem:[#allocation10_spill] sm:$0xff] }
 0x7aa   :  { %7655 = vmatpush1.msra.mxu0 %v16330_v18 }
 0x7ab   :  { %7658 = vmatprep.subr.mxu0 %v16404_v26  ;;  %7565 = vmatpush1.msra.mxu1 %v7564_v20  ;;  %v7582_v34 = vand.u32 4294901760, %v7581_v40  ;;  %v7588_v20 = vand.u32 4294901760, %v7587_v31  ;;  %v19941_v40 = vand.u32 4294901760, %v16363_v0  ;;  %v19945_v31 = vand.u32 4294901760, %v16330_v18  ;;  %v19951_v18 = vld [vmem:[#allocation9_spill] sm:$0xff] }
 0x7ac   :  { %7661 = vmatpush1.msra.mxu0 %v16354_v14  ;;  %7571 = vmatprep.subr.mxu1 %v7570_v1  ;;  %v19943_v1 = vand.u32 4294901760, %v16366_v4  ;;  %v19947_v0 = vand.u32 4294901760, %v16404_v26  ;;  %v19950_v4 = vand.u32 4294901760, %v16407_v13 }
 0x7ad   :  { %7664 = vmatprep.subr.mxu0 %v16407_v13  ;;  %7577 = vmatpush1.msra.mxu1 %v7576_v56  ;;  %v19944_v56 = vld [vmem:[#allocation17_spill] sm:$0xff] }
 0x7ae   :  { %7667 = vmatpush1.msra.mxu0 %v16371_v19  ;;  %7583 = vmatprep.subr.mxu1 %v7582_v34  ;;  %v19946_v34 = vld [vmem:[#allocation16_spill] sm:$0xff] }
 0x7af   :  { %7670 = vmatprep.subr.mxu0 %v16242_v36  ;;  %7589 = vmatpush1.msra.mxu1 %v7588_v20  ;;  %v19949_v20 = vld [vmem:[#allocation28_spill] sm:$0xff]  ;;  %v7212_v36 = vsel %vm255_vm2, %v16539_v15, %v19959_v58 }
 0x7b0   :  { %7673 = vmatpush1.msra.mxu0 %v16221_v28  ;;  %7624 = vmatmul.mubr.f32.vlgmr.msra.gmra.mxu1 %v16311_v48  ;;  %v7310_v26 = vrot.slane %v19949_v20, %v12824_v32 }
 0x7b1   :  { %7676 = vmatprep.subr.mxu0 %v16412_v2  ;;  %7754 = vmatprep.subr.mxu1 %v16337_v57 }
 0x7b2   :  { %7679 = vmatpush1.msra.mxu0 %v16444_v60  ;;  %7756 = vmatpush1.msra.mxu1 %v16263_v42 }
 0x7b3   :  { %7682 = vmatprep.subr.mxu0 %v16441_v45  ;;  %7758 = vmatprep.subr.mxu1 %v16339_v33 }
 0x7b4   :  { %7685 = vmatpush1.msra.mxu0 %v16542_v6  ;;  %7760 = vmatpush1.msra.mxu1 %v16292_v11  ;;  %v19967_v6 = vld [vmem:[#allocation11_spill] sm:$0xff] }
 0x7b5   :  { %7688 = vmatprep.subr.mxu0 %v16527_v24  ;;  %7762 = vmatprep.subr.mxu1 %v16378_v52 }
 0x7b6   :  { %7691 = vmatpush1.msra.mxu0 %v16530_v51  ;;  %7764 = vmatpush1.msra.mxu1 %v16313_v12 }
 0x7b7   :  { %7694 = vmatprep.subr.mxu0 %v16569_v62  ;;  %7766 = vmatprep.subr.mxu1 %v16380_v53 }
 0x7b8   :  { %7697 = vmatpush1.msra.mxu0 %v16573_v27  ;;  %7768 = vmatpush1.msra.mxu1 %v16332_v63 }
 0x7b9   :  { %7733 = vmatmul.mubr.f32.vlgmr.msra.gmra.mxu0 %v16351_v43  ;;  %7848 = vmatprep.subr.mxu0 %v19941_v40  ;;  %v7314_v40 = vrot.slane %v19949_v20, %v12827_v61  ;;  %v19954_v20 = vand.u32 4294901760, %v16371_v19  ;;  %v19958_v19 = vld [vmem:[#allocation18_spill] sm:$0xff] }
 0x7ba   :  { %7852 = vmatpush1.msra.mxu0 %v19942_v5  ;;  %7770 = vmatprep.subr.mxu1 %v19944_v56  ;;  %v16646_v5 = vand.u32 4294901760, %v19951_v18 }
 0x7bb   :  { %7856 = vmatprep.subr.mxu0 %v19943_v1  ;;  %7772 = vmatpush1.msra.mxu1 %v19946_v34  ;;  %v19952_v1 = vld [vmem:[#allocation12_spill] sm:$0xff] }
 0x7bc   :  { %7860 = vmatpush1.msra.mxu0 %v19945_v31  ;;  %7774 = vmatprep.subr.mxu1 %v16373_v49  ;;  %v7296_v14 = vsel %vm343_vm0, %v16507_v37, %v19952_v1  ;;  %v19953_v31 = vld [vmem:[#allocation26_spill] sm:$0xff] }
 0x7bd   :  { %7864 = vmatprep.subr.mxu0 %v19947_v0  ;;  %7776 = vmatpush1.msra.mxu1 %v16421_v38  ;;  %v7293_v13 = vsel %vm343_vm0, %v19953_v31, %v16507_v37  ;;  %v7272_v0 = vrot.slane %v16211_v3, %v12827_v61  ;;  %v7322_v37 = vmul.f32 %v7314_v40, %v7296_v14  ;;  %v19957_v31 = vand.u32 4294901760, %v16221_v28  ;;  %v19962_v14 = vld [vmem:[#allocation20_spill] sm:$0xff] }
 0x7be   :  { %7868 = vmatpush1.msra.mxu0 %v19948_v47  ;;  %7778 = vmatprep.subr.mxu1 %v16401_v8  ;;  %v7166_v47 = vpop.permute.xlu1 %7165  ;;  %v7230_v3 = vrot.slane %v16226_v35, %v12827_v61  ;;  %v19960_v35 = vld [vmem:[#allocation8_spill] sm:$0xff]  ;;  %v19961_v28 = vand.u32 4294901760, %v16412_v2 }
 0x7bf   :  { %7872 = vmatprep.subr.mxu0 %v19950_v4  ;;  %7821 = vmatprep.mubr.f32.mxu1 %v19593_v50  ;;  %v19955_v4 = vld [vmem:[#allocation24_spill] sm:$0xff]  ;;  %v7184_v15 = vrot.slane %v19960_v35, %v12824_v32  ;;  %v16703_v58 = vand.u32 4294901760, %v7322_v37 }
 0x7c0   :  { %7780 = vmatpush1.msra.mxu1 %v16500_v9  ;;  %7876 = vmatpush1.msra.mxu0 %v19954_v20  ;;  %v7254_v1 = vsel %vm299_vm1, %v16537_v46, %v19955_v4  ;;  %v16678_v20 = vand.u32 4294901760, %v19958_v19  ;;  %v16682_v46 = vsub.f32 %v19951_v18, %v16646_v5  ;;  %v7321_v4 = vmul.f32 %v7310_v26, %v7293_v13  ;;  %v19964_v13 = vld [vmem:[#allocation14_spill] sm:$0xff] }
 0x7c1   :  { %7782 = vmatprep.subr.mxu1 %v16496_v41  ;;  %7880 = vmatprep.subr.mxu0 %v19956_v55  ;;  %v7188_v55 = vrot.slane %v19960_v35, %v12827_v61  ;;  %v7280_v40 = vmul.f32 %v7272_v0, %v7254_v1  ;;  %v7170_v18 = vsel %vm211_vm3, %v7166_v47, %v19962_v14  ;;  %v19963_v26 = vand.u32 4294901760, %v16444_v60 }
 0x7c2   :  { %7784 = vmatpush1.msra.mxu1 %v16498_v22  ;;  %7884 = vmatpush1.msra.mxu0 %v19957_v31  ;;  %v7238_v2 = vmul.f32 %v7230_v3, %v7212_v36  ;;  %v7167_v0 = vsel %vm211_vm3, %v19964_v13, %v7166_v47  ;;  %v7076_v1 = vpop.permute.xlu1 %7075  ;;  %v19965_v60 = vand.u32 4294901760, %v16441_v45  ;;  %v16713_v31 = vsub.f32 %v19958_v19, %v16678_v20  ;;  %v19966_v19 = vld [vmem:[#allocation27_spill] sm:$0xff]  ;;  %v19971_v13 = vld [vmem:[#allocation25_spill] sm:$0xff] }
 0x7c3   :  { %7786 = vmatprep.subr.mxu1 %v16532_v59  ;;  %7888 = vmatprep.subr.mxu0 %v19961_v28  ;;  %v16715_v35 = vand.u32 4294901760, %v7321_v4  ;;  %v7138_v3 = vrot.slane %v16261_v39, %v12824_v32  ;;  %v16723_v47 = vand.u32 4294901760, %v7280_v40  ;;  %v16726_v45 = vand.u32 4294901760, %v16553_v54 }
 0x7c4   :  { %7788 = vmatpush1.msra.mxu1 %v16534_v21  ;;  %7892 = vmatpush1.msra.mxu0 %v19963_v26  ;;  %v7096_v36 = vrot.slane %v19966_v19, %v12824_v32  ;;  %v7195_v39 = vmul.f32 %v7184_v15, %v7167_v0  ;;  %v7058_v28 = vrot.slane %v19967_v6, %v12827_v61  ;;  %v19968_v14 = vand.u32 4294901760, %v16530_v51  ;;  %v7034_v26 = vpop.permute.xlu0 %7033 }
 0x7c5   :  { %7825 = vmatmul.mubr.f32.vlgmr.msra.gmra.mxu1 %v16399_v23  ;;  %7972 = vmatprep.subr.mxu1 %v16337_v57  ;;  %v7196_v57 = vmul.f32 %v7188_v55, %v7170_v18  ;;  %v7100_v55 = vrot.slane %v19966_v19, %v12827_v61  ;;  %v16748_v24 = vand.u32 4294901760, %v7238_v2  ;;  %v7012_v15 = vrot.slane %v16348_v16, %v12824_v32 }
 0x7c6   :  { %7974 = vmatpush1.msra.mxu1 %v16263_v42  ;;  %7896 = vmatprep.subr.mxu0 %v19965_v60  ;;  %v19286_v42 = vand.u32 4294901760, %v16682_v46  ;;  %v16760_v51 = vsub.f32 %v7321_v4, %v16715_v35  ;;  %v7079_v0 = vsel %vm119_vm6, %v7076_v1, %v19971_v13  ;;  %v19972_v60 = vand.u32 4294901760, %v16573_v27  ;;  %v19973_v4 = vld [vmem:[#allocation29_spill] sm:$0xff] }
 0x7c7   :  { %7976 = vmatprep.subr.mxu1 %v16339_v33  ;;  %7900 = vmatpush1.msra.mxu0 %v7562_v17  ;;  %v16736_v33 = vand.u32 4294901760, %v16556_v25  ;;  %v7054_v17 = vrot.slane %v19967_v6, %v12824_v32  ;;  %v7080_v19 = vsel %vm119_vm6, %v19973_v4, %v7076_v1  ;;  %v6992_v6 = vpop.permute.xlu1 %6991  ;;  %v7108_v1 = vmul.f32 %v7100_v55, %v7079_v0 }
 0x7c8   :  { %7978 = vmatpush1.msra.mxu1 %v16292_v11  ;;  %7904 = vmatprep.subr.mxu0 %v7568_v29  ;;  %v16746_v11 = vsub.f32 %v7322_v37, %v16703_v58  ;;  %v19969_v29 = vld [vmem:[#allocation19_spill] sm:$0xff]  ;;  %v16762_v37 = vand.u32 4294901760, %v7196_v57 }
 0x7c9   :  { %7980 = vmatprep.subr.mxu1 %v16378_v52  ;;  %7908 = vmatpush1.msra.mxu0 %v19968_v14  ;;  %v7122_v18 = vsel %vm163_vm4, %v19969_v29, %v16560_v44  ;;  %v19970_v52 = vand.u32 4294901760, %v16569_v62  ;;  %v7016_v44 = vrot.slane %v16348_v16, %v12827_v61  ;;  %v16777_v62 = vsub.f32 %v16553_v54, %v16726_v45  ;;  %v19974_v54 = vld [vmem:[#allocation30_spill] sm:$0xff]  ;;  %v19975_v14 = vld [vmem:[#allocation15_spill] sm:$0xff] }
 0x7ca   :  { %7982 = vmatpush1.msra.mxu1 %v16313_v12  ;;  %v16773_v12 = vsub.f32 %v7280_v40, %v16723_v47  ;;  %7949 = vmatprep.mubr.f32.mxu0 %v19593_v50  ;;  %v19283_v61 = vand.u32 4294901760, %v16713_v31  ;;  %v16787_v16 = vsub.f32 %v16556_v25, %v16736_v33  ;;  %v7149_v27 = vmul.f32 %v7138_v3, %v7122_v18 }
 0x7cb   :  { %7912 = vmatprep.subr.mxu0 %v19970_v52  ;;  %7984 = vmatprep.subr.mxu1 %v16380_v53  ;;  %v16789_v53 = vand.u32 4294901760, %v7195_v39  ;;  %v7037_v40 = vsel %vm75_vm7, %v7034_v26, %v19974_v54  ;;  %v7038_v25 = vsel %vm75_vm7, %v19975_v14, %v7034_v26  ;;  %v8157_v3 = vand.u32 4294901760, %v16746_v11  ;;  %v19976_v26 = vld [vmem:[#allocation7_spill] sm:$0xff] }
 0x7cc   :  { %7916 = vmatpush1.msra.mxu0 %v19972_v60  ;;  %7986 = vmatpush1.msra.mxu1 %v16332_v63  ;;  %v16797_v63 = vsub.f32 %v7238_v2, %v16748_v24  ;;  %v8163_v29 = vand.u32 4294901760, %v16760_v51  ;;  %v7107_v18 = vmul.f32 %v7096_v36, %v7080_v19  ;;  %v6995_v2 = vsel %vm31_vm8, %v6992_v6, %v16505_v10 }
 0x7cd   :  { %7988 = vmatprep.subr.mxu1 %v19944_v56  ;;  %7951 = vmatmul.mubr.f32.vlgmr.msra.gmra.mxu0 %v16311_v48  ;;  %v16807_v56 = vsub.f32 %v7196_v57, %v16762_v37  ;;  %v7066_v55 = vmul.f32 %v7058_v28, %v7037_v40  ;;  %v6996_v52 = vsel %vm31_vm8, %v19976_v26, %v6992_v6  ;;  %v8169_v57 = vand.u32 4294901760, %v16773_v12 }
 0x7ce   :  { %7990 = vmatpush1.msra.mxu1 %v19946_v34  ;;  %8062 = vmatprep.subr.mxu0 %v16703_v58  ;;  %v16815_v34 = vand.u32 4294901760, %v16585_v30  ;;  %v8175_v10 = vand.u32 4294901760, %v16777_v62  ;;  %v16827_v36 = vand.u32 4294901760, %v7149_v27  ;;  %v7065_v13 = vmul.f32 %v7054_v17, %v7038_v25 }
 0x7cf   :  { %7992 = vmatprep.subr.mxu1 %v16373_v49  ;;  %8064 = vmatpush1.msra.mxu0 %v16715_v35  ;;  %v16825_v49 = vsub.f32 %v7195_v39, %v16789_v53  ;;  %v16831_v7 = vand.u32 4294901760, %v7108_v1  ;;  %v7024_v28 = vmul.f32 %v7016_v44, %v6995_v2  ;;  %v8181_v39 = vand.u32 4294901760, %v16797_v63 }
 0x7d0   :  { %7994 = vmatpush1.msra.mxu1 %v16421_v38  ;;  %8066 = vmatprep.subr.mxu0 %v16723_v47  ;;  %v8158_v38 = vsub.f32 %v16746_v11, %v8157_v3  ;;  %v8187_v0 = vand.u32 4294901760, %v16787_v16  ;;  %v16840_v17 = vand.u32 4294901760, %v7107_v18  ;;  %v16849_v44 = vsub.f32 %v16585_v30, %v16815_v34 }
 0x7d1   :  { %7996 = vmatprep.subr.mxu1 %v16401_v8  ;;  %8068 = vmatpush1.msra.mxu0 %v16726_v45  ;;  %v7023_v8 = vmul.f32 %v7012_v15, %v6996_v52  ;;  %v16851_v60 = vand.u32 4294901760, %v7066_v55  ;;  %v19282_v15 = vand.u32 4294901760, %v16807_v56  ;;  %v19284_v4 = vand.u32 4294901760, %v16825_v49 }
 0x7d2   :  { %7998 = vmatpush1.msra.mxu1 %v16500_v9  ;;  %8070 = vmatprep.subr.mxu0 %v16748_v24  ;;  %v8164_v9 = vsub.f32 %v16760_v51, %v8163_v29  ;;  %v16861_v19 = vsub.f32 %v7149_v27, %v16827_v36  ;;  %v16863_v6 = vand.u32 4294901760, %v7065_v13  ;;  %v16871_v30 = vsub.f32 %v7108_v1, %v16831_v7 }
 0x7d3   :  { %8000 = vmatprep.subr.mxu1 %v16496_v41  ;;  %8072 = vmatpush1.msra.mxu0 %v16736_v33  ;;  %v8170_v41 = vsub.f32 %v16773_v12, %v8169_v57  ;;  %v16873_v54 = vand.u32 4294901760, %v7024_v28  ;;  %v8159_v27 = vand.u32 4294901760, %v8158_v38  ;;  %v16881_v40 = vsub.f32 %v7107_v18, %v16840_v17 }
 0x7d4   :  { %8002 = vmatpush1.msra.mxu1 %v16498_v22  ;;  %8074 = vmatprep.subr.mxu0 %v16762_v37  ;;  %v8176_v22 = vsub.f32 %v16777_v62, %v8175_v10  ;;  %v16883_v14 = vand.u32 4294901760, %v7023_v8  ;;  %v8165_v1 = vand.u32 4294901760, %v8164_v9  ;;  %v16891_v25 = vsub.f32 %v7066_v55, %v16851_v60 }
 0x7d5   :  { %8004 = vmatprep.subr.mxu1 %v16532_v59  ;;  %8039 = vmatprep.mubr.f32.mxu1 %v19593_v50  ;;  %v8182_v59 = vsub.f32 %v16797_v63, %v8181_v39  ;;  %v8171_v2 = vand.u32 4294901760, %v8170_v41  ;;  %v8194_v18 = vsub.f32 %v16807_v56, %v19282_v15  ;;  %v19285_v26 = vand.u32 4294901760, %v16849_v44 }
 0x7d6   :  { %8006 = vmatpush1.msra.mxu1 %v16534_v21  ;;  %8076 = vmatpush1.msra.mxu0 %v16789_v53  ;;  %v8188_v21 = vsub.f32 %v16787_v16, %v8187_v0  ;;  %v8223_v52 = vand.u32 4294901760, %v16861_v19  ;;  %v16900_v38 = vsub.f32 %v7065_v13, %v16863_v6  ;;  %v8177_v55 = vand.u32 4294901760, %v8176_v22 }
 0x7d7   :  { %8041 = vmatmul.mubr.f32.vlgmr.msra.gmra.mxu1 %v16311_v48  ;;  %8078 = vmatprep.subr.mxu0 %v16678_v20  ;;  %v8200_v9 = vsub.f32 %v16825_v49, %v19284_v4  ;;  %v16907_v41 = vsub.f32 %v7024_v28, %v16873_v54  ;;  %v8206_v13 = vsub.f32 %v16713_v31, %v19283_v61  ;;  %v8235_v15 = vand.u32 4294901760, %v16881_v40 }
 0x7d8   :  { %8160 = vmatprep.subr.mxu1 %v8159_v27  ;;  %8080 = vmatpush1.msra.mxu0 %v16646_v5  ;;  %v8183_v27 = vand.u32 4294901760, %v8182_v59  ;;  %v16916_v22 = vsub.f32 %v7023_v8, %v16883_v14  ;;  %v8189_v28 = vand.u32 4294901760, %v8188_v21  ;;  %v8195_v59 = vand.u32 4294901760, %v8194_v18 }
 0x7d9   :  { %8166 = vmatpush1.msra.mxu1 %v8165_v1  ;;  %8082 = vmatprep.subr.mxu0 %v16815_v34  ;;  %v19287_v1 = vand.u32 4294901760, %v16871_v30  ;;  %v8218_v61 = vsub.f32 %v16849_v44, %v19285_v26  ;;  %v19288_v4 = vand.u32 4294901760, %v16891_v25  ;;  %v8247_v8 = vand.u32 4294901760, %v16900_v38 }
 0x7da   :  { %8172 = vmatprep.subr.mxu1 %v8171_v2  ;;  %8084 = vmatpush1.msra.mxu0 %v16827_v36  ;;  %v8212_v2 = vsub.f32 %v16682_v46, %v19286_v42  ;;  %v8201_v21 = vand.u32 4294901760, %v8200_v9  ;;  %v8207_v18 = vand.u32 4294901760, %v8206_v13  ;;  %v8253_v26 = vand.u32 4294901760, %v16907_v41 }
 0x7db   :  { %8178 = vmatpush1.msra.mxu1 %v8177_v55  ;;  %8086 = vmatprep.subr.mxu0 %v16831_v7  ;;  %v8224_v55 = vsub.f32 %v16861_v19, %v8223_v52  ;;  %v8259_v42 = vand.u32 4294901760, %v16916_v22  ;;  %v8219_v13 = vand.u32 4294901760, %v8218_v61 }
 0x7dc   :  { %8184 = vmatprep.subr.mxu1 %v8183_v27  ;;  %8088 = vmatpush1.msra.mxu0 %v16840_v17  ;;  %v8230_v27 = vsub.f32 %v16871_v30, %v19287_v1  ;;  %v8213_v9 = vand.u32 4294901760, %v8212_v2  ;;  %v8248_v2 = vsub.f32 %v16900_v38, %v8247_v8  ;;  %v8254_v61 = vsub.f32 %v16907_v41, %v8253_v26 }
 0x7dd   :  { %8190 = vmatpush1.msra.mxu1 %v8189_v28  ;;  %8090 = vmatprep.subr.mxu0 %v16851_v60  ;;  %v8236_v28 = vsub.f32 %v16881_v40, %v8235_v15  ;;  %v8225_v1 = vand.u32 4294901760, %v8224_v55  ;;  %v8260_v55 = vsub.f32 %v16916_v22, %v8259_v42 }
 0x7de   :  { %8196 = vmatprep.subr.mxu1 %v8195_v59  ;;  %8092 = vmatpush1.msra.mxu0 %v16863_v6  ;;  %v8242_v59 = vsub.f32 %v16891_v25, %v19288_v4 }
 0x7df   :  { %8202 = vmatpush1.msra.mxu1 %v8201_v21  ;;  %8094 = vmatprep.subr.mxu0 %v16873_v54  ;;  %v8231_v21 = vand.u32 4294901760, %v8230_v27  ;;  %v8237_v4 = vand.u32 4294901760, %v8236_v28  ;;  %v8249_v27 = vand.u32 4294901760, %v8248_v2 }
 0x7e0   :  { %8208 = vmatprep.subr.mxu1 %v8207_v18  ;;  %8096 = vmatpush1.msra.mxu0 %v16883_v14  ;;  %v19977_v18 = vld [vmem:[#allocation6_spill] sm:$0xff] }
 0x7e1   :  { %8214 = vmatpush1.msra.mxu1 %v8213_v9  ;;  %8129 = vmatprep.mubr.f32.mxu0 %v19593_v50  ;;  %v8243_v9 = vand.u32 4294901760, %v8242_v59 }
 0x7e2   :  { %8220 = vmatprep.subr.mxu1 %v8219_v13  ;;  %8319 = vmatprep.subr.mxu0 %v16746_v11  ;;  %v8255_v13 = vand.u32 4294901760, %v8254_v61  ;;  %v19979_v11 = vand.u32 4294901760, %v16825_v49 }
 0x7e3   :  { %8135 = vmatmul.mubr.f32.vlgmr.msra.gmra.mxu0 %v19977_v18  ;;  %8226 = vmatpush1.msra.mxu1 %v8225_v1  ;;  %v8261_v1 = vand.u32 4294901760, %v8260_v55 }
 0x7e4   :  { %8322 = vmatpush1.msra.mxu0 %v16760_v51  ;;  %8232 = vmatprep.subr.mxu1 %v8231_v21  ;;  %v19980_v51 = vand.u32 4294901760, %v16713_v31 }
 0x7e5   :  { %8325 = vmatprep.subr.mxu0 %v16773_v12  ;;  %8238 = vmatpush1.msra.mxu1 %v8237_v4  ;;  %v19981_v12 = vand.u32 4294901760, %v16682_v46 }
 0x7e6   :  { %8328 = vmatpush1.msra.mxu0 %v16777_v62  ;;  %8244 = vmatprep.subr.mxu1 %v8243_v9  ;;  %v19982_v62 = vand.u32 4294901760, %v16849_v44 }
 0x7e7   :  { %8331 = vmatprep.subr.mxu0 %v16797_v63  ;;  %8250 = vmatpush1.msra.mxu1 %v8249_v27 }
 0x7e8   :  { %8334 = vmatpush1.msra.mxu0 %v16787_v16  ;;  %8256 = vmatprep.subr.mxu1 %v8255_v13 }
 0x7e9   :  { %8337 = vmatprep.subr.mxu0 %v16807_v56  ;;  %8262 = vmatpush1.msra.mxu1 %v8261_v1 }
 0x7ea   :  { %8295 = vmatprep.mubr.f32.mxu1 %v19593_v50  ;;  %8340 = vmatpush1.msra.mxu0 %v16825_v49 }
 0x7eb   :  { %8297 = vmatmul.mubr.f32.vlgmr.msra.gmra.mxu1 %v16311_v48  ;;  %8343 = vmatprep.subr.mxu0 %v16713_v31  ;;  %v17062_v31 = vpop.permute.xlu0 %7368 }
 0x7ec   :  { %8427 = vmatprep.subr.mxu1 %v16703_v58  ;;  %8346 = vmatpush1.msra.mxu0 %v16682_v46  ;;  %v19984_v46 = vand.u32 4294901760, %v16891_v25 }
 0x7ed   :  { %8429 = vmatpush1.msra.mxu1 %v16715_v35  ;;  %8349 = vmatprep.subr.mxu0 %v16849_v44 }
 0x7ee   :  { %8431 = vmatprep.subr.mxu1 %v16723_v47  ;;  %8352 = vmatpush1.msra.mxu0 %v16861_v19  ;;  %v19985_v19 = vld [vmem:[#allocation13_spill] sm:$0xff] }
 0x7ef   :  { %8433 = vmatpush1.msra.mxu1 %v16726_v45  ;;  %8355 = vmatprep.subr.mxu0 %v16871_v30 }
 0x7f0   :  { %8435 = vmatprep.subr.mxu1 %v16748_v24  ;;  %8358 = vmatpush1.msra.mxu0 %v16881_v40  ;;  %v19986_v40 = vld [vmem:[#allocation23_spill] sm:$0xff] }
 0x7f1   :  { %8437 = vmatpush1.msra.mxu1 %v16736_v33  ;;  %8361 = vmatprep.subr.mxu0 %v16891_v25 }
 0x7f2   :  { %8439 = vmatprep.subr.mxu1 %v16762_v37  ;;  %8364 = vmatpush1.msra.mxu0 %v16900_v38 }
 0x7f3   :  { %8441 = vmatpush1.msra.mxu1 %v16789_v53  ;;  %8367 = vmatprep.subr.mxu0 %v16907_v41 }
 0x7f4   :  { %8443 = vmatprep.subr.mxu1 %v16678_v20  ;;  %8370 = vmatpush1.msra.mxu0 %v16916_v22 }
 0x7f5   :  { %8403 = vmatprep.mubr.f32.mxu0 %v19593_v50  ;;  %8445 = vmatpush1.msra.mxu1 %v16646_v5 }
 0x7f6   :  { %8406 = vmatmul.mubr.f32.vlgmr.msra.gmra.mxu0 %v16351_v43  ;;  %8447 = vmatprep.subr.mxu1 %v16815_v34  ;;  %v19978_v43 = vand.u32 4294901760, %v16807_v56 }
 0x7f7   :  { %8521 = vmatprep.subr.mxu0 %v8157_v3  ;;  %8449 = vmatpush1.msra.mxu1 %v16827_v36 }
 0x7f8   :  { %8525 = vmatpush1.msra.mxu0 %v8163_v29  ;;  %8451 = vmatprep.subr.mxu1 %v16831_v7 }
 0x7f9   :  { %8529 = vmatprep.subr.mxu0 %v8169_v57  ;;  %8453 = vmatpush1.msra.mxu1 %v16840_v17 }
 0x7fa   :  { %8533 = vmatpush1.msra.mxu0 %v8175_v10  ;;  %8455 = vmatprep.subr.mxu1 %v16851_v60 }
 0x7fb   :  { %8537 = vmatprep.subr.mxu0 %v8181_v39  ;;  %8457 = vmatpush1.msra.mxu1 %v16863_v6 }
 0x7fc   :  { %8541 = vmatpush1.msra.mxu0 %v8187_v0  ;;  %8459 = vmatprep.subr.mxu1 %v16873_v54 }
 0x7fd   :  { %8545 = vmatprep.subr.mxu0 %v19978_v43  ;;  %8461 = vmatpush1.msra.mxu1 %v16883_v14 }
 0x7fe   :  { %8494 = vmatprep.mubr.f32.mxu1 %v19593_v50  ;;  %8549 = vmatpush1.msra.mxu0 %v19979_v11 }
 0x7ff   :  { %8498 = vmatmul.mubr.f32.vlgmr.msra.gmra.mxu1 %v16399_v23  ;;  %8553 = vmatprep.subr.mxu0 %v19980_v51  ;;  %v19983_v23 = vand.u32 4294901760, %v16871_v30 }
 0x800   :  { %8645 = vmatprep.subr.mxu1 %v16703_v58  ;;  %8557 = vmatpush1.msra.mxu0 %v19981_v12 }
 0x801   :  { %8647 = vmatpush1.msra.mxu1 %v16715_v35  ;;  %8561 = vmatprep.subr.mxu0 %v19982_v62 }
 0x802   :  { %8649 = vmatprep.subr.mxu1 %v16723_v47  ;;  %8565 = vmatpush1.msra.mxu0 %v8223_v52 }
 0x803   :  { %8651 = vmatpush1.msra.mxu1 %v16726_v45  ;;  %8569 = vmatprep.subr.mxu0 %v19983_v23 }
 0x804   :  { %8653 = vmatprep.subr.mxu1 %v16748_v24  ;;  %8573 = vmatpush1.msra.mxu0 %v8235_v15 }
 0x805   :  { %8655 = vmatpush1.msra.mxu1 %v16736_v33  ;;  %8577 = vmatprep.subr.mxu0 %v19984_v46 }
 0x806   :  { %8657 = vmatprep.subr.mxu1 %v16762_v37  ;;  %8581 = vmatpush1.msra.mxu0 %v8247_v8 }
 0x807   :  { %8659 = vmatpush1.msra.mxu1 %v16789_v53  ;;  %8585 = vmatprep.subr.mxu0 %v8253_v26 }
 0x808   :  { %8661 = vmatprep.subr.mxu1 %v16678_v20  ;;  %8589 = vmatpush1.msra.mxu0 %v8259_v42  ;;  %v12307_v20 = vmov 8  }
 0x809   :  { %8622 = vmatprep.mubr.f32.mxu0 %v19593_v50  ;;  %8663 = vmatpush1.msra.mxu1 %v16646_v5  ;;  %v8728_v5 = vld [vmem:[%s19049_s3 + $0x18] sm:$0xc] }
 0x80a   :  { %8624 = vmatmul.mubr.f32.vlgmr.msra.gmra.mxu0 %v16311_v48  ;;  %8665 = vmatprep.subr.mxu1 %v16815_v34  ;;  %v8733_v47 = vrot.slane %v8728_v5, 2 }
 0x80b   :  { %8667 = vmatpush1.msra.mxu1 %v16827_v36  ;;  %8712 = vmatprep.mubr.f32.mxu1 %v19593_v50 }
 0x80c   :  { %8669 = vmatprep.subr.mxu1 %v16831_v7  ;;  %8805 = vmatprep.mubr.f32.mxu0 %v19593_v50  ;;  %v8737_v24 = vsel %vm8736_vm9, %v8733_v47, 0  ;;  %v9745_v47 = vld [vmem:[%s19051_s2 + $0x168] sm:$0xff] }
 0x80d   :  { %8671 = vmatpush1.msra.mxu1 %v16840_v17  ;;  %12285 = vset.pattern.permute.xlu1 %v12307_v20  ;;  %v17066_v3 = vand.u32 4294901760, %v8737_v24 }
 0x80e   :  { %8673 = vmatprep.subr.mxu1 %v16851_v60  ;;  %12286 = vset.pattern.permute.xlu0 %v12307_v20 }
 0x80f   :  { %8675 = vmatpush1.msra.mxu1 %v16863_v6  ;;  %8731 = vperm.xlu1 %12285, %v8728_v5   ;;  %v17069_v36 = vsub.f32 %v8737_v24, %v17066_v3 }
 0x810   :  { %8677 = vmatprep.subr.mxu1 %v16873_v54 }
 0x811   :  { %8679 = vmatpush1.msra.mxu1 %v16883_v14  ;;  %v17072_v15 = vand.u32 4294901760, %v17069_v36 }
 0x812   :  { %8714 = vmatmul.mubr.f32.vlgmr.msra.gmra.mxu1 %v16311_v48 }
 0x813   :  { %8891 = vmatprep.mubr.f32.mxu1 %v19593_v50  ;;  %v8809_v25 = vsub.f32 %v17069_v36, %v17072_v15 }
 0x815   :  { %v17078_v22 = vand.u32 4294901760, %v8809_v25 }
 0x867   :  { %v7463_v58 = vpop.f32.mrf.mxu0 }
 0x868   :  { %v7464_v48 = vadd.f32 %v7463_v58, %v17062_v31 }
 0x869   :  { %v7465_v35 = vpop.f32.mrf.mxu0 }
 0x86a   :  { %v7466_v37 = vadd.f32 %v7465_v35, %v17062_v31 }
 0x870   :  { %v7625_v42 = vpop.f32.mrf.mxu1 }
 0x871   :  { %v7626_v63 = vadd.f32 %v7625_v42, %v7464_v48  ;;  %v9746_v42 = vld [vmem:[%s19051_s2 + $0x170] sm:$0xff] }
 0x872   :  { %v7627_v33 = vpop.f32.mrf.mxu1 }
 0x873   :  { %v7628_v56 = vadd.f32 %v7627_v33, %v7466_v37  ;;  %v9743_v33 = vld [vmem:[%s19051_s2 + $0x158] sm:$0xff]  ;;  %v17103_v37 = vand.u32 4294901760, %v9746_v42 }
 0x875   :  { %19987 = vst [vmem:[#allocation17_spill] sm:$0xff] %v17103_v37 }
 0x879   :  { %v7734_v45 = vpop.f32.mrf.mxu0 }
 0x87a   :  { %v7735_v34 = vadd.f32 %v7734_v45, %v7626_v63 }
 0x87b   :  { %v7736_v16 = vpop.f32.mrf.mxu0 }
 0x87c   :  { %v7737_v10 = vadd.f32 %v7736_v16, %v7628_v56  ;;  %v17105_v16 = vand.u32 4294901760, %v9745_v47 }
 0x885   :  { %v7826_v53 = vpop.f32.mrf.mxu1 }
 0x886   :  { %v7827_v49 = vadd.f32 %v7826_v53, %v7735_v34  ;;  %v9742_v53 = vld [vmem:[%s19051_s2 + $0x150] sm:$0xff]  ;;  %v17110_v34 = vand.u32 4294901760, %v9743_v33 }
 0x887   :  { %v7828_v57 = vpop.f32.mrf.mxu1 }
 0x888   :  { %v7829_v39 = vadd.f32 %v7828_v57, %v7737_v10  ;;  %v9740_v57 = vld [vmem:[%s19051_s2 + $0x140] sm:$0xff] }
 0x889   :  { %v19988_v10 = vld [vmem:[#allocation3_spill] sm:$0xff] }
 0x88d   :  { %v7952_v29 = vpop.f32.mrf.mxu0 }
 0x88e   :  { %v7953_v0 = vadd.f32 %v7952_v29, %v7827_v49 }
 0x88f   :  { %v7954_v7 = vpop.f32.mrf.mxu0 }
 0x890   :  { %v7955_v44 = vadd.f32 %v7954_v7, %v7829_v39  ;;  %v17116_v39 = vand.u32 4294901760, %v9742_v53 }
 0x897   :  { %v8042_v17 = vpop.f32.mrf.mxu1 }
 0x898   :  { %v8043_v60 = vadd.f32 %v8042_v17, %v7953_v0  ;;  %v9739_v0 = vld [vmem:[%s19051_s2 + $0x138] sm:$0xff]  ;;  %v17122_v17 = vsub.f32 %v9746_v42, %v17103_v37 }
 0x899   :  { %v8044_v4 = vpop.f32.mrf.mxu1 }
 0x89a   :  { %v8720_v6 = vadd.f32 %v8043_v60, %v19985_v19  ;;  %v8045_v30 = vadd.f32 %v8044_v4, %v7955_v44  ;;  %19989 = vst [vmem:[#allocation16_spill] sm:$0xff] %v17122_v17  ;;  %v17125_v44 = vsub.f32 %v9745_v47, %v17105_v16  ;;  %v9737_v60 = vld [vmem:[%s19051_s2 + $0x128] sm:$0xff]  ;;  %v19990_v19 = vld [vmem:[#allocation22_spill] sm:$0xff] }
 0x89c   :  { %v8724_v54 = vmax.f32 %v8720_v6, 0.0  ;;  %v8721_v14 = vadd.f32 %v8045_v30, %v19986_v40  ;;  %v17131_v30 = vand.u32 4294901760, %v9740_v57  ;;  %v17136_v40 = vand.u32 4294901760, %v9739_v0 }
 0x89e   :  { %v8771_v26 = vand.u32 4294901760, %v8724_v54  ;;  %v8725_v52 = vmax.f32 %v8721_v14, 0.0 }
 0x8a0   :  { %v8854_v38 = vsub.f32 %v8724_v54, %v8771_v26  ;;  %v8769_v41 = vand.u32 4294901760, %v8725_v52  ;;  %v17134_v54 = vsub.f32 %v9743_v33, %v17110_v34 }
 0x8a2   :  { %8770 = vmatprep.subr.mxu0 %v8769_v41  ;;  %v8848_v8 = vsub.f32 %v8725_v52, %v8769_v41  ;;  %v8855_v28 = vand.u32 4294901760, %v8854_v38  ;;  %v17143_v52 = vand.u32 4294901760, %v9737_v60 }
 0x8a3   :  { %8772 = vmatpush1.msra.mxu0 %v8771_v26  ;;  %v8136_v55 = vpop.f32.mrf.mxu0 }
 0x8a4   :  { %8811 = vmatmul.mubr.f32.vlgmr.msra.gmra.mxu0 %v17078_v22  ;;  %8931 = vmatprep.subr.mxu0 %v8848_v8  ;;  %v8849_v59 = vand.u32 4294901760, %v8848_v8  ;;  %v8856_v2 = vsub.f32 %v8854_v38, %v8855_v28  ;;  %v8137_v1 = vadd.f32 %v8136_v55, %v17062_v31  ;;  %v9733_v55 = vld [vmem:[%s19051_s2 + $0x108] sm:$0xff] }
 0x8a5   :  { %8934 = vmatpush1.msra.mxu0 %v8854_v38  ;;  %8967 = vmatprep.mubr.f32.mxu0 %v19593_v50  ;;  %v8138_v9 = vpop.f32.mrf.mxu0  ;;  %v19295_v38 = vand.u32 4294901760, %v17122_v17 }
 0x8a6   :  { %9085 = vmatprep.subr.mxu0 %v8849_v59  ;;  %v8850_v21 = vsub.f32 %v8848_v8, %v8849_v59  ;;  %v8857_v18 = vand.u32 4294901760, %v8856_v2  ;;  %v8139_v11 = vadd.f32 %v8138_v9, %v17062_v31  ;;  %v17151_v59 = vsub.f32 %v9740_v57, %v17131_v30  ;;  %v9736_v2 = vld [vmem:[%s19051_s2 + $0x120] sm:$0xff]  ;;  %v9725_v57 = vld [vmem:[%s19051_s2 + $0xc8] sm:$0xff] }
 0x8a8   :  { %8970 = vmatmul.mubr.f32.vlgmr.msra.gmra.mxu0 %v17069_v36  ;;  %v8851_v61 = vand.u32 4294901760, %v8850_v21  ;;  %v9734_v21 = vld [vmem:[%s19051_s2 + $0x110] sm:$0xff] }
 0x8a9   :  { %9089 = vmatpush1.msra.mxu0 %v8855_v28  ;;  %9122 = vmatprep.mubr.f32.mxu0 %v19593_v50 }
 0x8aa   :  { %8852 = vmatprep.subr.mxu1 %v8851_v61  ;;  %v19293_v61 = vand.u32 4294901760, %v17134_v54 }
 0x8ab   :  { %8858 = vmatpush1.msra.mxu1 %v8857_v18  ;;  %v8298_v27 = vpop.f32.mrf.mxu1  ;;  %v17161_v18 = vsub.f32 %v9739_v0, %v17136_v40 }
 0x8ac   :  { %8893 = vmatmul.mubr.f32.vlgmr.msra.gmra.mxu1 %v17066_v3  ;;  %9007 = vmatprep.subr.mxu1 %v8769_v41  ;;  %v8299_v62 = vadd.f32 %v8298_v27, %v8137_v1  ;;  %v17170_v1 = vsub.f32 %v9737_v60, %v17143_v52  ;;  %v9724_v60 = vld [vmem:[%s19051_s2 + $0xc0] sm:$0xff] }
 0x8ad   :  { %9009 = vmatpush1.msra.mxu1 %v8771_v26  ;;  %9042 = vmatprep.mubr.f32.mxu1 %v19593_v50  ;;  %v8300_v43 = vpop.f32.mrf.mxu1  ;;  %v19290_v42 = vand.u32 4294901760, %v17161_v18 }
 0x8ae   :  { %9161 = vmatprep.subr.mxu1 %v8769_v41  ;;  %9124 = vmatmul.mubr.f32.vlgmr.msra.gmra.mxu0 %v17066_v3  ;;  %v8301_v46 = vadd.f32 %v8300_v43, %v8139_v11  ;;  %v19294_v41 = vand.u32 4294901760, %v17125_v44  ;;  %19991 = vst [vmem:[#allocation28_spill] sm:$0xff] %v17170_v1  ;;  %v9731_v43 = vld [vmem:[%s19051_s2 + $0xf8] sm:$0xff]  ;;  %v17179_v11 = vsub.f32 %v17122_v17, %v19295_v38 }
 0x8af   :  { %9270 = vmatprep.mubr.f32.mxu0 %v19593_v50  ;;  %v17204_v47 = vand.u32 4294901760, %v9731_v43 }
 0x8b0   :  { %9046 = vmatmul.mubr.f32.vlgmr.msra.gmra.mxu1 %v17072_v15 }
 0x8b1   :  { %9163 = vmatpush1.msra.mxu1 %v8771_v26  ;;  %9196 = vmatprep.mubr.f32.mxu1 %v19593_v50  ;;  %v17141_v26 = vsub.f32 %v9742_v53, %v17116_v39 }
 0x8b4   :  { %9198 = vmatmul.mubr.f32.vlgmr.msra.gmra.mxu1 %v17066_v3 }
 0x8b5   :  { %9356 = vmatprep.mubr.f32.mxu1 %v19593_v50 }
 0x8b6   :  { %v8407_v13 = vpop.f32.mrf.mxu0 }
 0x8b7   :  { %v8408_v5 = vadd.f32 %v8407_v13, %v8299_v62  ;;  %v19292_v13 = vand.u32 4294901760, %v17141_v26  ;;  %v17188_v62 = vand.u32 4294901760, %v9734_v21 }
 0x8b8   :  { %v8409_v51 = vpop.f32.mrf.mxu0 }
 0x8b9   :  { %v8410_v58 = vadd.f32 %v8409_v51, %v8301_v46  ;;  %v17184_v51 = vsub.f32 %v17125_v44, %v19294_v41 }
 0x8bf   :  { %v8499_v12 = vpop.f32.mrf.mxu1 }
 0x8c0   :  { %v8500_v35 = vadd.f32 %v8499_v12, %v8408_v5  ;;  %v17186_v12 = vand.u32 4294901760, %v9736_v2  ;;  %v19291_v5 = vand.u32 4294901760, %v17151_v59 }
 0x8c1   :  { %v8501_v20 = vpop.f32.mrf.mxu1 }
 0x8c2   :  { %v8502_v48 = vadd.f32 %v8501_v20, %v8410_v58  ;;  %v17195_v20 = vand.u32 4294901760, %v9733_v55 }
 0x8ca   :  { %v8625_v23 = vpop.f32.mrf.mxu0 }
 0x8cb   :  { %v8626_v31 = vadd.f32 %v8625_v23, %v8500_v35  ;;  %v9730_v23 = vld [vmem:[%s19051_s2 + $0xf0] sm:$0xff]  ;;  %v17201_v35 = vsub.f32 %v17134_v54, %v19293_v61 }
 0x8cc   :  { %v8627_v45 = vpop.f32.mrf.mxu0  ;;  %v17215_v33 = vand.u32 4294901760, %v9730_v23 }
 0x8cd   :  { %v8628_v63 = vadd.f32 %v8627_v45, %v8502_v48  ;;  %v17212_v48 = vsub.f32 %v17141_v26, %v19292_v13 }
 0x8d2   :  { %v8715_v24 = vpop.f32.mrf.mxu1 }
 0x8d3   :  { %v8716_v29 = vadd.f32 %v8715_v24, %v8626_v31  ;;  %v19289_v31 = vand.u32 4294901760, %v17170_v1  ;;  %v9727_v24 = vld [vmem:[%s19051_s2 + $0xd8] sm:$0xff] }
 0x8d4   :  { %v8717_v56 = vpop.f32.mrf.mxu1 }
 0x8d5   :  { %v8722_v49 = vadd.f32 %v8716_v29, %v19988_v10  ;;  %v8718_v7 = vadd.f32 %v8717_v56, %v8628_v63  ;;  %v17223_v29 = vsub.f32 %v9736_v2, %v17186_v12  ;;  %v17226_v56 = vsub.f32 %v9734_v21, %v17188_v62  ;;  %v9713_v63 = vld [vmem:[%s19051_s2 + $0x68] sm:$0xff] }
 0x8d6   :  { %v17263_v2 = vsub.f32 %v17170_v1, %v19289_v31  ;;  %v17267_v21 = vsub.f32 %v9730_v23, %v17215_v33  ;;  %v9719_v23 = vld [vmem:[%s19051_s2 + $0x98] sm:$0xff] }
 0x8d7   :  { %v8726_v4 = vmax.f32 %v8722_v49, 0.0  ;;  %v8723_v6 = vadd.f32 %v8718_v7, %v19990_v19  ;;  %19992 = vst [vmem:[#allocation9_spill] sm:$0xff] %v17223_v29  ;;  %19993 = vst [vmem:[#allocation12_spill] sm:$0xff] %v17226_v56  ;;  %v17235_v49 = vsub.f32 %v17151_v59, %v19291_v5  ;;  %v17238_v7 = vsub.f32 %v9733_v55, %v17195_v20 }
 0x8d8   :  { %v17252_v19 = vsub.f32 %v9731_v43, %v17204_v47  ;;  %19997 = vst [vmem:[#allocation10_spill] sm:$0xff] %v17267_v21  ;;  %v17269_v55 = vand.u32 4294901760, %v9725_v57  ;;  %v19296_v43 = vand.u32 4294901760, %v17223_v29 }
 0x8d9   :  { %v17138_v14 = vand.u32 4294901760, %v8726_v4  ;;  %v8727_v25 = vmax.f32 %v8723_v6, 0.0  ;;  %19994 = vst [vmem:[#allocation26_spill] sm:$0xff] %v17238_v7  ;;  %v17254_v6 = vand.u32 4294901760, %v9727_v24 }
 0x8da   :  { %19995 = vst [vmem:[#allocation24_spill] sm:$0xff] %v17252_v19  ;;  %19998 = vst [vmem:[#allocation8_spill] sm:$0xff] %v17269_v55  ;;  %v19299_v13 = vand.u32 4294901760, %v17252_v19  ;;  %v17311_v5 = vsub.f32 %v9725_v57, %v17269_v55 }
 0x8db   :  { %v9319_v8 = vsub.f32 %v8726_v4, %v17138_v14  ;;  %v17148_v28 = vand.u32 4294901760, %v8727_v25  ;;  %19996 = vst [vmem:[#allocation18_spill] sm:$0xff] %v17254_v6  ;;  %v17299_v61 = vsub.f32 %v9727_v24, %v17254_v6  ;;  %v9715_v24 = vld [vmem:[%s19051_s2 + $0x78] sm:$0xff] }
 0x8dc   :  { %20004 = vst [vmem:[#allocation25_spill] sm:$0xff] %v17311_v5 }
 0x8dd   :  { %9235 = vmatprep.subr.mxu0 %v17148_v28  ;;  %v9313_v9 = vsub.f32 %v8727_v25, %v17148_v28  ;;  %v9320_v27 = vand.u32 4294901760, %v9319_v8  ;;  %v9722_v25 = vld [vmem:[%s19051_s2 + $0xb0] sm:$0xff]  ;;  %20002 = vst [vmem:[#allocation11_spill] sm:$0xff] %v17299_v61 }
 0x8de   :  { %9237 = vmatpush1.msra.mxu0 %v17138_v14  ;;  %v17289_v31 = vand.u32 4294901760, %v9722_v25 }
 0x8df   :  { %9276 = vmatmul.mubr.f32.vlgmr.msra.gmra.mxu0 %v17078_v22  ;;  %9396 = vmatprep.subr.mxu0 %v9313_v9  ;;  %v9314_v46 = vand.u32 4294901760, %v9313_v9  ;;  %v9321_v58 = vsub.f32 %v9319_v8, %v9320_v27  ;;  %v9728_v22 = vld [vmem:[%s19051_s2 + $0xe0] sm:$0xff] }
 0x8e0   :  { %9399 = vmatpush1.msra.mxu0 %v9319_v8  ;;  %9432 = vmatprep.mubr.f32.mxu0 %v19593_v50  ;;  %v17240_v0 = vand.u32 4294901760, %v9728_v22  ;;  %20001 = vst [vmem:[#allocation27_spill] sm:$0xff] %v17289_v31  ;;  %v17321_v8 = vsub.f32 %v17223_v29, %v19296_v43 }
 0x8e1   :  { %9550 = vmatprep.subr.mxu0 %v9314_v46  ;;  %v9315_v45 = vsub.f32 %v9313_v9, %v9314_v46  ;;  %v9322_v4 = vand.u32 4294901760, %v9321_v58  ;;  %v9721_v9 = vld [vmem:[%s19051_s2 + $0xa8] sm:$0xff]  ;;  %v19297_v46 = vand.u32 4294901760, %v17226_v56  ;;  %v17277_v58 = vand.u32 4294901760, %v9724_v60 }
 0x8e2   :  { %v17301_v41 = vand.u32 4294901760, %v9721_v9 }
 0x8e3   :  { %9435 = vmatmul.mubr.f32.vlgmr.msra.gmra.mxu0 %v17069_v36  ;;  %v9316_v10 = vand.u32 4294901760, %v9315_v45  ;;  %v17249_v36 = vsub.f32 %v17161_v18, %v19290_v42  ;;  %19999 = vst [vmem:[#allocation20_spill] sm:$0xff] %v17277_v58  ;;  %v9718_v42 = vld [vmem:[%s19051_s2 + $0x90] sm:$0xff]  ;;  %v17330_v57 = vsub.f32 %v9724_v60, %v17277_v58  ;;  %v17346_v60 = vsub.f32 %v9722_v25, %v17289_v31 }
 0x8e4   :  { %9554 = vmatpush1.msra.mxu0 %v9320_v27  ;;  %9587 = vmatprep.mubr.f32.mxu0 %v19593_v50  ;;  %20003 = vst [vmem:[#allocation19_spill] sm:$0xff] %v17301_v41  ;;  %v17313_v27 = vand.u32 4294901760, %v9719_v23  ;;  %v17332_v38 = vand.u32 4294901760, %v9718_v42  ;;  %v17359_v53 = vsub.f32 %v9721_v9, %v17301_v41  ;;  %v20012_v25 = vand.u32 4294901760, %v17179_v11  ;;  %v9712_v9 = vld [vmem:[%s19051_s2 + $0x60] sm:$0xff] }
 0x8e5   :  { %9317 = vmatprep.subr.mxu1 %v9316_v10  ;;  %9813 = vmatprep.subr.mxu0 %v17103_v37  ;;  %v19298_v10 = vand.u32 4294901760, %v17238_v7  ;;  %20006 = vst [vmem:[#allocation30_spill] sm:$0xff] %v17330_v57  ;;  %20008 = vst [vmem:[#allocation7_spill] sm:$0xff] %v17346_v60  ;;  %v10003_v11 = vand.u32 4294901760, %v17321_v8 }
 0x8e6   :  { %9323 = vmatpush1.msra.mxu1 %v9322_v4  ;;  %v17287_v4 = vsub.f32 %v9728_v22, %v17240_v0  ;;  %v9716_v22 = vld [vmem:[%s19051_s2 + $0x80] sm:$0xff]  ;;  %20005 = vst [vmem:[#allocation29_spill] sm:$0xff] %v17313_v27  ;;  %20007 = vst [vmem:[#allocation15_spill] sm:$0xff] %v17332_v38  ;;  %v17373_v32 = vsub.f32 %v9719_v23, %v17313_v27 }
 0x8e7   :  { %9358 = vmatmul.mubr.f32.vlgmr.msra.gmra.mxu1 %v17066_v3  ;;  %9472 = vmatprep.subr.mxu1 %v17148_v28  ;;  %v17341_v43 = vsub.f32 %v17238_v7, %v19298_v10  ;;  %v17348_v45 = vand.u32 4294901760, %v9716_v22  ;;  %20010 = vst [vmem:[#allocation13_spill] sm:$0xff] %v17359_v53  ;;  %v17375_v10 = vand.u32 4294901760, %v9713_v63  ;;  %v20025_v7 = vand.u32 4294901760, %v17212_v48 }
 0x8e8   :  { %20000 = vst [vmem:[#allocation14_spill] sm:$0xff] %v17287_v4  ;;  %9474 = vmatpush1.msra.mxu1 %v17138_v14  ;;  %9507 = vmatprep.mubr.f32.mxu1 %v19593_v50  ;;  %20014 = vst [vmem:[#allocation3_spill] sm:$0xff] %v17373_v32  ;;  %v20027_v48 = vand.u32 4294901760, %v17235_v49  ;;  %v20029_v49 = vand.u32 4294901760, %v17249_v36  ;;  %v20032_v36 = vand.u32 4294901760, %v17263_v2 }
 0x8e9   :  { %9626 = vmatprep.subr.mxu1 %v17148_v28  ;;  %9589 = vmatmul.mubr.f32.vlgmr.msra.gmra.mxu0 %v17066_v3  ;;  %v17326_v28 = vsub.f32 %v17226_v56, %v19297_v46  ;;  %20009 = vst [vmem:[#allocation6_spill] sm:$0xff] %v17348_v45  ;;  %v17361_v46 = vand.u32 4294901760, %v9715_v24  ;;  %v10015_v23 = vand.u32 4294901760, %v17341_v43  ;;  %v20019_v43 = vand.u32 4294901760, %v17299_v61  ;;  %v9704_v56 = vld [vmem:[%s19051_s2 + $0x20] sm:$0xff] }
 0x8ea   :  { %9815 = vmatpush1.msra.mxu0 %v17105_v16 }
 0x8eb   :  { %9511 = vmatmul.mubr.f32.vlgmr.msra.gmra.mxu1 %v17072_v15  ;;  %9817 = vmatprep.subr.mxu0 %v17110_v34  ;;  %v17355_v15 = vsub.f32 %v17252_v19, %v19299_v13  ;;  %20011 = vst [vmem:[#allocation23_spill] sm:$0xff] %v17361_v46  ;;  %v20016_v13 = vand.u32 4294901760, %v17287_v4  ;;  %v17412_v8 = vsub.f32 %v9715_v24, %v17361_v46 }
 0x8ec   :  { %9628 = vmatpush1.msra.mxu1 %v17138_v14  ;;  %9661 = vmatprep.mubr.f32.mxu1 %v19593_v50  ;;  %v20013_v14 = vand.u32 4294901760, %v17267_v21 }
 0x8ed   :  { %9962 = vmatprep.subr.mxu1 %v20012_v25  ;;  %9819 = vmatpush1.msra.mxu0 %v17116_v39  ;;  %v10009_v25 = vand.u32 4294901760, %v17326_v28  ;;  %v17392_v19 = vsub.f32 %v17287_v4, %v20016_v13  ;;  %v17397_v28 = vsub.f32 %v9716_v22, %v17348_v45  ;;  %20020 = vst [vmem:[#allocation32_spill] sm:$0xff] %v17412_v8  ;;  %v17414_v22 = vand.u32 4294901760, %v9712_v9  ;;  %v9709_v4 = vld [vmem:[%s19051_s2 + $0x48] sm:$0xff] }
 0x8ee   :  { %v17369_v50 = vsub.f32 %v17267_v21, %v20013_v14  ;;  %9821 = vmatprep.subr.mxu0 %v17131_v30  ;;  %v17385_v21 = vsub.f32 %v9718_v42, %v17332_v38  ;;  %v9710_v42 = vld [vmem:[%s19051_s2 + $0x50] sm:$0xff]  ;;  %v17407_v14 = vsub.f32 %v17299_v61, %v20019_v43  ;;  %v20023_v43 = vand.u32 4294901760, %v17311_v5 }
 0x8ef   :  { %9663 = vmatmul.mubr.f32.vlgmr.msra.gmra.mxu1 %v17066_v3  ;;  %9823 = vmatpush1.msra.mxu0 %v17136_v40  ;;  %20017 = vst [vmem:[#allocation31_spill] sm:$0xff] %v17397_v28  ;;  %v20018_v3 = vand.u32 4294901760, %v17184_v51  ;;  %20021 = vst [vmem:[#allocation33_spill] sm:$0xff] %v17414_v22  ;;  %v20022_v51 = vand.u32 4294901760, %v17201_v35  ;;  %v17430_v13 = vsub.f32 %v9713_v63, %v17375_v10  ;;  %v9707_v63 = vld [vmem:[%s19051_s2 + $0x38] sm:$0xff]  ;;  %v17457_v24 = vand.u32 4294901760, %v9709_v4 }
 0x8f0   :  { %20015 = vst [vmem:[#allocation22_spill] sm:$0xff] %v17385_v21  ;;  %9825 = vmatprep.subr.mxu0 %v17143_v52  ;;  %v17425_v61 = vsub.f32 %v17311_v5, %v20023_v43  ;;  %v10027_v35 = vand.u32 4294901760, %v17369_v50  ;;  %v17442_v5 = vand.u32 4294901760, %v9710_v42  ;;  %v20028_v50 = vand.u32 4294901760, %v17346_v60 }
 0x8f1   :  { %9968 = vmatpush1.msra.mxu1 %v20018_v3  ;;  %v10021_v3 = vand.u32 4294901760, %v17355_v15  ;;  %9827 = vmatpush1.msra.mxu0 %v17186_v12  ;;  %20024 = vst [vmem:[#allocation34_spill] sm:$0xff] %v17430_v13 }
 0x8f2   :  { %9974 = vmatprep.subr.mxu1 %v20022_v51  ;;  %v20026_v51 = vand.u32 4294901760, %v17330_v57  ;;  %9829 = vmatprep.subr.mxu0 %v17188_v62 }
 0x8f3   :  { %9980 = vmatpush1.msra.mxu1 %v20025_v7  ;;  %v10033_v7 = vand.u32 4294901760, %v17392_v19  ;;  %9831 = vmatpush1.msra.mxu0 %v17195_v20  ;;  %v10039_v19 = vand.u32 4294901760, %v17407_v14  ;;  %v10045_v14 = vand.u32 4294901760, %v17425_v61  ;;  %v20034_v61 = vand.u32 4294901760, %v17385_v21 }
 0x8f4   :  { %v17438_v15 = vsub.f32 %v17330_v57, %v20026_v51  ;;  %9986 = vmatprep.subr.mxu1 %v20027_v48  ;;  %v17453_v51 = vsub.f32 %v17346_v60, %v20028_v50  ;;  %v9706_v57 = vld [vmem:[%s19051_s2 + $0x30] sm:$0xff]  ;;  %v20030_v48 = vand.u32 4294901760, %v17359_v53  ;;  %9833 = vmatprep.subr.mxu0 %v17204_v47  ;;  %v17473_v60 = vsub.f32 %v9712_v9, %v17414_v22 }
 0x8f5   :  { %9992 = vmatpush1.msra.mxu1 %v20029_v49  ;;  %v20033_v49 = vand.u32 4294901760, %v17373_v32  ;;  %9835 = vmatpush1.msra.mxu0 %v17215_v33  ;;  %v17488_v9 = vand.u32 4294901760, %v9707_v63  ;;  %v17503_v43 = vand.u32 4294901760, %v9706_v57 }
 0x8f6   :  { %v17468_v50 = vsub.f32 %v17359_v53, %v20030_v48  ;;  %20031 = vst [vmem:[#allocation35_spill] sm:$0xff] %v17473_v60  ;;  %9998 = vmatprep.subr.mxu1 %v20032_v36  ;;  %v9703_v53 = vld [vmem:[%s19051_s2 + $0x18] sm:$0xff]  ;;  %v10051_v2 = vand.u32 4294901760, %v17438_v15  ;;  %v17497_v36 = vsub.f32 %v17385_v21, %v20034_v61  ;;  %9837 = vmatprep.subr.mxu0 %v17240_v0  ;;  %v20037_v15 = vand.u32 4294901760, %v17397_v28  ;;  %v9700_v21 = vld [vmem:[%s19051_s2] sm:$0xff] }
 0x8f7   :  { %v17484_v48 = vsub.f32 %v17373_v32, %v20033_v49  ;;  %10004 = vmatpush1.msra.mxu1 %v10003_v11  ;;  %v17501_v49 = vsub.f32 %v9710_v42, %v17442_v5  ;;  %20036 = vst [vmem:[#allocation37_spill] sm:$0xff] %v17503_v43  ;;  %v9701_v32 = vld [vmem:[%s19051_s2 + $0x8] sm:$0xff]  ;;  %v10057_v11 = vand.u32 4294901760, %v17453_v51  ;;  %9839 = vmatpush1.msra.mxu0 %v17254_v6  ;;  %v17518_v42 = vand.u32 4294901760, %v9704_v56 }
 0x8f8   :  { %10010 = vmatprep.subr.mxu1 %v10009_v25  ;;  %v17512_v29 = vsub.f32 %v17397_v28, %v20037_v15  ;;  %v17516_v61 = vsub.f32 %v9709_v4, %v17457_v24  ;;  %v10063_v25 = vand.u32 4294901760, %v17468_v50  ;;  %v20040_v51 = vand.u32 4294901760, %v17412_v8  ;;  %9841 = vmatprep.subr.mxu0 %v17269_v55  ;;  %v9794_v28 = vld [vmem:[%s19051_s2 + $0x2f0] sm:$0xff] }
 0x8f9   :  { %20035 = vst [vmem:[#allocation36_spill] sm:$0xff] %v17501_v49  ;;  %20039 = vst [vmem:[#allocation39_spill] sm:$0xff] %v17518_v42  ;;  %10016 = vmatpush1.msra.mxu1 %v10015_v23  ;;  %v17531_v4 = vand.u32 4294901760, %v9703_v53  ;;  %v10069_v23 = vand.u32 4294901760, %v17484_v48  ;;  %v20042_v50 = vand.u32 4294901760, %v17430_v13  ;;  %9843 = vmatpush1.msra.mxu0 %v17277_v58  ;;  %v17546_v15 = vand.u32 4294901760, %v9701_v32 }
 0x8fa   :  { %20038 = vst [vmem:[#allocation38_spill] sm:$0xff] %v17516_v61  ;;  %v17527_v1 = vsub.f32 %v17412_v8, %v20040_v51  ;;  %10022 = vmatprep.subr.mxu1 %v10021_v3  ;;  %v17544_v51 = vsub.f32 %v9707_v63, %v17488_v9  ;;  %v9793_v8 = vld [vmem:[%s19051_s2 + $0x2e8] sm:$0xff]  ;;  %v10075_v3 = vand.u32 4294901760, %v17497_v36  ;;  %9845 = vmatprep.subr.mxu0 %v17289_v31  ;;  %v9791_v63 = vld [vmem:[%s19051_s2 + $0x2d8] sm:$0xff]  ;;  %v10081_v58 = vand.u32 4294901760, %v17512_v29 }
 0x8fb   :  { %20041 = vst [vmem:[#allocation40_spill] sm:$0xff] %v17531_v4  ;;  %v17540_v6 = vsub.f32 %v17430_v13, %v20042_v50  ;;  %10028 = vmatpush1.msra.mxu1 %v10027_v35  ;;  %v17555_v50 = vsub.f32 %v9706_v57, %v17503_v43  ;;  %v17557_v13 = vand.u32 4294901760, %v9700_v21  ;;  %9847 = vmatpush1.msra.mxu0 %v17301_v41  ;;  %v17568_v48 = vand.u32 4294901760, %v9794_v28  ;;  %v9790_v57 = vld [vmem:[%s19051_s2 + $0x2d0] sm:$0xff]  ;;  %v9788_v41 = vld [vmem:[%s19051_s2 + $0x2c0] sm:$0xff] }
 0x8fc   :  { %20043 = vst [vmem:[#allocation41_spill] sm:$0xff] %v17544_v51  ;;  %10034 = vmatprep.subr.mxu1 %v10033_v7  ;;  %v17566_v36 = vsub.f32 %v9704_v56, %v17518_v42  ;;  %v10087_v31 = vand.u32 4294901760, %v17527_v1  ;;  %v20048_v7 = vand.u32 4294901760, %v17473_v60  ;;  %9849 = vmatprep.subr.mxu0 %v17313_v27  ;;  %v17579_v35 = vsub.f32 %v9703_v53, %v17531_v4  ;;  %v9787_v53 = vld [vmem:[%s19051_s2 + $0x2b8] sm:$0xff] }
 0x8fd   :  { %20044 = vst [vmem:[#allocation42_spill] sm:$0xff] %v17555_v50  ;;  %20045 = vst [vmem:[#allocation43_spill] sm:$0xff] %v17557_v13  ;;  %10040 = vmatpush1.msra.mxu1 %v10039_v19  ;;  %v17581_v56 = vand.u32 4294901760, %v9793_v8  ;;  %v10093_v19 = vand.u32 4294901760, %v17540_v6  ;;  %9851 = vmatpush1.msra.mxu0 %v17332_v38  ;;  %v20053_v27 = vand.u32 4294901760, %v17501_v49  ;;  %v17603_v1 = vsub.f32 %v9700_v21, %v17557_v13  ;;  %v9785_v38 = vld [vmem:[%s19051_s2 + $0x2a8] sm:$0xff] }
 0x8fe   :  { %20046 = vst [vmem:[#allocation44_spill] sm:$0xff] %v17566_v36  ;;  %20047 = vst [vmem:[#allocation45_spill] sm:$0xff] %v17568_v48  ;;  %v10098_v29 = vsub.f32 %v17473_v60, %v20048_v7  ;;  %10046 = vmatprep.subr.mxu1 %v10045_v14  ;;  %v17590_v7 = vsub.f32 %v9701_v32, %v17546_v15  ;;  %v17592_v60 = vand.u32 4294901760, %v9791_v63  ;;  %9853 = vmatprep.subr.mxu0 %v17348_v45 }
 0x8ff   :  { %20049 = vst [vmem:[#allocation46_spill] sm:$0xff] %v17579_v35  ;;  %20050 = vst [vmem:[#allocation47_spill] sm:$0xff] %v17581_v56  ;;  %10052 = vmatpush1.msra.mxu1 %v10051_v2  ;;  %v10104_v14 = vsub.f32 %v17501_v49, %v20053_v27  ;;  %v17605_v32 = vand.u32 4294901760, %v9790_v57  ;;  %v20056_v2 = vand.u32 4294901760, %v17516_v61  ;;  %9855 = vmatpush1.msra.mxu0 %v17361_v46  ;;  %v17618_v21 = vand.u32 4294901760, %v9788_v41  ;;  %v9784_v49 = vld [vmem:[%s19051_s2 + $0x2a0] sm:$0xff] }
 0x900   :  { %20051 = vst [vmem:[#allocation48_spill] sm:$0xff] %v17590_v7  ;;  %20052 = vst [vmem:[#allocation49_spill] sm:$0xff] %v17592_v60  ;;  %10058 = vmatprep.subr.mxu1 %v10057_v11  ;;  %v17616_v6 = vsub.f32 %v9794_v28, %v17568_v48  ;;  %v10099_v45 = vand.u32 4294901760, %v10098_v29  ;;  %9857 = vmatprep.subr.mxu0 %v17375_v10  ;;  %v17628_v27 = vand.u32 4294901760, %v9787_v53  ;;  %v20061_v28 = vand.u32 4294901760, %v17544_v51 }
 0x901   :  { %20054 = vst [vmem:[#allocation50_spill] sm:$0xff] %v17603_v1  ;;  %20055 = vst [vmem:[#allocation51_spill] sm:$0xff] %v17605_v32  ;;  %v10110_v55 = vsub.f32 %v17516_v61, %v20056_v2  ;;  %10064 = vmatpush1.msra.mxu1 %v10063_v25  ;;  %v17626_v2 = vsub.f32 %v9793_v8, %v17581_v56  ;;  %9859 = vmatpush1.msra.mxu0 %v17414_v22  ;;  %v17638_v29 = vand.u32 4294901760, %v9785_v38 }
 0x902   :  { %20057 = vst [vmem:[#allocation52_spill] sm:$0xff] %v17616_v6  ;;  %20058 = vst [vmem:[#allocation53_spill] sm:$0xff] %v17618_v21  ;;  %10070 = vmatprep.subr.mxu1 %v10069_v23  ;;  %v10116_v61 = vsub.f32 %v17544_v51, %v20061_v28  ;;  %v17636_v25 = vsub.f32 %v9791_v63, %v17592_v60  ;;  %v20064_v8 = vand.u32 4294901760, %v17555_v50  ;;  %9861 = vmatprep.subr.mxu0 %v17442_v5 }
 0x903   :  { %20059 = vst [vmem:[#allocation54_spill] sm:$0xff] %v17626_v2  ;;  %20060 = vst [vmem:[#allocation55_spill] sm:$0xff] %v17628_v27  ;;  %10076 = vmatpush1.msra.mxu1 %v10075_v3  ;;  %v17646_v28 = vsub.f32 %v9790_v57, %v17605_v32  ;;  %v17648_v46 = vand.u32 4294901760, %v9784_v49  ;;  %v10105_v51 = vand.u32 4294901760, %v10104_v14  ;;  %v20067_v63 = vand.u32 4294901760, %v17566_v36  ;;  %9863 = vmatpush1.msra.mxu0 %v17457_v24 }
 0x904   :  { %20062 = vst [vmem:[#allocation56_spill] sm:$0xff] %v17636_v25  ;;  %20063 = vst [vmem:[#allocation57_spill] sm:$0xff] %v17638_v29  ;;  %v10122_v11 = vsub.f32 %v17555_v50, %v20064_v8  ;;  %10082 = vmatprep.subr.mxu1 %v10081_v58  ;;  %v17656_v8 = vsub.f32 %v9788_v41, %v17618_v21  ;;  %v10111_v23 = vand.u32 4294901760, %v10110_v55  ;;  %v20069_v57 = vand.u32 4294901760, %v17579_v35 }
 0x905   :  { %20065 = vst [vmem:[#allocation58_spill] sm:$0xff] %v17646_v28  ;;  %20066 = vst [vmem:[#allocation59_spill] sm:$0xff] %v17648_v46  ;;  %v10128_v22 = vsub.f32 %v17566_v36, %v20067_v63  ;;  %10088 = vmatpush1.msra.mxu1 %v10087_v31  ;;  %9865 = vmatprep.subr.mxu0 %v17488_v9  ;;  %v17664_v14 = vsub.f32 %v9787_v53, %v17628_v27  ;;  %v10117_v63 = vand.u32 4294901760, %v10116_v61 }
 0x906   :  { %20068 = vst [vmem:[#allocation60_spill] sm:$0xff] %v17656_v8  ;;  %v10134_v50 = vsub.f32 %v17579_v35, %v20069_v57  ;;  %10094 = vmatprep.subr.mxu1 %v10093_v19  ;;  %v20071_v3 = vand.u32 4294901760, %v17590_v7  ;;  %9867 = vmatpush1.msra.mxu0 %v17503_v43  ;;  %v17672_v55 = vsub.f32 %v9785_v38, %v17638_v29  ;;  %v10123_v57 = vand.u32 4294901760, %v10122_v11 }
 0x907   :  { %20070 = vst [vmem:[#allocation61_spill] sm:$0xff] %v17664_v14  ;;  %10100 = vmatpush1.msra.mxu1 %v10099_v45  ;;  %v20073_v58 = vand.u32 4294901760, %v17603_v1  ;;  %9869 = vmatprep.subr.mxu0 %v17518_v42  ;;  %v17680_v61 = vsub.f32 %v9784_v49, %v17648_v46  ;;  %v20075_v31 = vand.u32 4294901760, %v17616_v6  ;;  %v19369_v45 = vand.u32 4294901760, %v17656_v8 }
 0x908   :  { %v10140_v41 = vsub.f32 %v17590_v7, %v20071_v3  ;;  %20072 = vst [vmem:[#allocation62_spill] sm:$0xff] %v17672_v55  ;;  %10106 = vmatprep.subr.mxu1 %v10105_v51  ;;  %v10129_v3 = vand.u32 4294901760, %v10128_v22  ;;  %9871 = vmatpush1.msra.mxu0 %v17531_v4  ;;  %v10135_v11 = vand.u32 4294901760, %v10134_v50  ;;  %v20077_v49 = vand.u32 4294901760, %v17636_v25 }
 0x909   :  { %v10146_v53 = vsub.f32 %v17603_v1, %v20073_v58  ;;  %20074 = vst [vmem:[#allocation63_spill] sm:$0xff] %v17680_v61  ;;  %v10152_v38 = vsub.f32 %v17616_v6, %v20075_v31  ;;  %10112 = vmatpush1.msra.mxu1 %v10111_v23  ;;  %v20076_v58 = vand.u32 4294901760, %v17626_v2  ;;  %9873 = vmatprep.subr.mxu0 %v17546_v15  ;;  %v19368_v31 = vand.u32 4294901760, %v17672_v55 }
 0x90a   :  { %10118 = vmatprep.subr.mxu1 %v10117_v63  ;;  %v10141_v22 = vand.u32 4294901760, %v10140_v41  ;;  %v10164_v51 = vsub.f32 %v17636_v25, %v20077_v49  ;;  %9875 = vmatpush1.msra.mxu0 %v17557_v13  ;;  %v20078_v23 = vand.u32 4294901760, %v17646_v28  ;;  %v19367_v1 = vand.u32 4294901760, %v17680_v61 }
 0x90b   :  { %v10158_v19 = vsub.f32 %v17626_v2, %v20076_v58  ;;  %10124 = vmatpush1.msra.mxu1 %v10123_v57  ;;  %v10147_v50 = vand.u32 4294901760, %v10146_v53  ;;  %9877 = vmatprep.subr.mxu0 %v17568_v48  ;;  %v10153_v63 = vand.u32 4294901760, %v10152_v38  ;;  %v10176_v41 = vsub.f32 %v17656_v8, %v19369_v45 }
 0x90c   :  { %v10170_v58 = vsub.f32 %v17646_v28, %v20078_v23  ;;  %10130 = vmatprep.subr.mxu1 %v10129_v3  ;;  %9879 = vmatpush2.msra.mxu0 %v17581_v56  ;;  %v20079_v57 = vand.u32 4294901760, %v17664_v14  ;;  %v10165_v23 = vand.u32 4294901760, %v10164_v51  ;;  %v10188_v3 = vsub.f32 %v17672_v55, %v19368_v31 }
 0x90d   :  { %10136 = vmatpush1.msra.mxu1 %v10135_v11  ;;  %v10159_v49 = vand.u32 4294901760, %v10158_v19  ;;  %9881 = vmatprep.subr.mxu0 %v17592_v60  ;;  %v10194_v19 = vsub.f32 %v17680_v61, %v19367_v1  ;;  %v10177_v11 = vand.u32 4294901760, %v10176_v41  ;;  %v9781_v41 = vld [vmem:[%s19051_s2 + $0x288] sm:$0xff] }
 0x90e   :  { %v10182_v53 = vsub.f32 %v17664_v14, %v20079_v57  ;;  %10142 = vmatprep.subr.mxu1 %v10141_v22  ;;  %9883 = vmatpush2.msra.mxu0 %v17605_v32  ;;  %v10171_v38 = vand.u32 4294901760, %v10170_v58  ;;  %v10189_v51 = vand.u32 4294901760, %v10188_v3  ;;  %v9782_v58 = vld [vmem:[%s19051_s2 + $0x290] sm:$0xff]  ;;  %v9779_v57 = vld [vmem:[%s19051_s2 + $0x278] sm:$0xff] }
 0x90f   :  { %10148 = vmatpush1.msra.mxu1 %v10147_v50  ;;  %9885 = vmatprep.subr.mxu0 %v17618_v21  ;;  %v10195_v50 = vand.u32 4294901760, %v10194_v19  ;;  %v9778_v3 = vld [vmem:[%s19051_s2 + $0x270] sm:$0xff] }
 0x910   :  { %10154 = vmatprep.subr.mxu1 %v10153_v63  ;;  %9887 = vmatpush2.msra.mxu0 %v17628_v27  ;;  %v10183_v22 = vand.u32 4294901760, %v10182_v53  ;;  %v17724_v63 = vand.u32 4294901760, %v9782_v58  ;;  %v17746_v19 = vand.u32 4294901760, %v9778_v3 }
 0x911   :  { %10160 = vmatpush2.msra.mxu1 %v10159_v49  ;;  %9889 = vmatprep.subr.mxu0 %v17638_v29  ;;  %v17729_v49 = vand.u32 4294901760, %v9781_v41 }
 0x912   :  { %10166 = vmatprep.subr.mxu1 %v10165_v23  ;;  %9891 = vmatpush2.msra.mxu0 %v17648_v46  ;;  %20080 = vst [vmem:[#allocation64_spill] sm:$0xff] %v17724_v63  ;;  %v17735_v53 = vsub.f32 %v9782_v58, %v17724_v63  ;;  %v17737_v23 = vand.u32 4294901760, %v9779_v57  ;;  %20085 = vst [vmem:[#allocation69_spill] sm:$0xff] %v17746_v19  ;;  %v9775_v58 = vld [vmem:[%s19051_s2 + $0x258] sm:$0xff]  ;;  %v17764_v1 = vsub.f32 %v9778_v3, %v17746_v19  ;;  %v9772_v3 = vld [vmem:[%s19051_s2 + $0x240] sm:$0xff] }
 0x913   :  { %10172 = vmatpush2.msra.mxu1 %v10171_v38  ;;  %20081 = vst [vmem:[#allocation65_spill] sm:$0xff] %v17729_v49  ;;  %9893 = vmatprep.subr.mxu0 %v17724_v63  ;;  %v17744_v38 = vsub.f32 %v9781_v41, %v17729_v49  ;;  %v17766_v31 = vand.u32 4294901760, %v9775_v58  ;;  %v17792_v61 = vand.u32 4294901760, %v9772_v3 }
 0x914   :  { %10178 = vmatprep.subr.mxu1 %v10177_v11  ;;  %20082 = vst [vmem:[#allocation66_spill] sm:$0xff] %v17735_v53  ;;  %20083 = vst [vmem:[#allocation67_spill] sm:$0xff] %v17737_v23  ;;  %v9776_v11 = vld [vmem:[%s19051_s2 + $0x260] sm:$0xff]  ;;  %9895 = vmatpush2.msra.mxu0 %v17729_v49 }
 0x915   :  { %10184 = vmatpush2.msra.mxu1 %v10183_v22  ;;  %20084 = vst [vmem:[#allocation68_spill] sm:$0xff] %v17744_v38  ;;  %v19380_v22 = vand.u32 4294901760, %v17735_v53  ;;  %9897 = vmatprep.subr.mxu0 %v17737_v23  ;;  %20088 = vst [vmem:[#allocation72_spill] sm:$0xff] %v17764_v1  ;;  %v20092_v14 = vand.u32 4294901760, %v17744_v38 }
 0x916   :  { %10190 = vmatprep.subr.mxu1 %v10189_v51  ;;  %v17754_v51 = vsub.f32 %v9779_v57, %v17737_v23  ;;  %20089 = vst [vmem:[#allocation73_spill] sm:$0xff] %v17766_v31  ;;  %v9773_v57 = vld [vmem:[%s19051_s2 + $0x248] sm:$0xff]  ;;  %9899 = vmatpush2.msra.mxu0 %v17746_v19  ;;  %20094 = vst [vmem:[#allocation77_spill] sm:$0xff] %v17792_v61  ;;  %v20097_v23 = vand.u32 4294901760, %v17764_v1 }
 0x917   :  { %10196 = vmatpush2.msra.mxu1 %v10195_v50  ;;  %v17756_v50 = vand.u32 4294901760, %v9776_v11  ;;  %v10200_v45 = vsub.f32 %v17735_v53, %v19380_v22  ;;  %v17779_v41 = vand.u32 4294901760, %v9773_v57  ;;  %v10206_v8 = vsub.f32 %v17744_v38, %v20092_v14 }
 0x918   :  { %20086 = vst [vmem:[#allocation70_spill] sm:$0xff] %v17754_v51  ;;  %v17790_v22 = vsub.f32 %v9775_v58, %v17766_v31  ;;  %v9769_v58 = vld [vmem:[%s19051_s2 + $0x228] sm:$0xff] }
 0x919   :  { %20087 = vst [vmem:[#allocation71_spill] sm:$0xff] %v17756_v50  ;;  %v17777_v55 = vsub.f32 %v9776_v11, %v17756_v50  ;;  %20091 = vst [vmem:[#allocation75_spill] sm:$0xff] %v17779_v41  ;;  %9901 = vmatprep.subr.mxu0 %v17756_v50  ;;  %v9770_v11 = vld [vmem:[%s19051_s2 + $0x230] sm:$0xff]  ;;  %v10201_v53 = vand.u32 4294901760, %v10200_v45  ;;  %v20095_v50 = vand.u32 4294901760, %v17754_v51  ;;  %v17803_v19 = vsub.f32 %v9773_v57, %v17779_v41  ;;  %v9767_v57 = vld [vmem:[%s19051_s2 + $0x218] sm:$0xff] }
 0x91a   :  { %20093 = vst [vmem:[#allocation76_spill] sm:$0xff] %v17790_v22  ;;  %9903 = vmatpush2.msra.mxu0 %v17766_v31  ;;  %v10207_v38 = vand.u32 4294901760, %v10206_v8  ;;  %v10218_v45 = vsub.f32 %v17764_v1, %v20097_v23  ;;  %v17824_v23 = vand.u32 4294901760, %v9770_v11  ;;  %v20101_v1 = vand.u32 4294901760, %v17790_v22 }
 0x91b   :  { %20090 = vst [vmem:[#allocation74_spill] sm:$0xff] %v17777_v55  ;;  %v10212_v28 = vsub.f32 %v17754_v51, %v20095_v50  ;;  %20096 = vst [vmem:[#allocation78_spill] sm:$0xff] %v17803_v19  ;;  %9905 = vmatprep.subr.mxu0 %v17779_v41  ;;  %v17814_v50 = vsub.f32 %v9772_v3, %v17792_v61  ;;  %10202 = vmatprep.subr.mxu1 %v10201_v53  ;;  %v20099_v51 = vand.u32 4294901760, %v17777_v55  ;;  %v9766_v3 = vld [vmem:[%s19051_s2 + $0x210] sm:$0xff] }
 0x91c   :  { %9907 = vmatpush2.msra.mxu0 %v17792_v61  ;;  %20100 = vst [vmem:[#allocation80_spill] sm:$0xff] %v17824_v23  ;;  %10208 = vmatpush2.msra.mxu1 %v10207_v38  ;;  %v10219_v31 = vand.u32 4294901760, %v10218_v45  ;;  %v10230_v61 = vsub.f32 %v17790_v22, %v20101_v1  ;;  %v17833_v53 = vand.u32 4294901760, %v9769_v58  ;;  %v17842_v38 = vsub.f32 %v9770_v11, %v17824_v23  ;;  %v9763_v1 = vld [vmem:[%s19051_s2 + $0x1f8] sm:$0xff]  ;;  %v9761_v11 = vld [vmem:[%s19051_s2 + $0x1e8] sm:$0xff] }
 0x91d   :  { %20098 = vst [vmem:[#allocation79_spill] sm:$0xff] %v17814_v50  ;;  %v10213_v14 = vand.u32 4294901760, %v10212_v28  ;;  %v10224_v8 = vsub.f32 %v17777_v55, %v20099_v51  ;;  %v9764_v51 = vld [vmem:[%s19051_s2 + $0x200] sm:$0xff]  ;;  %v20103_v55 = vand.u32 4294901760, %v17803_v19  ;;  %v17844_v45 = vand.u32 4294901760, %v9767_v57  ;;  %9909 = vmatprep.subr.mxu0 %v17824_v23 }
 0x91e   :  { %20102 = vst [vmem:[#allocation81_spill] sm:$0xff] %v17833_v53  ;;  %20104 = vst [vmem:[#allocation82_spill] sm:$0xff] %v17842_v38  ;;  %v10231_v28 = vand.u32 4294901760, %v10230_v61  ;;  %v17854_v22 = vsub.f32 %v9769_v58, %v17833_v53  ;;  %9911 = vmatpush2.msra.mxu0 %v17833_v53  ;;  %v17866_v23 = vand.u32 4294901760, %v9764_v51  ;;  %v9760_v58 = vld [vmem:[%s19051_s2 + $0x1e0] sm:$0xff] }
 0x91f   :  { %10214 = vmatprep.subr.mxu1 %v10213_v14  ;;  %v10225_v41 = vand.u32 4294901760, %v10224_v8  ;;  %v10236_v25 = vsub.f32 %v17803_v19, %v20103_v55  ;;  %20105 = vst [vmem:[#allocation83_spill] sm:$0xff] %v17844_v45  ;;  %v20106_v14 = vand.u32 4294901760, %v17814_v50  ;;  %v17856_v55 = vand.u32 4294901760, %v9766_v3  ;;  %9913 = vmatprep.subr.mxu0 %v17844_v45 }
 0x920   :  { %10220 = vmatpush2.msra.mxu1 %v10219_v31  ;;  %20107 = vst [vmem:[#allocation84_spill] sm:$0xff] %v17854_v22  ;;  %v19417_v31 = vand.u32 4294901760, %v17842_v38  ;;  %v17864_v61 = vsub.f32 %v9767_v57, %v17844_v45  ;;  %20110 = vst [vmem:[#allocation87_spill] sm:$0xff] %v17866_v23  ;;  %v17884_v45 = vsub.f32 %v9764_v51, %v17866_v23  ;;  %v9758_v51 = vld [vmem:[%s19051_s2 + $0x1d0] sm:$0xff] }
 0x921   :  { %v10242_v8 = vsub.f32 %v17814_v50, %v20106_v14  ;;  %20108 = vst [vmem:[#allocation85_spill] sm:$0xff] %v17856_v55  ;;  %10226 = vmatprep.subr.mxu1 %v10225_v41  ;;  %v10237_v19 = vand.u32 4294901760, %v10236_v25  ;;  %v19420_v50 = vand.u32 4294901760, %v17854_v22  ;;  %v17874_v41 = vsub.f32 %v9766_v3, %v17856_v55  ;;  %9915 = vmatpush2.msra.mxu0 %v17856_v55 }
 0x922   :  { %20109 = vst [vmem:[#allocation86_spill] sm:$0xff] %v17864_v61  ;;  %10232 = vmatpush2.msra.mxu1 %v10231_v28  ;;  %v17876_v25 = vand.u32 4294901760, %v9763_v1  ;;  %v10248_v57 = vsub.f32 %v17842_v38, %v19417_v31  ;;  %20113 = vst [vmem:[#allocation90_spill] sm:$0xff] %v17884_v45  ;;  %v17886_v28 = vand.u32 4294901760, %v9761_v11  ;;  %9917 = vmatprep.subr.mxu0 %v17866_v23  ;;  %v17896_v31 = vand.u32 4294901760, %v9760_v58 }
 0x923   :  { %v10243_v14 = vand.u32 4294901760, %v10242_v8  ;;  %20111 = vst [vmem:[#allocation88_spill] sm:$0xff] %v17874_v41  ;;  %10238 = vmatprep.subr.mxu1 %v10237_v19  ;;  %v10254_v3 = vsub.f32 %v17854_v22, %v19420_v50  ;;  %v20119_v23 = vand.u32 4294901760, %v17874_v41 }
 0x924   :  { %20112 = vst [vmem:[#allocation89_spill] sm:$0xff] %v17876_v25  ;;  %20114 = vst [vmem:[#allocation91_spill] sm:$0xff] %v17886_v28  ;;  %v17894_v8 = vsub.f32 %v9763_v1, %v17876_v25  ;;  %9919 = vmatpush2.msra.mxu0 %v17876_v25  ;;  %v10249_v53 = vand.u32 4294901760, %v10248_v57  ;;  %v17907_v19 = vsub.f32 %v9761_v11, %v17886_v28  ;;  %v9757_v1 = vld [vmem:[%s19051_s2 + $0x1c8] sm:$0xff]  ;;  %v9755_v11 = vld [vmem:[%s19051_s2 + $0x1b8] sm:$0xff] }
 0x925   :  { %10244 = vmatpush2.msra.mxu1 %v10243_v14  ;;  %20116 = vst [vmem:[#allocation93_spill] sm:$0xff] %v17896_v31  ;;  %v20117_v14 = vand.u32 4294901760, %v17864_v61  ;;  %9921 = vmatprep.subr.mxu0 %v17886_v28  ;;  %v10255_v22 = vand.u32 4294901760, %v10254_v3  ;;  %v10266_v57 = vsub.f32 %v17874_v41, %v20119_v23  ;;  %v17928_v23 = vand.u32 4294901760, %v9758_v51 }
 0x926   :  { %20115 = vst [vmem:[#allocation92_spill] sm:$0xff] %v17894_v8  ;;  %20118 = vst [vmem:[#allocation94_spill] sm:$0xff] %v17907_v19  ;;  %9923 = vmatpush2.msra.mxu0 %v17896_v31  ;;  %10250 = vmatprep.subr.mxu1 %v10249_v53  ;;  %v19441_v28 = vand.u32 4294901760, %v17907_v19  ;;  %v20123_v41 = vand.u32 4294901760, %v17894_v8  ;;  %v17945_v49 = vand.u32 4294901760, %v9755_v11 }
 0x927   :  { %v10260_v38 = vsub.f32 %v17864_v61, %v20117_v14  ;;  %v17918_v14 = vsub.f32 %v9760_v58, %v17896_v31  ;;  %v20121_v61 = vand.u32 4294901760, %v17884_v45  ;;  %20122 = vst [vmem:[#allocation96_spill] sm:$0xff] %v17928_v23  ;;  %v9754_v58 = vld [vmem:[%s19051_s2 + $0x1b0] sm:$0xff]  ;;  %10256 = vmatpush2.msra.mxu1 %v10255_v22  ;;  %v10267_v25 = vand.u32 4294901760, %v10266_v57  ;;  %v9752_v22 = vld [vmem:[%s19051_s2 + $0x1a0] sm:$0xff]  ;;  %9925 = vmatprep.subr.mxu0 %v17928_v23 }
 0x928   :  { %v10278_v31 = vsub.f32 %v17894_v8, %v20123_v41  ;;  %v17943_v55 = vsub.f32 %v9758_v51, %v17928_v23  ;;  %20126 = vst [vmem:[#allocation99_spill] sm:$0xff] %v17945_v49  ;;  %v9751_v51 = vld [vmem:[%s19051_s2 + $0x198] sm:$0xff] }
 0x929   :  { %20120 = vst [vmem:[#allocation95_spill] sm:$0xff] %v17918_v14  ;;  %v10261_v50 = vand.u32 4294901760, %v10260_v38  ;;  %v10272_v3 = vsub.f32 %v17884_v45, %v20121_v61  ;;  %v19442_v53 = vand.u32 4294901760, %v17918_v14  ;;  %v17937_v38 = vand.u32 4294901760, %v9757_v1 }
 0x92a   :  { %v10284_v45 = vsub.f32 %v17907_v19, %v19441_v28  ;;  %20125 = vst [vmem:[#allocation98_spill] sm:$0xff] %v17943_v55  ;;  %v10279_v41 = vand.u32 4294901760, %v10278_v31  ;;  %v17965_v31 = vsub.f32 %v9755_v11, %v17945_v49  ;;  %v17972_v19 = vand.u32 4294901760, %v9752_v22 }
 0x92b   :  { %20124 = vst [vmem:[#allocation97_spill] sm:$0xff] %v17937_v38  ;;  %10262 = vmatprep.subr.mxu1 %v10261_v50  ;;  %v10273_v61 = vand.u32 4294901760, %v10272_v3  ;;  %v10290_v50 = vsub.f32 %v17918_v14, %v19442_v53  ;;  %v17955_v57 = vsub.f32 %v9757_v1, %v17937_v38  ;;  %v17957_v3 = vand.u32 4294901760, %v9754_v58  ;;  %9927 = vmatpush2.msra.mxu0 %v17937_v38 }
 0x92c   :  { %10268 = vmatpush2.msra.mxu1 %v10267_v25  ;;  %v10285_v28 = vand.u32 4294901760, %v10284_v45  ;;  %v19449_v25 = vand.u32 4294901760, %v17943_v55  ;;  %20129 = vst [vmem:[#allocation102_spill] sm:$0xff] %v17965_v31  ;;  %9929 = vmatprep.subr.mxu0 %v17945_v49  ;;  %20131 = vst [vmem:[#allocation104_spill] sm:$0xff] %v17972_v19  ;;  %v9749_v45 = vld [vmem:[%s19051_s2 + $0x188] sm:$0xff] }
 0x92d   :  { %20127 = vst [vmem:[#allocation100_spill] sm:$0xff] %v17955_v57  ;;  %20128 = vst [vmem:[#allocation101_spill] sm:$0xff] %v17957_v3  ;;  %10274 = vmatprep.subr.mxu1 %v10273_v61  ;;  %v10291_v1 = vand.u32 4294901760, %v10290_v50  ;;  %v19454_v53 = vand.u32 4294901760, %v17955_v57  ;;  %v17970_v14 = vsub.f32 %v9754_v58, %v17957_v3  ;;  %9931 = vmatpush2.msra.mxu0 %v17957_v3  ;;  %v19459_v61 = vand.u32 4294901760, %v17965_v31  ;;  %v9748_v58 = vld [vmem:[%s19051_s2 + $0x180] sm:$0xff] }
 0x92e   :  { %10280 = vmatpush2.msra.mxu1 %v10279_v41  ;;  %v10296_v11 = vsub.f32 %v17943_v55, %v19449_v25  ;;  %v17982_v41 = vand.u32 4294901760, %v9751_v51  ;;  %9933 = vmatprep.subr.mxu0 %v17972_v19 }
 0x92f   :  { %20130 = vst [vmem:[#allocation103_spill] sm:$0xff] %v17970_v14  ;;  %10286 = vmatprep.subr.mxu1 %v10285_v28  ;;  %v10302_v50 = vsub.f32 %v17955_v57, %v19454_v53  ;;  %v19462_v8 = vand.u32 4294901760, %v17970_v14  ;;  %v17992_v28 = vsub.f32 %v9752_v22, %v17972_v19  ;;  %v10308_v55 = vsub.f32 %v17965_v31, %v19459_v61 }
 0x930   :  { %20132 = vst [vmem:[#allocation105_spill] sm:$0xff] %v17982_v41  ;;  %10292 = vmatpush2.msra.mxu1 %v10291_v1  ;;  %v10297_v25 = vand.u32 4294901760, %v10296_v11  ;;  %v17999_v3 = vsub.f32 %v9751_v51, %v17982_v41  ;;  %v18001_v1 = vand.u32 4294901760, %v9749_v45  ;;  %9935 = vmatpush2.msra.mxu0 %v17982_v41  ;;  %v18008_v19 = vand.u32 4294901760, %v9748_v58 }
 0x931   :  { %20133 = vst [vmem:[#allocation106_spill] sm:$0xff] %v17992_v28  ;;  %v10303_v53 = vand.u32 4294901760, %v10302_v50  ;;  %v10314_v22 = vsub.f32 %v17970_v14, %v19462_v8  ;;  %v19464_v57 = vand.u32 4294901760, %v17992_v28  ;;  %v10309_v11 = vand.u32 4294901760, %v10308_v55 }
 0x932   :  { %20134 = vst [vmem:[#allocation107_spill] sm:$0xff] %v17999_v3  ;;  %20135 = vst [vmem:[#allocation108_spill] sm:$0xff] %v18001_v1  ;;  %10298 = vmatprep.subr.mxu1 %v10297_v25  ;;  %v19463_v61 = vand.u32 4294901760, %v17999_v3  ;;  %v18012_v51 = vsub.f32 %v9749_v45, %v18001_v1  ;;  %9937 = vmatprep.subr.mxu0 %v18001_v1  ;;  %v18019_v8 = vsub.f32 %v9748_v58, %v18008_v19 }
 0x933   :  { %20136 = vst [vmem:[#allocation109_spill] sm:$0xff] %v18008_v19  ;;  %10304 = vmatpush2.msra.mxu1 %v10303_v53  ;;  %v10315_v31 = vand.u32 4294901760, %v10314_v22  ;;  %v10320_v50 = vsub.f32 %v17992_v28, %v19464_v57  ;;  %9939 = vmatpush2.msra.mxu0 %v18008_v19 }
 0x934   :  { %20137 = vst [vmem:[#allocation110_spill] sm:$0xff] %v18012_v51  ;;  %20138 = vst [vmem:[#allocation111_spill] sm:$0xff] %v18019_v8  ;;  %10310 = vmatprep.subr.mxu1 %v10309_v11  ;;  %v10326_v55 = vsub.f32 %v17999_v3, %v19463_v61  ;;  %v19472_v25 = vand.u32 4294901760, %v18012_v51  ;;  %10352 = vmatprep.subr.mxu0 %v17122_v17  ;;  %v19479_v45 = vand.u32 4294901760, %v18019_v8  ;;  %v8732_v3 = vpop.permute.xlu1 %8731 }
 0x935   :  { %10316 = vmatpush2.msra.mxu1 %v10315_v31  ;;  %v10321_v53 = vand.u32 4294901760, %v10320_v50  ;;  %v8734_v14 = vrot.slane %v8732_v3, 2 }
 0x936   :  { %v10327_v22 = vand.u32 4294901760, %v10326_v55  ;;  %v10332_v58 = vsub.f32 %v18012_v51, %v19472_v25  ;;  %v10338_v11 = vsub.f32 %v18019_v8, %v19479_v45 }
 0x937   :  { %10322 = vmatprep.subr.mxu1 %v10321_v53 }
 0x938   :  { %10328 = vmatpush2.msra.mxu1 %v10327_v22  ;;  %v10333_v61 = vand.u32 4294901760, %v10332_v58  ;;  %v10339_v57 = vand.u32 4294901760, %v10338_v11 }
 0x93a   :  { %10334 = vmatprep.subr.mxu1 %v10333_v61 }
 0x93b   :  { %10340 = vmatpush2.msra.mxu1 %v10339_v57 }
 0x93c   :  { %10554 = vmatprep.subr.mxu1 %v17103_v37 }
 0x964   :  { %v8812_v31 = vpop.f32.mrf.mxu0 }
 0x965   :  { %v8813_v51 = vadd.f32 %v8812_v31, %v8734_v14 }
 0x966   :  { %v8814_v50 = vpop.f32.mrf.mxu0 }
 0x967   :  { %v8815_v1 = vadd.f32 %v8814_v50, %v8734_v14 }
 0x968   :  { %v8971_v17 = vpop.f32.mrf.mxu0 }
 0x96a   :  { %v8973_v28 = vpop.f32.mrf.mxu0 }
 0x96c   :  { %v8894_v55 = vpop.f32.mrf.mxu1 }
 0x96d   :  { %v8895_v22 = vadd.f32 %v8894_v55, %v8813_v51 }
 0x96e   :  { %v8896_v25 = vpop.f32.mrf.mxu1  ;;  %v9125_v53 = vpop.f32.mrf.mxu0 }
 0x96f   :  { %v8897_v11 = vadd.f32 %v8896_v25, %v8815_v1  ;;  %v8972_v57 = vadd.f32 %v8971_v17, %v8895_v22 }
 0x970   :  { %v9047_v19 = vpop.f32.mrf.mxu1  ;;  %v9127_v45 = vpop.f32.mrf.mxu0 }
 0x971   :  { %v8974_v41 = vadd.f32 %v8973_v28, %v8897_v11  ;;  %v9048_v23 = vadd.f32 %v9047_v19, %v8972_v57 }
 0x972   :  { %v9049_v58 = vpop.f32.mrf.mxu1 }
 0x973   :  { %v9050_v63 = vadd.f32 %v9049_v58, %v8974_v41  ;;  %v9126_v29 = vadd.f32 %v9125_v53, %v9048_v23 }
 0x974   :  { %v9199_v8 = vpop.f32.mrf.mxu1 }
 0x975   :  { %v9128_v55 = vadd.f32 %v9127_v45, %v9050_v63  ;;  %v9200_v27 = vadd.f32 %v9199_v8, %v9126_v29 }
 0x976   :  { %v9201_v2 = vpop.f32.mrf.mxu1 }
 0x977   :  { %v9202_v19 = vadd.f32 %v9201_v2, %v9128_v55 }
 0x99f   :  { %v9277_v61 = vpop.f32.mrf.mxu0 }
 0x9a0   :  { %v9278_v38 = vadd.f32 %v9277_v61, %v8734_v14 }
 0x9a1   :  { %v9279_v37 = vpop.f32.mrf.mxu0 }
 0x9a2   :  { %v9280_v46 = vadd.f32 %v9279_v37, %v8734_v14  ;;  %v9669_v37 = vmax.f32 %v9200_v27, 0.0 }
 0x9a3   :  { %v9436_v49 = vpop.f32.mrf.mxu0 }
 0x9a5   :  { %v9438_v6 = vpop.f32.mrf.mxu0 }
 0x9a7   :  { %v9359_v3 = vpop.f32.mrf.mxu1 }
 0x9a8   :  { %v9360_v31 = vadd.f32 %v9359_v3, %v9278_v38 }
 0x9a9   :  { %v9361_v50 = vpop.f32.mrf.mxu1  ;;  %v9590_v25 = vpop.f32.mrf.mxu0 }
 0x9aa   :  { %v9362_v7 = vadd.f32 %v9361_v50, %v9280_v46  ;;  %v9437_v51 = vadd.f32 %v9436_v49, %v9360_v31  ;;  %v9670_v46 = vmax.f32 %v9202_v19, 0.0  ;;  %v20147_v19 = vld [vmem:[#allocation18_spill] sm:$0xff] }
 0x9ab   :  { %v9512_v1 = vpop.f32.mrf.mxu1  ;;  %v9592_v57 = vpop.f32.mrf.mxu0 }
 0x9ac   :  { %v9439_v17 = vadd.f32 %v9438_v6, %v9362_v7  ;;  %v9513_v22 = vadd.f32 %v9512_v1, %v9437_v51  ;;  %v9681_v7 = vrot.slane %v9669_v37, 7  ;;  %v9682_v45 = vrot.slane %v9670_v46, 7 }
 0x9ad   :  { %v9514_v28 = vpop.f32.mrf.mxu1 }
 0x9ae   :  { %v9515_v11 = vadd.f32 %v9514_v28, %v9439_v17  ;;  %v9591_v61 = vadd.f32 %v9590_v25, %v9513_v22 }
 0x9af   :  { %v9664_v41 = vpop.f32.mrf.mxu1 }
 0x9b0   :  { %v9593_v58 = vadd.f32 %v9592_v57, %v9515_v11  ;;  %v9665_v35 = vadd.f32 %v9664_v41, %v9591_v61  ;;  %v20148_v57 = vld [vmem:[#allocation28_spill] sm:$0xff] }
 0x9b1   :  { %v9666_v14 = vpop.f32.mrf.mxu1  ;;  %v20149_v41 = vld [vmem:[#allocation8_spill] sm:$0xff] }
 0x9b2   :  { %v9671_v23 = vmax.f32 %v9665_v35, 0.0  ;;  %v9667_v38 = vadd.f32 %v9666_v14, %v9593_v58  ;;  %v20150_v58 = vld [vmem:[#allocation9_spill] sm:$0xff]  ;;  %v20152_v14 = vld [vmem:[#allocation12_spill] sm:$0xff] }
 0x9b4   :  { %v9675_v63 = vrot.slane %v9671_v23, 7  ;;  %v9672_v49 = vmax.f32 %v9667_v38, 0.0  ;;  %v9685_v6 = vrot.slane %v9671_v23, 6  ;;  %v20153_v23 = vld [vmem:[#allocation27_spill] sm:$0xff]  ;;  %v20154_v38 = vld [vmem:[#allocation26_spill] sm:$0xff] }
 0x9b6   :  { %v9690_v29 = vsel %vm9689_vm10, %v9669_v37, %v9675_v63  ;;  %v9676_v8 = vrot.slane %v9672_v49, 7  ;;  %v9686_v3 = vrot.slane %v9672_v49, 6  ;;  %v20151_v37 = vld [vmem:[#allocation20_spill] sm:$0xff]  ;;  %v20157_v49 = vld [vmem:[#allocation29_spill] sm:$0xff] }
 0x9b7   :  { %v9693_v2 = vsel %vm9692_vm11, %v9690_v29, %v9681_v7  ;;  %v20156_v63 = vld [vmem:[#allocation24_spill] sm:$0xff]  ;;  %v20158_v7 = vld [vmem:[#allocation10_spill] sm:$0xff] }
 0x9b8   :  { %v9696_v53 = vsel %vm9695_vm12, %v9693_v2, %v9685_v6  ;;  %v9691_v31 = vsel %vm9689_vm10, %v9670_v46, %v9676_v8  ;;  %v20155_v46 = vld [vmem:[#allocation19_spill] sm:$0xff]  ;;  %v20160_v29 = vld [vmem:[#allocation14_spill] sm:$0xff] }
 0x9b9   :  { %v18035_v50 = vand.u32 4294901760, %v9696_v53  ;;  %v9694_v27 = vsel %vm9692_vm11, %v9691_v31, %v9682_v45  ;;  %v20159_v6 = vld [vmem:[#allocation15_spill] sm:$0xff]  ;;  %v20161_v8 = vld [vmem:[#allocation6_spill] sm:$0xff]  ;;  %v20166_v31 = vld [vmem:[#allocation33_spill] sm:$0xff] }
 0x9ba   :  { %v9697_v35 = vsel %vm9695_vm12, %v9694_v27, %v9686_v3  ;;  %v20162_v45 = vld [vmem:[#allocation11_spill] sm:$0xff]  ;;  %v20165_v3 = vld [vmem:[#allocation30_spill] sm:$0xff] }
 0x9bb   :  { %20139 = vst [vmem:[#allocation112_spill] sm:$0xff] %v18035_v50  ;;  %v18038_v51 = vsub.f32 %v9696_v53, %v18035_v50  ;;  %v18040_v55 = vand.u32 4294901760, %v9697_v35  ;;  %v20163_v2 = vld [vmem:[#allocation23_spill] sm:$0xff]  ;;  %v20164_v53 = vld [vmem:[#allocation25_spill] sm:$0xff] }
 0x9bc   :  { %v20167_v27 = vld [vmem:[#allocation7_spill] sm:$0xff] }
 0x9bd   :  { %20140 = vst [vmem:[#allocation113_spill] sm:$0xff] %v18038_v51  ;;  %20141 = vst [vmem:[#allocation114_spill] sm:$0xff] %v18040_v55  ;;  %v18043_v1 = vsub.f32 %v9697_v35, %v18040_v55  ;;  %10342 = vmatprep.mubr.f32.mxu1 %v18040_v55  ;;  %v18047_v25 = vand.u32 4294901760, %v18038_v51  ;;  %v20168_v35 = vld [vmem:[#allocation13_spill] sm:$0xff] }
 0x9be   :  { %10344 = vmatmul.mubr.f32.vlgmr.msra.gmra.mxu1 %v18035_v50  ;;  %v20175_v50 = vld [vmem:[#allocation36_spill] sm:$0xff] }
 0x9bf   :  { %20142 = vst [vmem:[#allocation115_spill] sm:$0xff] %v18043_v1  ;;  %20143 = vst [vmem:[#allocation116_spill] sm:$0xff] %v18047_v25  ;;  %10556 = vmatpush1.msra.mxu1 %v17105_v16  ;;  %v18052_v17 = vand.u32 4294901760, %v18043_v1  ;;  %v9949_v22 = vsub.f32 %v18038_v51, %v18047_v25 }
 0x9c0   :  { %10558 = vmatprep.subr.mxu1 %v17110_v34 }
 0x9c1   :  { %20144 = vst [vmem:[#allocation117_spill] sm:$0xff] %v18052_v17  ;;  %10560 = vmatpush1.msra.mxu1 %v17116_v39  ;;  %10684 = vmatprep.mubr.f32.mxu1 %v18052_v17  ;;  %v9943_v28 = vsub.f32 %v18043_v1, %v18052_v17  ;;  %v18066_v61 = vand.u32 4294901760, %v9949_v22  ;;  %v20169_v22 = vld [vmem:[#allocation3_spill] sm:$0xff]  ;;  %v20173_v17 = vld [vmem:[#allocation34_spill] sm:$0xff] }
 0x9c2   :  { %10562 = vmatprep.subr.mxu1 %v17131_v30 }
 0x9c3   :  { %10564 = vmatpush1.msra.mxu1 %v17136_v40  ;;  %v18063_v11 = vand.u32 4294901760, %v9943_v28  ;;  %20146 = vst [vmem:[#allocation119_spill] sm:$0xff] %v18066_v61  ;;  %v20170_v28 = vld [vmem:[#allocation22_spill] sm:$0xff] }
 0x9c4   :  { %10566 = vmatprep.subr.mxu1 %v17143_v52 }
 0x9c5   :  { %20145 = vst [vmem:[#allocation118_spill] sm:$0xff] %v18063_v11  ;;  %10568 = vmatpush1.msra.mxu1 %v17186_v12  ;;  %9945 = vmatprep.mubr.f32.mxu0 %v18063_v11  ;;  %v20174_v11 = vld [vmem:[#allocation35_spill] sm:$0xff] }
 0x9c6   :  { %10570 = vmatprep.subr.mxu1 %v17188_v62  ;;  %9951 = vmatmul.mubr.f32.vlgmr.msra.gmra.mxu0 %v18066_v61  ;;  %v20172_v61 = vld [vmem:[#allocation32_spill] sm:$0xff] }
 0x9c7   :  { %10355 = vmatpush1.msra.mxu0 %v17125_v44  ;;  %10572 = vmatpush1.msra.mxu1 %v17195_v20 }
 0x9c8   :  { %10358 = vmatprep.subr.mxu0 %v17134_v54  ;;  %10544 = vmatprep.mubr.f32.mxu0 %v18043_v1  ;;  %v20171_v1 = vld [vmem:[#allocation31_spill] sm:$0xff] }
 0x9c9   :  { %10574 = vmatprep.subr.mxu1 %v17204_v47  ;;  %10361 = vmatpush1.msra.mxu0 %v17141_v26 }
 0x9ca   :  { %10576 = vmatpush1.msra.mxu1 %v17215_v33  ;;  %10364 = vmatprep.subr.mxu0 %v17151_v59 }
 0x9cb   :  { %10578 = vmatprep.subr.mxu1 %v17240_v0  ;;  %10367 = vmatpush1.msra.mxu0 %v17161_v18 }
 0x9cc   :  { %10580 = vmatpush1.msra.mxu1 %v20147_v19  ;;  %10370 = vmatprep.subr.mxu0 %v20148_v57 }
 0x9cd   :  { %10582 = vmatprep.subr.mxu1 %v20149_v41  ;;  %10373 = vmatpush1.msra.mxu0 %v20150_v58 }
 0x9ce   :  { %10584 = vmatpush1.msra.mxu1 %v20151_v37  ;;  %10376 = vmatprep.subr.mxu0 %v20152_v14 }
 0x9cf   :  { %10586 = vmatprep.subr.mxu1 %v20153_v23  ;;  %10379 = vmatpush1.msra.mxu0 %v20154_v38 }
 0x9d0   :  { %10588 = vmatpush1.msra.mxu1 %v20155_v46  ;;  %10382 = vmatprep.subr.mxu0 %v20156_v63 }
 0x9d1   :  { %10590 = vmatprep.subr.mxu1 %v20157_v49  ;;  %10385 = vmatpush1.msra.mxu0 %v20158_v7 }
 0x9d2   :  { %10592 = vmatpush1.msra.mxu1 %v20159_v6  ;;  %10388 = vmatprep.subr.mxu0 %v20160_v29 }
 0x9d3   :  { %10594 = vmatprep.subr.mxu1 %v20161_v8  ;;  %10391 = vmatpush1.msra.mxu0 %v20162_v45 }
 0x9d4   :  { %10596 = vmatpush1.msra.mxu1 %v20163_v2  ;;  %10394 = vmatprep.subr.mxu0 %v20164_v53 }
 0x9d5   :  { %10598 = vmatprep.subr.mxu1 %v17375_v10  ;;  %10397 = vmatpush1.msra.mxu0 %v20165_v3 }
 0x9d6   :  { %10600 = vmatpush1.msra.mxu1 %v20166_v31  ;;  %10400 = vmatprep.subr.mxu0 %v20167_v27 }
 0x9d7   :  { %10602 = vmatprep.subr.mxu1 %v17442_v5  ;;  %10403 = vmatpush1.msra.mxu0 %v20168_v35 }
 0x9d8   :  { %10604 = vmatpush1.msra.mxu1 %v17457_v24  ;;  %10406 = vmatprep.subr.mxu0 %v20169_v22 }
 0x9d9   :  { %10606 = vmatprep.subr.mxu1 %v17488_v9  ;;  %10409 = vmatpush1.msra.mxu0 %v20170_v28 }
 0x9da   :  { %10608 = vmatpush1.msra.mxu1 %v17503_v43  ;;  %10412 = vmatprep.subr.mxu0 %v20171_v1  ;;  %v20176_v43 = vld [vmem:[#allocation38_spill] sm:$0xff] }
 0x9db   :  { %10610 = vmatprep.subr.mxu1 %v17518_v42  ;;  %10415 = vmatpush1.msra.mxu0 %v20172_v61  ;;  %v20177_v42 = vld [vmem:[#allocation41_spill] sm:$0xff] }
 0x9dc   :  { %10612 = vmatpush1.msra.mxu1 %v17531_v4  ;;  %10418 = vmatprep.subr.mxu0 %v20173_v17  ;;  %v20178_v4 = vld [vmem:[#allocation42_spill] sm:$0xff] }
 0x9dd   :  { %10614 = vmatprep.subr.mxu1 %v17546_v15  ;;  %10421 = vmatpush1.msra.mxu0 %v20174_v11 }
 0x9de   :  { %10616 = vmatpush1.msra.mxu1 %v17557_v13  ;;  %10424 = vmatprep.subr.mxu0 %v20175_v50  ;;  %v20179_v13 = vld [vmem:[#allocation46_spill] sm:$0xff]  ;;  %v20180_v50 = vld [vmem:[#allocation55_spill] sm:$0xff] }
 0x9df   :  { %10618 = vmatprep.subr.mxu1 %v17568_v48  ;;  %10427 = vmatpush1.msra.mxu0 %v20176_v43  ;;  %v20181_v48 = vld [vmem:[#allocation48_spill] sm:$0xff]  ;;  %v20182_v43 = vld [vmem:[#allocation57_spill] sm:$0xff] }
 0x9e0   :  { %10620 = vmatpush2.msra.mxu1 %v17581_v56  ;;  %10430 = vmatprep.subr.mxu0 %v20177_v42  ;;  %v20183_v56 = vld [vmem:[#allocation50_spill] sm:$0xff]  ;;  %v20184_v42 = vld [vmem:[#allocation59_spill] sm:$0xff] }
 0x9e1   :  { %10622 = vmatprep.subr.mxu1 %v17592_v60  ;;  %10433 = vmatpush1.msra.mxu0 %v20178_v4  ;;  %v20185_v60 = vld [vmem:[#allocation52_spill] sm:$0xff] }
 0x9e2   :  { %10624 = vmatpush2.msra.mxu1 %v17605_v32  ;;  %10436 = vmatprep.subr.mxu0 %v17566_v36  ;;  %v20186_v4 = vld [vmem:[#allocation64_spill] sm:$0xff]  ;;  %v20187_v32 = vld [vmem:[#allocation54_spill] sm:$0xff]  ;;  %v20188_v36 = vld [vmem:[#allocation65_spill] sm:$0xff] }
 0x9e3   :  { %10626 = vmatprep.subr.mxu1 %v17618_v21  ;;  %10439 = vmatpush1.msra.mxu0 %v20179_v13  ;;  %v20189_v21 = vld [vmem:[#allocation56_spill] sm:$0xff]  ;;  %v20190_v13 = vld [vmem:[#allocation67_spill] sm:$0xff] }
 0x9e4   :  { %10628 = vmatpush2.msra.mxu1 %v20180_v50  ;;  %10442 = vmatprep.subr.mxu0 %v20181_v48  ;;  %v20191_v50 = vld [vmem:[#allocation58_spill] sm:$0xff]  ;;  %v20192_v48 = vld [vmem:[#allocation69_spill] sm:$0xff] }
 0x9e5   :  { %10630 = vmatprep.subr.mxu1 %v20182_v43  ;;  %10445 = vmatpush1.msra.mxu0 %v20183_v56  ;;  %v20193_v43 = vld [vmem:[#allocation60_spill] sm:$0xff]  ;;  %v20194_v56 = vld [vmem:[#allocation71_spill] sm:$0xff] }
 0x9e6   :  { %10632 = vmatpush2.msra.mxu1 %v20184_v42  ;;  %10448 = vmatprep.subr.mxu0 %v20185_v60  ;;  %v20195_v42 = vld [vmem:[#allocation61_spill] sm:$0xff] }
 0x9e7   :  { %10634 = vmatprep.subr.mxu1 %v20186_v4  ;;  %10451 = vmatpush2.msra.mxu0 %v20187_v32  ;;  %v20196_v60 = vld [vmem:[#allocation73_spill] sm:$0xff]  ;;  %v20197_v4 = vld [vmem:[#allocation62_spill] sm:$0xff]  ;;  %v20198_v32 = vld [vmem:[#allocation75_spill] sm:$0xff] }
 0x9e8   :  { %10636 = vmatpush2.msra.mxu1 %v20188_v36  ;;  %10454 = vmatprep.subr.mxu0 %v20189_v21  ;;  %v20199_v36 = vld [vmem:[#allocation63_spill] sm:$0xff]  ;;  %v20200_v21 = vld [vmem:[#allocation77_spill] sm:$0xff] }
 0x9e9   :  { %10638 = vmatprep.subr.mxu1 %v20190_v13  ;;  %10457 = vmatpush2.msra.mxu0 %v20191_v50  ;;  %v20201_v13 = vld [vmem:[#allocation66_spill] sm:$0xff]  ;;  %v20202_v50 = vld [vmem:[#allocation80_spill] sm:$0xff] }
 0x9ea   :  { %10640 = vmatpush2.msra.mxu1 %v20192_v48  ;;  %10460 = vmatprep.subr.mxu0 %v20193_v43  ;;  %v20203_v48 = vld [vmem:[#allocation68_spill] sm:$0xff]  ;;  %v20204_v43 = vld [vmem:[#allocation81_spill] sm:$0xff] }
 0x9eb   :  { %10642 = vmatprep.subr.mxu1 %v20194_v56  ;;  %10463 = vmatpush2.msra.mxu0 %v20195_v42  ;;  %v20205_v56 = vld [vmem:[#allocation70_spill] sm:$0xff]  ;;  %v20206_v42 = vld [vmem:[#allocation83_spill] sm:$0xff] }
 0x9ec   :  { %10644 = vmatpush2.msra.mxu1 %v20196_v60  ;;  %10466 = vmatprep.subr.mxu0 %v20197_v4  ;;  %v20207_v60 = vld [vmem:[#allocation72_spill] sm:$0xff]  ;;  %v20208_v4 = vld [vmem:[#allocation85_spill] sm:$0xff] }
 0x9ed   :  { %10646 = vmatprep.subr.mxu1 %v20198_v32  ;;  %10469 = vmatpush2.msra.mxu0 %v20199_v36  ;;  %v20209_v32 = vld [vmem:[#allocation74_spill] sm:$0xff]  ;;  %v20210_v36 = vld [vmem:[#allocation87_spill] sm:$0xff] }
 0x9ee   :  { %10648 = vmatpush2.msra.mxu1 %v20200_v21  ;;  %10472 = vmatprep.subr.mxu0 %v20201_v13  ;;  %v20211_v21 = vld [vmem:[#allocation76_spill] sm:$0xff]  ;;  %v20212_v13 = vld [vmem:[#allocation89_spill] sm:$0xff] }
 0x9ef   :  { %10650 = vmatprep.subr.mxu1 %v20202_v50  ;;  %10475 = vmatpush2.msra.mxu0 %v20203_v48  ;;  %v20213_v50 = vld [vmem:[#allocation78_spill] sm:$0xff]  ;;  %v20214_v48 = vld [vmem:[#allocation91_spill] sm:$0xff] }
 0x9f0   :  { %10652 = vmatpush2.msra.mxu1 %v20204_v43  ;;  %10478 = vmatprep.subr.mxu0 %v20205_v56  ;;  %v20215_v43 = vld [vmem:[#allocation79_spill] sm:$0xff]  ;;  %v20216_v56 = vld [vmem:[#allocation93_spill] sm:$0xff] }
 0x9f1   :  { %10654 = vmatprep.subr.mxu1 %v20206_v42  ;;  %10481 = vmatpush2.msra.mxu0 %v20207_v60  ;;  %v20217_v42 = vld [vmem:[#allocation82_spill] sm:$0xff]  ;;  %v20218_v60 = vld [vmem:[#allocation96_spill] sm:$0xff] }
 0x9f2   :  { %10656 = vmatpush2.msra.mxu1 %v20208_v4  ;;  %10484 = vmatprep.subr.mxu0 %v20209_v32  ;;  %v20219_v4 = vld [vmem:[#allocation84_spill] sm:$0xff]  ;;  %v20220_v32 = vld [vmem:[#allocation97_spill] sm:$0xff] }
 0x9f3   :  { %10658 = vmatprep.subr.mxu1 %v20210_v36  ;;  %10487 = vmatpush2.msra.mxu0 %v20211_v21  ;;  %v20221_v36 = vld [vmem:[#allocation86_spill] sm:$0xff]  ;;  %v20222_v21 = vld [vmem:[#allocation99_spill] sm:$0xff] }
 0x9f4   :  { %10660 = vmatpush2.msra.mxu1 %v20212_v13  ;;  %10490 = vmatprep.subr.mxu0 %v20213_v50  ;;  %v20223_v13 = vld [vmem:[#allocation88_spill] sm:$0xff]  ;;  %v20224_v50 = vld [vmem:[#allocation101_spill] sm:$0xff] }
 0x9f5   :  { %10662 = vmatprep.subr.mxu1 %v20214_v48  ;;  %10493 = vmatpush2.msra.mxu0 %v20215_v43  ;;  %v20225_v48 = vld [vmem:[#allocation90_spill] sm:$0xff]  ;;  %v20226_v43 = vld [vmem:[#allocation104_spill] sm:$0xff] }
 0x9f6   :  { %10664 = vmatpush2.msra.mxu1 %v20216_v56  ;;  %10496 = vmatprep.subr.mxu0 %v20217_v42  ;;  %v20227_v56 = vld [vmem:[#allocation92_spill] sm:$0xff]  ;;  %v20228_v42 = vld [vmem:[#allocation105_spill] sm:$0xff] }
 0x9f7   :  { %10666 = vmatprep.subr.mxu1 %v20218_v60  ;;  %10499 = vmatpush2.msra.mxu0 %v20219_v4  ;;  %v20229_v60 = vld [vmem:[#allocation94_spill] sm:$0xff]  ;;  %v20230_v4 = vld [vmem:[#allocation108_spill] sm:$0xff] }
 0x9f8   :  { %10668 = vmatpush2.msra.mxu1 %v20220_v32  ;;  %10502 = vmatprep.subr.mxu0 %v20221_v36  ;;  %v20231_v32 = vld [vmem:[#allocation95_spill] sm:$0xff]  ;;  %v20232_v36 = vld [vmem:[#allocation109_spill] sm:$0xff] }
 0x9f9   :  { %10670 = vmatprep.subr.mxu1 %v20222_v21  ;;  %10505 = vmatpush2.msra.mxu0 %v20223_v13  ;;  %v20233_v21 = vld [vmem:[#allocation98_spill] sm:$0xff] }
 0x9fa   :  { %10672 = vmatpush2.msra.mxu1 %v20224_v50  ;;  %10508 = vmatprep.subr.mxu0 %v20225_v48  ;;  %v20234_v50 = vld [vmem:[#allocation17_spill] sm:$0xff]  ;;  %v20235_v48 = vld [vmem:[#allocation100_spill] sm:$0xff] }
 0x9fb   :  { %10674 = vmatprep.subr.mxu1 %v20226_v43  ;;  %10511 = vmatpush2.msra.mxu0 %v20227_v56 }
 0x9fc   :  { %10676 = vmatpush2.msra.mxu1 %v20228_v42  ;;  %10514 = vmatprep.subr.mxu0 %v20229_v60  ;;  %v20236_v42 = vld [vmem:[#allocation102_spill] sm:$0xff] }
 0x9fd   :  { %10678 = vmatprep.subr.mxu1 %v20230_v4  ;;  %10517 = vmatpush2.msra.mxu0 %v20231_v32  ;;  %v20237_v4 = vld [vmem:[#allocation103_spill] sm:$0xff] }
 0x9fe   :  { %10680 = vmatpush2.msra.mxu1 %v20232_v36  ;;  %10520 = vmatprep.subr.mxu0 %v20233_v21  ;;  %v20238_v36 = vld [vmem:[#allocation106_spill] sm:$0xff] }
 0x9ff   :  { %10688 = vmatmul.mubr.f32.vlgmr.msra.gmra.mxu1 %v18047_v25  ;;  %10960 = vmatprep.subr.mxu1 %v20234_v50  ;;  %v20239_v25 = vld [vmem:[#allocation107_spill] sm:$0xff]  ;;  %v20240_v50 = vld [vmem:[#allocation110_spill] sm:$0xff] }
 0xa00   :  { %10523 = vmatpush2.msra.mxu0 %v20235_v48  ;;  %10962 = vmatpush1.msra.mxu1 %v17105_v16  ;;  %v20241_v16 = vld [vmem:[#allocation111_spill] sm:$0xff] }
 0xa01   :  { %11088 = vmatprep.mubr.f32.mxu1 %v18040_v55  ;;  %10526 = vmatprep.subr.mxu0 %v20236_v42 }
 0xa02   :  { %10964 = vmatprep.subr.mxu1 %v17110_v34  ;;  %10529 = vmatpush2.msra.mxu0 %v20237_v4  ;;  %v20242_v34 = vld [vmem:[#allocation16_spill] sm:$0xff] }
 0xa03   :  { %10966 = vmatpush1.msra.mxu1 %v17116_v39  ;;  %10532 = vmatprep.subr.mxu0 %v20238_v36  ;;  %v20243_v39 = vand.u32 4294901760, %v20242_v34  ;;  %v20291_v34 = vld [vmem:[#allocation57_spill] sm:$0xff] }
 0xa04   :  { %10968 = vmatprep.subr.mxu1 %v17131_v30  ;;  %10535 = vmatpush2.msra.mxu0 %v20239_v25  ;;  %v20244_v30 = vand.u32 4294901760, %v17125_v44  ;;  %v20248_v44 = vand.u32 4294901760, %v17161_v18  ;;  %v20252_v18 = vand.u32 4294901760, %v20154_v38  ;;  %v20267_v38 = vld [vmem:[#allocation40_spill] sm:$0xff] }
 0xa05   :  { %10970 = vmatpush1.msra.mxu1 %v17136_v40  ;;  %10538 = vmatprep.subr.mxu0 %v20240_v50  ;;  %v20245_v40 = vand.u32 4294901760, %v17134_v54  ;;  %v20249_v54 = vand.u32 4294901760, %v20148_v57  ;;  %v20259_v57 = vand.u32 4294901760, %v20167_v27 }
 0xa06   :  { %10972 = vmatprep.subr.mxu1 %v17143_v52  ;;  %10541 = vmatpush2.msra.mxu0 %v20241_v16  ;;  %v20246_v52 = vand.u32 4294901760, %v17141_v26  ;;  %v20250_v26 = vand.u32 4294901760, %v20150_v58  ;;  %v20261_v58 = vand.u32 4294901760, %v20169_v22  ;;  %v20289_v22 = vld [vmem:[#allocation48_spill] sm:$0xff] }
 0xa07   :  { %10974 = vmatpush1.msra.mxu1 %v17186_v12  ;;  %10547 = vmatmul.mubr.f32.vlgmr.msra.gmra.mxu0 %v18038_v51  ;;  %v20247_v12 = vand.u32 4294901760, %v17151_v59  ;;  %v20251_v59 = vand.u32 4294901760, %v20152_v14  ;;  %v20264_v14 = vand.u32 4294901760, %v20171_v1  ;;  %v20377_v51 = vld [vmem:[#allocation112_spill] sm:$0xff] }
 0xa08   :  { %10697 = vmatprep.subr.mxu0 %v20243_v39  ;;  %10976 = vmatprep.subr.mxu1 %v17188_v62  ;;  %v20253_v62 = vand.u32 4294901760, %v20156_v63  ;;  %v20271_v63 = vld [vmem:[#allocation36_spill] sm:$0xff]  ;;  %v20292_v39 = vld [vmem:[#allocation50_spill] sm:$0xff] }
 0xa09   :  { %10701 = vmatpush1.msra.mxu0 %v20244_v30  ;;  %10951 = vmatprep.mubr.f32.mxu0 %v18040_v55  ;;  %v20272_v1 = vand.u32 4294901760, %v20271_v63  ;;  %v20293_v30 = vand.u32 4294901760, %v20292_v39  ;;  %v9741_v63 = vld [vmem:[%s19051_s2 + $0x148] sm:$0xff] }
 0xa0a   :  { %10978 = vmatpush1.msra.mxu1 %v17195_v20  ;;  %10705 = vmatprep.subr.mxu0 %v20245_v40  ;;  %v20254_v20 = vand.u32 4294901760, %v20158_v7  ;;  %v20274_v7 = vld [vmem:[#allocation38_spill] sm:$0xff] }
 0xa0b   :  { %10980 = vmatprep.subr.mxu1 %v17204_v47  ;;  %10709 = vmatpush1.msra.mxu0 %v20246_v52  ;;  %v20255_v47 = vand.u32 4294901760, %v20160_v29  ;;  %v20277_v29 = vld [vmem:[#allocation41_spill] sm:$0xff]  ;;  %v9795_v40 = vld [vmem:[%s19051_s2 + $0x2f8] sm:$0xff]  ;;  %v20294_v52 = vld [vmem:[#allocation59_spill] sm:$0xff] }
 0xa0c   :  { %10982 = vmatpush1.msra.mxu1 %v17215_v33  ;;  %10713 = vmatprep.subr.mxu0 %v20247_v12  ;;  %v20256_v33 = vand.u32 4294901760, %v20162_v45  ;;  %v20282_v45 = vld [vmem:[#allocation51_spill] sm:$0xff]  ;;  %v20295_v12 = vld [vmem:[#allocation52_spill] sm:$0xff] }
 0xa0d   :  { %10984 = vmatprep.subr.mxu1 %v17240_v0  ;;  %10717 = vmatpush1.msra.mxu0 %v20248_v44  ;;  %v20257_v0 = vand.u32 4294901760, %v20164_v53  ;;  %v20296_v44 = vand.u32 4294901760, %v20295_v12  ;;  %v20326_v12 = vld [vmem:[#allocation70_spill] sm:$0xff] }
 0xa0e   :  { %10986 = vmatpush1.msra.mxu1 %v20147_v19  ;;  %10721 = vmatprep.subr.mxu0 %v20249_v54  ;;  %v20258_v19 = vand.u32 4294901760, %v20165_v3  ;;  %v20285_v3 = vld [vmem:[#allocation53_spill] sm:$0xff]  ;;  %v20297_v54 = vld [vmem:[#allocation64_spill] sm:$0xff] }
 0xa0f   :  { %10988 = vmatprep.subr.mxu1 %v20149_v41  ;;  %10725 = vmatpush1.msra.mxu0 %v20250_v26  ;;  %v20260_v41 = vand.u32 4294901760, %v20168_v35  ;;  %v20288_v35 = vld [vmem:[#allocation55_spill] sm:$0xff]  ;;  %v20298_v26 = vld [vmem:[#allocation54_spill] sm:$0xff] }
 0xa10   :  { %10990 = vmatpush1.msra.mxu1 %v20151_v37  ;;  %10729 = vmatprep.subr.mxu0 %v20251_v59  ;;  %v20263_v37 = vld [vmem:[#allocation37_spill] sm:$0xff]  ;;  %v20299_v59 = vand.u32 4294901760, %v20298_v26 }
 0xa11   :  { %10992 = vmatprep.subr.mxu1 %v20153_v23  ;;  %10733 = vmatpush1.msra.mxu0 %v20252_v18  ;;  %v20265_v23 = vld [vmem:[#allocation39_spill] sm:$0xff]  ;;  %v9747_v18 = vld [vmem:[%s19051_s2 + $0x178] sm:$0xff] }
 0xa12   :  { %10994 = vmatpush1.msra.mxu1 %v20155_v46  ;;  %10737 = vmatprep.subr.mxu0 %v20253_v62  ;;  %v20270_v46 = vld [vmem:[#allocation43_spill] sm:$0xff]  ;;  %v20300_v62 = vld [vmem:[#allocation65_spill] sm:$0xff] }
 0xa13   :  { %10996 = vmatprep.subr.mxu1 %v20157_v49  ;;  %10741 = vmatpush1.msra.mxu0 %v20254_v20  ;;  %v20273_v49 = vld [vmem:[#allocation45_spill] sm:$0xff]  ;;  %v20301_v20 = vld [vmem:[#allocation56_spill] sm:$0xff] }
 0xa14   :  { %10998 = vmatpush1.msra.mxu1 %v20159_v6  ;;  %10745 = vmatprep.subr.mxu0 %v20255_v47  ;;  %v20276_v6 = vld [vmem:[#allocation47_spill] sm:$0xff]  ;;  %v20302_v47 = vand.u32 4294901760, %v20301_v20  ;;  %v20330_v20 = vld [vmem:[#allocation72_spill] sm:$0xff] }
 0xa15   :  { %11000 = vmatprep.subr.mxu1 %v20161_v8  ;;  %10749 = vmatpush1.msra.mxu0 %v20256_v33  ;;  %v20279_v8 = vld [vmem:[#allocation49_spill] sm:$0xff]  ;;  %v18313_v33 = vand.u32 4294901760, %v9795_v40 }
 0xa16   :  { %11002 = vmatpush1.msra.mxu1 %v20163_v2  ;;  %10753 = vmatprep.subr.mxu0 %v20257_v0  ;;  %v20283_v2 = vld [vmem:[#allocation44_spill] sm:$0xff]  ;;  %v9792_v0 = vld [vmem:[%s19051_s2 + $0x2e0] sm:$0xff] }
 0xa17   :  { %11004 = vmatprep.subr.mxu1 %v17375_v10  ;;  %10757 = vmatpush1.msra.mxu0 %v20258_v19  ;;  %v20262_v10 = vand.u32 4294901760, %v20170_v28  ;;  %v20284_v53 = vand.u32 4294901760, %v20283_v2  ;;  %v20290_v28 = vand.u32 4294901760, %v20289_v22  ;;  %v20303_v19 = vld [vmem:[#allocation67_spill] sm:$0xff]  ;;  %v20318_v2 = vld [vmem:[#allocation77_spill] sm:$0xff]  ;;  %v20321_v22 = vld [vmem:[#allocation80_spill] sm:$0xff] }
 0xa18   :  { %11006 = vmatpush1.msra.mxu1 %v20166_v31  ;;  %10761 = vmatprep.subr.mxu0 %v20259_v57  ;;  %v20286_v31 = vld [vmem:[#allocation46_spill] sm:$0xff] }
 0xa19   :  { %11008 = vmatprep.subr.mxu1 %v17442_v5  ;;  %10765 = vmatpush1.msra.mxu0 %v20260_v41  ;;  %v20266_v5 = vand.u32 4294901760, %v20172_v61  ;;  %v20275_v61 = vand.u32 4294901760, %v20274_v7  ;;  %v20287_v27 = vand.u32 4294901760, %v20286_v31  ;;  %v20304_v57 = vld [vmem:[#allocation58_spill] sm:$0xff] }
 0xa1a   :  { %11010 = vmatpush1.msra.mxu1 %v17457_v24  ;;  %10769 = vmatprep.subr.mxu0 %v20261_v58  ;;  %v20268_v24 = vand.u32 4294901760, %v20173_v17  ;;  %v20278_v17 = vand.u32 4294901760, %v20277_v29  ;;  %v20305_v41 = vand.u32 4294901760, %v20304_v57  ;;  %v9744_v58 = vld [vmem:[%s19051_s2 + $0x160] sm:$0xff]  ;;  %v9786_v29 = vld [vmem:[%s19051_s2 + $0x2b0] sm:$0xff] }
 0xa1b   :  { %11012 = vmatprep.subr.mxu1 %v17488_v9  ;;  %10773 = vmatpush1.msra.mxu0 %v20262_v10  ;;  %v20269_v9 = vand.u32 4294901760, %v20174_v11  ;;  %v20306_v10 = vld [vmem:[#allocation69_spill] sm:$0xff]  ;;  %v9732_v57 = vld [vmem:[%s19051_s2 + $0x100] sm:$0xff] }
 0xa1c   :  { %11014 = vmatpush1.msra.mxu1 %v20263_v37  ;;  %10777 = vmatprep.subr.mxu0 %v20264_v14  ;;  %v20307_v37 = vld [vmem:[#allocation60_spill] sm:$0xff] }
 0xa1d   :  { %11016 = vmatprep.subr.mxu1 %v20265_v23  ;;  %10781 = vmatpush1.msra.mxu0 %v20266_v5  ;;  %v20308_v14 = vand.u32 4294901760, %v20307_v37  ;;  %v18327_v23 = vand.u32 4294901760, %v9747_v18  ;;  %v9789_v5 = vld [vmem:[%s19051_s2 + $0x2c8] sm:$0xff] }
 0xa1e   :  { %11018 = vmatpush1.msra.mxu1 %v20267_v38  ;;  %10785 = vmatprep.subr.mxu0 %v20268_v24  ;;  %v20309_v38 = vld [vmem:[#allocation71_spill] sm:$0xff]  ;;  %v20310_v24 = vld [vmem:[#allocation61_spill] sm:$0xff] }
 0xa1f   :  { %11020 = vmatprep.subr.mxu1 %v17546_v15  ;;  %10789 = vmatpush1.msra.mxu0 %v20269_v9  ;;  %v20280_v15 = vld [vmem:[#allocation42_spill] sm:$0xff]  ;;  %v20311_v9 = vand.u32 4294901760, %v20310_v24  ;;  %v18363_v31 = vsub.f32 %v9747_v18, %v18327_v23  ;;  %v9780_v18 = vld [vmem:[%s19051_s2 + $0x280] sm:$0xff] }
 0xa20   :  { %11022 = vmatpush1.msra.mxu1 %v20270_v46  ;;  %10793 = vmatprep.subr.mxu0 %v20272_v1  ;;  %v20281_v11 = vand.u32 4294901760, %v20280_v15  ;;  %v18335_v46 = vand.u32 4294901760, %v9792_v0  ;;  %v20312_v1 = vld [vmem:[#allocation73_spill] sm:$0xff]  ;;  %v20337_v24 = vld [vmem:[#allocation87_spill] sm:$0xff] }
 0xa21   :  { %11024 = vmatprep.subr.mxu1 %v20273_v49  ;;  %10797 = vmatpush1.msra.mxu0 %v20275_v61  ;;  %v20313_v49 = vld [vmem:[#allocation62_spill] sm:$0xff]  ;;  %v18344_v61 = vsub.f32 %v9795_v40, %v18313_v33  ;;  %v19527_v37 = vand.u32 4294901760, %v18363_v31 }
 0xa22   :  { %11026 = vmatpush2.msra.mxu1 %v20276_v6  ;;  %10801 = vmatprep.subr.mxu0 %v20278_v17  ;;  %v20314_v7 = vand.u32 4294901760, %v20313_v49  ;;  %v18346_v6 = vand.u32 4294901760, %v9744_v58  ;;  %v20315_v17 = vld [vmem:[#allocation75_spill] sm:$0xff]  ;;  %v18374_v39 = vsub.f32 %v9792_v0, %v18335_v46  ;;  %v9735_v40 = vld [vmem:[%s19051_s2 + $0x118] sm:$0xff] }
 0xa23   :  { %11028 = vmatprep.subr.mxu1 %v20279_v8  ;;  %10805 = vmatpush1.msra.mxu0 %v20281_v11  ;;  %v20316_v8 = vld [vmem:[#allocation63_spill] sm:$0xff]  ;;  %v18354_v11 = vand.u32 4294901760, %v9789_v5 }
 0xa24   :  { %11030 = vmatpush2.msra.mxu1 %v20282_v45  ;;  %10809 = vmatprep.subr.mxu0 %v20284_v53  ;;  %v20317_v15 = vand.u32 4294901760, %v20316_v8  ;;  %v9738_v45 = vld [vmem:[%s19051_s2 + $0x130] sm:$0xff]  ;;  %v20319_v53 = vld [vmem:[#allocation66_spill] sm:$0xff]  ;;  %20324 = vst [vmem:[#allocation18_spill] sm:$0xff] %v18374_v39  ;;  %v18386_v26 = vsub.f32 %v9744_v58, %v18346_v6  ;;  %v19524_v49 = vand.u32 4294901760, %v18374_v39 }
 0xa25   :  { %11032 = vmatprep.subr.mxu1 %v20285_v3  ;;  %10813 = vmatpush1.msra.mxu0 %v20287_v27  ;;  %v20320_v3 = vand.u32 4294901760, %v20319_v53  ;;  %v18365_v27 = vand.u32 4294901760, %v9741_v63  ;;  %v18397_v0 = vsub.f32 %v9789_v5, %v18354_v11  ;;  %v20334_v58 = vld [vmem:[#allocation74_spill] sm:$0xff]  ;;  %v9777_v5 = vld [vmem:[%s19051_s2 + $0x268] sm:$0xff]  ;;  %v20341_v8 = vld [vmem:[#allocation89_spill] sm:$0xff] }
 0xa26   :  { %11034 = vmatpush2.msra.mxu1 %v20288_v35  ;;  %10817 = vmatprep.subr.mxu0 %v20290_v28  ;;  %v9783_v35 = vld [vmem:[%s19051_s2 + $0x298] sm:$0xff]  ;;  %v20322_v28 = vld [vmem:[#allocation68_spill] sm:$0xff]  ;;  %20328 = vst [vmem:[#allocation28_spill] sm:$0xff] %v18386_v26 }
 0xa27   :  { %11036 = vmatprep.subr.mxu1 %v20291_v34  ;;  %10821 = vmatpush1.msra.mxu0 %v20293_v30  ;;  %v20323_v34 = vand.u32 4294901760, %v20322_v28  ;;  %v18376_v30 = vand.u32 4294901760, %v9786_v29  ;;  %20332 = vst [vmem:[#allocation8_spill] sm:$0xff] %v18397_v0  ;;  %v9774_v28 = vld [vmem:[%s19051_s2 + $0x250] sm:$0xff] }
 0xa28   :  { %11038 = vmatpush2.msra.mxu1 %v20294_v52  ;;  %10825 = vmatprep.subr.mxu0 %v20296_v44  ;;  %v20325_v52 = vld [vmem:[#allocation81_spill] sm:$0xff]  ;;  %v20327_v44 = vand.u32 4294901760, %v20326_v12 }
 0xa29   :  { %11040 = vmatprep.subr.mxu1 %v20297_v54  ;;  %10829 = vmatpush2.msra.mxu0 %v20299_v59  ;;  %v19528_v54 = vand.u32 4294901760, %v18344_v61  ;;  %v18388_v59 = vand.u32 4294901760, %v9738_v45 }
 0xa2a   :  { %11042 = vmatpush2.msra.mxu1 %v20300_v62  ;;  %10833 = vmatprep.subr.mxu0 %v20302_v47  ;;  %v20329_v62 = vld [vmem:[#allocation83_spill] sm:$0xff]  ;;  %v20331_v47 = vand.u32 4294901760, %v20330_v20  ;;  %v18452_v20 = vand.u32 4294901760, %v9777_v5 }
 0xa2b   :  { %11044 = vmatprep.subr.mxu1 %v20303_v19  ;;  %10837 = vmatpush2.msra.mxu0 %v20305_v41  ;;  %v18399_v19 = vand.u32 4294901760, %v9783_v35  ;;  %v20333_v41 = vld [vmem:[#allocation85_spill] sm:$0xff]  ;;  %v18434_v53 = vsub.f32 %v18344_v61, %v19528_v54  ;;  %v20368_v54 = vand.u32 4294901760, %v20227_v56  ;;  %v20371_v56 = vand.u32 4294901760, %v20229_v60 }
 0xa2c   :  { %11046 = vmatpush2.msra.mxu1 %v20306_v10  ;;  %10841 = vmatprep.subr.mxu0 %v20308_v14  ;;  %v20335_v10 = vand.u32 4294901760, %v20334_v58  ;;  %v18409_v14 = vsub.f32 %v9741_v63, %v18365_v27  ;;  %v9729_v63 = vld [vmem:[%s19051_s2 + $0xe8] sm:$0xff]  ;;  %v18460_v58 = vsub.f32 %v18363_v31, %v19527_v37  ;;  %v20373_v60 = vand.u32 4294901760, %v20231_v32 }
 0xa2d   :  { %11048 = vmatprep.subr.mxu1 %v20309_v38  ;;  %10845 = vmatpush2.msra.mxu0 %v20311_v9  ;;  %v18411_v38 = vand.u32 4294901760, %v9735_v40  ;;  %v20338_v9 = vld [vmem:[#allocation76_spill] sm:$0xff]  ;;  %v20376_v32 = vand.u32 4294901760, %v20233_v21 }
 0xa2e   :  { %11050 = vmatpush2.msra.mxu1 %v20312_v1  ;;  %10849 = vmatprep.subr.mxu0 %v20314_v7  ;;  %20336 = vst [vmem:[#allocation9_spill] sm:$0xff] %v18409_v14  ;;  %v20339_v1 = vand.u32 4294901760, %v20338_v9  ;;  %v18421_v7 = vsub.f32 %v9786_v29, %v18376_v30  ;;  %v18438_v29 = vsub.f32 %v9738_v45, %v18388_v59  ;;  %v20349_v45 = vld [vmem:[#allocation93_spill] sm:$0xff]  ;;  %v18466_v9 = vand.u32 4294901760, %v9729_v63 }
 0xa2f   :  { %11052 = vmatprep.subr.mxu1 %v20315_v17  ;;  %10853 = vmatpush2.msra.mxu0 %v20317_v15  ;;  %v18423_v17 = vand.u32 4294901760, %v9780_v18  ;;  %v20342_v15 = vld [vmem:[#allocation78_spill] sm:$0xff] }
 0xa30   :  { %11054 = vmatpush2.msra.mxu1 %v20318_v2  ;;  %10857 = vmatprep.subr.mxu0 %v20320_v3  ;;  %20340 = vst [vmem:[#allocation20_spill] sm:$0xff] %v18421_v7  ;;  %v20343_v2 = vand.u32 4294901760, %v20342_v15  ;;  %v19525_v3 = vand.u32 4294901760, %v18386_v26  ;;  %20344 = vst [vmem:[#allocation12_spill] sm:$0xff] %v18438_v29  ;;  %v18526_v37 = vsub.f32 %v9729_v63, %v18466_v9  ;;  %v9723_v63 = vld [vmem:[%s19051_s2 + $0xb8] sm:$0xff] }
 0xa31   :  { %11056 = vmatprep.subr.mxu1 %v20321_v22  ;;  %10861 = vmatpush2.msra.mxu0 %v20323_v34  ;;  %v18440_v22 = vand.u32 4294901760, %v9732_v57  ;;  %v20345_v34 = vld [vmem:[#allocation91_spill] sm:$0xff] }
 0xa32   :  { %11058 = vmatpush2.msra.mxu1 %v20325_v52  ;;  %10865 = vmatprep.subr.mxu0 %v20327_v44  ;;  %v20346_v52 = vld [vmem:[#allocation79_spill] sm:$0xff]  ;;  %v19526_v44 = vand.u32 4294901760, %v18397_v0  ;;  %20367 = vst [vmem:[#allocation10_spill] sm:$0xff] %v18526_v37 }
 0xa33   :  { %11060 = vmatprep.subr.mxu1 %v20329_v62  ;;  %10869 = vmatpush2.msra.mxu0 %v20331_v47  ;;  %v20347_v12 = vand.u32 4294901760, %v20346_v52  ;;  %v18450_v62 = vsub.f32 %v9783_v35, %v18399_v19  ;;  %v20350_v47 = vld [vmem:[#allocation82_spill] sm:$0xff]  ;;  %v9726_v35 = vld [vmem:[%s19051_s2 + $0xd0] sm:$0xff]  ;;  %v18483_v52 = vand.u32 4294901760, %v9774_v28 }
 0xa34   :  { %11062 = vmatpush2.msra.mxu1 %v20333_v41  ;;  %10873 = vmatprep.subr.mxu0 %v20335_v10  ;;  %v20351_v41 = vand.u32 4294901760, %v20350_v47  ;;  %v19530_v10 = vand.u32 4294901760, %v18409_v14 }
 0xa35   :  { %11064 = vmatprep.subr.mxu1 %v20337_v24  ;;  %10877 = vmatpush2.msra.mxu0 %v20339_v1  ;;  %20348 = vst [vmem:[#allocation27_spill] sm:$0xff] %v18450_v62  ;;  %v18464_v24 = vsub.f32 %v9735_v40, %v18411_v38  ;;  %v20353_v1 = vld [vmem:[#allocation96_spill] sm:$0xff]  ;;  %v18481_v40 = vsub.f32 %v9780_v18, %v18423_v17  ;;  %v20361_v18 = vld [vmem:[#allocation99_spill] sm:$0xff] }
 0xa36   :  { %11066 = vmatpush2.msra.mxu1 %v20341_v8  ;;  %10881 = vmatprep.subr.mxu0 %v20343_v2  ;;  %v20354_v8 = vld [vmem:[#allocation84_spill] sm:$0xff]  ;;  %v18477_v2 = vsub.f32 %v18374_v39, %v19524_v49  ;;  %v20362_v49 = vand.u32 4294901760, %v20223_v13  ;;  %v20365_v13 = vld [vmem:[#allocation90_spill] sm:$0xff] }
 0xa37   :  { %11068 = vmatprep.subr.mxu1 %v20345_v34  ;;  %10885 = vmatpush2.msra.mxu0 %v20347_v12  ;;  %20352 = vst [vmem:[#allocation26_spill] sm:$0xff] %v18464_v24  ;;  %v20355_v15 = vand.u32 4294901760, %v20354_v8  ;;  %v19529_v34 = vand.u32 4294901760, %v18421_v7  ;;  %20356 = vst [vmem:[#allocation19_spill] sm:$0xff] %v18481_v40  ;;  %v20357_v12 = vld [vmem:[#allocation97_spill] sm:$0xff]  ;;  %v19531_v8 = vand.u32 4294901760, %v18438_v29 }
 0xa38   :  { %11070 = vmatpush2.msra.mxu1 %v20349_v45  ;;  %10889 = vmatprep.subr.mxu0 %v20351_v41  ;;  %v20358_v45 = vld [vmem:[#allocation86_spill] sm:$0xff]  ;;  %v11325_v41 = vand.u32 4294901760, %v18434_v53  ;;  %v19532_v53 = vand.u32 4294901760, %v18450_v62 }
 0xa39   :  { %11072 = vmatprep.subr.mxu1 %v20353_v1  ;;  %10893 = vmatpush2.msra.mxu0 %v20355_v15  ;;  %v20359_v47 = vand.u32 4294901760, %v20358_v45  ;;  %v18492_v1 = vsub.f32 %v18386_v26, %v19525_v3  ;;  %v18496_v15 = vsub.f32 %v9732_v57, %v18440_v22  ;;  %v18508_v45 = vsub.f32 %v9777_v5, %v18452_v20  ;;  %v9771_v57 = vld [vmem:[%s19051_s2 + $0x238] sm:$0xff] }
 0xa3a   :  { %11074 = vmatpush2.msra.mxu1 %v20357_v12  ;;  %v18504_v12 = vsub.f32 %v18397_v0, %v19526_v44  ;;  %v11213_v3 = vand.u32 4294901760, %v18460_v58  ;;  %v18522_v44 = vsub.f32 %v18409_v14, %v19530_v10  ;;  %v19534_v5 = vand.u32 4294901760, %v18464_v24  ;;  %v9768_v10 = vld [vmem:[%s19051_s2 + $0x220] sm:$0xff] }
 0xa3b   :  { %10897 = vmatprep.subr.mxu0 %v20359_v47  ;;  %20360 = vst [vmem:[#allocation24_spill] sm:$0xff] %v18496_v15  ;;  %11076 = vmatprep.subr.mxu1 %v20361_v18  ;;  %20363 = vst [vmem:[#allocation29_spill] sm:$0xff] %v18508_v45  ;;  %v18510_v47 = vand.u32 4294901760, %v9726_v35  ;;  %v20364_v18 = vld [vmem:[#allocation101_spill] sm:$0xff]  ;;  %v18535_v58 = vsub.f32 %v18421_v7, %v19529_v34  ;;  %v9720_v34 = vld [vmem:[%s19051_s2 + $0xa0] sm:$0xff] }
 0xa3c   :  { %10901 = vmatpush2.msra.mxu0 %v20362_v49  ;;  %11078 = vmatpush2.msra.mxu1 %v20364_v18  ;;  %v20366_v49 = vand.u32 4294901760, %v20365_v13  ;;  %v11332_v18 = vand.u32 4294901760, %v18477_v2  ;;  %v18551_v2 = vsub.f32 %v18438_v29, %v19531_v8  ;;  %v20372_v13 = vld [vmem:[#allocation108_spill] sm:$0xff]  ;;  %v20397_v29 = vld [vmem:[#allocation118_spill] sm:$0xff] }
 0xa3d   :  { %11080 = vmatprep.subr.mxu1 %v20226_v43  ;;  %v20370_v43 = vld [vmem:[#allocation105_spill] sm:$0xff]  ;;  %v18570_v8 = vsub.f32 %v9726_v35, %v18510_v47  ;;  %v18585_v35 = vand.u32 4294901760, %v9723_v63  ;;  %v11346_v21 = vand.u32 4294901760, %v18535_v58  ;;  %v20380_v58 = vand.u32 4294901760, %v18496_v15 }
 0xa3e   :  { %10905 = vmatprep.subr.mxu0 %v20366_v49  ;;  %v18539_v49 = vsub.f32 %v9774_v28, %v18483_v52  ;;  %11082 = vmatpush2.msra.mxu1 %v20370_v43  ;;  %v18554_v28 = vand.u32 4294901760, %v9771_v57  ;;  %v18566_v43 = vsub.f32 %v18450_v62, %v19532_v53  ;;  %v9717_v53 = vld [vmem:[%s19051_s2 + $0x88] sm:$0xff] }
 0xa3f   :  { %10909 = vmatpush2.msra.mxu0 %v20368_v54  ;;  %v11220_v54 = vand.u32 4294901760, %v18492_v1  ;;  %11084 = vmatprep.subr.mxu1 %v20372_v13  ;;  %v11339_v1 = vand.u32 4294901760, %v18504_v12  ;;  %20374 = vst [vmem:[#allocation14_spill] sm:$0xff] %v18570_v8  ;;  %v20375_v13 = vld [vmem:[#allocation109_spill] sm:$0xff]  ;;  %v11227_v12 = vand.u32 4294901760, %v18522_v44  ;;  %v20378_v44 = vand.u32 4294901760, %v18481_v40 }
 0xa40   :  { %20369 = vst [vmem:[#allocation15_spill] sm:$0xff] %v18539_v49  ;;  %10913 = vmatprep.subr.mxu0 %v20371_v56  ;;  %11086 = vmatpush2.msra.mxu1 %v20375_v13  ;;  %v9765_v56 = vld [vmem:[%s19051_s2 + $0x208] sm:$0xff]  ;;  %v18609_v62 = vsub.f32 %v18496_v15, %v20380_v58  ;;  %v9714_v15 = vld [vmem:[%s19051_s2 + $0x70] sm:$0xff] }
 0xa41   :  { %10917 = vmatpush2.msra.mxu0 %v20373_v60  ;;  %v18582_v60 = vsub.f32 %v18464_v24, %v19534_v5  ;;  %11090 = vmatmul.mubr.f32.vlgmr.msra.gmra.mxu1 %v20377_v51  ;;  %v18595_v13 = vsub.f32 %v18481_v40, %v20378_v44  ;;  %v18598_v5 = vand.u32 4294901760, %v9768_v10  ;;  %v20379_v24 = vand.u32 4294901760, %v20235_v48  ;;  %v9762_v40 = vld [vmem:[%s19051_s2 + $0x1f0] sm:$0xff] }
 0xa42   :  { %10921 = vmatprep.subr.mxu0 %v20376_v32  ;;  %12089 = vmatprep.subr.mxu1 %v11325_v41  ;;  %v11234_v41 = vand.u32 4294901760, %v18551_v2  ;;  %v18612_v44 = vsub.f32 %v9771_v57, %v18554_v28  ;;  %v18614_v32 = vand.u32 4294901760, %v9720_v34  ;;  %v20382_v48 = vand.u32 4294901760, %v20236_v42 }
 0xa43   :  { %10925 = vmatpush2.msra.mxu0 %v20379_v24  ;;  %12090 = vmatpush3.msra.mxu1 %v11213_v3  ;;  %v11353_v3 = vand.u32 4294901760, %v18566_v43  ;;  %v20383_v24 = vand.u32 4294901760, %v18508_v45  ;;  %v18629_v58 = vand.u32 4294901760, %v9765_v56  ;;  %v11241_v42 = vand.u32 4294901760, %v18582_v60 }
 0xa44   :  { %20381 = vst [vmem:[#allocation6_spill] sm:$0xff] %v18612_v44  ;;  %11433 = vmatprep.mubr.f32.mxu1 %v18040_v55  ;;  %10929 = vmatprep.subr.mxu0 %v20382_v48  ;;  %v20384_v55 = vand.u32 4294901760, %v20237_v4  ;;  %v20385_v43 = vand.u32 4294901760, %v18526_v37  ;;  %v18645_v57 = vand.u32 4294901760, %v9717_v53  ;;  %v20387_v4 = vand.u32 4294901760, %v20238_v36 }
 0xa45   :  { %v18626_v2 = vsub.f32 %v18508_v45, %v20383_v24  ;;  %12091 = vmatprep.subr.mxu1 %v11332_v18  ;;  %v18643_v24 = vsub.f32 %v9723_v63, %v18585_v35  ;;  %v9759_v45 = vld [vmem:[%s19051_s2 + $0x1d8] sm:$0xff]  ;;  %v20388_v18 = vand.u32 4294901760, %v18539_v49  ;;  %v18659_v63 = vsub.f32 %v9768_v10, %v18598_v5  ;;  %v9756_v10 = vld [vmem:[%s19051_s2 + $0x1c0] sm:$0xff] }
 0xa46   :  { %10933 = vmatpush2.msra.mxu0 %v20384_v55  ;;  %v18640_v48 = vsub.f32 %v18526_v37, %v20385_v43  ;;  %12092 = vmatpush3.msra.mxu1 %v11220_v54  ;;  %v11360_v55 = vand.u32 4294901760, %v18595_v13  ;;  %v18661_v43 = vand.u32 4294901760, %v9762_v40  ;;  %v9711_v37 = vld [vmem:[%s19051_s2 + $0x58] sm:$0xff]  ;;  %v20390_v36 = vand.u32 4294901760, %v20239_v25  ;;  %v9708_v13 = vld [vmem:[%s19051_s2 + $0x40] sm:$0xff] }
 0xa47   :  { %20386 = vst [vmem:[#allocation11_spill] sm:$0xff] %v18643_v24  ;;  %10937 = vmatprep.subr.mxu0 %v20387_v4  ;;  %v18656_v60 = vsub.f32 %v18539_v49, %v20388_v18  ;;  %20389 = vst [vmem:[#allocation23_spill] sm:$0xff] %v18659_v63  ;;  %12093 = vmatprep.subr.mxu1 %v11339_v1  ;;  %v11248_v54 = vand.u32 4294901760, %v18609_v62  ;;  %v18671_v4 = vsub.f32 %v9720_v34, %v18614_v32 }
 0xa48   :  { %10941 = vmatpush2.msra.mxu0 %v20390_v36  ;;  %v18673_v18 = vand.u32 4294901760, %v9714_v15  ;;  %12094 = vmatpush3.msra.mxu1 %v11227_v12  ;;  %v20392_v49 = vand.u32 4294901760, %v20240_v50  ;;  %v11367_v25 = vand.u32 4294901760, %v18626_v2  ;;  %v20393_v1 = vand.u32 4294901760, %v18570_v8 }
 0xa49   :  { %20391 = vst [vmem:[#allocation25_spill] sm:$0xff] %v18671_v4  ;;  %v18687_v34 = vsub.f32 %v9765_v56, %v18629_v58  ;;  %v18689_v36 = vand.u32 4294901760, %v9759_v45  ;;  %12095 = vmatprep.subr.mxu1 %v11346_v21  ;;  %v20394_v50 = vand.u32 4294901760, %v20241_v16  ;;  %v18699_v2 = vsub.f32 %v9717_v53, %v18645_v57  ;;  %v9753_v56 = vld [vmem:[%s19051_s2 + $0x1a8] sm:$0xff] }
 0xa4a   :  { %10945 = vmatprep.subr.mxu0 %v20392_v49  ;;  %v18684_v62 = vsub.f32 %v18570_v8, %v20393_v1  ;;  %v11255_v49 = vand.u32 4294901760, %v18640_v48  ;;  %v18701_v1 = vand.u32 4294901760, %v9711_v37  ;;  %12096 = vmatpush3.msra.mxu1 %v11234_v41  ;;  %v11374_v21 = vand.u32 4294901760, %v18656_v60  ;;  %v9705_v53 = vld [vmem:[%s19051_s2 + $0x28] sm:$0xff]  ;;  %v9750_v8 = vld [vmem:[%s19051_s2 + $0x190] sm:$0xff] }
 0xa4b   :  { %10949 = vmatpush2.msra.mxu0 %v20394_v50  ;;  %20395 = vst [vmem:[#allocation30_spill] sm:$0xff] %v18699_v2  ;;  %v18710_v48 = vsub.f32 %v9762_v40, %v18661_v43  ;;  %v18712_v50 = vand.u32 4294901760, %v9756_v10  ;;  %12097 = vmatprep.subr.mxu1 %v11353_v3  ;;  %v20396_v41 = vand.u32 4294901760, %v18612_v44  ;;  %v18723_v16 = vsub.f32 %v9714_v15, %v18673_v18  ;;  %v9702_v15 = vld [vmem:[%s19051_s2 + $0x10] sm:$0xff] }
 0xa4c   :  { %10953 = vmatmul.mubr.f32.vlgmr.msra.gmra.mxu0 %v20377_v51  ;;  %12054 = vmatprep.subr.mxu0 %v18313_v33  ;;  %v18725_v40 = vand.u32 4294901760, %v9708_v13  ;;  %v11262_v3 = vand.u32 4294901760, %v18684_v62  ;;  %v18737_v60 = vand.u32 4294901760, %v9753_v56  ;;  %v18748_v7 = vsub.f32 %v9711_v37, %v18701_v1 }
 0xa4d   :  { %v11380_v12 = vsub.f32 %v18612_v44, %v20396_v41  ;;  %12055 = vmatpush3.msra.mxu0 %v18327_v23  ;;  %11197 = vmatprep.mubr.f32.mxu0 %v20397_v29  ;;  %v18735_v41 = vsub.f32 %v9759_v45, %v18689_v36  ;;  %v20398_v44 = vand.u32 4294901760, %v18643_v24  ;;  %v18750_v45 = vand.u32 4294901760, %v9705_v53 }
 0xa4e   :  { %12098 = vmatpush3.msra.mxu1 %v11241_v42  ;;  %12056 = vmatprep.subr.mxu0 %v18335_v46  ;;  %v20399_v14 = vand.u32 4294901760, %v18659_v63  ;;  %v18758_v26 = vsub.f32 %v9756_v10, %v18712_v50  ;;  %v20400_v37 = vand.u32 4294901760, %v18671_v4  ;;  %v20401_v0 = vand.u32 4294901760, %v18687_v34 }
 0xa4f   :  { %v11268_v29 = vsub.f32 %v18643_v24, %v20398_v44  ;;  %12099 = vmatprep.subr.mxu1 %v11360_v55  ;;  %12057 = vmatpush3.msra.mxu0 %v18346_v6  ;;  %v18760_v44 = vand.u32 4294901760, %v9750_v8  ;;  %v18768_v24 = vsub.f32 %v9708_v13, %v18725_v40  ;;  %v11381_v10 = vand.u32 4294901760, %v11380_v12 }
 0xa50   :  { %v11387_v42 = vsub.f32 %v18659_v63, %v20399_v14  ;;  %12100 = vmatpush3.msra.mxu1 %v11248_v54  ;;  %12058 = vmatprep.subr.mxu0 %v18354_v11  ;;  %v11275_v55 = vsub.f32 %v18671_v4, %v20400_v37  ;;  %v18770_v14 = vand.u32 4294901760, %v9702_v15  ;;  %v11394_v54 = vsub.f32 %v18687_v34, %v20401_v0 }
 0xa51   :  { %12101 = vmatprep.subr.mxu1 %v11367_v25  ;;  %12059 = vmatpush3.msra.mxu0 %v18365_v27  ;;  %v18778_v39 = vsub.f32 %v9753_v56, %v18737_v60  ;;  %v11269_v13 = vand.u32 4294901760, %v11268_v29  ;;  %v20402_v37 = vand.u32 4294901760, %v18699_v2  ;;  %v18786_v12 = vsub.f32 %v9705_v53, %v18750_v45 }
 0xa52   :  { %12102 = vmatpush3.msra.mxu1 %v11255_v49  ;;  %12060 = vmatprep.subr.mxu0 %v18376_v30  ;;  %v11388_v0 = vand.u32 4294901760, %v11387_v42  ;;  %v20403_v56 = vand.u32 4294901760, %v18710_v48  ;;  %v18794_v29 = vsub.f32 %v9750_v8, %v18760_v44  ;;  %v20404_v53 = vand.u32 4294901760, %v18723_v16 }
 0xa53   :  { %v11282_v25 = vsub.f32 %v18699_v2, %v20402_v37  ;;  %12103 = vmatprep.subr.mxu1 %v11374_v21  ;;  %12061 = vmatpush3.msra.mxu0 %v18388_v59  ;;  %v11276_v37 = vand.u32 4294901760, %v11275_v55  ;;  %v18802_v42 = vsub.f32 %v9702_v15, %v18770_v14  ;;  %v20405_v8 = vand.u32 4294901760, %v18735_v41 }
 0xa54   :  { %v11401_v49 = vsub.f32 %v18710_v48, %v20403_v56  ;;  %12104 = vmatpush3.msra.mxu1 %v11262_v3  ;;  %12062 = vmatprep.subr.mxu0 %v18399_v19  ;;  %v11289_v21 = vsub.f32 %v18723_v16, %v20404_v53  ;;  %v11395_v56 = vand.u32 4294901760, %v11394_v54  ;;  %v20406_v53 = vand.u32 4294901760, %v18748_v7 }
 0xa55   :  { %12105 = vmatprep.subr.mxu1 %v11381_v10  ;;  %12063 = vmatpush3.msra.mxu0 %v18411_v38  ;;  %v11408_v3 = vsub.f32 %v18735_v41, %v20405_v8  ;;  %v11283_v55 = vand.u32 4294901760, %v11282_v25  ;;  %v20407_v54 = vand.u32 4294901760, %v18758_v26  ;;  %v20408_v25 = vand.u32 4294901760, %v18768_v24 }
 0xa56   :  { %12106 = vmatpush3.msra.mxu1 %v11269_v13  ;;  %12064 = vmatprep.subr.mxu0 %v18423_v17  ;;  %v11296_v62 = vsub.f32 %v18748_v7, %v20406_v53  ;;  %v11402_v10 = vand.u32 4294901760, %v11401_v49  ;;  %v11290_v13 = vand.u32 4294901760, %v11289_v21  ;;  %v19571_v15 = vand.u32 4294901760, %v18802_v42 }
 0xa57   :  { %12107 = vmatprep.subr.mxu1 %v11388_v0  ;;  %12065 = vmatpush3.msra.mxu0 %v18440_v22  ;;  %v11415_v8 = vsub.f32 %v18758_v26, %v20407_v54  ;;  %v11303_v53 = vsub.f32 %v18768_v24, %v20408_v25  ;;  %v11409_v0 = vand.u32 4294901760, %v11408_v3  ;;  %v20409_v49 = vand.u32 4294901760, %v18778_v39 }
 0xa58   :  { %12108 = vmatpush3.msra.mxu1 %v11276_v37  ;;  %12066 = vmatprep.subr.mxu0 %v18452_v20  ;;  %v11297_v37 = vand.u32 4294901760, %v11296_v62  ;;  %v20410_v21 = vand.u32 4294901760, %v18786_v12  ;;  %v11317_v62 = vsub.f32 %v18802_v42, %v19571_v15  ;;  %v20430_v15 = vld [vmem:[#allocation11_spill] sm:$0xff] }
 0xa59   :  { %12109 = vmatprep.subr.mxu1 %v11395_v56  ;;  %12067 = vmatpush3.msra.mxu0 %v18466_v9  ;;  %v11422_v54 = vsub.f32 %v18778_v39, %v20409_v49  ;;  %v11416_v25 = vand.u32 4294901760, %v11415_v8  ;;  %v20411_v56 = vand.u32 4294901760, %v18794_v29  ;;  %v11304_v49 = vand.u32 4294901760, %v11303_v53  ;;  %v20413_v53 = vld [vmem:[#allocation119_spill] sm:$0xff] }
 0xa5a   :  { %12110 = vmatpush3.msra.mxu1 %v11283_v55  ;;  %12068 = vmatprep.subr.mxu0 %v18483_v52  ;;  %v11310_v63 = vsub.f32 %v18786_v12, %v20410_v21  ;;  %v20417_v21 = vld [vmem:[#allocation8_spill] sm:$0xff] }
 0xa5b   :  { %12111 = vmatprep.subr.mxu1 %v11402_v10  ;;  %12069 = vmatpush3.msra.mxu0 %v18510_v47  ;;  %v11429_v3 = vsub.f32 %v18794_v29, %v20411_v56  ;;  %v11423_v55 = vand.u32 4294901760, %v11422_v54  ;;  %v20415_v54 = vld [vmem:[#allocation18_spill] sm:$0xff]  ;;  %v20419_v56 = vld [vmem:[#allocation20_spill] sm:$0xff] }
 0xa5c   :  { %12112 = vmatpush3.msra.mxu1 %v11290_v13  ;;  %12070 = vmatprep.subr.mxu0 %v18554_v28  ;;  %v11311_v10 = vand.u32 4294901760, %v11310_v63  ;;  %v11318_v13 = vand.u32 4294901760, %v11317_v62  ;;  %v20412_v63 = vld [vmem:[#allocation117_spill] sm:$0xff]  ;;  %v20422_v62 = vld [vmem:[#allocation26_spill] sm:$0xff] }
 0xa5d   :  { %12113 = vmatprep.subr.mxu1 %v11409_v0  ;;  %12071 = vmatpush3.msra.mxu0 %v18585_v35  ;;  %v11430_v8 = vand.u32 4294901760, %v11429_v3  ;;  %v20414_v0 = vld [vmem:[#allocation115_spill] sm:$0xff]  ;;  %v20420_v3 = vld [vmem:[#allocation12_spill] sm:$0xff] }
 0xa5e   :  { %12114 = vmatpush3.msra.mxu1 %v11297_v37  ;;  %12072 = vmatprep.subr.mxu0 %v18598_v5  ;;  %v20416_v37 = vld [vmem:[#allocation28_spill] sm:$0xff] }
 0xa5f   :  { %12115 = vmatprep.subr.mxu1 %v11416_v25  ;;  %12073 = vmatpush3.msra.mxu0 %v18614_v32  ;;  %v20418_v25 = vld [vmem:[#allocation9_spill] sm:$0xff] }
 0xa60   :  { %12116 = vmatpush3.msra.mxu1 %v11304_v49  ;;  %12074 = vmatprep.subr.mxu0 %v18629_v58  ;;  %v20421_v49 = vld [vmem:[#allocation27_spill] sm:$0xff] }
 0xa61   :  { %12117 = vmatprep.subr.mxu1 %v11423_v55  ;;  %12075 = vmatpush3.msra.mxu0 %v18645_v57  ;;  %v20423_v55 = vld [vmem:[#allocation19_spill] sm:$0xff] }
 0xa62   :  { %12118 = vmatpush3.msra.mxu1 %v11311_v10  ;;  %12076 = vmatprep.subr.mxu0 %v18661_v43  ;;  %v20424_v10 = vld [vmem:[#allocation24_spill] sm:$0xff] }
 0xa63   :  { %12119 = vmatprep.subr.mxu1 %v11430_v8  ;;  %12077 = vmatpush3.msra.mxu0 %v18673_v18  ;;  %v20425_v8 = vld [vmem:[#allocation29_spill] sm:$0xff] }
 0xa64   :  { %12120 = vmatpush3.msra.mxu1 %v11318_v13  ;;  %12078 = vmatprep.subr.mxu0 %v18689_v36  ;;  %v20426_v13 = vld [vmem:[#allocation10_spill] sm:$0xff] }
 0xa65   :  { %11435 = vmatmul.mubr.f32.vlgmr.msra.gmra.mxu1 %v20377_v51  ;;  %12159 = vmatprep.subr.mxu1 %v18313_v33  ;;  %v20431_v51 = vld [vmem:[#allocation23_spill] sm:$0xff] }
 0xa66   :  { %12079 = vmatpush3.msra.mxu0 %v18701_v1  ;;  %12160 = vmatpush3.msra.mxu1 %v18327_v23 }
 0xa67   :  { %11677 = vmatprep.mubr.f32.mxu1 %v20412_v63  ;;  %12080 = vmatprep.subr.mxu0 %v18712_v50  ;;  %v20427_v63 = vld [vmem:[#allocation15_spill] sm:$0xff] }
 0xa68   :  { %12161 = vmatprep.subr.mxu1 %v18335_v46  ;;  %12081 = vmatpush3.msra.mxu0 %v18725_v40 }
 0xa69   :  { %12162 = vmatpush3.msra.mxu1 %v18346_v6  ;;  %12082 = vmatprep.subr.mxu0 %v18737_v60 }
 0xa6a   :  { %12163 = vmatprep.subr.mxu1 %v18354_v11  ;;  %12083 = vmatpush3.msra.mxu0 %v18750_v45 }
 0xa6b   :  { %12164 = vmatpush3.msra.mxu1 %v18365_v27  ;;  %12084 = vmatprep.subr.mxu0 %v18760_v44 }
 0xa6c   :  { %12165 = vmatprep.subr.mxu1 %v18376_v30  ;;  %12085 = vmatpush3.msra.mxu0 %v18770_v14 }
 0xa6d   :  { %12166 = vmatpush3.msra.mxu1 %v18388_v59  ;;  %11203 = vmatmul.mubr.f32.vlgmr.msra.gmra.mxu0 %v20413_v53  ;;  %v20428_v53 = vld [vmem:[#allocation14_spill] sm:$0xff] }
 0xa6e   :  { %12124 = vmatprep.subr.mxu0 %v18344_v61  ;;  %12167 = vmatprep.subr.mxu1 %v18399_v19 }
 0xa6f   :  { %12125 = vmatpush3.msra.mxu0 %v18363_v31  ;;  %11570 = vmatprep.mubr.f32.mxu0 %v20414_v0  ;;  %v20429_v0 = vld [vmem:[#allocation6_spill] sm:$0xff] }
 0xa70   :  { %12168 = vmatpush3.msra.mxu1 %v18411_v38  ;;  %12126 = vmatprep.subr.mxu0 %v20415_v54 }
 0xa71   :  { %12169 = vmatprep.subr.mxu1 %v18423_v17  ;;  %12127 = vmatpush3.msra.mxu0 %v20416_v37 }
 0xa72   :  { %12170 = vmatpush3.msra.mxu1 %v18440_v22  ;;  %12128 = vmatprep.subr.mxu0 %v20417_v21 }
 0xa73   :  { %12171 = vmatprep.subr.mxu1 %v18452_v20  ;;  %12129 = vmatpush3.msra.mxu0 %v20418_v25 }
 0xa74   :  { %12172 = vmatpush3.msra.mxu1 %v18466_v9  ;;  %12130 = vmatprep.subr.mxu0 %v20419_v56 }
 0xa75   :  { %12173 = vmatprep.subr.mxu1 %v18483_v52  ;;  %12131 = vmatpush3.msra.mxu0 %v20420_v3 }
 0xa76   :  { %12174 = vmatpush3.msra.mxu1 %v18510_v47  ;;  %12132 = vmatprep.subr.mxu0 %v20421_v49 }
 0xa77   :  { %12175 = vmatprep.subr.mxu1 %v18554_v28  ;;  %12133 = vmatpush3.msra.mxu0 %v20422_v62 }
 0xa78   :  { %12176 = vmatpush3.msra.mxu1 %v18585_v35  ;;  %12134 = vmatprep.subr.mxu0 %v20423_v55 }
 0xa79   :  { %12177 = vmatprep.subr.mxu1 %v18598_v5  ;;  %12135 = vmatpush3.msra.mxu0 %v20424_v10 }
 0xa7a   :  { %12178 = vmatpush3.msra.mxu1 %v18614_v32  ;;  %12136 = vmatprep.subr.mxu0 %v20425_v8 }
 0xa7b   :  { %12179 = vmatprep.subr.mxu1 %v18629_v58  ;;  %12137 = vmatpush3.msra.mxu0 %v20426_v13 }
 0xa7c   :  { %12180 = vmatpush3.msra.mxu1 %v18645_v57  ;;  %12138 = vmatprep.subr.mxu0 %v20427_v63 }
 0xa7d   :  { %12181 = vmatprep.subr.mxu1 %v18661_v43  ;;  %12139 = vmatpush3.msra.mxu0 %v20428_v53 }
 0xa7e   :  { %12182 = vmatpush3.msra.mxu1 %v18673_v18  ;;  %12140 = vmatprep.subr.mxu0 %v20429_v0 }
 0xa7f   :  { %12183 = vmatprep.subr.mxu1 %v18689_v36  ;;  %12141 = vmatpush3.msra.mxu0 %v20430_v15 }
 0xa80   :  { %12184 = vmatpush3.msra.mxu1 %v18701_v1  ;;  %12142 = vmatprep.subr.mxu0 %v20431_v51 }
 0xa81   :  { %12185 = vmatprep.subr.mxu1 %v18712_v50  ;;  %12143 = vmatpush3.msra.mxu0 %v18671_v4  ;;  %v20432_v4 = vld [vmem:[#allocation116_spill] sm:$0xff] }
 0xa82   :  { %12186 = vmatpush3.msra.mxu1 %v18725_v40  ;;  %12144 = vmatprep.subr.mxu0 %v18687_v34 }
 0xa83   :  { %12187 = vmatprep.subr.mxu1 %v18737_v60  ;;  %12145 = vmatpush3.msra.mxu0 %v18699_v2  ;;  %v20433_v2 = vld [vmem:[#allocation114_spill] sm:$0xff] }
 0xa84   :  { %12188 = vmatpush3.msra.mxu1 %v18750_v45  ;;  %12146 = vmatprep.subr.mxu0 %v18710_v48 }
 0xa85   :  { %12189 = vmatprep.subr.mxu1 %v18760_v44  ;;  %12147 = vmatpush3.msra.mxu0 %v18723_v16 }
 0xa86   :  { %12190 = vmatpush3.msra.mxu1 %v18770_v14  ;;  %12148 = vmatprep.subr.mxu0 %v18735_v41 }
 0xa87   :  { %11681 = vmatmul.mubr.f32.vlgmr.msra.gmra.mxu1 %v20432_v4  ;;  %12229 = vmatprep.subr.mxu1 %v18313_v33  ;;  %v20434_v33 = vld [vmem:[#allocation113_spill] sm:$0xff]  ;;  %v20460_v4 = vand.u32 4294901760, %v18723_v16  ;;  %v20467_v16 = vand.u32 4294901760, %v18786_v12 }
 0xa88   :  { %12149 = vmatpush3.msra.mxu0 %v18748_v7  ;;  %12230 = vmatpush3.msra.mxu1 %v18327_v23  ;;  %v20435_v23 = vand.u32 4294901760, %v18344_v61  ;;  %v20439_v61 = vand.u32 4294901760, %v20417_v21 }
 0xa89   :  { %11951 = vmatprep.mubr.f32.mxu1 %v20433_v2  ;;  %12150 = vmatprep.subr.mxu0 %v18758_v26 }
 0xa8a   :  { %12231 = vmatprep.subr.mxu1 %v18335_v46  ;;  %12151 = vmatpush3.msra.mxu0 %v18768_v24  ;;  %v20436_v46 = vand.u32 4294901760, %v18363_v31  ;;  %v20440_v31 = vand.u32 4294901760, %v20418_v25 }
 0xa8b   :  { %12232 = vmatpush3.msra.mxu1 %v18346_v6  ;;  %12152 = vmatprep.subr.mxu0 %v18778_v39  ;;  %v20437_v6 = vand.u32 4294901760, %v20415_v54 }
 0xa8c   :  { %12233 = vmatprep.subr.mxu1 %v18354_v11  ;;  %12153 = vmatpush3.msra.mxu0 %v18786_v12  ;;  %v20438_v11 = vand.u32 4294901760, %v20416_v37 }
 0xa8d   :  { %12234 = vmatpush3.msra.mxu1 %v18365_v27  ;;  %12154 = vmatprep.subr.mxu0 %v18794_v29  ;;  %v20441_v27 = vand.u32 4294901760, %v20419_v56 }
 0xa8e   :  { %12235 = vmatprep.subr.mxu1 %v18376_v30  ;;  %12155 = vmatpush3.msra.mxu0 %v18802_v42  ;;  %v20442_v30 = vand.u32 4294901760, %v20420_v3 }
 0xa8f   :  { %12236 = vmatpush3.msra.mxu1 %v18388_v59  ;;  %11573 = vmatmul.mubr.f32.vlgmr.msra.gmra.mxu0 %v20434_v33  ;;  %v20443_v59 = vand.u32 4294901760, %v20421_v49 }
 0xa90   :  { %12194 = vmatprep.subr.mxu0 %v20435_v23  ;;  %12237 = vmatprep.subr.mxu1 %v18399_v19  ;;  %v20444_v19 = vand.u32 4294901760, %v20422_v62 }
 0xa91   :  { %12195 = vmatpush3.msra.mxu0 %v20436_v46  ;;  %11847 = vmatprep.mubr.f32.mxu0 %v20433_v2  ;;  %v20464_v2 = vand.u32 4294901760, %v18758_v26  ;;  %v12052_v26 = vld [vmem:[%s19049_s3 + $0x18] ss:$8 sm:$0x7] }
 0xa92   :  { %12238 = vmatpush3.msra.mxu1 %v18411_v38  ;;  %12196 = vmatprep.subr.mxu0 %v20437_v6  ;;  %v20445_v38 = vand.u32 4294901760, %v20423_v55 }
 0xa93   :  { %12239 = vmatprep.subr.mxu1 %v18423_v17  ;;  %12197 = vmatpush3.msra.mxu0 %v20438_v11  ;;  %v20446_v17 = vand.u32 4294901760, %v20424_v10  ;;  %v12053_v10 = vld [vmem:[%s19049_s3 + $0x19] ss:$8 sm:$0x3] }
 0xa94   :  { %12240 = vmatpush3.msra.mxu1 %v18440_v22  ;;  %12198 = vmatprep.subr.mxu0 %v20439_v61  ;;  %v20447_v22 = vand.u32 4294901760, %v20425_v8 }
 0xa95   :  { %12241 = vmatprep.subr.mxu1 %v18452_v20  ;;  %12199 = vmatpush3.msra.mxu0 %v20440_v31  ;;  %v20448_v20 = vand.u32 4294901760, %v20426_v13 }
 0xa96   :  { %12242 = vmatpush3.msra.mxu1 %v18466_v9  ;;  %12200 = vmatprep.subr.mxu0 %v20441_v27  ;;  %v20449_v9 = vand.u32 4294901760, %v20427_v63 }
 0xa97   :  { %12243 = vmatprep.subr.mxu1 %v18483_v52  ;;  %12201 = vmatpush3.msra.mxu0 %v20442_v30  ;;  %v20450_v52 = vand.u32 4294901760, %v20428_v53 }
 0xa98   :  { %12244 = vmatpush3.msra.mxu1 %v18510_v47  ;;  %12202 = vmatprep.subr.mxu0 %v20443_v59  ;;  %v20451_v47 = vand.u32 4294901760, %v20429_v0 }
 0xa99   :  { %12245 = vmatprep.subr.mxu1 %v18554_v28  ;;  %12203 = vmatpush3.msra.mxu0 %v20444_v19  ;;  %v20453_v28 = vand.u32 4294901760, %v20431_v51  ;;  %v20459_v51 = vand.u32 4294901760, %v18710_v48  ;;  %v20466_v48 = vand.u32 4294901760, %v18778_v39  ;;  %v20471_v39 = vld [vmem:[#allocation5_spill] sm:$0xff] }
 0xa9a   :  { %12246 = vmatpush3.msra.mxu1 %v18585_v35  ;;  %12204 = vmatprep.subr.mxu0 %v20445_v38  ;;  %v20454_v35 = vld [vmem:[#allocation25_spill] sm:$0xff]  ;;  %v11985_v11 = vrot.slane %v12053_v10, %v20471_v39 }
 0xa9b   :  { %12247 = vmatprep.subr.mxu1 %v18598_v5  ;;  %12205 = vmatpush3.msra.mxu0 %v20446_v17  ;;  %v20452_v5 = vand.u32 4294901760, %v20430_v15 }
 0xa9c   :  { %12248 = vmatpush3.msra.mxu1 %v18614_v32  ;;  %12206 = vmatprep.subr.mxu0 %v20447_v22  ;;  %v20455_v32 = vand.u32 4294901760, %v20454_v35 }
 0xa9d   :  { %12249 = vmatprep.subr.mxu1 %v18629_v58  ;;  %12207 = vmatpush3.msra.mxu0 %v20448_v20  ;;  %v20457_v58 = vld [vmem:[#allocation30_spill] sm:$0xff] }
 0xa9e   :  { %12250 = vmatpush3.msra.mxu1 %v18645_v57  ;;  %12208 = vmatprep.subr.mxu0 %v20449_v9  ;;  %v20456_v57 = vand.u32 4294901760, %v18687_v34  ;;  %v20462_v34 = vld [vmem:[#allocation112_spill] sm:$0xff]  ;;  %v20472_v9 = vld [vmem:[#allocation21_spill] sm:$0xff] }
 0xa9f   :  { %12251 = vmatprep.subr.mxu1 %v18661_v43  ;;  %12209 = vmatpush3.msra.mxu0 %v20450_v52  ;;  %v20458_v43 = vand.u32 4294901760, %v20457_v58  ;;  %v9808_v52 = vrot.slane %v12052_v26, %v20472_v9 }
 0xaa0   :  { %12252 = vmatpush3.msra.mxu1 %v18673_v18  ;;  %12210 = vmatprep.subr.mxu0 %v20451_v47  ;;  %v20461_v18 = vand.u32 4294901760, %v18735_v41  ;;  %v9804_v41 = vrot.slane %v12052_v26, %v20471_v39 }
 0xaa1   :  { %12253 = vmatprep.subr.mxu1 %v18689_v36  ;;  %12211 = vmatpush3.msra.mxu0 %v20452_v5  ;;  %v20463_v36 = vand.u32 4294901760, %v18748_v7  ;;  %v9952_v7 = vpop.f32.mrf.mxu0 }
 0xaa2   :  { %12254 = vmatpush3.msra.mxu1 %v18701_v1  ;;  %12212 = vmatprep.subr.mxu0 %v20453_v28  ;;  %v20465_v1 = vand.u32 4294901760, %v18768_v24  ;;  %v20470_v24 = vld [vmem:[#allocation4_spill] sm:$0xff] }
 0xaa3   :  { %12255 = vmatprep.subr.mxu1 %v18712_v50  ;;  %12213 = vmatpush3.msra.mxu0 %v20455_v32  ;;  %v20468_v50 = vand.u32 4294901760, %v18794_v29  ;;  %v11981_v0 = vrot.slane %v12053_v10, %v20470_v24 }
 0xaa4   :  { %12256 = vmatpush3.msra.mxu1 %v18725_v40  ;;  %12214 = vmatprep.subr.mxu0 %v20456_v57  ;;  %v9800_v40 = vrot.slane %v12052_v26, %v20470_v24  ;;  %v11976_v24 = vld [vmem:[%s19049_s3 + $0x29] ss:$0 sm:$0xff] }
 0xaa5   :  { %12257 = vmatprep.subr.mxu1 %v18737_v60  ;;  %12215 = vmatpush3.msra.mxu0 %v20458_v43  ;;  %v20469_v60 = vand.u32 4294901760, %v18802_v42 }
 0xaa6   :  { %12258 = vmatpush3.msra.mxu1 %v18750_v45  ;;  %12216 = vmatprep.subr.mxu0 %v20459_v51  ;;  %v10345_v45 = vpop.f32.mrf.mxu1 }
 0xaa7   :  { %12259 = vmatprep.subr.mxu1 %v18760_v44  ;;  %12217 = vmatpush3.msra.mxu0 %v20460_v4  ;;  %v9954_v44 = vpop.f32.mrf.mxu0 }
 0xaa8   :  { %12260 = vmatpush3.msra.mxu1 %v18770_v14  ;;  %12218 = vmatprep.subr.mxu0 %v20461_v18  ;;  %v9953_v14 = vadd.f32 %v9952_v7, %v9800_v40  ;;  %v9955_v29 = vadd.f32 %v9954_v44, %v9804_v41  ;;  %v10347_v15 = vpop.f32.mrf.mxu1 }
 0xaa9   :  { %11953 = vmatmul.mubr.f32.vlgmr.msra.gmra.mxu1 %v20462_v34  ;;  %12219 = vmatpush3.msra.mxu0 %v20463_v36 }
 0xaaa   :  { %12220 = vmatprep.subr.mxu0 %v20464_v2  ;;  %v10346_v54 = vadd.f32 %v10345_v45, %v9953_v14  ;;  %v10348_v25 = vadd.f32 %v10347_v15, %v9955_v29 }
 0xaab   :  { %12221 = vmatpush3.msra.mxu0 %v20465_v1 }
 0xaac   :  { %12222 = vmatprep.subr.mxu0 %v20466_v48 }
 0xaad   :  { %12223 = vmatpush3.msra.mxu0 %v20467_v16 }
 0xaae   :  { %12224 = vmatprep.subr.mxu0 %v20468_v50 }
 0xaaf   :  { %12225 = vmatpush3.msra.mxu0 %v20469_v60 }
 0xab0   :  { %11849 = vmatmul.mubr.f32.vlgmr.msra.gmra.mxu0 %v20462_v34 }
 0xabf   :  { %v10689_v42 = vpop.f32.mrf.mxu1 }
 0xac1   :  { %v10691_v3 = vpop.f32.mrf.mxu1 }
 0xac7   :  { %v10548_v12 = vpop.f32.mrf.mxu0 }
 0xac8   :  { %v10549_v21 = vadd.f32 %v10548_v12, %v10346_v54 }
 0xac9   :  { %v10550_v37 = vpop.f32.mrf.mxu0 }
 0xaca   :  { %v10551_v56 = vadd.f32 %v10550_v37, %v10348_v25  ;;  %v10690_v49 = vadd.f32 %v10689_v42, %v10549_v21 }
 0xacc   :  { %v10692_v13 = vadd.f32 %v10691_v3, %v10551_v56 }
 0xb01   :  { %v11091_v62 = vpop.f32.mrf.mxu1 }
 0xb03   :  { %v11093_v23 = vpop.f32.mrf.mxu1 }
 0xb0c   :  { %v10954_v55 = vpop.f32.mrf.mxu0 }
 0xb0d   :  { %v10955_v8 = vadd.f32 %v10954_v55, %v10690_v49 }
 0xb0e   :  { %v10956_v63 = vpop.f32.mrf.mxu0 }
 0xb0f   :  { %v11092_v53 = vadd.f32 %v11091_v62, %v10955_v8  ;;  %v10957_v33 = vadd.f32 %v10956_v63, %v10692_v13 }
 0xb11   :  { %v11972_v46 = vmax.f32 %v11092_v53, 0.0  ;;  %v11094_v6 = vadd.f32 %v11093_v23, %v10957_v33 }
 0xb13   :  { %v11988_v61 = vmul.f32 %v11981_v0, %v11972_v46  ;;  %v11973_v31 = vmax.f32 %v11094_v6, 0.0 }
 0xb15   :  { %v11989_v27 = vmul.f32 %v11985_v11, %v11973_v31  ;;  %v11991_v30 = vsel %vm11990_vm13, %v11988_v61, 0.0 }
 0xb17   :  { %v11992_v59 = vsel %vm11990_vm13, %v11989_v27, 0.0 }
 0xb18   :  { %v11993_v19 = vadd.f32 %v11992_v59, %v11991_v30 }
 0xb1a   :  { %11994 = vadd.xlane.f32.xlu0 %v11993_v19 }
 0xb25   :  { %v12121_v17 = vpop.f32.mrf.mxu1 }
 0xb27   :  { %v12122_v5 = vpop.f32.mrf.mxu1 }
 0xb28   :  { %v12123_v57 = vadd.f32 %v12122_v5, %v12121_v17 }
 0xb2d   :  { %v12086_v38 = vpop.f32.mrf.mxu0 }
 0xb2f   :  { %v12087_v22 = vpop.f32.mrf.mxu0 }
 0xb30   :  { %v12088_v47 = vadd.f32 %v12087_v22, %v12086_v38 }
 0xb32   :  { %v11205_v32 = vadd.f32 %v12088_v47, %v9808_v52 }
 0xb34   :  { %v11437_v51 = vadd.f32 %v12123_v57, %v11205_v32 }
 0xb47   :  { %v12191_v28 = vpop.f32.mrf.mxu1 }
 0xb49   :  { %v12192_v43 = vpop.f32.mrf.mxu1 }
 0xb4a   :  { %v12193_v36 = vadd.f32 %v12192_v43, %v12191_v28 }
 0xb4f   :  { %v12156_v20 = vpop.f32.mrf.mxu0 }
 0xb51   :  { %v12157_v35 = vpop.f32.mrf.mxu0 }
 0xb52   :  { %v12158_v58 = vadd.f32 %v12157_v35, %v12156_v20 }
 0xb54   :  { %v11575_v18 = vadd.f32 %v12158_v58, %v11437_v51 }
 0xb56   :  { %v11683_v48 = vadd.f32 %v12193_v36, %v11575_v18 }
 0xb69   :  { %v12261_v4 = vpop.f32.mrf.mxu1 }
 0xb6b   :  { %v12262_v2 = vpop.f32.mrf.mxu1 }
 0xb6c   :  { %v12263_v50 = vadd.f32 %v12262_v2, %v12261_v4 }
 0xb70   :  { %v12226_v34 = vpop.f32.mrf.mxu0 }
 0xb72   :  { %v12227_v1 = vpop.f32.mrf.mxu0 }
 0xb73   :  { %v12228_v16 = vadd.f32 %v12227_v1, %v12226_v34 }
 0xb75   :  { %v11851_v60 = vadd.f32 %v12228_v16, %v11683_v48 }
 0xb77   :  { %v11955_v26 = vadd.f32 %v12263_v50, %v11851_v60 }
 0xb79   :  { %v11959_v7 = vsel %vm11958_vm14, %v11955_v26, -inf }
 0xb7a   :  { %11960 = vmax.xlane.f32.xlu1 %v11959_v7 }
 0xba3   :  { %v11995_v40 = vpop.xlane.xlu0 %11994 }
 0xba4   :  { %v11996_v39 = vadd.f32 %v11995_v40, %v11976_v24 }
 0xba6   :  { %12287 = vtanh.f32 %v11996_v39 }
 0xbb3   :  { %v12288_v41 = vpop.eup %12287 }
 0xbb4   :  { %11999 = vrot.lane.b32.xlu1 %v12288_v41, %s12308_s8 }
 0xc03   :  { %v11961_v45 = vpop.xlane.xlu1 %11960 }
 0xc04   :  { %v11962_v44 = vsub.f32 %v11955_v26, %v11961_v45 }
 0xc06   :  { %v11963_v14 = vmul.f32 1.442695, %v11962_v44 }
 0xc08   :  { %12289 = vpow2.f32 %v11963_v14 }
 0xc15   :  { %v12290_v12 = vpop.eup %12289 }
 0xc16   :  { %v11965_v29 = vsel %vm11958_vm14, %v12290_v12, 0.0 }
 0xc17   :  { %11966 = vadd.xlane.f32.xlu0 %v11965_v29 }
 0xc26   :  { %v12000_v21 = vpop.permute.xlu1 %11999 }
 0xca0   :  { %v11967_v15 = vpop.xlane.xlu0 %11966 }
 0xca1   :  { %12291 = vlog2.f32 %v11967_v15 }
 0xcae   :  { %v12292_v54 = vpop.eup %12291 }
 0xcaf   :  { %v11969_v42 = vmul.f32 0.6931472, %v12292_v54 }
 0xcb1   :  { %v11970_v37 = vsub.f32 %v11962_v44, %v11969_v42 }
 0xcb3   :  { %11971 = vst.msk [vmem:[%s19052_s4] sm:$0x3] %vm11958_vm14, %v11970_v37 }
 0xcb4   :  { %12003 = vst.msk [vmem:[%s19052_s4 - $0x2] sm:$0xc] %vm12002_vm15, %v12000_v21 }

</bundles_post_ra>
